<compile_context>
chip_gen: v6e
topology: v6e:2x2x1
jax: 0.10.0
libtpu: 0.0.40
codegen_flags: <defaults>
</compile_context>

<pallas_src>
import functools
import math

import jax
import jax.numpy as jnp
from jax import lax
from jax.experimental import pallas as pl
from jax.experimental.pallas import tpu as pltpu

INPUT_SIZE = 110
HIDDEN = 128
NUM_LAYERS = 5
TIME_BLOCK = 64  # timesteps processed per grid step (capped to padded seq len)


def _gru_stack_kernel(x_ref, wih_ref, whh_ref, bgi_ref, bhn_ref, y_ref,
                      h_ref, xbuf_ref, gi_ref, *, bp, tb):
    """Fused 5-layer GRU over one block of `tb` timesteps.

    x_ref   : (tb, bp, 128)   f32  layer-0 input block (time-major, padded)
    wih_ref : (L, 128, 3H)    bf16 input weights, gate order r|z|n
    whh_ref : (L, H, 3H)      bf16 hidden weights
    bgi_ref : (L, 1, 3H)      f32  b_ih + [b_hr, b_hz, 0]   (folded)
    bhn_ref : (L, 1, H)       f32  b_hn
    y_ref   : (tb, bp, H)     f32  top-layer output block
    h_ref   : (L, bp, H)  scratch  per-layer hidden state (persists over grid)
    xbuf_ref: (tb, bp, H) scratch  inter-layer activations within the block
    gi_ref  : (tb, bp, 3H) scratch staged input projection for current layer
    """
    H = HIDDEN

    @pl.when(pl.program_id(0) == 0)
    def _init():
        h_ref[...] = jnp.zeros_like(h_ref)

    for l in range(NUM_LAYERS):
        # Input to layer l over the whole time block (layer 0 reads the real
        # input; layers > 0 read the previous layer's output held in VMEM).
        src = x_ref[...] if l == 0 else xbuf_ref[...]      # (tb, bp, d)
        d_in = src.shape[-1]

        # Hoisted input projection: one (tb*bp, d) x (d, 3H) bf16 MXU matmul
        # per layer per block; biases (b_ih + b_hh[r,z]) folded in once.
        src2d = src.reshape(tb * bp, d_in).astype(jnp.bfloat16)
        gi = jnp.dot(src2d, wih_ref[l],
                     preferred_element_type=jnp.float32) + bgi_ref[l]
        gi_ref[...] = gi.reshape(tb, bp, 3 * H)

        wh = whh_ref[l]                                    # (H, 3H) bf16
        bhn = jnp.broadcast_to(bhn_ref[l], (bp, H))        # hoisted broadcast
        dst_ref = y_ref if l == NUM_LAYERS - 1 else xbuf_ref

        def step(t, h, wh=wh, bhn=bhn, dst_ref=dst_ref):
            g = gi_ref[t]                                  # (bp, 3H) f32
            gh = jnp.dot(h.astype(jnp.bfloat16), wh,
                         preferred_element_type=jnp.float32)
            r = jax.nn.sigmoid(g[:, 0:H] + gh[:, 0:H])
            z = jax.nn.sigmoid(g[:, H:2 * H] + gh[:, H:2 * H])
            n = jnp.tanh(g[:, 2 * H:] + r * (gh[:, 2 * H:] + bhn))
            h_new = n + z * (h - n)                        # == (1-z)*n + z*h
            dst_ref[t] = h_new
            return h_new

        h = lax.fori_loop(0, tb, step, h_ref[l], unroll=8)
        h_ref[l] = h


def gru_stack(x, params, *, tb):
    """x: (T_pad, B_pad, 128) time-major padded input -> (T_pad, B_pad, H)."""
    t_pad, b_pad, d_pad = x.shape
    H = HIDDEN
    L = NUM_LAYERS
    g3 = 3 * H
    grid = (t_pad // tb,)

    # Fold b_hh for the r/z gates into the hoisted-gi bias; keep b_hn separate
    # (it must be added inside r * (...)).
    bih = params["bih"].astype(jnp.float32)
    bhh = params["bhh"].astype(jnp.float32)
    bias_gi = bih.at[:, :, :2 * H].add(bhh[:, :, :2 * H])   # (L, 1, 3H)
    bias_hn = bhh[:, :, 2 * H:]                             # (L, 1, H)

    wih = params["wih"].astype(jnp.bfloat16)                # (L, 128, 3H)
    whh = params["whh"].astype(jnp.bfloat16)                # (L, H, 3H)

    kernel = functools.partial(_gru_stack_kernel, bp=b_pad, tb=tb)
    return pl.pallas_call(
        kernel,
        out_shape=jax.ShapeDtypeStruct((t_pad, b_pad, H), jnp.float32),
        grid_spec=pltpu.PrefetchScalarGridSpec(
            num_scalar_prefetch=0,
            grid=grid,
            in_specs=[
                pl.BlockSpec((tb, b_pad, d_pad), lambda i: (i, 0, 0)),  # input
                pl.BlockSpec((L, d_pad, g3), lambda i: (0, 0, 0)),      # W_ih
                pl.BlockSpec((L, H, g3), lambda i: (0, 0, 0)),          # W_hh
                pl.BlockSpec((L, 1, g3), lambda i: (0, 0, 0)),          # bias_gi
                pl.BlockSpec((L, 1, H), lambda i: (0, 0, 0)),           # bias_hn
            ],
            out_specs=pl.BlockSpec((tb, b_pad, H), lambda i: (i, 0, 0)),
            scratch_shapes=[
                pltpu.VMEM((L, b_pad, H), jnp.float32),    # hidden states
                pltpu.VMEM((tb, b_pad, H), jnp.float32),   # inter-layer acts
                pltpu.VMEM((tb, b_pad, g3), jnp.float32),  # staged gi
            ],
        ),
        compiler_params=pltpu.CompilerParams(
            # Sequential recurrence over time: h_ref carries across grid steps,
            # so this axis must stay "arbitrary" (never megacore-sharded).
            dimension_semantics=("arbitrary",)),
    )(x, wih, whh, bias_gi, bias_hn)


def init_gru_params(key, num_layers=NUM_LAYERS, input_size=INPUT_SIZE,
                    hidden=HIDDEN):
    """PyTorch nn.GRU-shaped init (uniform +-1/sqrt(H)), stored transposed for
    x @ W, stacked over layers, layer-0 input dim zero-padded to `hidden`.
    Weights are stored bf16 (MXU operands); biases stay f32."""
    bound = 1.0 / math.sqrt(hidden)
    wih_l, whh_l, bih_l, bhh_l = [], [], [], []
    for layer in range(num_layers):
        d_in = input_size if layer == 0 else hidden
        key, k1, k2, k3, k4 = jax.random.split(key, 5)
        w_ih = jax.random.uniform(k1, (3 * hidden, d_in), jnp.float32,
                                  -bound, bound).T          # (d_in, 3H)
        w_hh = jax.random.uniform(k2, (3 * hidden, hidden), jnp.float32,
                                  -bound, bound).T          # (H, 3H)
        b_ih = jax.random.uniform(k3, (3 * hidden,), jnp.float32, -bound, bound)
        b_hh = jax.random.uniform(k4, (3 * hidden,), jnp.float32, -bound, bound)
        if d_in < hidden:  # zero-pad contraction rows: math unchanged
            w_ih = jnp.pad(w_ih, ((0, hidden - d_in), (0, 0)))
        wih_l.append(w_ih)
        whh_l.append(w_hh)
        bih_l.append(b_ih.reshape(1, 3 * hidden))
        bhh_l.append(b_hh.reshape(1, 3 * hidden))
    return dict(
        wih=jnp.stack(wih_l).astype(jnp.bfloat16),   # (L, 128, 3H)
        whh=jnp.stack(whh_l).astype(jnp.bfloat16),   # (L, 128, 3H)
        bih=jnp.stack(bih_l),                        # (L, 1, 3H) f32
        bhh=jnp.stack(bhh_l),                        # (L, 1, 3H) f32
    )


def _round_up(x, m):
    return -(-x // m) * m


def rnn_forward(matrix_btd, params, tb=TIME_BLOCK):
    """Equivalent of RNN.forward: matrix (B, T, 110) -> (B, T, 128)."""
    B, T, D = matrix_btd.shape
    H = HIDDEN
    x = jnp.transpose(matrix_btd, (1, 0, 2)).astype(jnp.float32)  # (T, B, D)
    if D < H:  # lane-pad features to 128 (matches zero-padded W_ih rows)
        x = jnp.pad(x, ((0, 0), (0, 0), (0, H - D)))
    b_pad = max(8, _round_up(B, 8))          # sublane-pad the batch dim
    if b_pad != B:
        x = jnp.pad(x, ((0, 0), (0, b_pad - B), (0, 0)))
    tb = min(tb, max(8, _round_up(T, 8)))    # don't over-block tiny sequences
    t_pad = _round_up(T, tb)
    if t_pad != T:  # zero-pad time; padded steps run but are sliced off below
        x = jnp.pad(x, ((0, t_pad - T), (0, 0), (0, 0)))
    y = gru_stack(x, params, tb=tb)          # (t_pad, b_pad, H)
    y = y[:T, :B]
    return jnp.transpose(y, (1, 0, 2))       # (B, T, H)


def rnn_reference(matrix_btd, params):
    """Pure-JAX (lax.scan, f32 math) GRU reference using the same params."""
    B, T, D = matrix_btd.shape
    H = HIDDEN
    x = jnp.transpose(matrix_btd, (1, 0, 2)).astype(jnp.float32)
    x = jnp.pad(x, ((0, 0), (0, 0), (0, H - D)))
    for l in range(NUM_LAYERS):
        wih = params["wih"][l].astype(jnp.float32)
        whh = params["whh"][l].astype(jnp.float32)
        bih, bhh = params["bih"][l], params["bhh"][l]

        def step(h, xt, wih=wih, whh=whh, bih=bih, bhh=bhh):
            gi = xt @ wih + bih
            gh = h @ whh + bhh
            r = jax.nn.sigmoid(gi[:, 0:H] + gh[:, 0:H])
            z = jax.nn.sigmoid(gi[:, H:2 * H] + gh[:, H:2 * H])
            n = jnp.tanh(gi[:, 2 * H:] + r * gh[:, 2 * H:])
            h = (1.0 - z) * n + z * h
            return h, h

        _, x = jax.lax.scan(step, jnp.zeros((B, H), jnp.float32), x)
    return jnp.transpose(x, (1, 0, 2))


if __name__ == "__main__":
    key = jax.random.PRNGKey(0)
    k_in, k_par = jax.random.split(key)

    B, T = 2, 8
    matrix = jax.random.normal(k_in, (B, T, INPUT_SIZE), jnp.float32)
    params = init_gru_params(k_par)

    fwd = jax.jit(rnn_forward)
    out = jax.block_until_ready(fwd(matrix, params))

    assert out.shape == (B, T, HIDDEN), out.shape
    assert bool(jnp.all(jnp.isfinite(out)))

    ref = rnn_reference(matrix, params)
    err = float(jnp.max(jnp.abs(out - ref)))
    assert err < 5e-2, f"max abs diff vs reference too large: {err}"

    print("KERNEL_OK")
</pallas_src>

<mosaic_0001>
module attributes {stable_mosaic.version = 11 : i64} {
  func.func @_gru_stack_kernel(%arg0: i32, %arg1: memref<8x8x128xf32, #tpu.memory_space<vmem>>, %arg2: memref<5x128x384xbf16, #tpu.memory_space<vmem>>, %arg3: memref<5x128x384xbf16, #tpu.memory_space<vmem>>, %arg4: memref<5x1x384xf32, #tpu.memory_space<vmem>>, %arg5: memref<5x1x128xf32, #tpu.memory_space<vmem>>, %arg6: memref<8x8x128xf32, #tpu.memory_space<vmem>>, %arg7: memref<5x8x128xf32, #tpu.memory_space<vmem>>, %arg8: memref<8x8x128xf32, #tpu.memory_space<vmem>>, %arg9: memref<8x8x384xf32, #tpu.memory_space<vmem>>) attributes {dimension_semantics = [#tpu.dimension_semantics<arbitrary>], iteration_bounds = array<i64: 1>, scalar_prefetch = 0 : i64, scratch_operands = 3 : i64, tpu.core_type = #tpu.core_type<tc>, window_params = [{transform_indices = @transform_0, window_bounds = array<i64: 8, 8, 128>}, {pipeline_mode = #tpu.pipeline_mode<synchronous>, transform_indices = @transform_1, window_bounds = array<i64: 5, 128, 384>}, {pipeline_mode = #tpu.pipeline_mode<synchronous>, transform_indices = @transform_2, window_bounds = array<i64: 5, 128, 384>}, {pipeline_mode = #tpu.pipeline_mode<synchronous>, transform_indices = @transform_3, window_bounds = array<i64: 5, 1, 384>}, {pipeline_mode = #tpu.pipeline_mode<synchronous>, transform_indices = @transform_4, window_bounds = array<i64: 5, 1, 128>}, {transform_indices = @transform_5, window_bounds = array<i64: 8, 8, 128>}]} {
    %c0_i32 = arith.constant 0 : i32
    %0 = arith.cmpi eq, %arg0, %c0_i32 : i32
    %1 = arith.extui %0 : i1 to i32
    %c0_i32_0 = arith.constant 0 : i32
    %2 = arith.cmpi ne, %1, %c0_i32_0 : i32
    scf.if %2 {
      %cst_437 = arith.constant 0.000000e+00 : f32
      %1478 = vector.broadcast %cst_437 : f32 to vector<5x8x128xf32>
      %c0_438 = arith.constant 0 : index
      %c0_439 = arith.constant 0 : index
      %c0_440 = arith.constant 0 : index
      %1479 = vector.load %arg7[%c0_438, %c0_439, %c0_440] : memref<5x8x128xf32, #tpu.memory_space<vmem>>, vector<5x8x128xf32>
      tpu.vector_store %arg7[%c0_438, %c0_439, %c0_440], %1478 {strides = array<i32>} : memref<5x8x128xf32, #tpu.memory_space<vmem>>, vector<5x8x128xf32>,
    } else {
    }
    %c0 = arith.constant 0 : index
    %c0_1 = arith.constant 0 : index
    %c0_2 = arith.constant 0 : index
    %3 = vector.load %arg1[%c0, %c0_1, %c0_2] : memref<8x8x128xf32, #tpu.memory_space<vmem>>, vector<8x8x128xf32>
    %4 = vector.shape_cast %3 : vector<8x8x128xf32> to vector<64x128xf32>
    %5 = arith.truncf %4 : vector<64x128xf32> to vector<64x128xbf16>
    %c0_3 = arith.constant 0 : index
    %c0_4 = arith.constant 0 : index
    %c0_5 = arith.constant 0 : index
    %6 = vector.load %arg2[%c0_3, %c0_4, %c0_5] : memref<5x128x384xbf16, #tpu.memory_space<vmem>>, vector<1x128x384xbf16>
    %7 = vector.shape_cast %6 : vector<1x128x384xbf16> to vector<128x384xbf16>
    %cst = arith.constant dense<0.000000e+00> : vector<64x384xf32>
    %8 = tpu.matmul %5, %7, %cst {dimension_numbers = #tpu.dot_dimension_numbers<[1], [0], [0], [1], [0, 0, 1, 1], [], []>} : vector<64x128xbf16>, vector<128x384xbf16>, vector<64x384xf32> -> vector<64x384xf32>
    %c0_6 = arith.constant 0 : index
    %c0_7 = arith.constant 0 : index
    %c0_8 = arith.constant 0 : index
    %9 = vector.load %arg4[%c0_6, %c0_7, %c0_8] : memref<5x1x384xf32, #tpu.memory_space<vmem>>, vector<1x1x384xf32>
    %10 = vector.shape_cast %9 : vector<1x1x384xf32> to vector<1x384xf32>
    %11 = vector.broadcast %10 : vector<1x384xf32> to vector<64x384xf32>
    %12 = arith.addf %8, %11 : vector<64x384xf32>
    %13 = vector.shape_cast %12 : vector<64x384xf32> to vector<8x8x384xf32>
    %c0_9 = arith.constant 0 : index
    %c0_10 = arith.constant 0 : index
    %c0_11 = arith.constant 0 : index
    %14 = vector.load %arg9[%c0_9, %c0_10, %c0_11] : memref<8x8x384xf32, #tpu.memory_space<vmem>>, vector<8x8x384xf32>
    tpu.vector_store %arg9[%c0_9, %c0_10, %c0_11], %13 {strides = array<i32>} : memref<8x8x384xf32, #tpu.memory_space<vmem>>, vector<8x8x384xf32>,
    %c0_12 = arith.constant 0 : index
    %c0_13 = arith.constant 0 : index
    %c0_14 = arith.constant 0 : index
    %15 = vector.load %arg3[%c0_12, %c0_13, %c0_14] : memref<5x128x384xbf16, #tpu.memory_space<vmem>>, vector<1x128x384xbf16>
    %16 = vector.shape_cast %15 : vector<1x128x384xbf16> to vector<128x384xbf16>
    %c0_15 = arith.constant 0 : index
    %c0_16 = arith.constant 0 : index
    %c0_17 = arith.constant 0 : index
    %17 = vector.load %arg5[%c0_15, %c0_16, %c0_17] : memref<5x1x128xf32, #tpu.memory_space<vmem>>, vector<1x1x128xf32>
    %18 = vector.shape_cast %17 : vector<1x1x128xf32> to vector<1x128xf32>
    %19 = vector.shape_cast %18 : vector<1x128xf32> to vector<1x128xf32>
    %20 = vector.broadcast %19 : vector<1x128xf32> to vector<8x128xf32>
    %c0_18 = arith.constant 0 : index
    %c0_19 = arith.constant 0 : index
    %c0_20 = arith.constant 0 : index
    %21 = vector.load %arg7[%c0_18, %c0_19, %c0_20] : memref<5x8x128xf32, #tpu.memory_space<vmem>>, vector<1x8x128xf32>
    %22 = vector.shape_cast %21 : vector<1x8x128xf32> to vector<8x128xf32>
    %c0_i32_21 = arith.constant 0 : i32
    %23 = arith.index_cast %c0_i32_21 : i32 to index
    %c0_22 = arith.constant 0 : index
    %c0_23 = arith.constant 0 : index
    %24 = vector.load %arg9[%23, %c0_22, %c0_23] : memref<8x8x384xf32, #tpu.memory_space<vmem>>, vector<1x8x384xf32>
    %25 = vector.shape_cast %24 : vector<1x8x384xf32> to vector<8x384xf32>
    %26 = arith.truncf %22 : vector<8x128xf32> to vector<8x128xbf16>
    %cst_24 = arith.constant dense<0.000000e+00> : vector<8x384xf32>
    %27 = tpu.matmul %26, %16, %cst_24 {dimension_numbers = #tpu.dot_dimension_numbers<[1], [0], [0], [1], [0, 0, 1, 1], [], []>} : vector<8x128xbf16>, vector<128x384xbf16>, vector<8x384xf32> -> vector<8x384xf32>
    %28 = vector.extract_strided_slice %25 {offsets = [0, 0], sizes = [8, 128], strides = [1, 1]} : vector<8x384xf32> to vector<8x128xf32>
    %29 = vector.extract_strided_slice %27 {offsets = [0, 0], sizes = [8, 128], strides = [1, 1]} : vector<8x384xf32> to vector<8x128xf32>
    %30 = arith.addf %28, %29 : vector<8x128xf32>
    %31 = arith.negf %30 : vector<8x128xf32>
    %32 = math.exp %31 : vector<8x128xf32>
    %cst_25 = arith.constant 1.000000e+00 : f32
    %33 = vector.broadcast %cst_25 : f32 to vector<8x128xf32>
    %34 = arith.addf %33, %32 : vector<8x128xf32>
    %35 = arith.divf %33, %34 : vector<8x128xf32>
    %36 = vector.extract_strided_slice %25 {offsets = [0, 128], sizes = [8, 128], strides = [1, 1]} : vector<8x384xf32> to vector<8x128xf32>
    %37 = vector.extract_strided_slice %27 {offsets = [0, 128], sizes = [8, 128], strides = [1, 1]} : vector<8x384xf32> to vector<8x128xf32>
    %38 = arith.addf %36, %37 : vector<8x128xf32>
    %39 = arith.negf %38 : vector<8x128xf32>
    %40 = math.exp %39 : vector<8x128xf32>
    %cst_26 = arith.constant 1.000000e+00 : f32
    %41 = vector.broadcast %cst_26 : f32 to vector<8x128xf32>
    %42 = arith.addf %41, %40 : vector<8x128xf32>
    %43 = arith.divf %41, %42 : vector<8x128xf32>
    %44 = vector.extract_strided_slice %25 {offsets = [0, 256], sizes = [8, 128], strides = [1, 1]} : vector<8x384xf32> to vector<8x128xf32>
    %45 = vector.extract_strided_slice %27 {offsets = [0, 256], sizes = [8, 128], strides = [1, 1]} : vector<8x384xf32> to vector<8x128xf32>
    %46 = arith.addf %45, %20 : vector<8x128xf32>
    %47 = arith.mulf %35, %46 : vector<8x128xf32>
    %48 = arith.addf %44, %47 : vector<8x128xf32>
    %49 = math.tanh %48 : vector<8x128xf32>
    %50 = arith.subf %22, %49 : vector<8x128xf32>
    %51 = arith.mulf %43, %50 : vector<8x128xf32>
    %52 = arith.addf %49, %51 : vector<8x128xf32>
    %53 = arith.index_cast %c0_i32_21 : i32 to index
    %c0_27 = arith.constant 0 : index
    %c0_28 = arith.constant 0 : index
    %54 = vector.load %arg8[%53, %c0_27, %c0_28] : memref<8x8x128xf32, #tpu.memory_space<vmem>>, vector<1x8x128xf32>
    %55 = vector.shape_cast %54 : vector<1x8x128xf32> to vector<8x128xf32>
    %56 = vector.shape_cast %52 : vector<8x128xf32> to vector<1x8x128xf32>
    tpu.vector_store %arg8[%53, %c0_27, %c0_28], %56 {strides = array<i32>} : memref<8x8x128xf32, #tpu.memory_space<vmem>>, vector<1x8x128xf32>,
    %c1_i32 = arith.constant 1 : i32
    %57 = arith.index_cast %c1_i32 : i32 to index
    %c0_29 = arith.constant 0 : index
    %c0_30 = arith.constant 0 : index
    %58 = vector.load %arg9[%57, %c0_29, %c0_30] : memref<8x8x384xf32, #tpu.memory_space<vmem>>, vector<1x8x384xf32>
    %59 = vector.shape_cast %58 : vector<1x8x384xf32> to vector<8x384xf32>
    %60 = arith.truncf %52 : vector<8x128xf32> to vector<8x128xbf16>
    %cst_31 = arith.constant dense<0.000000e+00> : vector<8x384xf32>
    %61 = tpu.matmul %60, %16, %cst_31 {dimension_numbers = #tpu.dot_dimension_numbers<[1], [0], [0], [1], [0, 0, 1, 1], [], []>} : vector<8x128xbf16>, vector<128x384xbf16>, vector<8x384xf32> -> vector<8x384xf32>
    %62 = vector.extract_strided_slice %59 {offsets = [0, 0], sizes = [8, 128], strides = [1, 1]} : vector<8x384xf32> to vector<8x128xf32>
    %63 = vector.extract_strided_slice %61 {offsets = [0, 0], sizes = [8, 128], strides = [1, 1]} : vector<8x384xf32> to vector<8x128xf32>
    %64 = arith.addf %62, %63 : vector<8x128xf32>
    %65 = arith.negf %64 : vector<8x128xf32>
    %66 = math.exp %65 : vector<8x128xf32>
    %cst_32 = arith.constant 1.000000e+00 : f32
    %67 = vector.broadcast %cst_32 : f32 to vector<8x128xf32>
    %68 = arith.addf %67, %66 : vector<8x128xf32>
    %69 = arith.divf %67, %68 : vector<8x128xf32>
    %70 = vector.extract_strided_slice %59 {offsets = [0, 128], sizes = [8, 128], strides = [1, 1]} : vector<8x384xf32> to vector<8x128xf32>
    %71 = vector.extract_strided_slice %61 {offsets = [0, 128], sizes = [8, 128], strides = [1, 1]} : vector<8x384xf32> to vector<8x128xf32>
    %72 = arith.addf %70, %71 : vector<8x128xf32>
    %73 = arith.negf %72 : vector<8x128xf32>
    %74 = math.exp %73 : vector<8x128xf32>
    %cst_33 = arith.constant 1.000000e+00 : f32
    %75 = vector.broadcast %cst_33 : f32 to vector<8x128xf32>
    %76 = arith.addf %75, %74 : vector<8x128xf32>
    %77 = arith.divf %75, %76 : vector<8x128xf32>
    %78 = vector.extract_strided_slice %59 {offsets = [0, 256], sizes = [8, 128], strides = [1, 1]} : vector<8x384xf32> to vector<8x128xf32>
    %79 = vector.extract_strided_slice %61 {offsets = [0, 256], sizes = [8, 128], strides = [1, 1]} : vector<8x384xf32> to vector<8x128xf32>
    %80 = arith.addf %79, %20 : vector<8x128xf32>
    %81 = arith.mulf %69, %80 : vector<8x128xf32>
    %82 = arith.addf %78, %81 : vector<8x128xf32>
    %83 = math.tanh %82 : vector<8x128xf32>
    %84 = arith.subf %52, %83 : vector<8x128xf32>
    %85 = arith.mulf %77, %84 : vector<8x128xf32>
    %86 = arith.addf %83, %85 : vector<8x128xf32>
    %87 = arith.index_cast %c1_i32 : i32 to index
    %c0_34 = arith.constant 0 : index
    %c0_35 = arith.constant 0 : index
    %88 = vector.load %arg8[%87, %c0_34, %c0_35] : memref<8x8x128xf32, #tpu.memory_space<vmem>>, vector<1x8x128xf32>
    %89 = vector.shape_cast %88 : vector<1x8x128xf32> to vector<8x128xf32>
    %90 = vector.shape_cast %86 : vector<8x128xf32> to vector<1x8x128xf32>
    tpu.vector_store %arg8[%87, %c0_34, %c0_35], %90 {strides = array<i32>} : memref<8x8x128xf32, #tpu.memory_space<vmem>>, vector<1x8x128xf32>,
    %c2_i32 = arith.constant 2 : i32
    %91 = arith.index_cast %c2_i32 : i32 to index
    %c0_36 = arith.constant 0 : index
    %c0_37 = arith.constant 0 : index
    %92 = vector.load %arg9[%91, %c0_36, %c0_37] : memref<8x8x384xf32, #tpu.memory_space<vmem>>, vector<1x8x384xf32>
    %93 = vector.shape_cast %92 : vector<1x8x384xf32> to vector<8x384xf32>
    %94 = arith.truncf %86 : vector<8x128xf32> to vector<8x128xbf16>
    %cst_38 = arith.constant dense<0.000000e+00> : vector<8x384xf32>
    %95 = tpu.matmul %94, %16, %cst_38 {dimension_numbers = #tpu.dot_dimension_numbers<[1], [0], [0], [1], [0, 0, 1, 1], [], []>} : vector<8x128xbf16>, vector<128x384xbf16>, vector<8x384xf32> -> vector<8x384xf32>
    %96 = vector.extract_strided_slice %93 {offsets = [0, 0], sizes = [8, 128], strides = [1, 1]} : vector<8x384xf32> to vector<8x128xf32>
    %97 = vector.extract_strided_slice %95 {offsets = [0, 0], sizes = [8, 128], strides = [1, 1]} : vector<8x384xf32> to vector<8x128xf32>
    %98 = arith.addf %96, %97 : vector<8x128xf32>
    %99 = arith.negf %98 : vector<8x128xf32>
    %100 = math.exp %99 : vector<8x128xf32>
    %cst_39 = arith.constant 1.000000e+00 : f32
    %101 = vector.broadcast %cst_39 : f32 to vector<8x128xf32>
    %102 = arith.addf %101, %100 : vector<8x128xf32>
    %103 = arith.divf %101, %102 : vector<8x128xf32>
    %104 = vector.extract_strided_slice %93 {offsets = [0, 128], sizes = [8, 128], strides = [1, 1]} : vector<8x384xf32> to vector<8x128xf32>
    %105 = vector.extract_strided_slice %95 {offsets = [0, 128], sizes = [8, 128], strides = [1, 1]} : vector<8x384xf32> to vector<8x128xf32>
    %106 = arith.addf %104, %105 : vector<8x128xf32>
    %107 = arith.negf %106 : vector<8x128xf32>
    %108 = math.exp %107 : vector<8x128xf32>
    %cst_40 = arith.constant 1.000000e+00 : f32
    %109 = vector.broadcast %cst_40 : f32 to vector<8x128xf32>
    %110 = arith.addf %109, %108 : vector<8x128xf32>
    %111 = arith.divf %109, %110 : vector<8x128xf32>
    %112 = vector.extract_strided_slice %93 {offsets = [0, 256], sizes = [8, 128], strides = [1, 1]} : vector<8x384xf32> to vector<8x128xf32>
    %113 = vector.extract_strided_slice %95 {offsets = [0, 256], sizes = [8, 128], strides = [1, 1]} : vector<8x384xf32> to vector<8x128xf32>
    %114 = arith.addf %113, %20 : vector<8x128xf32>
    %115 = arith.mulf %103, %114 : vector<8x128xf32>
    %116 = arith.addf %112, %115 : vector<8x128xf32>
    %117 = math.tanh %116 : vector<8x128xf32>
    %118 = arith.subf %86, %117 : vector<8x128xf32>
    %119 = arith.mulf %111, %118 : vector<8x128xf32>
    %120 = arith.addf %117, %119 : vector<8x128xf32>
    %121 = arith.index_cast %c2_i32 : i32 to index
    %c0_41 = arith.constant 0 : index
    %c0_42 = arith.constant 0 : index
    %122 = vector.load %arg8[%121, %c0_41, %c0_42] : memref<8x8x128xf32, #tpu.memory_space<vmem>>, vector<1x8x128xf32>
    %123 = vector.shape_cast %122 : vector<1x8x128xf32> to vector<8x128xf32>
    %124 = vector.shape_cast %120 : vector<8x128xf32> to vector<1x8x128xf32>
    tpu.vector_store %arg8[%121, %c0_41, %c0_42], %124 {strides = array<i32>} : memref<8x8x128xf32, #tpu.memory_space<vmem>>, vector<1x8x128xf32>,
    %c3_i32 = arith.constant 3 : i32
    %125 = arith.index_cast %c3_i32 : i32 to index
    %c0_43 = arith.constant 0 : index
    %c0_44 = arith.constant 0 : index
    %126 = vector.load %arg9[%125, %c0_43, %c0_44] : memref<8x8x384xf32, #tpu.memory_space<vmem>>, vector<1x8x384xf32>
    %127 = vector.shape_cast %126 : vector<1x8x384xf32> to vector<8x384xf32>
    %128 = arith.truncf %120 : vector<8x128xf32> to vector<8x128xbf16>
    %cst_45 = arith.constant dense<0.000000e+00> : vector<8x384xf32>
    %129 = tpu.matmul %128, %16, %cst_45 {dimension_numbers = #tpu.dot_dimension_numbers<[1], [0], [0], [1], [0, 0, 1, 1], [], []>} : vector<8x128xbf16>, vector<128x384xbf16>, vector<8x384xf32> -> vector<8x384xf32>
    %130 = vector.extract_strided_slice %127 {offsets = [0, 0], sizes = [8, 128], strides = [1, 1]} : vector<8x384xf32> to vector<8x128xf32>
    %131 = vector.extract_strided_slice %129 {offsets = [0, 0], sizes = [8, 128], strides = [1, 1]} : vector<8x384xf32> to vector<8x128xf32>
    %132 = arith.addf %130, %131 : vector<8x128xf32>
    %133 = arith.negf %132 : vector<8x128xf32>
    %134 = math.exp %133 : vector<8x128xf32>
    %cst_46 = arith.constant 1.000000e+00 : f32
    %135 = vector.broadcast %cst_46 : f32 to vector<8x128xf32>
    %136 = arith.addf %135, %134 : vector<8x128xf32>
    %137 = arith.divf %135, %136 : vector<8x128xf32>
    %138 = vector.extract_strided_slice %127 {offsets = [0, 128], sizes = [8, 128], strides = [1, 1]} : vector<8x384xf32> to vector<8x128xf32>
    %139 = vector.extract_strided_slice %129 {offsets = [0, 128], sizes = [8, 128], strides = [1, 1]} : vector<8x384xf32> to vector<8x128xf32>
    %140 = arith.addf %138, %139 : vector<8x128xf32>
    %141 = arith.negf %140 : vector<8x128xf32>
    %142 = math.exp %141 : vector<8x128xf32>
    %cst_47 = arith.constant 1.000000e+00 : f32
    %143 = vector.broadcast %cst_47 : f32 to vector<8x128xf32>
    %144 = arith.addf %143, %142 : vector<8x128xf32>
    %145 = arith.divf %143, %144 : vector<8x128xf32>
    %146 = vector.extract_strided_slice %127 {offsets = [0, 256], sizes = [8, 128], strides = [1, 1]} : vector<8x384xf32> to vector<8x128xf32>
    %147 = vector.extract_strided_slice %129 {offsets = [0, 256], sizes = [8, 128], strides = [1, 1]} : vector<8x384xf32> to vector<8x128xf32>
    %148 = arith.addf %147, %20 : vector<8x128xf32>
    %149 = arith.mulf %137, %148 : vector<8x128xf32>
    %150 = arith.addf %146, %149 : vector<8x128xf32>
    %151 = math.tanh %150 : vector<8x128xf32>
    %152 = arith.subf %120, %151 : vector<8x128xf32>
    %153 = arith.mulf %145, %152 : vector<8x128xf32>
    %154 = arith.addf %151, %153 : vector<8x128xf32>
    %155 = arith.index_cast %c3_i32 : i32 to index
    %c0_48 = arith.constant 0 : index
    %c0_49 = arith.constant 0 : index
    %156 = vector.load %arg8[%155, %c0_48, %c0_49] : memref<8x8x128xf32, #tpu.memory_space<vmem>>, vector<1x8x128xf32>
    %157 = vector.shape_cast %156 : vector<1x8x128xf32> to vector<8x128xf32>
    %158 = vector.shape_cast %154 : vector<8x128xf32> to vector<1x8x128xf32>
    tpu.vector_store %arg8[%155, %c0_48, %c0_49], %158 {strides = array<i32>} : memref<8x8x128xf32, #tpu.memory_space<vmem>>, vector<1x8x128xf32>,
    %c4_i32 = arith.constant 4 : i32
    %159 = arith.index_cast %c4_i32 : i32 to index
    %c0_50 = arith.constant 0 : index
    %c0_51 = arith.constant 0 : index
    %160 = vector.load %arg9[%159, %c0_50, %c0_51] : memref<8x8x384xf32, #tpu.memory_space<vmem>>, vector<1x8x384xf32>
    %161 = vector.shape_cast %160 : vector<1x8x384xf32> to vector<8x384xf32>
    %162 = arith.truncf %154 : vector<8x128xf32> to vector<8x128xbf16>
    %cst_52 = arith.constant dense<0.000000e+00> : vector<8x384xf32>
    %163 = tpu.matmul %162, %16, %cst_52 {dimension_numbers = #tpu.dot_dimension_numbers<[1], [0], [0], [1], [0, 0, 1, 1], [], []>} : vector<8x128xbf16>, vector<128x384xbf16>, vector<8x384xf32> -> vector<8x384xf32>
    %164 = vector.extract_strided_slice %161 {offsets = [0, 0], sizes = [8, 128], strides = [1, 1]} : vector<8x384xf32> to vector<8x128xf32>
    %165 = vector.extract_strided_slice %163 {offsets = [0, 0], sizes = [8, 128], strides = [1, 1]} : vector<8x384xf32> to vector<8x128xf32>
    %166 = arith.addf %164, %165 : vector<8x128xf32>
    %167 = arith.negf %166 : vector<8x128xf32>
    %168 = math.exp %167 : vector<8x128xf32>
    %cst_53 = arith.constant 1.000000e+00 : f32
    %169 = vector.broadcast %cst_53 : f32 to vector<8x128xf32>
    %170 = arith.addf %169, %168 : vector<8x128xf32>
    %171 = arith.divf %169, %170 : vector<8x128xf32>
    %172 = vector.extract_strided_slice %161 {offsets = [0, 128], sizes = [8, 128], strides = [1, 1]} : vector<8x384xf32> to vector<8x128xf32>
    %173 = vector.extract_strided_slice %163 {offsets = [0, 128], sizes = [8, 128], strides = [1, 1]} : vector<8x384xf32> to vector<8x128xf32>
    %174 = arith.addf %172, %173 : vector<8x128xf32>
    %175 = arith.negf %174 : vector<8x128xf32>
    %176 = math.exp %175 : vector<8x128xf32>
    %cst_54 = arith.constant 1.000000e+00 : f32
    %177 = vector.broadcast %cst_54 : f32 to vector<8x128xf32>
    %178 = arith.addf %177, %176 : vector<8x128xf32>
    %179 = arith.divf %177, %178 : vector<8x128xf32>
    %180 = vector.extract_strided_slice %161 {offsets = [0, 256], sizes = [8, 128], strides = [1, 1]} : vector<8x384xf32> to vector<8x128xf32>
    %181 = vector.extract_strided_slice %163 {offsets = [0, 256], sizes = [8, 128], strides = [1, 1]} : vector<8x384xf32> to vector<8x128xf32>
    %182 = arith.addf %181, %20 : vector<8x128xf32>
    %183 = arith.mulf %171, %182 : vector<8x128xf32>
    %184 = arith.addf %180, %183 : vector<8x128xf32>
    %185 = math.tanh %184 : vector<8x128xf32>
    %186 = arith.subf %154, %185 : vector<8x128xf32>
    %187 = arith.mulf %179, %186 : vector<8x128xf32>
    %188 = arith.addf %185, %187 : vector<8x128xf32>
    %189 = arith.index_cast %c4_i32 : i32 to index
    %c0_55 = arith.constant 0 : index
    %c0_56 = arith.constant 0 : index
    %190 = vector.load %arg8[%189, %c0_55, %c0_56] : memref<8x8x128xf32, #tpu.memory_space<vmem>>, vector<1x8x128xf32>
    %191 = vector.shape_cast %190 : vector<1x8x128xf32> to vector<8x128xf32>
    %192 = vector.shape_cast %188 : vector<8x128xf32> to vector<1x8x128xf32>
    tpu.vector_store %arg8[%189, %c0_55, %c0_56], %192 {strides = array<i32>} : memref<8x8x128xf32, #tpu.memory_space<vmem>>, vector<1x8x128xf32>,
    %c5_i32 = arith.constant 5 : i32
    %193 = arith.index_cast %c5_i32 : i32 to index
    %c0_57 = arith.constant 0 : index
    %c0_58 = arith.constant 0 : index
    %194 = vector.load %arg9[%193, %c0_57, %c0_58] : memref<8x8x384xf32, #tpu.memory_space<vmem>>, vector<1x8x384xf32>
    %195 = vector.shape_cast %194 : vector<1x8x384xf32> to vector<8x384xf32>
    %196 = arith.truncf %188 : vector<8x128xf32> to vector<8x128xbf16>
    %cst_59 = arith.constant dense<0.000000e+00> : vector<8x384xf32>
    %197 = tpu.matmul %196, %16, %cst_59 {dimension_numbers = #tpu.dot_dimension_numbers<[1], [0], [0], [1], [0, 0, 1, 1], [], []>} : vector<8x128xbf16>, vector<128x384xbf16>, vector<8x384xf32> -> vector<8x384xf32>
    %198 = vector.extract_strided_slice %195 {offsets = [0, 0], sizes = [8, 128], strides = [1, 1]} : vector<8x384xf32> to vector<8x128xf32>
    %199 = vector.extract_strided_slice %197 {offsets = [0, 0], sizes = [8, 128], strides = [1, 1]} : vector<8x384xf32> to vector<8x128xf32>
    %200 = arith.addf %198, %199 : vector<8x128xf32>
    %201 = arith.negf %200 : vector<8x128xf32>
    %202 = math.exp %201 : vector<8x128xf32>
    %cst_60 = arith.constant 1.000000e+00 : f32
    %203 = vector.broadcast %cst_60 : f32 to vector<8x128xf32>
    %204 = arith.addf %203, %202 : vector<8x128xf32>
    %205 = arith.divf %203, %204 : vector<8x128xf32>
    %206 = vector.extract_strided_slice %195 {offsets = [0, 128], sizes = [8, 128], strides = [1, 1]} : vector<8x384xf32> to vector<8x128xf32>
    %207 = vector.extract_strided_slice %197 {offsets = [0, 128], sizes = [8, 128], strides = [1, 1]} : vector<8x384xf32> to vector<8x128xf32>
    %208 = arith.addf %206, %207 : vector<8x128xf32>
    %209 = arith.negf %208 : vector<8x128xf32>
    %210 = math.exp %209 : vector<8x128xf32>
    %cst_61 = arith.constant 1.000000e+00 : f32
    %211 = vector.broadcast %cst_61 : f32 to vector<8x128xf32>
    %212 = arith.addf %211, %210 : vector<8x128xf32>
    %213 = arith.divf %211, %212 : vector<8x128xf32>
    %214 = vector.extract_strided_slice %195 {offsets = [0, 256], sizes = [8, 128], strides = [1, 1]} : vector<8x384xf32> to vector<8x128xf32>
    %215 = vector.extract_strided_slice %197 {offsets = [0, 256], sizes = [8, 128], strides = [1, 1]} : vector<8x384xf32> to vector<8x128xf32>
    %216 = arith.addf %215, %20 : vector<8x128xf32>
    %217 = arith.mulf %205, %216 : vector<8x128xf32>
    %218 = arith.addf %214, %217 : vector<8x128xf32>
    %219 = math.tanh %218 : vector<8x128xf32>
    %220 = arith.subf %188, %219 : vector<8x128xf32>
    %221 = arith.mulf %213, %220 : vector<8x128xf32>
    %222 = arith.addf %219, %221 : vector<8x128xf32>
    %223 = arith.index_cast %c5_i32 : i32 to index
    %c0_62 = arith.constant 0 : index
    %c0_63 = arith.constant 0 : index
    %224 = vector.load %arg8[%223, %c0_62, %c0_63] : memref<8x8x128xf32, #tpu.memory_space<vmem>>, vector<1x8x128xf32>
    %225 = vector.shape_cast %224 : vector<1x8x128xf32> to vector<8x128xf32>
    %226 = vector.shape_cast %222 : vector<8x128xf32> to vector<1x8x128xf32>
    tpu.vector_store %arg8[%223, %c0_62, %c0_63], %226 {strides = array<i32>} : memref<8x8x128xf32, #tpu.memory_space<vmem>>, vector<1x8x128xf32>,
    %c6_i32 = arith.constant 6 : i32
    %227 = arith.index_cast %c6_i32 : i32 to index
    %c0_64 = arith.constant 0 : index
    %c0_65 = arith.constant 0 : index
    %228 = vector.load %arg9[%227, %c0_64, %c0_65] : memref<8x8x384xf32, #tpu.memory_space<vmem>>, vector<1x8x384xf32>
    %229 = vector.shape_cast %228 : vector<1x8x384xf32> to vector<8x384xf32>
    %230 = arith.truncf %222 : vector<8x128xf32> to vector<8x128xbf16>
    %cst_66 = arith.constant dense<0.000000e+00> : vector<8x384xf32>
    %231 = tpu.matmul %230, %16, %cst_66 {dimension_numbers = #tpu.dot_dimension_numbers<[1], [0], [0], [1], [0, 0, 1, 1], [], []>} : vector<8x128xbf16>, vector<128x384xbf16>, vector<8x384xf32> -> vector<8x384xf32>
    %232 = vector.extract_strided_slice %229 {offsets = [0, 0], sizes = [8, 128], strides = [1, 1]} : vector<8x384xf32> to vector<8x128xf32>
    %233 = vector.extract_strided_slice %231 {offsets = [0, 0], sizes = [8, 128], strides = [1, 1]} : vector<8x384xf32> to vector<8x128xf32>
    %234 = arith.addf %232, %233 : vector<8x128xf32>
    %235 = arith.negf %234 : vector<8x128xf32>
    %236 = math.exp %235 : vector<8x128xf32>
    %cst_67 = arith.constant 1.000000e+00 : f32
    %237 = vector.broadcast %cst_67 : f32 to vector<8x128xf32>
    %238 = arith.addf %237, %236 : vector<8x128xf32>
    %239 = arith.divf %237, %238 : vector<8x128xf32>
    %240 = vector.extract_strided_slice %229 {offsets = [0, 128], sizes = [8, 128], strides = [1, 1]} : vector<8x384xf32> to vector<8x128xf32>
    %241 = vector.extract_strided_slice %231 {offsets = [0, 128], sizes = [8, 128], strides = [1, 1]} : vector<8x384xf32> to vector<8x128xf32>
    %242 = arith.addf %240, %241 : vector<8x128xf32>
    %243 = arith.negf %242 : vector<8x128xf32>
    %244 = math.exp %243 : vector<8x128xf32>
    %cst_68 = arith.constant 1.000000e+00 : f32
    %245 = vector.broadcast %cst_68 : f32 to vector<8x128xf32>
    %246 = arith.addf %245, %244 : vector<8x128xf32>
    %247 = arith.divf %245, %246 : vector<8x128xf32>
    %248 = vector.extract_strided_slice %229 {offsets = [0, 256], sizes = [8, 128], strides = [1, 1]} : vector<8x384xf32> to vector<8x128xf32>
    %249 = vector.extract_strided_slice %231 {offsets = [0, 256], sizes = [8, 128], strides = [1, 1]} : vector<8x384xf32> to vector<8x128xf32>
    %250 = arith.addf %249, %20 : vector<8x128xf32>
    %251 = arith.mulf %239, %250 : vector<8x128xf32>
    %252 = arith.addf %248, %251 : vector<8x128xf32>
    %253 = math.tanh %252 : vector<8x128xf32>
    %254 = arith.subf %222, %253 : vector<8x128xf32>
    %255 = arith.mulf %247, %254 : vector<8x128xf32>
    %256 = arith.addf %253, %255 : vector<8x128xf32>
    %257 = arith.index_cast %c6_i32 : i32 to index
    %c0_69 = arith.constant 0 : index
    %c0_70 = arith.constant 0 : index
    %258 = vector.load %arg8[%257, %c0_69, %c0_70] : memref<8x8x128xf32, #tpu.memory_space<vmem>>, vector<1x8x128xf32>
    %259 = vector.shape_cast %258 : vector<1x8x128xf32> to vector<8x128xf32>
    %260 = vector.shape_cast %256 : vector<8x128xf32> to vector<1x8x128xf32>
    tpu.vector_store %arg8[%257, %c0_69, %c0_70], %260 {strides = array<i32>} : memref<8x8x128xf32, #tpu.memory_space<vmem>>, vector<1x8x128xf32>,
    %c7_i32 = arith.constant 7 : i32
    %261 = arith.index_cast %c7_i32 : i32 to index
    %c0_71 = arith.constant 0 : index
    %c0_72 = arith.constant 0 : index
    %262 = vector.load %arg9[%261, %c0_71, %c0_72] : memref<8x8x384xf32, #tpu.memory_space<vmem>>, vector<1x8x384xf32>
    %263 = vector.shape_cast %262 : vector<1x8x384xf32> to vector<8x384xf32>
    %264 = arith.truncf %256 : vector<8x128xf32> to vector<8x128xbf16>
    %cst_73 = arith.constant dense<0.000000e+00> : vector<8x384xf32>
    %265 = tpu.matmul %264, %16, %cst_73 {dimension_numbers = #tpu.dot_dimension_numbers<[1], [0], [0], [1], [0, 0, 1, 1], [], []>} : vector<8x128xbf16>, vector<128x384xbf16>, vector<8x384xf32> -> vector<8x384xf32>
    %266 = vector.extract_strided_slice %263 {offsets = [0, 0], sizes = [8, 128], strides = [1, 1]} : vector<8x384xf32> to vector<8x128xf32>
    %267 = vector.extract_strided_slice %265 {offsets = [0, 0], sizes = [8, 128], strides = [1, 1]} : vector<8x384xf32> to vector<8x128xf32>
    %268 = arith.addf %266, %267 : vector<8x128xf32>
    %269 = arith.negf %268 : vector<8x128xf32>
    %270 = math.exp %269 : vector<8x128xf32>
    %cst_74 = arith.constant 1.000000e+00 : f32
    %271 = vector.broadcast %cst_74 : f32 to vector<8x128xf32>
    %272 = arith.addf %271, %270 : vector<8x128xf32>
    %273 = arith.divf %271, %272 : vector<8x128xf32>
    %274 = vector.extract_strided_slice %263 {offsets = [0, 128], sizes = [8, 128], strides = [1, 1]} : vector<8x384xf32> to vector<8x128xf32>
    %275 = vector.extract_strided_slice %265 {offsets = [0, 128], sizes = [8, 128], strides = [1, 1]} : vector<8x384xf32> to vector<8x128xf32>
    %276 = arith.addf %274, %275 : vector<8x128xf32>
    %277 = arith.negf %276 : vector<8x128xf32>
    %278 = math.exp %277 : vector<8x128xf32>
    %cst_75 = arith.constant 1.000000e+00 : f32
    %279 = vector.broadcast %cst_75 : f32 to vector<8x128xf32>
    %280 = arith.addf %279, %278 : vector<8x128xf32>
    %281 = arith.divf %279, %280 : vector<8x128xf32>
    %282 = vector.extract_strided_slice %263 {offsets = [0, 256], sizes = [8, 128], strides = [1, 1]} : vector<8x384xf32> to vector<8x128xf32>
    %283 = vector.extract_strided_slice %265 {offsets = [0, 256], sizes = [8, 128], strides = [1, 1]} : vector<8x384xf32> to vector<8x128xf32>
    %284 = arith.addf %283, %20 : vector<8x128xf32>
    %285 = arith.mulf %273, %284 : vector<8x128xf32>
    %286 = arith.addf %282, %285 : vector<8x128xf32>
    %287 = math.tanh %286 : vector<8x128xf32>
    %288 = arith.subf %256, %287 : vector<8x128xf32>
    %289 = arith.mulf %281, %288 : vector<8x128xf32>
    %290 = arith.addf %287, %289 : vector<8x128xf32>
    %291 = arith.index_cast %c7_i32 : i32 to index
    %c0_76 = arith.constant 0 : index
    %c0_77 = arith.constant 0 : index
    %292 = vector.load %arg8[%291, %c0_76, %c0_77] : memref<8x8x128xf32, #tpu.memory_space<vmem>>, vector<1x8x128xf32>
    %293 = vector.shape_cast %292 : vector<1x8x128xf32> to vector<8x128xf32>
    %294 = vector.shape_cast %290 : vector<8x128xf32> to vector<1x8x128xf32>
    tpu.vector_store %arg8[%291, %c0_76, %c0_77], %294 {strides = array<i32>} : memref<8x8x128xf32, #tpu.memory_space<vmem>>, vector<1x8x128xf32>,
    %c8_i32 = arith.constant 8 : i32
    %c0_78 = arith.constant 0 : index
    %c0_79 = arith.constant 0 : index
    %c0_80 = arith.constant 0 : index
    %295 = vector.load %arg7[%c0_78, %c0_79, %c0_80] : memref<5x8x128xf32, #tpu.memory_space<vmem>>, vector<1x8x128xf32>
    %296 = vector.shape_cast %295 : vector<1x8x128xf32> to vector<8x128xf32>
    %297 = vector.shape_cast %290 : vector<8x128xf32> to vector<1x8x128xf32>
    tpu.vector_store %arg7[%c0_78, %c0_79, %c0_80], %297 {strides = array<i32>} : memref<5x8x128xf32, #tpu.memory_space<vmem>>, vector<1x8x128xf32>,
    %c0_81 = arith.constant 0 : index
    %c0_82 = arith.constant 0 : index
    %c0_83 = arith.constant 0 : index
    %298 = vector.load %arg8[%c0_81, %c0_82, %c0_83] : memref<8x8x128xf32, #tpu.memory_space<vmem>>, vector<8x8x128xf32>
    %299 = vector.shape_cast %298 : vector<8x8x128xf32> to vector<64x128xf32>
    %300 = arith.truncf %299 : vector<64x128xf32> to vector<64x128xbf16>
    %c1 = arith.constant 1 : index
    %c0_84 = arith.constant 0 : index
    %c0_85 = arith.constant 0 : index
    %301 = vector.load %arg2[%c1, %c0_84, %c0_85] : memref<5x128x384xbf16, #tpu.memory_space<vmem>>, vector<1x128x384xbf16>
    %302 = vector.shape_cast %301 : vector<1x128x384xbf16> to vector<128x384xbf16>
    %cst_86 = arith.constant dense<0.000000e+00> : vector<64x384xf32>
    %303 = tpu.matmul %300, %302, %cst_86 {dimension_numbers = #tpu.dot_dimension_numbers<[1], [0], [0], [1], [0, 0, 1, 1], [], []>} : vector<64x128xbf16>, vector<128x384xbf16>, vector<64x384xf32> -> vector<64x384xf32>
    %c1_87 = arith.constant 1 : index
    %c0_88 = arith.constant 0 : index
    %c0_89 = arith.constant 0 : index
    %304 = vector.load %arg4[%c1_87, %c0_88, %c0_89] : memref<5x1x384xf32, #tpu.memory_space<vmem>>, vector<1x1x384xf32>
    %305 = vector.shape_cast %304 : vector<1x1x384xf32> to vector<1x384xf32>
    %306 = vector.broadcast %305 : vector<1x384xf32> to vector<64x384xf32>
    %307 = arith.addf %303, %306 : vector<64x384xf32>
    %308 = vector.shape_cast %307 : vector<64x384xf32> to vector<8x8x384xf32>
    %c0_90 = arith.constant 0 : index
    %c0_91 = arith.constant 0 : index
    %c0_92 = arith.constant 0 : index
    %309 = vector.load %arg9[%c0_90, %c0_91, %c0_92] : memref<8x8x384xf32, #tpu.memory_space<vmem>>, vector<8x8x384xf32>
    tpu.vector_store %arg9[%c0_90, %c0_91, %c0_92], %308 {strides = array<i32>} : memref<8x8x384xf32, #tpu.memory_space<vmem>>, vector<8x8x384xf32>,
    %c1_93 = arith.constant 1 : index
    %c0_94 = arith.constant 0 : index
    %c0_95 = arith.constant 0 : index
    %310 = vector.load %arg3[%c1_93, %c0_94, %c0_95] : memref<5x128x384xbf16, #tpu.memory_space<vmem>>, vector<1x128x384xbf16>
    %311 = vector.shape_cast %310 : vector<1x128x384xbf16> to vector<128x384xbf16>
    %c1_96 = arith.constant 1 : index
    %c0_97 = arith.constant 0 : index
    %c0_98 = arith.constant 0 : index
    %312 = vector.load %arg5[%c1_96, %c0_97, %c0_98] : memref<5x1x128xf32, #tpu.memory_space<vmem>>, vector<1x1x128xf32>
    %313 = vector.shape_cast %312 : vector<1x1x128xf32> to vector<1x128xf32>
    %314 = vector.shape_cast %313 : vector<1x128xf32> to vector<1x128xf32>
    %315 = vector.broadcast %314 : vector<1x128xf32> to vector<8x128xf32>
    %c1_99 = arith.constant 1 : index
    %c0_100 = arith.constant 0 : index
    %c0_101 = arith.constant 0 : index
    %316 = vector.load %arg7[%c1_99, %c0_100, %c0_101] : memref<5x8x128xf32, #tpu.memory_space<vmem>>, vector<1x8x128xf32>
    %317 = vector.shape_cast %316 : vector<1x8x128xf32> to vector<8x128xf32>
    %c0_i32_102 = arith.constant 0 : i32
    %318 = arith.index_cast %c0_i32_102 : i32 to index
    %c0_103 = arith.constant 0 : index
    %c0_104 = arith.constant 0 : index
    %319 = vector.load %arg9[%318, %c0_103, %c0_104] : memref<8x8x384xf32, #tpu.memory_space<vmem>>, vector<1x8x384xf32>
    %320 = vector.shape_cast %319 : vector<1x8x384xf32> to vector<8x384xf32>
    %321 = arith.truncf %317 : vector<8x128xf32> to vector<8x128xbf16>
    %cst_105 = arith.constant dense<0.000000e+00> : vector<8x384xf32>
    %322 = tpu.matmul %321, %311, %cst_105 {dimension_numbers = #tpu.dot_dimension_numbers<[1], [0], [0], [1], [0, 0, 1, 1], [], []>} : vector<8x128xbf16>, vector<128x384xbf16>, vector<8x384xf32> -> vector<8x384xf32>
    %323 = vector.extract_strided_slice %320 {offsets = [0, 0], sizes = [8, 128], strides = [1, 1]} : vector<8x384xf32> to vector<8x128xf32>
    %324 = vector.extract_strided_slice %322 {offsets = [0, 0], sizes = [8, 128], strides = [1, 1]} : vector<8x384xf32> to vector<8x128xf32>
    %325 = arith.addf %323, %324 : vector<8x128xf32>
    %326 = arith.negf %325 : vector<8x128xf32>
    %327 = math.exp %326 : vector<8x128xf32>
    %cst_106 = arith.constant 1.000000e+00 : f32
    %328 = vector.broadcast %cst_106 : f32 to vector<8x128xf32>
    %329 = arith.addf %328, %327 : vector<8x128xf32>
    %330 = arith.divf %328, %329 : vector<8x128xf32>
    %331 = vector.extract_strided_slice %320 {offsets = [0, 128], sizes = [8, 128], strides = [1, 1]} : vector<8x384xf32> to vector<8x128xf32>
    %332 = vector.extract_strided_slice %322 {offsets = [0, 128], sizes = [8, 128], strides = [1, 1]} : vector<8x384xf32> to vector<8x128xf32>
    %333 = arith.addf %331, %332 : vector<8x128xf32>
    %334 = arith.negf %333 : vector<8x128xf32>
    %335 = math.exp %334 : vector<8x128xf32>
    %cst_107 = arith.constant 1.000000e+00 : f32
    %336 = vector.broadcast %cst_107 : f32 to vector<8x128xf32>
    %337 = arith.addf %336, %335 : vector<8x128xf32>
    %338 = arith.divf %336, %337 : vector<8x128xf32>
    %339 = vector.extract_strided_slice %320 {offsets = [0, 256], sizes = [8, 128], strides = [1, 1]} : vector<8x384xf32> to vector<8x128xf32>
    %340 = vector.extract_strided_slice %322 {offsets = [0, 256], sizes = [8, 128], strides = [1, 1]} : vector<8x384xf32> to vector<8x128xf32>
    %341 = arith.addf %340, %315 : vector<8x128xf32>
    %342 = arith.mulf %330, %341 : vector<8x128xf32>
    %343 = arith.addf %339, %342 : vector<8x128xf32>
    %344 = math.tanh %343 : vector<8x128xf32>
    %345 = arith.subf %317, %344 : vector<8x128xf32>
    %346 = arith.mulf %338, %345 : vector<8x128xf32>
    %347 = arith.addf %344, %346 : vector<8x128xf32>
    %348 = arith.index_cast %c0_i32_102 : i32 to index
    %c0_108 = arith.constant 0 : index
    %c0_109 = arith.constant 0 : index
    %349 = vector.load %arg8[%348, %c0_108, %c0_109] : memref<8x8x128xf32, #tpu.memory_space<vmem>>, vector<1x8x128xf32>
    %350 = vector.shape_cast %349 : vector<1x8x128xf32> to vector<8x128xf32>
    %351 = vector.shape_cast %347 : vector<8x128xf32> to vector<1x8x128xf32>
    tpu.vector_store %arg8[%348, %c0_108, %c0_109], %351 {strides = array<i32>} : memref<8x8x128xf32, #tpu.memory_space<vmem>>, vector<1x8x128xf32>,
    %c1_i32_110 = arith.constant 1 : i32
    %352 = arith.index_cast %c1_i32_110 : i32 to index
    %c0_111 = arith.constant 0 : index
    %c0_112 = arith.constant 0 : index
    %353 = vector.load %arg9[%352, %c0_111, %c0_112] : memref<8x8x384xf32, #tpu.memory_space<vmem>>, vector<1x8x384xf32>
    %354 = vector.shape_cast %353 : vector<1x8x384xf32> to vector<8x384xf32>
    %355 = arith.truncf %347 : vector<8x128xf32> to vector<8x128xbf16>
    %cst_113 = arith.constant dense<0.000000e+00> : vector<8x384xf32>
    %356 = tpu.matmul %355, %311, %cst_113 {dimension_numbers = #tpu.dot_dimension_numbers<[1], [0], [0], [1], [0, 0, 1, 1], [], []>} : vector<8x128xbf16>, vector<128x384xbf16>, vector<8x384xf32> -> vector<8x384xf32>
    %357 = vector.extract_strided_slice %354 {offsets = [0, 0], sizes = [8, 128], strides = [1, 1]} : vector<8x384xf32> to vector<8x128xf32>
    %358 = vector.extract_strided_slice %356 {offsets = [0, 0], sizes = [8, 128], strides = [1, 1]} : vector<8x384xf32> to vector<8x128xf32>
    %359 = arith.addf %357, %358 : vector<8x128xf32>
    %360 = arith.negf %359 : vector<8x128xf32>
    %361 = math.exp %360 : vector<8x128xf32>
    %cst_114 = arith.constant 1.000000e+00 : f32
    %362 = vector.broadcast %cst_114 : f32 to vector<8x128xf32>
    %363 = arith.addf %362, %361 : vector<8x128xf32>
    %364 = arith.divf %362, %363 : vector<8x128xf32>
    %365 = vector.extract_strided_slice %354 {offsets = [0, 128], sizes = [8, 128], strides = [1, 1]} : vector<8x384xf32> to vector<8x128xf32>
    %366 = vector.extract_strided_slice %356 {offsets = [0, 128], sizes = [8, 128], strides = [1, 1]} : vector<8x384xf32> to vector<8x128xf32>
    %367 = arith.addf %365, %366 : vector<8x128xf32>
    %368 = arith.negf %367 : vector<8x128xf32>
    %369 = math.exp %368 : vector<8x128xf32>
    %cst_115 = arith.constant 1.000000e+00 : f32
    %370 = vector.broadcast %cst_115 : f32 to vector<8x128xf32>
    %371 = arith.addf %370, %369 : vector<8x128xf32>
    %372 = arith.divf %370, %371 : vector<8x128xf32>
    %373 = vector.extract_strided_slice %354 {offsets = [0, 256], sizes = [8, 128], strides = [1, 1]} : vector<8x384xf32> to vector<8x128xf32>
    %374 = vector.extract_strided_slice %356 {offsets = [0, 256], sizes = [8, 128], strides = [1, 1]} : vector<8x384xf32> to vector<8x128xf32>
    %375 = arith.addf %374, %315 : vector<8x128xf32>
    %376 = arith.mulf %364, %375 : vector<8x128xf32>
    %377 = arith.addf %373, %376 : vector<8x128xf32>
    %378 = math.tanh %377 : vector<8x128xf32>
    %379 = arith.subf %347, %378 : vector<8x128xf32>
    %380 = arith.mulf %372, %379 : vector<8x128xf32>
    %381 = arith.addf %378, %380 : vector<8x128xf32>
    %382 = arith.index_cast %c1_i32_110 : i32 to index
    %c0_116 = arith.constant 0 : index
    %c0_117 = arith.constant 0 : index
    %383 = vector.load %arg8[%382, %c0_116, %c0_117] : memref<8x8x128xf32, #tpu.memory_space<vmem>>, vector<1x8x128xf32>
    %384 = vector.shape_cast %383 : vector<1x8x128xf32> to vector<8x128xf32>
    %385 = vector.shape_cast %381 : vector<8x128xf32> to vector<1x8x128xf32>
    tpu.vector_store %arg8[%382, %c0_116, %c0_117], %385 {strides = array<i32>} : memref<8x8x128xf32, #tpu.memory_space<vmem>>, vector<1x8x128xf32>,
    %c2_i32_118 = arith.constant 2 : i32
    %386 = arith.index_cast %c2_i32_118 : i32 to index
    %c0_119 = arith.constant 0 : index
    %c0_120 = arith.constant 0 : index
    %387 = vector.load %arg9[%386, %c0_119, %c0_120] : memref<8x8x384xf32, #tpu.memory_space<vmem>>, vector<1x8x384xf32>
    %388 = vector.shape_cast %387 : vector<1x8x384xf32> to vector<8x384xf32>
    %389 = arith.truncf %381 : vector<8x128xf32> to vector<8x128xbf16>
    %cst_121 = arith.constant dense<0.000000e+00> : vector<8x384xf32>
    %390 = tpu.matmul %389, %311, %cst_121 {dimension_numbers = #tpu.dot_dimension_numbers<[1], [0], [0], [1], [0, 0, 1, 1], [], []>} : vector<8x128xbf16>, vector<128x384xbf16>, vector<8x384xf32> -> vector<8x384xf32>
    %391 = vector.extract_strided_slice %388 {offsets = [0, 0], sizes = [8, 128], strides = [1, 1]} : vector<8x384xf32> to vector<8x128xf32>
    %392 = vector.extract_strided_slice %390 {offsets = [0, 0], sizes = [8, 128], strides = [1, 1]} : vector<8x384xf32> to vector<8x128xf32>
    %393 = arith.addf %391, %392 : vector<8x128xf32>
    %394 = arith.negf %393 : vector<8x128xf32>
    %395 = math.exp %394 : vector<8x128xf32>
    %cst_122 = arith.constant 1.000000e+00 : f32
    %396 = vector.broadcast %cst_122 : f32 to vector<8x128xf32>
    %397 = arith.addf %396, %395 : vector<8x128xf32>
    %398 = arith.divf %396, %397 : vector<8x128xf32>
    %399 = vector.extract_strided_slice %388 {offsets = [0, 128], sizes = [8, 128], strides = [1, 1]} : vector<8x384xf32> to vector<8x128xf32>
    %400 = vector.extract_strided_slice %390 {offsets = [0, 128], sizes = [8, 128], strides = [1, 1]} : vector<8x384xf32> to vector<8x128xf32>
    %401 = arith.addf %399, %400 : vector<8x128xf32>
    %402 = arith.negf %401 : vector<8x128xf32>
    %403 = math.exp %402 : vector<8x128xf32>
    %cst_123 = arith.constant 1.000000e+00 : f32
    %404 = vector.broadcast %cst_123 : f32 to vector<8x128xf32>
    %405 = arith.addf %404, %403 : vector<8x128xf32>
    %406 = arith.divf %404, %405 : vector<8x128xf32>
    %407 = vector.extract_strided_slice %388 {offsets = [0, 256], sizes = [8, 128], strides = [1, 1]} : vector<8x384xf32> to vector<8x128xf32>
    %408 = vector.extract_strided_slice %390 {offsets = [0, 256], sizes = [8, 128], strides = [1, 1]} : vector<8x384xf32> to vector<8x128xf32>
    %409 = arith.addf %408, %315 : vector<8x128xf32>
    %410 = arith.mulf %398, %409 : vector<8x128xf32>
    %411 = arith.addf %407, %410 : vector<8x128xf32>
    %412 = math.tanh %411 : vector<8x128xf32>
    %413 = arith.subf %381, %412 : vector<8x128xf32>
    %414 = arith.mulf %406, %413 : vector<8x128xf32>
    %415 = arith.addf %412, %414 : vector<8x128xf32>
    %416 = arith.index_cast %c2_i32_118 : i32 to index
    %c0_124 = arith.constant 0 : index
    %c0_125 = arith.constant 0 : index
    %417 = vector.load %arg8[%416, %c0_124, %c0_125] : memref<8x8x128xf32, #tpu.memory_space<vmem>>, vector<1x8x128xf32>
    %418 = vector.shape_cast %417 : vector<1x8x128xf32> to vector<8x128xf32>
    %419 = vector.shape_cast %415 : vector<8x128xf32> to vector<1x8x128xf32>
    tpu.vector_store %arg8[%416, %c0_124, %c0_125], %419 {strides = array<i32>} : memref<8x8x128xf32, #tpu.memory_space<vmem>>, vector<1x8x128xf32>,
    %c3_i32_126 = arith.constant 3 : i32
    %420 = arith.index_cast %c3_i32_126 : i32 to index
    %c0_127 = arith.constant 0 : index
    %c0_128 = arith.constant 0 : index
    %421 = vector.load %arg9[%420, %c0_127, %c0_128] : memref<8x8x384xf32, #tpu.memory_space<vmem>>, vector<1x8x384xf32>
    %422 = vector.shape_cast %421 : vector<1x8x384xf32> to vector<8x384xf32>
    %423 = arith.truncf %415 : vector<8x128xf32> to vector<8x128xbf16>
    %cst_129 = arith.constant dense<0.000000e+00> : vector<8x384xf32>
    %424 = tpu.matmul %423, %311, %cst_129 {dimension_numbers = #tpu.dot_dimension_numbers<[1], [0], [0], [1], [0, 0, 1, 1], [], []>} : vector<8x128xbf16>, vector<128x384xbf16>, vector<8x384xf32> -> vector<8x384xf32>
    %425 = vector.extract_strided_slice %422 {offsets = [0, 0], sizes = [8, 128], strides = [1, 1]} : vector<8x384xf32> to vector<8x128xf32>
    %426 = vector.extract_strided_slice %424 {offsets = [0, 0], sizes = [8, 128], strides = [1, 1]} : vector<8x384xf32> to vector<8x128xf32>
    %427 = arith.addf %425, %426 : vector<8x128xf32>
    %428 = arith.negf %427 : vector<8x128xf32>
    %429 = math.exp %428 : vector<8x128xf32>
    %cst_130 = arith.constant 1.000000e+00 : f32
    %430 = vector.broadcast %cst_130 : f32 to vector<8x128xf32>
    %431 = arith.addf %430, %429 : vector<8x128xf32>
    %432 = arith.divf %430, %431 : vector<8x128xf32>
    %433 = vector.extract_strided_slice %422 {offsets = [0, 128], sizes = [8, 128], strides = [1, 1]} : vector<8x384xf32> to vector<8x128xf32>
    %434 = vector.extract_strided_slice %424 {offsets = [0, 128], sizes = [8, 128], strides = [1, 1]} : vector<8x384xf32> to vector<8x128xf32>
    %435 = arith.addf %433, %434 : vector<8x128xf32>
    %436 = arith.negf %435 : vector<8x128xf32>
    %437 = math.exp %436 : vector<8x128xf32>
    %cst_131 = arith.constant 1.000000e+00 : f32
    %438 = vector.broadcast %cst_131 : f32 to vector<8x128xf32>
    %439 = arith.addf %438, %437 : vector<8x128xf32>
    %440 = arith.divf %438, %439 : vector<8x128xf32>
    %441 = vector.extract_strided_slice %422 {offsets = [0, 256], sizes = [8, 128], strides = [1, 1]} : vector<8x384xf32> to vector<8x128xf32>
    %442 = vector.extract_strided_slice %424 {offsets = [0, 256], sizes = [8, 128], strides = [1, 1]} : vector<8x384xf32> to vector<8x128xf32>
    %443 = arith.addf %442, %315 : vector<8x128xf32>
    %444 = arith.mulf %432, %443 : vector<8x128xf32>
    %445 = arith.addf %441, %444 : vector<8x128xf32>
    %446 = math.tanh %445 : vector<8x128xf32>
    %447 = arith.subf %415, %446 : vector<8x128xf32>
    %448 = arith.mulf %440, %447 : vector<8x128xf32>
    %449 = arith.addf %446, %448 : vector<8x128xf32>
    %450 = arith.index_cast %c3_i32_126 : i32 to index
    %c0_132 = arith.constant 0 : index
    %c0_133 = arith.constant 0 : index
    %451 = vector.load %arg8[%450, %c0_132, %c0_133] : memref<8x8x128xf32, #tpu.memory_space<vmem>>, vector<1x8x128xf32>
    %452 = vector.shape_cast %451 : vector<1x8x128xf32> to vector<8x128xf32>
    %453 = vector.shape_cast %449 : vector<8x128xf32> to vector<1x8x128xf32>
    tpu.vector_store %arg8[%450, %c0_132, %c0_133], %453 {strides = array<i32>} : memref<8x8x128xf32, #tpu.memory_space<vmem>>, vector<1x8x128xf32>,
    %c4_i32_134 = arith.constant 4 : i32
    %454 = arith.index_cast %c4_i32_134 : i32 to index
    %c0_135 = arith.constant 0 : index
    %c0_136 = arith.constant 0 : index
    %455 = vector.load %arg9[%454, %c0_135, %c0_136] : memref<8x8x384xf32, #tpu.memory_space<vmem>>, vector<1x8x384xf32>
    %456 = vector.shape_cast %455 : vector<1x8x384xf32> to vector<8x384xf32>
    %457 = arith.truncf %449 : vector<8x128xf32> to vector<8x128xbf16>
    %cst_137 = arith.constant dense<0.000000e+00> : vector<8x384xf32>
    %458 = tpu.matmul %457, %311, %cst_137 {dimension_numbers = #tpu.dot_dimension_numbers<[1], [0], [0], [1], [0, 0, 1, 1], [], []>} : vector<8x128xbf16>, vector<128x384xbf16>, vector<8x384xf32> -> vector<8x384xf32>
    %459 = vector.extract_strided_slice %456 {offsets = [0, 0], sizes = [8, 128], strides = [1, 1]} : vector<8x384xf32> to vector<8x128xf32>
    %460 = vector.extract_strided_slice %458 {offsets = [0, 0], sizes = [8, 128], strides = [1, 1]} : vector<8x384xf32> to vector<8x128xf32>
    %461 = arith.addf %459, %460 : vector<8x128xf32>
    %462 = arith.negf %461 : vector<8x128xf32>
    %463 = math.exp %462 : vector<8x128xf32>
    %cst_138 = arith.constant 1.000000e+00 : f32
    %464 = vector.broadcast %cst_138 : f32 to vector<8x128xf32>
    %465 = arith.addf %464, %463 : vector<8x128xf32>
    %466 = arith.divf %464, %465 : vector<8x128xf32>
    %467 = vector.extract_strided_slice %456 {offsets = [0, 128], sizes = [8, 128], strides = [1, 1]} : vector<8x384xf32> to vector<8x128xf32>
    %468 = vector.extract_strided_slice %458 {offsets = [0, 128], sizes = [8, 128], strides = [1, 1]} : vector<8x384xf32> to vector<8x128xf32>
    %469 = arith.addf %467, %468 : vector<8x128xf32>
    %470 = arith.negf %469 : vector<8x128xf32>
    %471 = math.exp %470 : vector<8x128xf32>
    %cst_139 = arith.constant 1.000000e+00 : f32
    %472 = vector.broadcast %cst_139 : f32 to vector<8x128xf32>
    %473 = arith.addf %472, %471 : vector<8x128xf32>
    %474 = arith.divf %472, %473 : vector<8x128xf32>
    %475 = vector.extract_strided_slice %456 {offsets = [0, 256], sizes = [8, 128], strides = [1, 1]} : vector<8x384xf32> to vector<8x128xf32>
    %476 = vector.extract_strided_slice %458 {offsets = [0, 256], sizes = [8, 128], strides = [1, 1]} : vector<8x384xf32> to vector<8x128xf32>
    %477 = arith.addf %476, %315 : vector<8x128xf32>
    %478 = arith.mulf %466, %477 : vector<8x128xf32>
    %479 = arith.addf %475, %478 : vector<8x128xf32>
    %480 = math.tanh %479 : vector<8x128xf32>
    %481 = arith.subf %449, %480 : vector<8x128xf32>
    %482 = arith.mulf %474, %481 : vector<8x128xf32>
    %483 = arith.addf %480, %482 : vector<8x128xf32>
    %484 = arith.index_cast %c4_i32_134 : i32 to index
    %c0_140 = arith.constant 0 : index
    %c0_141 = arith.constant 0 : index
    %485 = vector.load %arg8[%484, %c0_140, %c0_141] : memref<8x8x128xf32, #tpu.memory_space<vmem>>, vector<1x8x128xf32>
    %486 = vector.shape_cast %485 : vector<1x8x128xf32> to vector<8x128xf32>
    %487 = vector.shape_cast %483 : vector<8x128xf32> to vector<1x8x128xf32>
    tpu.vector_store %arg8[%484, %c0_140, %c0_141], %487 {strides = array<i32>} : memref<8x8x128xf32, #tpu.memory_space<vmem>>, vector<1x8x128xf32>,
    %c5_i32_142 = arith.constant 5 : i32
    %488 = arith.index_cast %c5_i32_142 : i32 to index
    %c0_143 = arith.constant 0 : index
    %c0_144 = arith.constant 0 : index
    %489 = vector.load %arg9[%488, %c0_143, %c0_144] : memref<8x8x384xf32, #tpu.memory_space<vmem>>, vector<1x8x384xf32>
    %490 = vector.shape_cast %489 : vector<1x8x384xf32> to vector<8x384xf32>
    %491 = arith.truncf %483 : vector<8x128xf32> to vector<8x128xbf16>
    %cst_145 = arith.constant dense<0.000000e+00> : vector<8x384xf32>
    %492 = tpu.matmul %491, %311, %cst_145 {dimension_numbers = #tpu.dot_dimension_numbers<[1], [0], [0], [1], [0, 0, 1, 1], [], []>} : vector<8x128xbf16>, vector<128x384xbf16>, vector<8x384xf32> -> vector<8x384xf32>
    %493 = vector.extract_strided_slice %490 {offsets = [0, 0], sizes = [8, 128], strides = [1, 1]} : vector<8x384xf32> to vector<8x128xf32>
    %494 = vector.extract_strided_slice %492 {offsets = [0, 0], sizes = [8, 128], strides = [1, 1]} : vector<8x384xf32> to vector<8x128xf32>
    %495 = arith.addf %493, %494 : vector<8x128xf32>
    %496 = arith.negf %495 : vector<8x128xf32>
    %497 = math.exp %496 : vector<8x128xf32>
    %cst_146 = arith.constant 1.000000e+00 : f32
    %498 = vector.broadcast %cst_146 : f32 to vector<8x128xf32>
    %499 = arith.addf %498, %497 : vector<8x128xf32>
    %500 = arith.divf %498, %499 : vector<8x128xf32>
    %501 = vector.extract_strided_slice %490 {offsets = [0, 128], sizes = [8, 128], strides = [1, 1]} : vector<8x384xf32> to vector<8x128xf32>
    %502 = vector.extract_strided_slice %492 {offsets = [0, 128], sizes = [8, 128], strides = [1, 1]} : vector<8x384xf32> to vector<8x128xf32>
    %503 = arith.addf %501, %502 : vector<8x128xf32>
    %504 = arith.negf %503 : vector<8x128xf32>
    %505 = math.exp %504 : vector<8x128xf32>
    %cst_147 = arith.constant 1.000000e+00 : f32
    %506 = vector.broadcast %cst_147 : f32 to vector<8x128xf32>
    %507 = arith.addf %506, %505 : vector<8x128xf32>
    %508 = arith.divf %506, %507 : vector<8x128xf32>
    %509 = vector.extract_strided_slice %490 {offsets = [0, 256], sizes = [8, 128], strides = [1, 1]} : vector<8x384xf32> to vector<8x128xf32>
    %510 = vector.extract_strided_slice %492 {offsets = [0, 256], sizes = [8, 128], strides = [1, 1]} : vector<8x384xf32> to vector<8x128xf32>
    %511 = arith.addf %510, %315 : vector<8x128xf32>
    %512 = arith.mulf %500, %511 : vector<8x128xf32>
    %513 = arith.addf %509, %512 : vector<8x128xf32>
    %514 = math.tanh %513 : vector<8x128xf32>
    %515 = arith.subf %483, %514 : vector<8x128xf32>
    %516 = arith.mulf %508, %515 : vector<8x128xf32>
    %517 = arith.addf %514, %516 : vector<8x128xf32>
    %518 = arith.index_cast %c5_i32_142 : i32 to index
    %c0_148 = arith.constant 0 : index
    %c0_149 = arith.constant 0 : index
    %519 = vector.load %arg8[%518, %c0_148, %c0_149] : memref<8x8x128xf32, #tpu.memory_space<vmem>>, vector<1x8x128xf32>
    %520 = vector.shape_cast %519 : vector<1x8x128xf32> to vector<8x128xf32>
    %521 = vector.shape_cast %517 : vector<8x128xf32> to vector<1x8x128xf32>
    tpu.vector_store %arg8[%518, %c0_148, %c0_149], %521 {strides = array<i32>} : memref<8x8x128xf32, #tpu.memory_space<vmem>>, vector<1x8x128xf32>,
    %c6_i32_150 = arith.constant 6 : i32
    %522 = arith.index_cast %c6_i32_150 : i32 to index
    %c0_151 = arith.constant 0 : index
    %c0_152 = arith.constant 0 : index
    %523 = vector.load %arg9[%522, %c0_151, %c0_152] : memref<8x8x384xf32, #tpu.memory_space<vmem>>, vector<1x8x384xf32>
    %524 = vector.shape_cast %523 : vector<1x8x384xf32> to vector<8x384xf32>
    %525 = arith.truncf %517 : vector<8x128xf32> to vector<8x128xbf16>
    %cst_153 = arith.constant dense<0.000000e+00> : vector<8x384xf32>
    %526 = tpu.matmul %525, %311, %cst_153 {dimension_numbers = #tpu.dot_dimension_numbers<[1], [0], [0], [1], [0, 0, 1, 1], [], []>} : vector<8x128xbf16>, vector<128x384xbf16>, vector<8x384xf32> -> vector<8x384xf32>
    %527 = vector.extract_strided_slice %524 {offsets = [0, 0], sizes = [8, 128], strides = [1, 1]} : vector<8x384xf32> to vector<8x128xf32>
    %528 = vector.extract_strided_slice %526 {offsets = [0, 0], sizes = [8, 128], strides = [1, 1]} : vector<8x384xf32> to vector<8x128xf32>
    %529 = arith.addf %527, %528 : vector<8x128xf32>
    %530 = arith.negf %529 : vector<8x128xf32>
    %531 = math.exp %530 : vector<8x128xf32>
    %cst_154 = arith.constant 1.000000e+00 : f32
    %532 = vector.broadcast %cst_154 : f32 to vector<8x128xf32>
    %533 = arith.addf %532, %531 : vector<8x128xf32>
    %534 = arith.divf %532, %533 : vector<8x128xf32>
    %535 = vector.extract_strided_slice %524 {offsets = [0, 128], sizes = [8, 128], strides = [1, 1]} : vector<8x384xf32> to vector<8x128xf32>
    %536 = vector.extract_strided_slice %526 {offsets = [0, 128], sizes = [8, 128], strides = [1, 1]} : vector<8x384xf32> to vector<8x128xf32>
    %537 = arith.addf %535, %536 : vector<8x128xf32>
    %538 = arith.negf %537 : vector<8x128xf32>
    %539 = math.exp %538 : vector<8x128xf32>
    %cst_155 = arith.constant 1.000000e+00 : f32
    %540 = vector.broadcast %cst_155 : f32 to vector<8x128xf32>
    %541 = arith.addf %540, %539 : vector<8x128xf32>
    %542 = arith.divf %540, %541 : vector<8x128xf32>
    %543 = vector.extract_strided_slice %524 {offsets = [0, 256], sizes = [8, 128], strides = [1, 1]} : vector<8x384xf32> to vector<8x128xf32>
    %544 = vector.extract_strided_slice %526 {offsets = [0, 256], sizes = [8, 128], strides = [1, 1]} : vector<8x384xf32> to vector<8x128xf32>
    %545 = arith.addf %544, %315 : vector<8x128xf32>
    %546 = arith.mulf %534, %545 : vector<8x128xf32>
    %547 = arith.addf %543, %546 : vector<8x128xf32>
    %548 = math.tanh %547 : vector<8x128xf32>
    %549 = arith.subf %517, %548 : vector<8x128xf32>
    %550 = arith.mulf %542, %549 : vector<8x128xf32>
    %551 = arith.addf %548, %550 : vector<8x128xf32>
    %552 = arith.index_cast %c6_i32_150 : i32 to index
    %c0_156 = arith.constant 0 : index
    %c0_157 = arith.constant 0 : index
    %553 = vector.load %arg8[%552, %c0_156, %c0_157] : memref<8x8x128xf32, #tpu.memory_space<vmem>>, vector<1x8x128xf32>
    %554 = vector.shape_cast %553 : vector<1x8x128xf32> to vector<8x128xf32>
    %555 = vector.shape_cast %551 : vector<8x128xf32> to vector<1x8x128xf32>
    tpu.vector_store %arg8[%552, %c0_156, %c0_157], %555 {strides = array<i32>} : memref<8x8x128xf32, #tpu.memory_space<vmem>>, vector<1x8x128xf32>,
    %c7_i32_158 = arith.constant 7 : i32
    %556 = arith.index_cast %c7_i32_158 : i32 to index
    %c0_159 = arith.constant 0 : index
    %c0_160 = arith.constant 0 : index
    %557 = vector.load %arg9[%556, %c0_159, %c0_160] : memref<8x8x384xf32, #tpu.memory_space<vmem>>, vector<1x8x384xf32>
    %558 = vector.shape_cast %557 : vector<1x8x384xf32> to vector<8x384xf32>
    %559 = arith.truncf %551 : vector<8x128xf32> to vector<8x128xbf16>
    %cst_161 = arith.constant dense<0.000000e+00> : vector<8x384xf32>
    %560 = tpu.matmul %559, %311, %cst_161 {dimension_numbers = #tpu.dot_dimension_numbers<[1], [0], [0], [1], [0, 0, 1, 1], [], []>} : vector<8x128xbf16>, vector<128x384xbf16>, vector<8x384xf32> -> vector<8x384xf32>
    %561 = vector.extract_strided_slice %558 {offsets = [0, 0], sizes = [8, 128], strides = [1, 1]} : vector<8x384xf32> to vector<8x128xf32>
    %562 = vector.extract_strided_slice %560 {offsets = [0, 0], sizes = [8, 128], strides = [1, 1]} : vector<8x384xf32> to vector<8x128xf32>
    %563 = arith.addf %561, %562 : vector<8x128xf32>
    %564 = arith.negf %563 : vector<8x128xf32>
    %565 = math.exp %564 : vector<8x128xf32>
    %cst_162 = arith.constant 1.000000e+00 : f32
    %566 = vector.broadcast %cst_162 : f32 to vector<8x128xf32>
    %567 = arith.addf %566, %565 : vector<8x128xf32>
    %568 = arith.divf %566, %567 : vector<8x128xf32>
    %569 = vector.extract_strided_slice %558 {offsets = [0, 128], sizes = [8, 128], strides = [1, 1]} : vector<8x384xf32> to vector<8x128xf32>
    %570 = vector.extract_strided_slice %560 {offsets = [0, 128], sizes = [8, 128], strides = [1, 1]} : vector<8x384xf32> to vector<8x128xf32>
    %571 = arith.addf %569, %570 : vector<8x128xf32>
    %572 = arith.negf %571 : vector<8x128xf32>
    %573 = math.exp %572 : vector<8x128xf32>
    %cst_163 = arith.constant 1.000000e+00 : f32
    %574 = vector.broadcast %cst_163 : f32 to vector<8x128xf32>
    %575 = arith.addf %574, %573 : vector<8x128xf32>
    %576 = arith.divf %574, %575 : vector<8x128xf32>
    %577 = vector.extract_strided_slice %558 {offsets = [0, 256], sizes = [8, 128], strides = [1, 1]} : vector<8x384xf32> to vector<8x128xf32>
    %578 = vector.extract_strided_slice %560 {offsets = [0, 256], sizes = [8, 128], strides = [1, 1]} : vector<8x384xf32> to vector<8x128xf32>
    %579 = arith.addf %578, %315 : vector<8x128xf32>
    %580 = arith.mulf %568, %579 : vector<8x128xf32>
    %581 = arith.addf %577, %580 : vector<8x128xf32>
    %582 = math.tanh %581 : vector<8x128xf32>
    %583 = arith.subf %551, %582 : vector<8x128xf32>
    %584 = arith.mulf %576, %583 : vector<8x128xf32>
    %585 = arith.addf %582, %584 : vector<8x128xf32>
    %586 = arith.index_cast %c7_i32_158 : i32 to index
    %c0_164 = arith.constant 0 : index
    %c0_165 = arith.constant 0 : index
    %587 = vector.load %arg8[%586, %c0_164, %c0_165] : memref<8x8x128xf32, #tpu.memory_space<vmem>>, vector<1x8x128xf32>
    %588 = vector.shape_cast %587 : vector<1x8x128xf32> to vector<8x128xf32>
    %589 = vector.shape_cast %585 : vector<8x128xf32> to vector<1x8x128xf32>
    tpu.vector_store %arg8[%586, %c0_164, %c0_165], %589 {strides = array<i32>} : memref<8x8x128xf32, #tpu.memory_space<vmem>>, vector<1x8x128xf32>,
    %c8_i32_166 = arith.constant 8 : i32
    %c1_167 = arith.constant 1 : index
    %c0_168 = arith.constant 0 : index
    %c0_169 = arith.constant 0 : index
    %590 = vector.load %arg7[%c1_167, %c0_168, %c0_169] : memref<5x8x128xf32, #tpu.memory_space<vmem>>, vector<1x8x128xf32>
    %591 = vector.shape_cast %590 : vector<1x8x128xf32> to vector<8x128xf32>
    %592 = vector.shape_cast %585 : vector<8x128xf32> to vector<1x8x128xf32>
    tpu.vector_store %arg7[%c1_167, %c0_168, %c0_169], %592 {strides = array<i32>} : memref<5x8x128xf32, #tpu.memory_space<vmem>>, vector<1x8x128xf32>,
    %c0_170 = arith.constant 0 : index
    %c0_171 = arith.constant 0 : index
    %c0_172 = arith.constant 0 : index
    %593 = vector.load %arg8[%c0_170, %c0_171, %c0_172] : memref<8x8x128xf32, #tpu.memory_space<vmem>>, vector<8x8x128xf32>
    %594 = vector.shape_cast %593 : vector<8x8x128xf32> to vector<64x128xf32>
    %595 = arith.truncf %594 : vector<64x128xf32> to vector<64x128xbf16>
    %c2 = arith.constant 2 : index
    %c0_173 = arith.constant 0 : index
    %c0_174 = arith.constant 0 : index
    %596 = vector.load %arg2[%c2, %c0_173, %c0_174] : memref<5x128x384xbf16, #tpu.memory_space<vmem>>, vector<1x128x384xbf16>
    %597 = vector.shape_cast %596 : vector<1x128x384xbf16> to vector<128x384xbf16>
    %cst_175 = arith.constant dense<0.000000e+00> : vector<64x384xf32>
    %598 = tpu.matmul %595, %597, %cst_175 {dimension_numbers = #tpu.dot_dimension_numbers<[1], [0], [0], [1], [0, 0, 1, 1], [], []>} : vector<64x128xbf16>, vector<128x384xbf16>, vector<64x384xf32> -> vector<64x384xf32>
    %c2_176 = arith.constant 2 : index
    %c0_177 = arith.constant 0 : index
    %c0_178 = arith.constant 0 : index
    %599 = vector.load %arg4[%c2_176, %c0_177, %c0_178] : memref<5x1x384xf32, #tpu.memory_space<vmem>>, vector<1x1x384xf32>
    %600 = vector.shape_cast %599 : vector<1x1x384xf32> to vector<1x384xf32>
    %601 = vector.broadcast %600 : vector<1x384xf32> to vector<64x384xf32>
    %602 = arith.addf %598, %601 : vector<64x384xf32>
    %603 = vector.shape_cast %602 : vector<64x384xf32> to vector<8x8x384xf32>
    %c0_179 = arith.constant 0 : index
    %c0_180 = arith.constant 0 : index
    %c0_181 = arith.constant 0 : index
    %604 = vector.load %arg9[%c0_179, %c0_180, %c0_181] : memref<8x8x384xf32, #tpu.memory_space<vmem>>, vector<8x8x384xf32>
    tpu.vector_store %arg9[%c0_179, %c0_180, %c0_181], %603 {strides = array<i32>} : memref<8x8x384xf32, #tpu.memory_space<vmem>>, vector<8x8x384xf32>,
    %c2_182 = arith.constant 2 : index
    %c0_183 = arith.constant 0 : index
    %c0_184 = arith.constant 0 : index
    %605 = vector.load %arg3[%c2_182, %c0_183, %c0_184] : memref<5x128x384xbf16, #tpu.memory_space<vmem>>, vector<1x128x384xbf16>
    %606 = vector.shape_cast %605 : vector<1x128x384xbf16> to vector<128x384xbf16>
    %c2_185 = arith.constant 2 : index
    %c0_186 = arith.constant 0 : index
    %c0_187 = arith.constant 0 : index
    %607 = vector.load %arg5[%c2_185, %c0_186, %c0_187] : memref<5x1x128xf32, #tpu.memory_space<vmem>>, vector<1x1x128xf32>
    %608 = vector.shape_cast %607 : vector<1x1x128xf32> to vector<1x128xf32>
    %609 = vector.shape_cast %608 : vector<1x128xf32> to vector<1x128xf32>
    %610 = vector.broadcast %609 : vector<1x128xf32> to vector<8x128xf32>
    %c2_188 = arith.constant 2 : index
    %c0_189 = arith.constant 0 : index
    %c0_190 = arith.constant 0 : index
    %611 = vector.load %arg7[%c2_188, %c0_189, %c0_190] : memref<5x8x128xf32, #tpu.memory_space<vmem>>, vector<1x8x128xf32>
    %612 = vector.shape_cast %611 : vector<1x8x128xf32> to vector<8x128xf32>
    %c0_i32_191 = arith.constant 0 : i32
    %613 = arith.index_cast %c0_i32_191 : i32 to index
    %c0_192 = arith.constant 0 : index
    %c0_193 = arith.constant 0 : index
    %614 = vector.load %arg9[%613, %c0_192, %c0_193] : memref<8x8x384xf32, #tpu.memory_space<vmem>>, vector<1x8x384xf32>
    %615 = vector.shape_cast %614 : vector<1x8x384xf32> to vector<8x384xf32>
    %616 = arith.truncf %612 : vector<8x128xf32> to vector<8x128xbf16>
    %cst_194 = arith.constant dense<0.000000e+00> : vector<8x384xf32>
    %617 = tpu.matmul %616, %606, %cst_194 {dimension_numbers = #tpu.dot_dimension_numbers<[1], [0], [0], [1], [0, 0, 1, 1], [], []>} : vector<8x128xbf16>, vector<128x384xbf16>, vector<8x384xf32> -> vector<8x384xf32>
    %618 = vector.extract_strided_slice %615 {offsets = [0, 0], sizes = [8, 128], strides = [1, 1]} : vector<8x384xf32> to vector<8x128xf32>
    %619 = vector.extract_strided_slice %617 {offsets = [0, 0], sizes = [8, 128], strides = [1, 1]} : vector<8x384xf32> to vector<8x128xf32>
    %620 = arith.addf %618, %619 : vector<8x128xf32>
    %621 = arith.negf %620 : vector<8x128xf32>
    %622 = math.exp %621 : vector<8x128xf32>
    %cst_195 = arith.constant 1.000000e+00 : f32
    %623 = vector.broadcast %cst_195 : f32 to vector<8x128xf32>
    %624 = arith.addf %623, %622 : vector<8x128xf32>
    %625 = arith.divf %623, %624 : vector<8x128xf32>
    %626 = vector.extract_strided_slice %615 {offsets = [0, 128], sizes = [8, 128], strides = [1, 1]} : vector<8x384xf32> to vector<8x128xf32>
    %627 = vector.extract_strided_slice %617 {offsets = [0, 128], sizes = [8, 128], strides = [1, 1]} : vector<8x384xf32> to vector<8x128xf32>
    %628 = arith.addf %626, %627 : vector<8x128xf32>
    %629 = arith.negf %628 : vector<8x128xf32>
    %630 = math.exp %629 : vector<8x128xf32>
    %cst_196 = arith.constant 1.000000e+00 : f32
    %631 = vector.broadcast %cst_196 : f32 to vector<8x128xf32>
    %632 = arith.addf %631, %630 : vector<8x128xf32>
    %633 = arith.divf %631, %632 : vector<8x128xf32>
    %634 = vector.extract_strided_slice %615 {offsets = [0, 256], sizes = [8, 128], strides = [1, 1]} : vector<8x384xf32> to vector<8x128xf32>
    %635 = vector.extract_strided_slice %617 {offsets = [0, 256], sizes = [8, 128], strides = [1, 1]} : vector<8x384xf32> to vector<8x128xf32>
    %636 = arith.addf %635, %610 : vector<8x128xf32>
    %637 = arith.mulf %625, %636 : vector<8x128xf32>
    %638 = arith.addf %634, %637 : vector<8x128xf32>
    %639 = math.tanh %638 : vector<8x128xf32>
    %640 = arith.subf %612, %639 : vector<8x128xf32>
    %641 = arith.mulf %633, %640 : vector<8x128xf32>
    %642 = arith.addf %639, %641 : vector<8x128xf32>
    %643 = arith.index_cast %c0_i32_191 : i32 to index
    %c0_197 = arith.constant 0 : index
    %c0_198 = arith.constant 0 : index
    %644 = vector.load %arg8[%643, %c0_197, %c0_198] : memref<8x8x128xf32, #tpu.memory_space<vmem>>, vector<1x8x128xf32>
    %645 = vector.shape_cast %644 : vector<1x8x128xf32> to vector<8x128xf32>
    %646 = vector.shape_cast %642 : vector<8x128xf32> to vector<1x8x128xf32>
    tpu.vector_store %arg8[%643, %c0_197, %c0_198], %646 {strides = array<i32>} : memref<8x8x128xf32, #tpu.memory_space<vmem>>, vector<1x8x128xf32>,
    %c1_i32_199 = arith.constant 1 : i32
    %647 = arith.index_cast %c1_i32_199 : i32 to index
    %c0_200 = arith.constant 0 : index
    %c0_201 = arith.constant 0 : index
    %648 = vector.load %arg9[%647, %c0_200, %c0_201] : memref<8x8x384xf32, #tpu.memory_space<vmem>>, vector<1x8x384xf32>
    %649 = vector.shape_cast %648 : vector<1x8x384xf32> to vector<8x384xf32>
    %650 = arith.truncf %642 : vector<8x128xf32> to vector<8x128xbf16>
    %cst_202 = arith.constant dense<0.000000e+00> : vector<8x384xf32>
    %651 = tpu.matmul %650, %606, %cst_202 {dimension_numbers = #tpu.dot_dimension_numbers<[1], [0], [0], [1], [0, 0, 1, 1], [], []>} : vector<8x128xbf16>, vector<128x384xbf16>, vector<8x384xf32> -> vector<8x384xf32>
    %652 = vector.extract_strided_slice %649 {offsets = [0, 0], sizes = [8, 128], strides = [1, 1]} : vector<8x384xf32> to vector<8x128xf32>
    %653 = vector.extract_strided_slice %651 {offsets = [0, 0], sizes = [8, 128], strides = [1, 1]} : vector<8x384xf32> to vector<8x128xf32>
    %654 = arith.addf %652, %653 : vector<8x128xf32>
    %655 = arith.negf %654 : vector<8x128xf32>
    %656 = math.exp %655 : vector<8x128xf32>
    %cst_203 = arith.constant 1.000000e+00 : f32
    %657 = vector.broadcast %cst_203 : f32 to vector<8x128xf32>
    %658 = arith.addf %657, %656 : vector<8x128xf32>
    %659 = arith.divf %657, %658 : vector<8x128xf32>
    %660 = vector.extract_strided_slice %649 {offsets = [0, 128], sizes = [8, 128], strides = [1, 1]} : vector<8x384xf32> to vector<8x128xf32>
    %661 = vector.extract_strided_slice %651 {offsets = [0, 128], sizes = [8, 128], strides = [1, 1]} : vector<8x384xf32> to vector<8x128xf32>
    %662 = arith.addf %660, %661 : vector<8x128xf32>
    %663 = arith.negf %662 : vector<8x128xf32>
    %664 = math.exp %663 : vector<8x128xf32>
    %cst_204 = arith.constant 1.000000e+00 : f32
    %665 = vector.broadcast %cst_204 : f32 to vector<8x128xf32>
    %666 = arith.addf %665, %664 : vector<8x128xf32>
    %667 = arith.divf %665, %666 : vector<8x128xf32>
    %668 = vector.extract_strided_slice %649 {offsets = [0, 256], sizes = [8, 128], strides = [1, 1]} : vector<8x384xf32> to vector<8x128xf32>
    %669 = vector.extract_strided_slice %651 {offsets = [0, 256], sizes = [8, 128], strides = [1, 1]} : vector<8x384xf32> to vector<8x128xf32>
    %670 = arith.addf %669, %610 : vector<8x128xf32>
    %671 = arith.mulf %659, %670 : vector<8x128xf32>
    %672 = arith.addf %668, %671 : vector<8x128xf32>
    %673 = math.tanh %672 : vector<8x128xf32>
    %674 = arith.subf %642, %673 : vector<8x128xf32>
    %675 = arith.mulf %667, %674 : vector<8x128xf32>
    %676 = arith.addf %673, %675 : vector<8x128xf32>
    %677 = arith.index_cast %c1_i32_199 : i32 to index
    %c0_205 = arith.constant 0 : index
    %c0_206 = arith.constant 0 : index
    %678 = vector.load %arg8[%677, %c0_205, %c0_206] : memref<8x8x128xf32, #tpu.memory_space<vmem>>, vector<1x8x128xf32>
    %679 = vector.shape_cast %678 : vector<1x8x128xf32> to vector<8x128xf32>
    %680 = vector.shape_cast %676 : vector<8x128xf32> to vector<1x8x128xf32>
    tpu.vector_store %arg8[%677, %c0_205, %c0_206], %680 {strides = array<i32>} : memref<8x8x128xf32, #tpu.memory_space<vmem>>, vector<1x8x128xf32>,
    %c2_i32_207 = arith.constant 2 : i32
    %681 = arith.index_cast %c2_i32_207 : i32 to index
    %c0_208 = arith.constant 0 : index
    %c0_209 = arith.constant 0 : index
    %682 = vector.load %arg9[%681, %c0_208, %c0_209] : memref<8x8x384xf32, #tpu.memory_space<vmem>>, vector<1x8x384xf32>
    %683 = vector.shape_cast %682 : vector<1x8x384xf32> to vector<8x384xf32>
    %684 = arith.truncf %676 : vector<8x128xf32> to vector<8x128xbf16>
    %cst_210 = arith.constant dense<0.000000e+00> : vector<8x384xf32>
    %685 = tpu.matmul %684, %606, %cst_210 {dimension_numbers = #tpu.dot_dimension_numbers<[1], [0], [0], [1], [0, 0, 1, 1], [], []>} : vector<8x128xbf16>, vector<128x384xbf16>, vector<8x384xf32> -> vector<8x384xf32>
    %686 = vector.extract_strided_slice %683 {offsets = [0, 0], sizes = [8, 128], strides = [1, 1]} : vector<8x384xf32> to vector<8x128xf32>
    %687 = vector.extract_strided_slice %685 {offsets = [0, 0], sizes = [8, 128], strides = [1, 1]} : vector<8x384xf32> to vector<8x128xf32>
    %688 = arith.addf %686, %687 : vector<8x128xf32>
    %689 = arith.negf %688 : vector<8x128xf32>
    %690 = math.exp %689 : vector<8x128xf32>
    %cst_211 = arith.constant 1.000000e+00 : f32
    %691 = vector.broadcast %cst_211 : f32 to vector<8x128xf32>
    %692 = arith.addf %691, %690 : vector<8x128xf32>
    %693 = arith.divf %691, %692 : vector<8x128xf32>
    %694 = vector.extract_strided_slice %683 {offsets = [0, 128], sizes = [8, 128], strides = [1, 1]} : vector<8x384xf32> to vector<8x128xf32>
    %695 = vector.extract_strided_slice %685 {offsets = [0, 128], sizes = [8, 128], strides = [1, 1]} : vector<8x384xf32> to vector<8x128xf32>
    %696 = arith.addf %694, %695 : vector<8x128xf32>
    %697 = arith.negf %696 : vector<8x128xf32>
    %698 = math.exp %697 : vector<8x128xf32>
    %cst_212 = arith.constant 1.000000e+00 : f32
    %699 = vector.broadcast %cst_212 : f32 to vector<8x128xf32>
    %700 = arith.addf %699, %698 : vector<8x128xf32>
    %701 = arith.divf %699, %700 : vector<8x128xf32>
    %702 = vector.extract_strided_slice %683 {offsets = [0, 256], sizes = [8, 128], strides = [1, 1]} : vector<8x384xf32> to vector<8x128xf32>
    %703 = vector.extract_strided_slice %685 {offsets = [0, 256], sizes = [8, 128], strides = [1, 1]} : vector<8x384xf32> to vector<8x128xf32>
    %704 = arith.addf %703, %610 : vector<8x128xf32>
    %705 = arith.mulf %693, %704 : vector<8x128xf32>
    %706 = arith.addf %702, %705 : vector<8x128xf32>
    %707 = math.tanh %706 : vector<8x128xf32>
    %708 = arith.subf %676, %707 : vector<8x128xf32>
    %709 = arith.mulf %701, %708 : vector<8x128xf32>
    %710 = arith.addf %707, %709 : vector<8x128xf32>
    %711 = arith.index_cast %c2_i32_207 : i32 to index
    %c0_213 = arith.constant 0 : index
    %c0_214 = arith.constant 0 : index
    %712 = vector.load %arg8[%711, %c0_213, %c0_214] : memref<8x8x128xf32, #tpu.memory_space<vmem>>, vector<1x8x128xf32>
    %713 = vector.shape_cast %712 : vector<1x8x128xf32> to vector<8x128xf32>
    %714 = vector.shape_cast %710 : vector<8x128xf32> to vector<1x8x128xf32>
    tpu.vector_store %arg8[%711, %c0_213, %c0_214], %714 {strides = array<i32>} : memref<8x8x128xf32, #tpu.memory_space<vmem>>, vector<1x8x128xf32>,
    %c3_i32_215 = arith.constant 3 : i32
    %715 = arith.index_cast %c3_i32_215 : i32 to index
    %c0_216 = arith.constant 0 : index
    %c0_217 = arith.constant 0 : index
    %716 = vector.load %arg9[%715, %c0_216, %c0_217] : memref<8x8x384xf32, #tpu.memory_space<vmem>>, vector<1x8x384xf32>
    %717 = vector.shape_cast %716 : vector<1x8x384xf32> to vector<8x384xf32>
    %718 = arith.truncf %710 : vector<8x128xf32> to vector<8x128xbf16>
    %cst_218 = arith.constant dense<0.000000e+00> : vector<8x384xf32>
    %719 = tpu.matmul %718, %606, %cst_218 {dimension_numbers = #tpu.dot_dimension_numbers<[1], [0], [0], [1], [0, 0, 1, 1], [], []>} : vector<8x128xbf16>, vector<128x384xbf16>, vector<8x384xf32> -> vector<8x384xf32>
    %720 = vector.extract_strided_slice %717 {offsets = [0, 0], sizes = [8, 128], strides = [1, 1]} : vector<8x384xf32> to vector<8x128xf32>
    %721 = vector.extract_strided_slice %719 {offsets = [0, 0], sizes = [8, 128], strides = [1, 1]} : vector<8x384xf32> to vector<8x128xf32>
    %722 = arith.addf %720, %721 : vector<8x128xf32>
    %723 = arith.negf %722 : vector<8x128xf32>
    %724 = math.exp %723 : vector<8x128xf32>
    %cst_219 = arith.constant 1.000000e+00 : f32
    %725 = vector.broadcast %cst_219 : f32 to vector<8x128xf32>
    %726 = arith.addf %725, %724 : vector<8x128xf32>
    %727 = arith.divf %725, %726 : vector<8x128xf32>
    %728 = vector.extract_strided_slice %717 {offsets = [0, 128], sizes = [8, 128], strides = [1, 1]} : vector<8x384xf32> to vector<8x128xf32>
    %729 = vector.extract_strided_slice %719 {offsets = [0, 128], sizes = [8, 128], strides = [1, 1]} : vector<8x384xf32> to vector<8x128xf32>
    %730 = arith.addf %728, %729 : vector<8x128xf32>
    %731 = arith.negf %730 : vector<8x128xf32>
    %732 = math.exp %731 : vector<8x128xf32>
    %cst_220 = arith.constant 1.000000e+00 : f32
    %733 = vector.broadcast %cst_220 : f32 to vector<8x128xf32>
    %734 = arith.addf %733, %732 : vector<8x128xf32>
    %735 = arith.divf %733, %734 : vector<8x128xf32>
    %736 = vector.extract_strided_slice %717 {offsets = [0, 256], sizes = [8, 128], strides = [1, 1]} : vector<8x384xf32> to vector<8x128xf32>
    %737 = vector.extract_strided_slice %719 {offsets = [0, 256], sizes = [8, 128], strides = [1, 1]} : vector<8x384xf32> to vector<8x128xf32>
    %738 = arith.addf %737, %610 : vector<8x128xf32>
    %739 = arith.mulf %727, %738 : vector<8x128xf32>
    %740 = arith.addf %736, %739 : vector<8x128xf32>
    %741 = math.tanh %740 : vector<8x128xf32>
    %742 = arith.subf %710, %741 : vector<8x128xf32>
    %743 = arith.mulf %735, %742 : vector<8x128xf32>
    %744 = arith.addf %741, %743 : vector<8x128xf32>
    %745 = arith.index_cast %c3_i32_215 : i32 to index
    %c0_221 = arith.constant 0 : index
    %c0_222 = arith.constant 0 : index
    %746 = vector.load %arg8[%745, %c0_221, %c0_222] : memref<8x8x128xf32, #tpu.memory_space<vmem>>, vector<1x8x128xf32>
    %747 = vector.shape_cast %746 : vector<1x8x128xf32> to vector<8x128xf32>
    %748 = vector.shape_cast %744 : vector<8x128xf32> to vector<1x8x128xf32>
    tpu.vector_store %arg8[%745, %c0_221, %c0_222], %748 {strides = array<i32>} : memref<8x8x128xf32, #tpu.memory_space<vmem>>, vector<1x8x128xf32>,
    %c4_i32_223 = arith.constant 4 : i32
    %749 = arith.index_cast %c4_i32_223 : i32 to index
    %c0_224 = arith.constant 0 : index
    %c0_225 = arith.constant 0 : index
    %750 = vector.load %arg9[%749, %c0_224, %c0_225] : memref<8x8x384xf32, #tpu.memory_space<vmem>>, vector<1x8x384xf32>
    %751 = vector.shape_cast %750 : vector<1x8x384xf32> to vector<8x384xf32>
    %752 = arith.truncf %744 : vector<8x128xf32> to vector<8x128xbf16>
    %cst_226 = arith.constant dense<0.000000e+00> : vector<8x384xf32>
    %753 = tpu.matmul %752, %606, %cst_226 {dimension_numbers = #tpu.dot_dimension_numbers<[1], [0], [0], [1], [0, 0, 1, 1], [], []>} : vector<8x128xbf16>, vector<128x384xbf16>, vector<8x384xf32> -> vector<8x384xf32>
    %754 = vector.extract_strided_slice %751 {offsets = [0, 0], sizes = [8, 128], strides = [1, 1]} : vector<8x384xf32> to vector<8x128xf32>
    %755 = vector.extract_strided_slice %753 {offsets = [0, 0], sizes = [8, 128], strides = [1, 1]} : vector<8x384xf32> to vector<8x128xf32>
    %756 = arith.addf %754, %755 : vector<8x128xf32>
    %757 = arith.negf %756 : vector<8x128xf32>
    %758 = math.exp %757 : vector<8x128xf32>
    %cst_227 = arith.constant 1.000000e+00 : f32
    %759 = vector.broadcast %cst_227 : f32 to vector<8x128xf32>
    %760 = arith.addf %759, %758 : vector<8x128xf32>
    %761 = arith.divf %759, %760 : vector<8x128xf32>
    %762 = vector.extract_strided_slice %751 {offsets = [0, 128], sizes = [8, 128], strides = [1, 1]} : vector<8x384xf32> to vector<8x128xf32>
    %763 = vector.extract_strided_slice %753 {offsets = [0, 128], sizes = [8, 128], strides = [1, 1]} : vector<8x384xf32> to vector<8x128xf32>
    %764 = arith.addf %762, %763 : vector<8x128xf32>
    %765 = arith.negf %764 : vector<8x128xf32>
    %766 = math.exp %765 : vector<8x128xf32>
    %cst_228 = arith.constant 1.000000e+00 : f32
    %767 = vector.broadcast %cst_228 : f32 to vector<8x128xf32>
    %768 = arith.addf %767, %766 : vector<8x128xf32>
    %769 = arith.divf %767, %768 : vector<8x128xf32>
    %770 = vector.extract_strided_slice %751 {offsets = [0, 256], sizes = [8, 128], strides = [1, 1]} : vector<8x384xf32> to vector<8x128xf32>
    %771 = vector.extract_strided_slice %753 {offsets = [0, 256], sizes = [8, 128], strides = [1, 1]} : vector<8x384xf32> to vector<8x128xf32>
    %772 = arith.addf %771, %610 : vector<8x128xf32>
    %773 = arith.mulf %761, %772 : vector<8x128xf32>
    %774 = arith.addf %770, %773 : vector<8x128xf32>
    %775 = math.tanh %774 : vector<8x128xf32>
    %776 = arith.subf %744, %775 : vector<8x128xf32>
    %777 = arith.mulf %769, %776 : vector<8x128xf32>
    %778 = arith.addf %775, %777 : vector<8x128xf32>
    %779 = arith.index_cast %c4_i32_223 : i32 to index
    %c0_229 = arith.constant 0 : index
    %c0_230 = arith.constant 0 : index
    %780 = vector.load %arg8[%779, %c0_229, %c0_230] : memref<8x8x128xf32, #tpu.memory_space<vmem>>, vector<1x8x128xf32>
    %781 = vector.shape_cast %780 : vector<1x8x128xf32> to vector<8x128xf32>
    %782 = vector.shape_cast %778 : vector<8x128xf32> to vector<1x8x128xf32>
    tpu.vector_store %arg8[%779, %c0_229, %c0_230], %782 {strides = array<i32>} : memref<8x8x128xf32, #tpu.memory_space<vmem>>, vector<1x8x128xf32>,
    %c5_i32_231 = arith.constant 5 : i32
    %783 = arith.index_cast %c5_i32_231 : i32 to index
    %c0_232 = arith.constant 0 : index
    %c0_233 = arith.constant 0 : index
    %784 = vector.load %arg9[%783, %c0_232, %c0_233] : memref<8x8x384xf32, #tpu.memory_space<vmem>>, vector<1x8x384xf32>
    %785 = vector.shape_cast %784 : vector<1x8x384xf32> to vector<8x384xf32>
    %786 = arith.truncf %778 : vector<8x128xf32> to vector<8x128xbf16>
    %cst_234 = arith.constant dense<0.000000e+00> : vector<8x384xf32>
    %787 = tpu.matmul %786, %606, %cst_234 {dimension_numbers = #tpu.dot_dimension_numbers<[1], [0], [0], [1], [0, 0, 1, 1], [], []>} : vector<8x128xbf16>, vector<128x384xbf16>, vector<8x384xf32> -> vector<8x384xf32>
    %788 = vector.extract_strided_slice %785 {offsets = [0, 0], sizes = [8, 128], strides = [1, 1]} : vector<8x384xf32> to vector<8x128xf32>
    %789 = vector.extract_strided_slice %787 {offsets = [0, 0], sizes = [8, 128], strides = [1, 1]} : vector<8x384xf32> to vector<8x128xf32>
    %790 = arith.addf %788, %789 : vector<8x128xf32>
    %791 = arith.negf %790 : vector<8x128xf32>
    %792 = math.exp %791 : vector<8x128xf32>
    %cst_235 = arith.constant 1.000000e+00 : f32
    %793 = vector.broadcast %cst_235 : f32 to vector<8x128xf32>
    %794 = arith.addf %793, %792 : vector<8x128xf32>
    %795 = arith.divf %793, %794 : vector<8x128xf32>
    %796 = vector.extract_strided_slice %785 {offsets = [0, 128], sizes = [8, 128], strides = [1, 1]} : vector<8x384xf32> to vector<8x128xf32>
    %797 = vector.extract_strided_slice %787 {offsets = [0, 128], sizes = [8, 128], strides = [1, 1]} : vector<8x384xf32> to vector<8x128xf32>
    %798 = arith.addf %796, %797 : vector<8x128xf32>
    %799 = arith.negf %798 : vector<8x128xf32>
    %800 = math.exp %799 : vector<8x128xf32>
    %cst_236 = arith.constant 1.000000e+00 : f32
    %801 = vector.broadcast %cst_236 : f32 to vector<8x128xf32>
    %802 = arith.addf %801, %800 : vector<8x128xf32>
    %803 = arith.divf %801, %802 : vector<8x128xf32>
    %804 = vector.extract_strided_slice %785 {offsets = [0, 256], sizes = [8, 128], strides = [1, 1]} : vector<8x384xf32> to vector<8x128xf32>
    %805 = vector.extract_strided_slice %787 {offsets = [0, 256], sizes = [8, 128], strides = [1, 1]} : vector<8x384xf32> to vector<8x128xf32>
    %806 = arith.addf %805, %610 : vector<8x128xf32>
    %807 = arith.mulf %795, %806 : vector<8x128xf32>
    %808 = arith.addf %804, %807 : vector<8x128xf32>
    %809 = math.tanh %808 : vector<8x128xf32>
    %810 = arith.subf %778, %809 : vector<8x128xf32>
    %811 = arith.mulf %803, %810 : vector<8x128xf32>
    %812 = arith.addf %809, %811 : vector<8x128xf32>
    %813 = arith.index_cast %c5_i32_231 : i32 to index
    %c0_237 = arith.constant 0 : index
    %c0_238 = arith.constant 0 : index
    %814 = vector.load %arg8[%813, %c0_237, %c0_238] : memref<8x8x128xf32, #tpu.memory_space<vmem>>, vector<1x8x128xf32>
    %815 = vector.shape_cast %814 : vector<1x8x128xf32> to vector<8x128xf32>
    %816 = vector.shape_cast %812 : vector<8x128xf32> to vector<1x8x128xf32>
    tpu.vector_store %arg8[%813, %c0_237, %c0_238], %816 {strides = array<i32>} : memref<8x8x128xf32, #tpu.memory_space<vmem>>, vector<1x8x128xf32>,
    %c6_i32_239 = arith.constant 6 : i32
    %817 = arith.index_cast %c6_i32_239 : i32 to index
    %c0_240 = arith.constant 0 : index
    %c0_241 = arith.constant 0 : index
    %818 = vector.load %arg9[%817, %c0_240, %c0_241] : memref<8x8x384xf32, #tpu.memory_space<vmem>>, vector<1x8x384xf32>
    %819 = vector.shape_cast %818 : vector<1x8x384xf32> to vector<8x384xf32>
    %820 = arith.truncf %812 : vector<8x128xf32> to vector<8x128xbf16>
    %cst_242 = arith.constant dense<0.000000e+00> : vector<8x384xf32>
    %821 = tpu.matmul %820, %606, %cst_242 {dimension_numbers = #tpu.dot_dimension_numbers<[1], [0], [0], [1], [0, 0, 1, 1], [], []>} : vector<8x128xbf16>, vector<128x384xbf16>, vector<8x384xf32> -> vector<8x384xf32>
    %822 = vector.extract_strided_slice %819 {offsets = [0, 0], sizes = [8, 128], strides = [1, 1]} : vector<8x384xf32> to vector<8x128xf32>
    %823 = vector.extract_strided_slice %821 {offsets = [0, 0], sizes = [8, 128], strides = [1, 1]} : vector<8x384xf32> to vector<8x128xf32>
    %824 = arith.addf %822, %823 : vector<8x128xf32>
    %825 = arith.negf %824 : vector<8x128xf32>
    %826 = math.exp %825 : vector<8x128xf32>
    %cst_243 = arith.constant 1.000000e+00 : f32
    %827 = vector.broadcast %cst_243 : f32 to vector<8x128xf32>
    %828 = arith.addf %827, %826 : vector<8x128xf32>
    %829 = arith.divf %827, %828 : vector<8x128xf32>
    %830 = vector.extract_strided_slice %819 {offsets = [0, 128], sizes = [8, 128], strides = [1, 1]} : vector<8x384xf32> to vector<8x128xf32>
    %831 = vector.extract_strided_slice %821 {offsets = [0, 128], sizes = [8, 128], strides = [1, 1]} : vector<8x384xf32> to vector<8x128xf32>
    %832 = arith.addf %830, %831 : vector<8x128xf32>
    %833 = arith.negf %832 : vector<8x128xf32>
    %834 = math.exp %833 : vector<8x128xf32>
    %cst_244 = arith.constant 1.000000e+00 : f32
    %835 = vector.broadcast %cst_244 : f32 to vector<8x128xf32>
    %836 = arith.addf %835, %834 : vector<8x128xf32>
    %837 = arith.divf %835, %836 : vector<8x128xf32>
    %838 = vector.extract_strided_slice %819 {offsets = [0, 256], sizes = [8, 128], strides = [1, 1]} : vector<8x384xf32> to vector<8x128xf32>
    %839 = vector.extract_strided_slice %821 {offsets = [0, 256], sizes = [8, 128], strides = [1, 1]} : vector<8x384xf32> to vector<8x128xf32>
    %840 = arith.addf %839, %610 : vector<8x128xf32>
    %841 = arith.mulf %829, %840 : vector<8x128xf32>
    %842 = arith.addf %838, %841 : vector<8x128xf32>
    %843 = math.tanh %842 : vector<8x128xf32>
    %844 = arith.subf %812, %843 : vector<8x128xf32>
    %845 = arith.mulf %837, %844 : vector<8x128xf32>
    %846 = arith.addf %843, %845 : vector<8x128xf32>
    %847 = arith.index_cast %c6_i32_239 : i32 to index
    %c0_245 = arith.constant 0 : index
    %c0_246 = arith.constant 0 : index
    %848 = vector.load %arg8[%847, %c0_245, %c0_246] : memref<8x8x128xf32, #tpu.memory_space<vmem>>, vector<1x8x128xf32>
    %849 = vector.shape_cast %848 : vector<1x8x128xf32> to vector<8x128xf32>
    %850 = vector.shape_cast %846 : vector<8x128xf32> to vector<1x8x128xf32>
    tpu.vector_store %arg8[%847, %c0_245, %c0_246], %850 {strides = array<i32>} : memref<8x8x128xf32, #tpu.memory_space<vmem>>, vector<1x8x128xf32>,
    %c7_i32_247 = arith.constant 7 : i32
    %851 = arith.index_cast %c7_i32_247 : i32 to index
    %c0_248 = arith.constant 0 : index
    %c0_249 = arith.constant 0 : index
    %852 = vector.load %arg9[%851, %c0_248, %c0_249] : memref<8x8x384xf32, #tpu.memory_space<vmem>>, vector<1x8x384xf32>
    %853 = vector.shape_cast %852 : vector<1x8x384xf32> to vector<8x384xf32>
    %854 = arith.truncf %846 : vector<8x128xf32> to vector<8x128xbf16>
    %cst_250 = arith.constant dense<0.000000e+00> : vector<8x384xf32>
    %855 = tpu.matmul %854, %606, %cst_250 {dimension_numbers = #tpu.dot_dimension_numbers<[1], [0], [0], [1], [0, 0, 1, 1], [], []>} : vector<8x128xbf16>, vector<128x384xbf16>, vector<8x384xf32> -> vector<8x384xf32>
    %856 = vector.extract_strided_slice %853 {offsets = [0, 0], sizes = [8, 128], strides = [1, 1]} : vector<8x384xf32> to vector<8x128xf32>
    %857 = vector.extract_strided_slice %855 {offsets = [0, 0], sizes = [8, 128], strides = [1, 1]} : vector<8x384xf32> to vector<8x128xf32>
    %858 = arith.addf %856, %857 : vector<8x128xf32>
    %859 = arith.negf %858 : vector<8x128xf32>
    %860 = math.exp %859 : vector<8x128xf32>
    %cst_251 = arith.constant 1.000000e+00 : f32
    %861 = vector.broadcast %cst_251 : f32 to vector<8x128xf32>
    %862 = arith.addf %861, %860 : vector<8x128xf32>
    %863 = arith.divf %861, %862 : vector<8x128xf32>
    %864 = vector.extract_strided_slice %853 {offsets = [0, 128], sizes = [8, 128], strides = [1, 1]} : vector<8x384xf32> to vector<8x128xf32>
    %865 = vector.extract_strided_slice %855 {offsets = [0, 128], sizes = [8, 128], strides = [1, 1]} : vector<8x384xf32> to vector<8x128xf32>
    %866 = arith.addf %864, %865 : vector<8x128xf32>
    %867 = arith.negf %866 : vector<8x128xf32>
    %868 = math.exp %867 : vector<8x128xf32>
    %cst_252 = arith.constant 1.000000e+00 : f32
    %869 = vector.broadcast %cst_252 : f32 to vector<8x128xf32>
    %870 = arith.addf %869, %868 : vector<8x128xf32>
    %871 = arith.divf %869, %870 : vector<8x128xf32>
    %872 = vector.extract_strided_slice %853 {offsets = [0, 256], sizes = [8, 128], strides = [1, 1]} : vector<8x384xf32> to vector<8x128xf32>
    %873 = vector.extract_strided_slice %855 {offsets = [0, 256], sizes = [8, 128], strides = [1, 1]} : vector<8x384xf32> to vector<8x128xf32>
    %874 = arith.addf %873, %610 : vector<8x128xf32>
    %875 = arith.mulf %863, %874 : vector<8x128xf32>
    %876 = arith.addf %872, %875 : vector<8x128xf32>
    %877 = math.tanh %876 : vector<8x128xf32>
    %878 = arith.subf %846, %877 : vector<8x128xf32>
    %879 = arith.mulf %871, %878 : vector<8x128xf32>
    %880 = arith.addf %877, %879 : vector<8x128xf32>
    %881 = arith.index_cast %c7_i32_247 : i32 to index
    %c0_253 = arith.constant 0 : index
    %c0_254 = arith.constant 0 : index
    %882 = vector.load %arg8[%881, %c0_253, %c0_254] : memref<8x8x128xf32, #tpu.memory_space<vmem>>, vector<1x8x128xf32>
    %883 = vector.shape_cast %882 : vector<1x8x128xf32> to vector<8x128xf32>
    %884 = vector.shape_cast %880 : vector<8x128xf32> to vector<1x8x128xf32>
    tpu.vector_store %arg8[%881, %c0_253, %c0_254], %884 {strides = array<i32>} : memref<8x8x128xf32, #tpu.memory_space<vmem>>, vector<1x8x128xf32>,
    %c8_i32_255 = arith.constant 8 : i32
    %c2_256 = arith.constant 2 : index
    %c0_257 = arith.constant 0 : index
    %c0_258 = arith.constant 0 : index
    %885 = vector.load %arg7[%c2_256, %c0_257, %c0_258] : memref<5x8x128xf32, #tpu.memory_space<vmem>>, vector<1x8x128xf32>
    %886 = vector.shape_cast %885 : vector<1x8x128xf32> to vector<8x128xf32>
    %887 = vector.shape_cast %880 : vector<8x128xf32> to vector<1x8x128xf32>
    tpu.vector_store %arg7[%c2_256, %c0_257, %c0_258], %887 {strides = array<i32>} : memref<5x8x128xf32, #tpu.memory_space<vmem>>, vector<1x8x128xf32>,
    %c0_259 = arith.constant 0 : index
    %c0_260 = arith.constant 0 : index
    %c0_261 = arith.constant 0 : index
    %888 = vector.load %arg8[%c0_259, %c0_260, %c0_261] : memref<8x8x128xf32, #tpu.memory_space<vmem>>, vector<8x8x128xf32>
    %889 = vector.shape_cast %888 : vector<8x8x128xf32> to vector<64x128xf32>
    %890 = arith.truncf %889 : vector<64x128xf32> to vector<64x128xbf16>
    %c3 = arith.constant 3 : index
    %c0_262 = arith.constant 0 : index
    %c0_263 = arith.constant 0 : index
    %891 = vector.load %arg2[%c3, %c0_262, %c0_263] : memref<5x128x384xbf16, #tpu.memory_space<vmem>>, vector<1x128x384xbf16>
    %892 = vector.shape_cast %891 : vector<1x128x384xbf16> to vector<128x384xbf16>
    %cst_264 = arith.constant dense<0.000000e+00> : vector<64x384xf32>
    %893 = tpu.matmul %890, %892, %cst_264 {dimension_numbers = #tpu.dot_dimension_numbers<[1], [0], [0], [1], [0, 0, 1, 1], [], []>} : vector<64x128xbf16>, vector<128x384xbf16>, vector<64x384xf32> -> vector<64x384xf32>
    %c3_265 = arith.constant 3 : index
    %c0_266 = arith.constant 0 : index
    %c0_267 = arith.constant 0 : index
    %894 = vector.load %arg4[%c3_265, %c0_266, %c0_267] : memref<5x1x384xf32, #tpu.memory_space<vmem>>, vector<1x1x384xf32>
    %895 = vector.shape_cast %894 : vector<1x1x384xf32> to vector<1x384xf32>
    %896 = vector.broadcast %895 : vector<1x384xf32> to vector<64x384xf32>
    %897 = arith.addf %893, %896 : vector<64x384xf32>
    %898 = vector.shape_cast %897 : vector<64x384xf32> to vector<8x8x384xf32>
    %c0_268 = arith.constant 0 : index
    %c0_269 = arith.constant 0 : index
    %c0_270 = arith.constant 0 : index
    %899 = vector.load %arg9[%c0_268, %c0_269, %c0_270] : memref<8x8x384xf32, #tpu.memory_space<vmem>>, vector<8x8x384xf32>
    tpu.vector_store %arg9[%c0_268, %c0_269, %c0_270], %898 {strides = array<i32>} : memref<8x8x384xf32, #tpu.memory_space<vmem>>, vector<8x8x384xf32>,
    %c3_271 = arith.constant 3 : index
    %c0_272 = arith.constant 0 : index
    %c0_273 = arith.constant 0 : index
    %900 = vector.load %arg3[%c3_271, %c0_272, %c0_273] : memref<5x128x384xbf16, #tpu.memory_space<vmem>>, vector<1x128x384xbf16>
    %901 = vector.shape_cast %900 : vector<1x128x384xbf16> to vector<128x384xbf16>
    %c3_274 = arith.constant 3 : index
    %c0_275 = arith.constant 0 : index
    %c0_276 = arith.constant 0 : index
    %902 = vector.load %arg5[%c3_274, %c0_275, %c0_276] : memref<5x1x128xf32, #tpu.memory_space<vmem>>, vector<1x1x128xf32>
    %903 = vector.shape_cast %902 : vector<1x1x128xf32> to vector<1x128xf32>
    %904 = vector.shape_cast %903 : vector<1x128xf32> to vector<1x128xf32>
    %905 = vector.broadcast %904 : vector<1x128xf32> to vector<8x128xf32>
    %c3_277 = arith.constant 3 : index
    %c0_278 = arith.constant 0 : index
    %c0_279 = arith.constant 0 : index
    %906 = vector.load %arg7[%c3_277, %c0_278, %c0_279] : memref<5x8x128xf32, #tpu.memory_space<vmem>>, vector<1x8x128xf32>
    %907 = vector.shape_cast %906 : vector<1x8x128xf32> to vector<8x128xf32>
    %c0_i32_280 = arith.constant 0 : i32
    %908 = arith.index_cast %c0_i32_280 : i32 to index
    %c0_281 = arith.constant 0 : index
    %c0_282 = arith.constant 0 : index
    %909 = vector.load %arg9[%908, %c0_281, %c0_282] : memref<8x8x384xf32, #tpu.memory_space<vmem>>, vector<1x8x384xf32>
    %910 = vector.shape_cast %909 : vector<1x8x384xf32> to vector<8x384xf32>
    %911 = arith.truncf %907 : vector<8x128xf32> to vector<8x128xbf16>
    %cst_283 = arith.constant dense<0.000000e+00> : vector<8x384xf32>
    %912 = tpu.matmul %911, %901, %cst_283 {dimension_numbers = #tpu.dot_dimension_numbers<[1], [0], [0], [1], [0, 0, 1, 1], [], []>} : vector<8x128xbf16>, vector<128x384xbf16>, vector<8x384xf32> -> vector<8x384xf32>
    %913 = vector.extract_strided_slice %910 {offsets = [0, 0], sizes = [8, 128], strides = [1, 1]} : vector<8x384xf32> to vector<8x128xf32>
    %914 = vector.extract_strided_slice %912 {offsets = [0, 0], sizes = [8, 128], strides = [1, 1]} : vector<8x384xf32> to vector<8x128xf32>
    %915 = arith.addf %913, %914 : vector<8x128xf32>
    %916 = arith.negf %915 : vector<8x128xf32>
    %917 = math.exp %916 : vector<8x128xf32>
    %cst_284 = arith.constant 1.000000e+00 : f32
    %918 = vector.broadcast %cst_284 : f32 to vector<8x128xf32>
    %919 = arith.addf %918, %917 : vector<8x128xf32>
    %920 = arith.divf %918, %919 : vector<8x128xf32>
    %921 = vector.extract_strided_slice %910 {offsets = [0, 128], sizes = [8, 128], strides = [1, 1]} : vector<8x384xf32> to vector<8x128xf32>
    %922 = vector.extract_strided_slice %912 {offsets = [0, 128], sizes = [8, 128], strides = [1, 1]} : vector<8x384xf32> to vector<8x128xf32>
    %923 = arith.addf %921, %922 : vector<8x128xf32>
    %924 = arith.negf %923 : vector<8x128xf32>
    %925 = math.exp %924 : vector<8x128xf32>
    %cst_285 = arith.constant 1.000000e+00 : f32
    %926 = vector.broadcast %cst_285 : f32 to vector<8x128xf32>
    %927 = arith.addf %926, %925 : vector<8x128xf32>
    %928 = arith.divf %926, %927 : vector<8x128xf32>
    %929 = vector.extract_strided_slice %910 {offsets = [0, 256], sizes = [8, 128], strides = [1, 1]} : vector<8x384xf32> to vector<8x128xf32>
    %930 = vector.extract_strided_slice %912 {offsets = [0, 256], sizes = [8, 128], strides = [1, 1]} : vector<8x384xf32> to vector<8x128xf32>
    %931 = arith.addf %930, %905 : vector<8x128xf32>
    %932 = arith.mulf %920, %931 : vector<8x128xf32>
    %933 = arith.addf %929, %932 : vector<8x128xf32>
    %934 = math.tanh %933 : vector<8x128xf32>
    %935 = arith.subf %907, %934 : vector<8x128xf32>
    %936 = arith.mulf %928, %935 : vector<8x128xf32>
    %937 = arith.addf %934, %936 : vector<8x128xf32>
    %938 = arith.index_cast %c0_i32_280 : i32 to index
    %c0_286 = arith.constant 0 : index
    %c0_287 = arith.constant 0 : index
    %939 = vector.load %arg8[%938, %c0_286, %c0_287] : memref<8x8x128xf32, #tpu.memory_space<vmem>>, vector<1x8x128xf32>
    %940 = vector.shape_cast %939 : vector<1x8x128xf32> to vector<8x128xf32>
    %941 = vector.shape_cast %937 : vector<8x128xf32> to vector<1x8x128xf32>
    tpu.vector_store %arg8[%938, %c0_286, %c0_287], %941 {strides = array<i32>} : memref<8x8x128xf32, #tpu.memory_space<vmem>>, vector<1x8x128xf32>,
    %c1_i32_288 = arith.constant 1 : i32
    %942 = arith.index_cast %c1_i32_288 : i32 to index
    %c0_289 = arith.constant 0 : index
    %c0_290 = arith.constant 0 : index
    %943 = vector.load %arg9[%942, %c0_289, %c0_290] : memref<8x8x384xf32, #tpu.memory_space<vmem>>, vector<1x8x384xf32>
    %944 = vector.shape_cast %943 : vector<1x8x384xf32> to vector<8x384xf32>
    %945 = arith.truncf %937 : vector<8x128xf32> to vector<8x128xbf16>
    %cst_291 = arith.constant dense<0.000000e+00> : vector<8x384xf32>
    %946 = tpu.matmul %945, %901, %cst_291 {dimension_numbers = #tpu.dot_dimension_numbers<[1], [0], [0], [1], [0, 0, 1, 1], [], []>} : vector<8x128xbf16>, vector<128x384xbf16>, vector<8x384xf32> -> vector<8x384xf32>
    %947 = vector.extract_strided_slice %944 {offsets = [0, 0], sizes = [8, 128], strides = [1, 1]} : vector<8x384xf32> to vector<8x128xf32>
    %948 = vector.extract_strided_slice %946 {offsets = [0, 0], sizes = [8, 128], strides = [1, 1]} : vector<8x384xf32> to vector<8x128xf32>
    %949 = arith.addf %947, %948 : vector<8x128xf32>
    %950 = arith.negf %949 : vector<8x128xf32>
    %951 = math.exp %950 : vector<8x128xf32>
    %cst_292 = arith.constant 1.000000e+00 : f32
    %952 = vector.broadcast %cst_292 : f32 to vector<8x128xf32>
    %953 = arith.addf %952, %951 : vector<8x128xf32>
    %954 = arith.divf %952, %953 : vector<8x128xf32>
    %955 = vector.extract_strided_slice %944 {offsets = [0, 128], sizes = [8, 128], strides = [1, 1]} : vector<8x384xf32> to vector<8x128xf32>
    %956 = vector.extract_strided_slice %946 {offsets = [0, 128], sizes = [8, 128], strides = [1, 1]} : vector<8x384xf32> to vector<8x128xf32>
    %957 = arith.addf %955, %956 : vector<8x128xf32>
    %958 = arith.negf %957 : vector<8x128xf32>
    %959 = math.exp %958 : vector<8x128xf32>
    %cst_293 = arith.constant 1.000000e+00 : f32
    %960 = vector.broadcast %cst_293 : f32 to vector<8x128xf32>
    %961 = arith.addf %960, %959 : vector<8x128xf32>
    %962 = arith.divf %960, %961 : vector<8x128xf32>
    %963 = vector.extract_strided_slice %944 {offsets = [0, 256], sizes = [8, 128], strides = [1, 1]} : vector<8x384xf32> to vector<8x128xf32>
    %964 = vector.extract_strided_slice %946 {offsets = [0, 256], sizes = [8, 128], strides = [1, 1]} : vector<8x384xf32> to vector<8x128xf32>
    %965 = arith.addf %964, %905 : vector<8x128xf32>
    %966 = arith.mulf %954, %965 : vector<8x128xf32>
    %967 = arith.addf %963, %966 : vector<8x128xf32>
    %968 = math.tanh %967 : vector<8x128xf32>
    %969 = arith.subf %937, %968 : vector<8x128xf32>
    %970 = arith.mulf %962, %969 : vector<8x128xf32>
    %971 = arith.addf %968, %970 : vector<8x128xf32>
    %972 = arith.index_cast %c1_i32_288 : i32 to index
    %c0_294 = arith.constant 0 : index
    %c0_295 = arith.constant 0 : index
    %973 = vector.load %arg8[%972, %c0_294, %c0_295] : memref<8x8x128xf32, #tpu.memory_space<vmem>>, vector<1x8x128xf32>
    %974 = vector.shape_cast %973 : vector<1x8x128xf32> to vector<8x128xf32>
    %975 = vector.shape_cast %971 : vector<8x128xf32> to vector<1x8x128xf32>
    tpu.vector_store %arg8[%972, %c0_294, %c0_295], %975 {strides = array<i32>} : memref<8x8x128xf32, #tpu.memory_space<vmem>>, vector<1x8x128xf32>,
    %c2_i32_296 = arith.constant 2 : i32
    %976 = arith.index_cast %c2_i32_296 : i32 to index
    %c0_297 = arith.constant 0 : index
    %c0_298 = arith.constant 0 : index
    %977 = vector.load %arg9[%976, %c0_297, %c0_298] : memref<8x8x384xf32, #tpu.memory_space<vmem>>, vector<1x8x384xf32>
    %978 = vector.shape_cast %977 : vector<1x8x384xf32> to vector<8x384xf32>
    %979 = arith.truncf %971 : vector<8x128xf32> to vector<8x128xbf16>
    %cst_299 = arith.constant dense<0.000000e+00> : vector<8x384xf32>
    %980 = tpu.matmul %979, %901, %cst_299 {dimension_numbers = #tpu.dot_dimension_numbers<[1], [0], [0], [1], [0, 0, 1, 1], [], []>} : vector<8x128xbf16>, vector<128x384xbf16>, vector<8x384xf32> -> vector<8x384xf32>
    %981 = vector.extract_strided_slice %978 {offsets = [0, 0], sizes = [8, 128], strides = [1, 1]} : vector<8x384xf32> to vector<8x128xf32>
    %982 = vector.extract_strided_slice %980 {offsets = [0, 0], sizes = [8, 128], strides = [1, 1]} : vector<8x384xf32> to vector<8x128xf32>
    %983 = arith.addf %981, %982 : vector<8x128xf32>
    %984 = arith.negf %983 : vector<8x128xf32>
    %985 = math.exp %984 : vector<8x128xf32>
    %cst_300 = arith.constant 1.000000e+00 : f32
    %986 = vector.broadcast %cst_300 : f32 to vector<8x128xf32>
    %987 = arith.addf %986, %985 : vector<8x128xf32>
    %988 = arith.divf %986, %987 : vector<8x128xf32>
    %989 = vector.extract_strided_slice %978 {offsets = [0, 128], sizes = [8, 128], strides = [1, 1]} : vector<8x384xf32> to vector<8x128xf32>
    %990 = vector.extract_strided_slice %980 {offsets = [0, 128], sizes = [8, 128], strides = [1, 1]} : vector<8x384xf32> to vector<8x128xf32>
    %991 = arith.addf %989, %990 : vector<8x128xf32>
    %992 = arith.negf %991 : vector<8x128xf32>
    %993 = math.exp %992 : vector<8x128xf32>
    %cst_301 = arith.constant 1.000000e+00 : f32
    %994 = vector.broadcast %cst_301 : f32 to vector<8x128xf32>
    %995 = arith.addf %994, %993 : vector<8x128xf32>
    %996 = arith.divf %994, %995 : vector<8x128xf32>
    %997 = vector.extract_strided_slice %978 {offsets = [0, 256], sizes = [8, 128], strides = [1, 1]} : vector<8x384xf32> to vector<8x128xf32>
    %998 = vector.extract_strided_slice %980 {offsets = [0, 256], sizes = [8, 128], strides = [1, 1]} : vector<8x384xf32> to vector<8x128xf32>
    %999 = arith.addf %998, %905 : vector<8x128xf32>
    %1000 = arith.mulf %988, %999 : vector<8x128xf32>
    %1001 = arith.addf %997, %1000 : vector<8x128xf32>
    %1002 = math.tanh %1001 : vector<8x128xf32>
    %1003 = arith.subf %971, %1002 : vector<8x128xf32>
    %1004 = arith.mulf %996, %1003 : vector<8x128xf32>
    %1005 = arith.addf %1002, %1004 : vector<8x128xf32>
    %1006 = arith.index_cast %c2_i32_296 : i32 to index
    %c0_302 = arith.constant 0 : index
    %c0_303 = arith.constant 0 : index
    %1007 = vector.load %arg8[%1006, %c0_302, %c0_303] : memref<8x8x128xf32, #tpu.memory_space<vmem>>, vector<1x8x128xf32>
    %1008 = vector.shape_cast %1007 : vector<1x8x128xf32> to vector<8x128xf32>
    %1009 = vector.shape_cast %1005 : vector<8x128xf32> to vector<1x8x128xf32>
    tpu.vector_store %arg8[%1006, %c0_302, %c0_303], %1009 {strides = array<i32>} : memref<8x8x128xf32, #tpu.memory_space<vmem>>, vector<1x8x128xf32>,
    %c3_i32_304 = arith.constant 3 : i32
    %1010 = arith.index_cast %c3_i32_304 : i32 to index
    %c0_305 = arith.constant 0 : index
    %c0_306 = arith.constant 0 : index
    %1011 = vector.load %arg9[%1010, %c0_305, %c0_306] : memref<8x8x384xf32, #tpu.memory_space<vmem>>, vector<1x8x384xf32>
    %1012 = vector.shape_cast %1011 : vector<1x8x384xf32> to vector<8x384xf32>
    %1013 = arith.truncf %1005 : vector<8x128xf32> to vector<8x128xbf16>
    %cst_307 = arith.constant dense<0.000000e+00> : vector<8x384xf32>
    %1014 = tpu.matmul %1013, %901, %cst_307 {dimension_numbers = #tpu.dot_dimension_numbers<[1], [0], [0], [1], [0, 0, 1, 1], [], []>} : vector<8x128xbf16>, vector<128x384xbf16>, vector<8x384xf32> -> vector<8x384xf32>
    %1015 = vector.extract_strided_slice %1012 {offsets = [0, 0], sizes = [8, 128], strides = [1, 1]} : vector<8x384xf32> to vector<8x128xf32>
    %1016 = vector.extract_strided_slice %1014 {offsets = [0, 0], sizes = [8, 128], strides = [1, 1]} : vector<8x384xf32> to vector<8x128xf32>
    %1017 = arith.addf %1015, %1016 : vector<8x128xf32>
    %1018 = arith.negf %1017 : vector<8x128xf32>
    %1019 = math.exp %1018 : vector<8x128xf32>
    %cst_308 = arith.constant 1.000000e+00 : f32
    %1020 = vector.broadcast %cst_308 : f32 to vector<8x128xf32>
    %1021 = arith.addf %1020, %1019 : vector<8x128xf32>
    %1022 = arith.divf %1020, %1021 : vector<8x128xf32>
    %1023 = vector.extract_strided_slice %1012 {offsets = [0, 128], sizes = [8, 128], strides = [1, 1]} : vector<8x384xf32> to vector<8x128xf32>
    %1024 = vector.extract_strided_slice %1014 {offsets = [0, 128], sizes = [8, 128], strides = [1, 1]} : vector<8x384xf32> to vector<8x128xf32>
    %1025 = arith.addf %1023, %1024 : vector<8x128xf32>
    %1026 = arith.negf %1025 : vector<8x128xf32>
    %1027 = math.exp %1026 : vector<8x128xf32>
    %cst_309 = arith.constant 1.000000e+00 : f32
    %1028 = vector.broadcast %cst_309 : f32 to vector<8x128xf32>
    %1029 = arith.addf %1028, %1027 : vector<8x128xf32>
    %1030 = arith.divf %1028, %1029 : vector<8x128xf32>
    %1031 = vector.extract_strided_slice %1012 {offsets = [0, 256], sizes = [8, 128], strides = [1, 1]} : vector<8x384xf32> to vector<8x128xf32>
    %1032 = vector.extract_strided_slice %1014 {offsets = [0, 256], sizes = [8, 128], strides = [1, 1]} : vector<8x384xf32> to vector<8x128xf32>
    %1033 = arith.addf %1032, %905 : vector<8x128xf32>
    %1034 = arith.mulf %1022, %1033 : vector<8x128xf32>
    %1035 = arith.addf %1031, %1034 : vector<8x128xf32>
    %1036 = math.tanh %1035 : vector<8x128xf32>
    %1037 = arith.subf %1005, %1036 : vector<8x128xf32>
    %1038 = arith.mulf %1030, %1037 : vector<8x128xf32>
    %1039 = arith.addf %1036, %1038 : vector<8x128xf32>
    %1040 = arith.index_cast %c3_i32_304 : i32 to index
    %c0_310 = arith.constant 0 : index
    %c0_311 = arith.constant 0 : index
    %1041 = vector.load %arg8[%1040, %c0_310, %c0_311] : memref<8x8x128xf32, #tpu.memory_space<vmem>>, vector<1x8x128xf32>
    %1042 = vector.shape_cast %1041 : vector<1x8x128xf32> to vector<8x128xf32>
    %1043 = vector.shape_cast %1039 : vector<8x128xf32> to vector<1x8x128xf32>
    tpu.vector_store %arg8[%1040, %c0_310, %c0_311], %1043 {strides = array<i32>} : memref<8x8x128xf32, #tpu.memory_space<vmem>>, vector<1x8x128xf32>,
    %c4_i32_312 = arith.constant 4 : i32
    %1044 = arith.index_cast %c4_i32_312 : i32 to index
    %c0_313 = arith.constant 0 : index
    %c0_314 = arith.constant 0 : index
    %1045 = vector.load %arg9[%1044, %c0_313, %c0_314] : memref<8x8x384xf32, #tpu.memory_space<vmem>>, vector<1x8x384xf32>
    %1046 = vector.shape_cast %1045 : vector<1x8x384xf32> to vector<8x384xf32>
    %1047 = arith.truncf %1039 : vector<8x128xf32> to vector<8x128xbf16>
    %cst_315 = arith.constant dense<0.000000e+00> : vector<8x384xf32>
    %1048 = tpu.matmul %1047, %901, %cst_315 {dimension_numbers = #tpu.dot_dimension_numbers<[1], [0], [0], [1], [0, 0, 1, 1], [], []>} : vector<8x128xbf16>, vector<128x384xbf16>, vector<8x384xf32> -> vector<8x384xf32>
    %1049 = vector.extract_strided_slice %1046 {offsets = [0, 0], sizes = [8, 128], strides = [1, 1]} : vector<8x384xf32> to vector<8x128xf32>
    %1050 = vector.extract_strided_slice %1048 {offsets = [0, 0], sizes = [8, 128], strides = [1, 1]} : vector<8x384xf32> to vector<8x128xf32>
    %1051 = arith.addf %1049, %1050 : vector<8x128xf32>
    %1052 = arith.negf %1051 : vector<8x128xf32>
    %1053 = math.exp %1052 : vector<8x128xf32>
    %cst_316 = arith.constant 1.000000e+00 : f32
    %1054 = vector.broadcast %cst_316 : f32 to vector<8x128xf32>
    %1055 = arith.addf %1054, %1053 : vector<8x128xf32>
    %1056 = arith.divf %1054, %1055 : vector<8x128xf32>
    %1057 = vector.extract_strided_slice %1046 {offsets = [0, 128], sizes = [8, 128], strides = [1, 1]} : vector<8x384xf32> to vector<8x128xf32>
    %1058 = vector.extract_strided_slice %1048 {offsets = [0, 128], sizes = [8, 128], strides = [1, 1]} : vector<8x384xf32> to vector<8x128xf32>
    %1059 = arith.addf %1057, %1058 : vector<8x128xf32>
    %1060 = arith.negf %1059 : vector<8x128xf32>
    %1061 = math.exp %1060 : vector<8x128xf32>
    %cst_317 = arith.constant 1.000000e+00 : f32
    %1062 = vector.broadcast %cst_317 : f32 to vector<8x128xf32>
    %1063 = arith.addf %1062, %1061 : vector<8x128xf32>
    %1064 = arith.divf %1062, %1063 : vector<8x128xf32>
    %1065 = vector.extract_strided_slice %1046 {offsets = [0, 256], sizes = [8, 128], strides = [1, 1]} : vector<8x384xf32> to vector<8x128xf32>
    %1066 = vector.extract_strided_slice %1048 {offsets = [0, 256], sizes = [8, 128], strides = [1, 1]} : vector<8x384xf32> to vector<8x128xf32>
    %1067 = arith.addf %1066, %905 : vector<8x128xf32>
    %1068 = arith.mulf %1056, %1067 : vector<8x128xf32>
    %1069 = arith.addf %1065, %1068 : vector<8x128xf32>
    %1070 = math.tanh %1069 : vector<8x128xf32>
    %1071 = arith.subf %1039, %1070 : vector<8x128xf32>
    %1072 = arith.mulf %1064, %1071 : vector<8x128xf32>
    %1073 = arith.addf %1070, %1072 : vector<8x128xf32>
    %1074 = arith.index_cast %c4_i32_312 : i32 to index
    %c0_318 = arith.constant 0 : index
    %c0_319 = arith.constant 0 : index
    %1075 = vector.load %arg8[%1074, %c0_318, %c0_319] : memref<8x8x128xf32, #tpu.memory_space<vmem>>, vector<1x8x128xf32>
    %1076 = vector.shape_cast %1075 : vector<1x8x128xf32> to vector<8x128xf32>
    %1077 = vector.shape_cast %1073 : vector<8x128xf32> to vector<1x8x128xf32>
    tpu.vector_store %arg8[%1074, %c0_318, %c0_319], %1077 {strides = array<i32>} : memref<8x8x128xf32, #tpu.memory_space<vmem>>, vector<1x8x128xf32>,
    %c5_i32_320 = arith.constant 5 : i32
    %1078 = arith.index_cast %c5_i32_320 : i32 to index
    %c0_321 = arith.constant 0 : index
    %c0_322 = arith.constant 0 : index
    %1079 = vector.load %arg9[%1078, %c0_321, %c0_322] : memref<8x8x384xf32, #tpu.memory_space<vmem>>, vector<1x8x384xf32>
    %1080 = vector.shape_cast %1079 : vector<1x8x384xf32> to vector<8x384xf32>
    %1081 = arith.truncf %1073 : vector<8x128xf32> to vector<8x128xbf16>
    %cst_323 = arith.constant dense<0.000000e+00> : vector<8x384xf32>
    %1082 = tpu.matmul %1081, %901, %cst_323 {dimension_numbers = #tpu.dot_dimension_numbers<[1], [0], [0], [1], [0, 0, 1, 1], [], []>} : vector<8x128xbf16>, vector<128x384xbf16>, vector<8x384xf32> -> vector<8x384xf32>
    %1083 = vector.extract_strided_slice %1080 {offsets = [0, 0], sizes = [8, 128], strides = [1, 1]} : vector<8x384xf32> to vector<8x128xf32>
    %1084 = vector.extract_strided_slice %1082 {offsets = [0, 0], sizes = [8, 128], strides = [1, 1]} : vector<8x384xf32> to vector<8x128xf32>
    %1085 = arith.addf %1083, %1084 : vector<8x128xf32>
    %1086 = arith.negf %1085 : vector<8x128xf32>
    %1087 = math.exp %1086 : vector<8x128xf32>
    %cst_324 = arith.constant 1.000000e+00 : f32
    %1088 = vector.broadcast %cst_324 : f32 to vector<8x128xf32>
    %1089 = arith.addf %1088, %1087 : vector<8x128xf32>
    %1090 = arith.divf %1088, %1089 : vector<8x128xf32>
    %1091 = vector.extract_strided_slice %1080 {offsets = [0, 128], sizes = [8, 128], strides = [1, 1]} : vector<8x384xf32> to vector<8x128xf32>
    %1092 = vector.extract_strided_slice %1082 {offsets = [0, 128], sizes = [8, 128], strides = [1, 1]} : vector<8x384xf32> to vector<8x128xf32>
    %1093 = arith.addf %1091, %1092 : vector<8x128xf32>
    %1094 = arith.negf %1093 : vector<8x128xf32>
    %1095 = math.exp %1094 : vector<8x128xf32>
    %cst_325 = arith.constant 1.000000e+00 : f32
    %1096 = vector.broadcast %cst_325 : f32 to vector<8x128xf32>
    %1097 = arith.addf %1096, %1095 : vector<8x128xf32>
    %1098 = arith.divf %1096, %1097 : vector<8x128xf32>
    %1099 = vector.extract_strided_slice %1080 {offsets = [0, 256], sizes = [8, 128], strides = [1, 1]} : vector<8x384xf32> to vector<8x128xf32>
    %1100 = vector.extract_strided_slice %1082 {offsets = [0, 256], sizes = [8, 128], strides = [1, 1]} : vector<8x384xf32> to vector<8x128xf32>
    %1101 = arith.addf %1100, %905 : vector<8x128xf32>
    %1102 = arith.mulf %1090, %1101 : vector<8x128xf32>
    %1103 = arith.addf %1099, %1102 : vector<8x128xf32>
    %1104 = math.tanh %1103 : vector<8x128xf32>
    %1105 = arith.subf %1073, %1104 : vector<8x128xf32>
    %1106 = arith.mulf %1098, %1105 : vector<8x128xf32>
    %1107 = arith.addf %1104, %1106 : vector<8x128xf32>
    %1108 = arith.index_cast %c5_i32_320 : i32 to index
    %c0_326 = arith.constant 0 : index
    %c0_327 = arith.constant 0 : index
    %1109 = vector.load %arg8[%1108, %c0_326, %c0_327] : memref<8x8x128xf32, #tpu.memory_space<vmem>>, vector<1x8x128xf32>
    %1110 = vector.shape_cast %1109 : vector<1x8x128xf32> to vector<8x128xf32>
    %1111 = vector.shape_cast %1107 : vector<8x128xf32> to vector<1x8x128xf32>
    tpu.vector_store %arg8[%1108, %c0_326, %c0_327], %1111 {strides = array<i32>} : memref<8x8x128xf32, #tpu.memory_space<vmem>>, vector<1x8x128xf32>,
    %c6_i32_328 = arith.constant 6 : i32
    %1112 = arith.index_cast %c6_i32_328 : i32 to index
    %c0_329 = arith.constant 0 : index
    %c0_330 = arith.constant 0 : index
    %1113 = vector.load %arg9[%1112, %c0_329, %c0_330] : memref<8x8x384xf32, #tpu.memory_space<vmem>>, vector<1x8x384xf32>
    %1114 = vector.shape_cast %1113 : vector<1x8x384xf32> to vector<8x384xf32>
    %1115 = arith.truncf %1107 : vector<8x128xf32> to vector<8x128xbf16>
    %cst_331 = arith.constant dense<0.000000e+00> : vector<8x384xf32>
    %1116 = tpu.matmul %1115, %901, %cst_331 {dimension_numbers = #tpu.dot_dimension_numbers<[1], [0], [0], [1], [0, 0, 1, 1], [], []>} : vector<8x128xbf16>, vector<128x384xbf16>, vector<8x384xf32> -> vector<8x384xf32>
    %1117 = vector.extract_strided_slice %1114 {offsets = [0, 0], sizes = [8, 128], strides = [1, 1]} : vector<8x384xf32> to vector<8x128xf32>
    %1118 = vector.extract_strided_slice %1116 {offsets = [0, 0], sizes = [8, 128], strides = [1, 1]} : vector<8x384xf32> to vector<8x128xf32>
    %1119 = arith.addf %1117, %1118 : vector<8x128xf32>
    %1120 = arith.negf %1119 : vector<8x128xf32>
    %1121 = math.exp %1120 : vector<8x128xf32>
    %cst_332 = arith.constant 1.000000e+00 : f32
    %1122 = vector.broadcast %cst_332 : f32 to vector<8x128xf32>
    %1123 = arith.addf %1122, %1121 : vector<8x128xf32>
    %1124 = arith.divf %1122, %1123 : vector<8x128xf32>
    %1125 = vector.extract_strided_slice %1114 {offsets = [0, 128], sizes = [8, 128], strides = [1, 1]} : vector<8x384xf32> to vector<8x128xf32>
    %1126 = vector.extract_strided_slice %1116 {offsets = [0, 128], sizes = [8, 128], strides = [1, 1]} : vector<8x384xf32> to vector<8x128xf32>
    %1127 = arith.addf %1125, %1126 : vector<8x128xf32>
    %1128 = arith.negf %1127 : vector<8x128xf32>
    %1129 = math.exp %1128 : vector<8x128xf32>
    %cst_333 = arith.constant 1.000000e+00 : f32
    %1130 = vector.broadcast %cst_333 : f32 to vector<8x128xf32>
    %1131 = arith.addf %1130, %1129 : vector<8x128xf32>
    %1132 = arith.divf %1130, %1131 : vector<8x128xf32>
    %1133 = vector.extract_strided_slice %1114 {offsets = [0, 256], sizes = [8, 128], strides = [1, 1]} : vector<8x384xf32> to vector<8x128xf32>
    %1134 = vector.extract_strided_slice %1116 {offsets = [0, 256], sizes = [8, 128], strides = [1, 1]} : vector<8x384xf32> to vector<8x128xf32>
    %1135 = arith.addf %1134, %905 : vector<8x128xf32>
    %1136 = arith.mulf %1124, %1135 : vector<8x128xf32>
    %1137 = arith.addf %1133, %1136 : vector<8x128xf32>
    %1138 = math.tanh %1137 : vector<8x128xf32>
    %1139 = arith.subf %1107, %1138 : vector<8x128xf32>
    %1140 = arith.mulf %1132, %1139 : vector<8x128xf32>
    %1141 = arith.addf %1138, %1140 : vector<8x128xf32>
    %1142 = arith.index_cast %c6_i32_328 : i32 to index
    %c0_334 = arith.constant 0 : index
    %c0_335 = arith.constant 0 : index
    %1143 = vector.load %arg8[%1142, %c0_334, %c0_335] : memref<8x8x128xf32, #tpu.memory_space<vmem>>, vector<1x8x128xf32>
    %1144 = vector.shape_cast %1143 : vector<1x8x128xf32> to vector<8x128xf32>
    %1145 = vector.shape_cast %1141 : vector<8x128xf32> to vector<1x8x128xf32>
    tpu.vector_store %arg8[%1142, %c0_334, %c0_335], %1145 {strides = array<i32>} : memref<8x8x128xf32, #tpu.memory_space<vmem>>, vector<1x8x128xf32>,
    %c7_i32_336 = arith.constant 7 : i32
    %1146 = arith.index_cast %c7_i32_336 : i32 to index
    %c0_337 = arith.constant 0 : index
    %c0_338 = arith.constant 0 : index
    %1147 = vector.load %arg9[%1146, %c0_337, %c0_338] : memref<8x8x384xf32, #tpu.memory_space<vmem>>, vector<1x8x384xf32>
    %1148 = vector.shape_cast %1147 : vector<1x8x384xf32> to vector<8x384xf32>
    %1149 = arith.truncf %1141 : vector<8x128xf32> to vector<8x128xbf16>
    %cst_339 = arith.constant dense<0.000000e+00> : vector<8x384xf32>
    %1150 = tpu.matmul %1149, %901, %cst_339 {dimension_numbers = #tpu.dot_dimension_numbers<[1], [0], [0], [1], [0, 0, 1, 1], [], []>} : vector<8x128xbf16>, vector<128x384xbf16>, vector<8x384xf32> -> vector<8x384xf32>
    %1151 = vector.extract_strided_slice %1148 {offsets = [0, 0], sizes = [8, 128], strides = [1, 1]} : vector<8x384xf32> to vector<8x128xf32>
    %1152 = vector.extract_strided_slice %1150 {offsets = [0, 0], sizes = [8, 128], strides = [1, 1]} : vector<8x384xf32> to vector<8x128xf32>
    %1153 = arith.addf %1151, %1152 : vector<8x128xf32>
    %1154 = arith.negf %1153 : vector<8x128xf32>
    %1155 = math.exp %1154 : vector<8x128xf32>
    %cst_340 = arith.constant 1.000000e+00 : f32
    %1156 = vector.broadcast %cst_340 : f32 to vector<8x128xf32>
    %1157 = arith.addf %1156, %1155 : vector<8x128xf32>
    %1158 = arith.divf %1156, %1157 : vector<8x128xf32>
    %1159 = vector.extract_strided_slice %1148 {offsets = [0, 128], sizes = [8, 128], strides = [1, 1]} : vector<8x384xf32> to vector<8x128xf32>
    %1160 = vector.extract_strided_slice %1150 {offsets = [0, 128], sizes = [8, 128], strides = [1, 1]} : vector<8x384xf32> to vector<8x128xf32>
    %1161 = arith.addf %1159, %1160 : vector<8x128xf32>
    %1162 = arith.negf %1161 : vector<8x128xf32>
    %1163 = math.exp %1162 : vector<8x128xf32>
    %cst_341 = arith.constant 1.000000e+00 : f32
    %1164 = vector.broadcast %cst_341 : f32 to vector<8x128xf32>
    %1165 = arith.addf %1164, %1163 : vector<8x128xf32>
    %1166 = arith.divf %1164, %1165 : vector<8x128xf32>
    %1167 = vector.extract_strided_slice %1148 {offsets = [0, 256], sizes = [8, 128], strides = [1, 1]} : vector<8x384xf32> to vector<8x128xf32>
    %1168 = vector.extract_strided_slice %1150 {offsets = [0, 256], sizes = [8, 128], strides = [1, 1]} : vector<8x384xf32> to vector<8x128xf32>
    %1169 = arith.addf %1168, %905 : vector<8x128xf32>
    %1170 = arith.mulf %1158, %1169 : vector<8x128xf32>
    %1171 = arith.addf %1167, %1170 : vector<8x128xf32>
    %1172 = math.tanh %1171 : vector<8x128xf32>
    %1173 = arith.subf %1141, %1172 : vector<8x128xf32>
    %1174 = arith.mulf %1166, %1173 : vector<8x128xf32>
    %1175 = arith.addf %1172, %1174 : vector<8x128xf32>
    %1176 = arith.index_cast %c7_i32_336 : i32 to index
    %c0_342 = arith.constant 0 : index
    %c0_343 = arith.constant 0 : index
    %1177 = vector.load %arg8[%1176, %c0_342, %c0_343] : memref<8x8x128xf32, #tpu.memory_space<vmem>>, vector<1x8x128xf32>
    %1178 = vector.shape_cast %1177 : vector<1x8x128xf32> to vector<8x128xf32>
    %1179 = vector.shape_cast %1175 : vector<8x128xf32> to vector<1x8x128xf32>
    tpu.vector_store %arg8[%1176, %c0_342, %c0_343], %1179 {strides = array<i32>} : memref<8x8x128xf32, #tpu.memory_space<vmem>>, vector<1x8x128xf32>,
    %c8_i32_344 = arith.constant 8 : i32
    %c3_345 = arith.constant 3 : index
    %c0_346 = arith.constant 0 : index
    %c0_347 = arith.constant 0 : index
    %1180 = vector.load %arg7[%c3_345, %c0_346, %c0_347] : memref<5x8x128xf32, #tpu.memory_space<vmem>>, vector<1x8x128xf32>
    %1181 = vector.shape_cast %1180 : vector<1x8x128xf32> to vector<8x128xf32>
    %1182 = vector.shape_cast %1175 : vector<8x128xf32> to vector<1x8x128xf32>
    tpu.vector_store %arg7[%c3_345, %c0_346, %c0_347], %1182 {strides = array<i32>} : memref<5x8x128xf32, #tpu.memory_space<vmem>>, vector<1x8x128xf32>,
    %c0_348 = arith.constant 0 : index
    %c0_349 = arith.constant 0 : index
    %c0_350 = arith.constant 0 : index
    %1183 = vector.load %arg8[%c0_348, %c0_349, %c0_350] : memref<8x8x128xf32, #tpu.memory_space<vmem>>, vector<8x8x128xf32>
    %1184 = vector.shape_cast %1183 : vector<8x8x128xf32> to vector<64x128xf32>
    %1185 = arith.truncf %1184 : vector<64x128xf32> to vector<64x128xbf16>
    %c4 = arith.constant 4 : index
    %c0_351 = arith.constant 0 : index
    %c0_352 = arith.constant 0 : index
    %1186 = vector.load %arg2[%c4, %c0_351, %c0_352] : memref<5x128x384xbf16, #tpu.memory_space<vmem>>, vector<1x128x384xbf16>
    %1187 = vector.shape_cast %1186 : vector<1x128x384xbf16> to vector<128x384xbf16>
    %cst_353 = arith.constant dense<0.000000e+00> : vector<64x384xf32>
    %1188 = tpu.matmul %1185, %1187, %cst_353 {dimension_numbers = #tpu.dot_dimension_numbers<[1], [0], [0], [1], [0, 0, 1, 1], [], []>} : vector<64x128xbf16>, vector<128x384xbf16>, vector<64x384xf32> -> vector<64x384xf32>
    %c4_354 = arith.constant 4 : index
    %c0_355 = arith.constant 0 : index
    %c0_356 = arith.constant 0 : index
    %1189 = vector.load %arg4[%c4_354, %c0_355, %c0_356] : memref<5x1x384xf32, #tpu.memory_space<vmem>>, vector<1x1x384xf32>
    %1190 = vector.shape_cast %1189 : vector<1x1x384xf32> to vector<1x384xf32>
    %1191 = vector.broadcast %1190 : vector<1x384xf32> to vector<64x384xf32>
    %1192 = arith.addf %1188, %1191 : vector<64x384xf32>
    %1193 = vector.shape_cast %1192 : vector<64x384xf32> to vector<8x8x384xf32>
    %c0_357 = arith.constant 0 : index
    %c0_358 = arith.constant 0 : index
    %c0_359 = arith.constant 0 : index
    %1194 = vector.load %arg9[%c0_357, %c0_358, %c0_359] : memref<8x8x384xf32, #tpu.memory_space<vmem>>, vector<8x8x384xf32>
    tpu.vector_store %arg9[%c0_357, %c0_358, %c0_359], %1193 {strides = array<i32>} : memref<8x8x384xf32, #tpu.memory_space<vmem>>, vector<8x8x384xf32>,
    %c4_360 = arith.constant 4 : index
    %c0_361 = arith.constant 0 : index
    %c0_362 = arith.constant 0 : index
    %1195 = vector.load %arg3[%c4_360, %c0_361, %c0_362] : memref<5x128x384xbf16, #tpu.memory_space<vmem>>, vector<1x128x384xbf16>
    %1196 = vector.shape_cast %1195 : vector<1x128x384xbf16> to vector<128x384xbf16>
    %c4_363 = arith.constant 4 : index
    %c0_364 = arith.constant 0 : index
    %c0_365 = arith.constant 0 : index
    %1197 = vector.load %arg5[%c4_363, %c0_364, %c0_365] : memref<5x1x128xf32, #tpu.memory_space<vmem>>, vector<1x1x128xf32>
    %1198 = vector.shape_cast %1197 : vector<1x1x128xf32> to vector<1x128xf32>
    %1199 = vector.shape_cast %1198 : vector<1x128xf32> to vector<1x128xf32>
    %1200 = vector.broadcast %1199 : vector<1x128xf32> to vector<8x128xf32>
    %c4_366 = arith.constant 4 : index
    %c0_367 = arith.constant 0 : index
    %c0_368 = arith.constant 0 : index
    %1201 = vector.load %arg7[%c4_366, %c0_367, %c0_368] : memref<5x8x128xf32, #tpu.memory_space<vmem>>, vector<1x8x128xf32>
    %1202 = vector.shape_cast %1201 : vector<1x8x128xf32> to vector<8x128xf32>
    %c0_i32_369 = arith.constant 0 : i32
    %1203 = arith.index_cast %c0_i32_369 : i32 to index
    %c0_370 = arith.constant 0 : index
    %c0_371 = arith.constant 0 : index
    %1204 = vector.load %arg9[%1203, %c0_370, %c0_371] : memref<8x8x384xf32, #tpu.memory_space<vmem>>, vector<1x8x384xf32>
    %1205 = vector.shape_cast %1204 : vector<1x8x384xf32> to vector<8x384xf32>
    %1206 = arith.truncf %1202 : vector<8x128xf32> to vector<8x128xbf16>
    %cst_372 = arith.constant dense<0.000000e+00> : vector<8x384xf32>
    %1207 = tpu.matmul %1206, %1196, %cst_372 {dimension_numbers = #tpu.dot_dimension_numbers<[1], [0], [0], [1], [0, 0, 1, 1], [], []>} : vector<8x128xbf16>, vector<128x384xbf16>, vector<8x384xf32> -> vector<8x384xf32>
    %1208 = vector.extract_strided_slice %1205 {offsets = [0, 0], sizes = [8, 128], strides = [1, 1]} : vector<8x384xf32> to vector<8x128xf32>
    %1209 = vector.extract_strided_slice %1207 {offsets = [0, 0], sizes = [8, 128], strides = [1, 1]} : vector<8x384xf32> to vector<8x128xf32>
    %1210 = arith.addf %1208, %1209 : vector<8x128xf32>
    %1211 = arith.negf %1210 : vector<8x128xf32>
    %1212 = math.exp %1211 : vector<8x128xf32>
    %cst_373 = arith.constant 1.000000e+00 : f32
    %1213 = vector.broadcast %cst_373 : f32 to vector<8x128xf32>
    %1214 = arith.addf %1213, %1212 : vector<8x128xf32>
    %1215 = arith.divf %1213, %1214 : vector<8x128xf32>
    %1216 = vector.extract_strided_slice %1205 {offsets = [0, 128], sizes = [8, 128], strides = [1, 1]} : vector<8x384xf32> to vector<8x128xf32>
    %1217 = vector.extract_strided_slice %1207 {offsets = [0, 128], sizes = [8, 128], strides = [1, 1]} : vector<8x384xf32> to vector<8x128xf32>
    %1218 = arith.addf %1216, %1217 : vector<8x128xf32>
    %1219 = arith.negf %1218 : vector<8x128xf32>
    %1220 = math.exp %1219 : vector<8x128xf32>
    %cst_374 = arith.constant 1.000000e+00 : f32
    %1221 = vector.broadcast %cst_374 : f32 to vector<8x128xf32>
    %1222 = arith.addf %1221, %1220 : vector<8x128xf32>
    %1223 = arith.divf %1221, %1222 : vector<8x128xf32>
    %1224 = vector.extract_strided_slice %1205 {offsets = [0, 256], sizes = [8, 128], strides = [1, 1]} : vector<8x384xf32> to vector<8x128xf32>
    %1225 = vector.extract_strided_slice %1207 {offsets = [0, 256], sizes = [8, 128], strides = [1, 1]} : vector<8x384xf32> to vector<8x128xf32>
    %1226 = arith.addf %1225, %1200 : vector<8x128xf32>
    %1227 = arith.mulf %1215, %1226 : vector<8x128xf32>
    %1228 = arith.addf %1224, %1227 : vector<8x128xf32>
    %1229 = math.tanh %1228 : vector<8x128xf32>
    %1230 = arith.subf %1202, %1229 : vector<8x128xf32>
    %1231 = arith.mulf %1223, %1230 : vector<8x128xf32>
    %1232 = arith.addf %1229, %1231 : vector<8x128xf32>
    %1233 = arith.index_cast %c0_i32_369 : i32 to index
    %c0_375 = arith.constant 0 : index
    %c0_376 = arith.constant 0 : index
    %1234 = vector.load %arg6[%1233, %c0_375, %c0_376] : memref<8x8x128xf32, #tpu.memory_space<vmem>>, vector<1x8x128xf32>
    %1235 = vector.shape_cast %1234 : vector<1x8x128xf32> to vector<8x128xf32>
    %1236 = vector.shape_cast %1232 : vector<8x128xf32> to vector<1x8x128xf32>
    tpu.vector_store %arg6[%1233, %c0_375, %c0_376], %1236 {strides = array<i32>} : memref<8x8x128xf32, #tpu.memory_space<vmem>>, vector<1x8x128xf32>,
    %c1_i32_377 = arith.constant 1 : i32
    %1237 = arith.index_cast %c1_i32_377 : i32 to index
    %c0_378 = arith.constant 0 : index
    %c0_379 = arith.constant 0 : index
    %1238 = vector.load %arg9[%1237, %c0_378, %c0_379] : memref<8x8x384xf32, #tpu.memory_space<vmem>>, vector<1x8x384xf32>
    %1239 = vector.shape_cast %1238 : vector<1x8x384xf32> to vector<8x384xf32>
    %1240 = arith.truncf %1232 : vector<8x128xf32> to vector<8x128xbf16>
    %cst_380 = arith.constant dense<0.000000e+00> : vector<8x384xf32>
    %1241 = tpu.matmul %1240, %1196, %cst_380 {dimension_numbers = #tpu.dot_dimension_numbers<[1], [0], [0], [1], [0, 0, 1, 1], [], []>} : vector<8x128xbf16>, vector<128x384xbf16>, vector<8x384xf32> -> vector<8x384xf32>
    %1242 = vector.extract_strided_slice %1239 {offsets = [0, 0], sizes = [8, 128], strides = [1, 1]} : vector<8x384xf32> to vector<8x128xf32>
    %1243 = vector.extract_strided_slice %1241 {offsets = [0, 0], sizes = [8, 128], strides = [1, 1]} : vector<8x384xf32> to vector<8x128xf32>
    %1244 = arith.addf %1242, %1243 : vector<8x128xf32>
    %1245 = arith.negf %1244 : vector<8x128xf32>
    %1246 = math.exp %1245 : vector<8x128xf32>
    %cst_381 = arith.constant 1.000000e+00 : f32
    %1247 = vector.broadcast %cst_381 : f32 to vector<8x128xf32>
    %1248 = arith.addf %1247, %1246 : vector<8x128xf32>
    %1249 = arith.divf %1247, %1248 : vector<8x128xf32>
    %1250 = vector.extract_strided_slice %1239 {offsets = [0, 128], sizes = [8, 128], strides = [1, 1]} : vector<8x384xf32> to vector<8x128xf32>
    %1251 = vector.extract_strided_slice %1241 {offsets = [0, 128], sizes = [8, 128], strides = [1, 1]} : vector<8x384xf32> to vector<8x128xf32>
    %1252 = arith.addf %1250, %1251 : vector<8x128xf32>
    %1253 = arith.negf %1252 : vector<8x128xf32>
    %1254 = math.exp %1253 : vector<8x128xf32>
    %cst_382 = arith.constant 1.000000e+00 : f32
    %1255 = vector.broadcast %cst_382 : f32 to vector<8x128xf32>
    %1256 = arith.addf %1255, %1254 : vector<8x128xf32>
    %1257 = arith.divf %1255, %1256 : vector<8x128xf32>
    %1258 = vector.extract_strided_slice %1239 {offsets = [0, 256], sizes = [8, 128], strides = [1, 1]} : vector<8x384xf32> to vector<8x128xf32>
    %1259 = vector.extract_strided_slice %1241 {offsets = [0, 256], sizes = [8, 128], strides = [1, 1]} : vector<8x384xf32> to vector<8x128xf32>
    %1260 = arith.addf %1259, %1200 : vector<8x128xf32>
    %1261 = arith.mulf %1249, %1260 : vector<8x128xf32>
    %1262 = arith.addf %1258, %1261 : vector<8x128xf32>
    %1263 = math.tanh %1262 : vector<8x128xf32>
    %1264 = arith.subf %1232, %1263 : vector<8x128xf32>
    %1265 = arith.mulf %1257, %1264 : vector<8x128xf32>
    %1266 = arith.addf %1263, %1265 : vector<8x128xf32>
    %1267 = arith.index_cast %c1_i32_377 : i32 to index
    %c0_383 = arith.constant 0 : index
    %c0_384 = arith.constant 0 : index
    %1268 = vector.load %arg6[%1267, %c0_383, %c0_384] : memref<8x8x128xf32, #tpu.memory_space<vmem>>, vector<1x8x128xf32>
    %1269 = vector.shape_cast %1268 : vector<1x8x128xf32> to vector<8x128xf32>
    %1270 = vector.shape_cast %1266 : vector<8x128xf32> to vector<1x8x128xf32>
    tpu.vector_store %arg6[%1267, %c0_383, %c0_384], %1270 {strides = array<i32>} : memref<8x8x128xf32, #tpu.memory_space<vmem>>, vector<1x8x128xf32>,
    %c2_i32_385 = arith.constant 2 : i32
    %1271 = arith.index_cast %c2_i32_385 : i32 to index
    %c0_386 = arith.constant 0 : index
    %c0_387 = arith.constant 0 : index
    %1272 = vector.load %arg9[%1271, %c0_386, %c0_387] : memref<8x8x384xf32, #tpu.memory_space<vmem>>, vector<1x8x384xf32>
    %1273 = vector.shape_cast %1272 : vector<1x8x384xf32> to vector<8x384xf32>
    %1274 = arith.truncf %1266 : vector<8x128xf32> to vector<8x128xbf16>
    %cst_388 = arith.constant dense<0.000000e+00> : vector<8x384xf32>
    %1275 = tpu.matmul %1274, %1196, %cst_388 {dimension_numbers = #tpu.dot_dimension_numbers<[1], [0], [0], [1], [0, 0, 1, 1], [], []>} : vector<8x128xbf16>, vector<128x384xbf16>, vector<8x384xf32> -> vector<8x384xf32>
    %1276 = vector.extract_strided_slice %1273 {offsets = [0, 0], sizes = [8, 128], strides = [1, 1]} : vector<8x384xf32> to vector<8x128xf32>
    %1277 = vector.extract_strided_slice %1275 {offsets = [0, 0], sizes = [8, 128], strides = [1, 1]} : vector<8x384xf32> to vector<8x128xf32>
    %1278 = arith.addf %1276, %1277 : vector<8x128xf32>
    %1279 = arith.negf %1278 : vector<8x128xf32>
    %1280 = math.exp %1279 : vector<8x128xf32>
    %cst_389 = arith.constant 1.000000e+00 : f32
    %1281 = vector.broadcast %cst_389 : f32 to vector<8x128xf32>
    %1282 = arith.addf %1281, %1280 : vector<8x128xf32>
    %1283 = arith.divf %1281, %1282 : vector<8x128xf32>
    %1284 = vector.extract_strided_slice %1273 {offsets = [0, 128], sizes = [8, 128], strides = [1, 1]} : vector<8x384xf32> to vector<8x128xf32>
    %1285 = vector.extract_strided_slice %1275 {offsets = [0, 128], sizes = [8, 128], strides = [1, 1]} : vector<8x384xf32> to vector<8x128xf32>
    %1286 = arith.addf %1284, %1285 : vector<8x128xf32>
    %1287 = arith.negf %1286 : vector<8x128xf32>
    %1288 = math.exp %1287 : vector<8x128xf32>
    %cst_390 = arith.constant 1.000000e+00 : f32
    %1289 = vector.broadcast %cst_390 : f32 to vector<8x128xf32>
    %1290 = arith.addf %1289, %1288 : vector<8x128xf32>
    %1291 = arith.divf %1289, %1290 : vector<8x128xf32>
    %1292 = vector.extract_strided_slice %1273 {offsets = [0, 256], sizes = [8, 128], strides = [1, 1]} : vector<8x384xf32> to vector<8x128xf32>
    %1293 = vector.extract_strided_slice %1275 {offsets = [0, 256], sizes = [8, 128], strides = [1, 1]} : vector<8x384xf32> to vector<8x128xf32>
    %1294 = arith.addf %1293, %1200 : vector<8x128xf32>
    %1295 = arith.mulf %1283, %1294 : vector<8x128xf32>
    %1296 = arith.addf %1292, %1295 : vector<8x128xf32>
    %1297 = math.tanh %1296 : vector<8x128xf32>
    %1298 = arith.subf %1266, %1297 : vector<8x128xf32>
    %1299 = arith.mulf %1291, %1298 : vector<8x128xf32>
    %1300 = arith.addf %1297, %1299 : vector<8x128xf32>
    %1301 = arith.index_cast %c2_i32_385 : i32 to index
    %c0_391 = arith.constant 0 : index
    %c0_392 = arith.constant 0 : index
    %1302 = vector.load %arg6[%1301, %c0_391, %c0_392] : memref<8x8x128xf32, #tpu.memory_space<vmem>>, vector<1x8x128xf32>
    %1303 = vector.shape_cast %1302 : vector<1x8x128xf32> to vector<8x128xf32>
    %1304 = vector.shape_cast %1300 : vector<8x128xf32> to vector<1x8x128xf32>
    tpu.vector_store %arg6[%1301, %c0_391, %c0_392], %1304 {strides = array<i32>} : memref<8x8x128xf32, #tpu.memory_space<vmem>>, vector<1x8x128xf32>,
    %c3_i32_393 = arith.constant 3 : i32
    %1305 = arith.index_cast %c3_i32_393 : i32 to index
    %c0_394 = arith.constant 0 : index
    %c0_395 = arith.constant 0 : index
    %1306 = vector.load %arg9[%1305, %c0_394, %c0_395] : memref<8x8x384xf32, #tpu.memory_space<vmem>>, vector<1x8x384xf32>
    %1307 = vector.shape_cast %1306 : vector<1x8x384xf32> to vector<8x384xf32>
    %1308 = arith.truncf %1300 : vector<8x128xf32> to vector<8x128xbf16>
    %cst_396 = arith.constant dense<0.000000e+00> : vector<8x384xf32>
    %1309 = tpu.matmul %1308, %1196, %cst_396 {dimension_numbers = #tpu.dot_dimension_numbers<[1], [0], [0], [1], [0, 0, 1, 1], [], []>} : vector<8x128xbf16>, vector<128x384xbf16>, vector<8x384xf32> -> vector<8x384xf32>
    %1310 = vector.extract_strided_slice %1307 {offsets = [0, 0], sizes = [8, 128], strides = [1, 1]} : vector<8x384xf32> to vector<8x128xf32>
    %1311 = vector.extract_strided_slice %1309 {offsets = [0, 0], sizes = [8, 128], strides = [1, 1]} : vector<8x384xf32> to vector<8x128xf32>
    %1312 = arith.addf %1310, %1311 : vector<8x128xf32>
    %1313 = arith.negf %1312 : vector<8x128xf32>
    %1314 = math.exp %1313 : vector<8x128xf32>
    %cst_397 = arith.constant 1.000000e+00 : f32
    %1315 = vector.broadcast %cst_397 : f32 to vector<8x128xf32>
    %1316 = arith.addf %1315, %1314 : vector<8x128xf32>
    %1317 = arith.divf %1315, %1316 : vector<8x128xf32>
    %1318 = vector.extract_strided_slice %1307 {offsets = [0, 128], sizes = [8, 128], strides = [1, 1]} : vector<8x384xf32> to vector<8x128xf32>
    %1319 = vector.extract_strided_slice %1309 {offsets = [0, 128], sizes = [8, 128], strides = [1, 1]} : vector<8x384xf32> to vector<8x128xf32>
    %1320 = arith.addf %1318, %1319 : vector<8x128xf32>
    %1321 = arith.negf %1320 : vector<8x128xf32>
    %1322 = math.exp %1321 : vector<8x128xf32>
    %cst_398 = arith.constant 1.000000e+00 : f32
    %1323 = vector.broadcast %cst_398 : f32 to vector<8x128xf32>
    %1324 = arith.addf %1323, %1322 : vector<8x128xf32>
    %1325 = arith.divf %1323, %1324 : vector<8x128xf32>
    %1326 = vector.extract_strided_slice %1307 {offsets = [0, 256], sizes = [8, 128], strides = [1, 1]} : vector<8x384xf32> to vector<8x128xf32>
    %1327 = vector.extract_strided_slice %1309 {offsets = [0, 256], sizes = [8, 128], strides = [1, 1]} : vector<8x384xf32> to vector<8x128xf32>
    %1328 = arith.addf %1327, %1200 : vector<8x128xf32>
    %1329 = arith.mulf %1317, %1328 : vector<8x128xf32>
    %1330 = arith.addf %1326, %1329 : vector<8x128xf32>
    %1331 = math.tanh %1330 : vector<8x128xf32>
    %1332 = arith.subf %1300, %1331 : vector<8x128xf32>
    %1333 = arith.mulf %1325, %1332 : vector<8x128xf32>
    %1334 = arith.addf %1331, %1333 : vector<8x128xf32>
    %1335 = arith.index_cast %c3_i32_393 : i32 to index
    %c0_399 = arith.constant 0 : index
    %c0_400 = arith.constant 0 : index
    %1336 = vector.load %arg6[%1335, %c0_399, %c0_400] : memref<8x8x128xf32, #tpu.memory_space<vmem>>, vector<1x8x128xf32>
    %1337 = vector.shape_cast %1336 : vector<1x8x128xf32> to vector<8x128xf32>
    %1338 = vector.shape_cast %1334 : vector<8x128xf32> to vector<1x8x128xf32>
    tpu.vector_store %arg6[%1335, %c0_399, %c0_400], %1338 {strides = array<i32>} : memref<8x8x128xf32, #tpu.memory_space<vmem>>, vector<1x8x128xf32>,
    %c4_i32_401 = arith.constant 4 : i32
    %1339 = arith.index_cast %c4_i32_401 : i32 to index
    %c0_402 = arith.constant 0 : index
    %c0_403 = arith.constant 0 : index
    %1340 = vector.load %arg9[%1339, %c0_402, %c0_403] : memref<8x8x384xf32, #tpu.memory_space<vmem>>, vector<1x8x384xf32>
    %1341 = vector.shape_cast %1340 : vector<1x8x384xf32> to vector<8x384xf32>
    %1342 = arith.truncf %1334 : vector<8x128xf32> to vector<8x128xbf16>
    %cst_404 = arith.constant dense<0.000000e+00> : vector<8x384xf32>
    %1343 = tpu.matmul %1342, %1196, %cst_404 {dimension_numbers = #tpu.dot_dimension_numbers<[1], [0], [0], [1], [0, 0, 1, 1], [], []>} : vector<8x128xbf16>, vector<128x384xbf16>, vector<8x384xf32> -> vector<8x384xf32>
    %1344 = vector.extract_strided_slice %1341 {offsets = [0, 0], sizes = [8, 128], strides = [1, 1]} : vector<8x384xf32> to vector<8x128xf32>
    %1345 = vector.extract_strided_slice %1343 {offsets = [0, 0], sizes = [8, 128], strides = [1, 1]} : vector<8x384xf32> to vector<8x128xf32>
    %1346 = arith.addf %1344, %1345 : vector<8x128xf32>
    %1347 = arith.negf %1346 : vector<8x128xf32>
    %1348 = math.exp %1347 : vector<8x128xf32>
    %cst_405 = arith.constant 1.000000e+00 : f32
    %1349 = vector.broadcast %cst_405 : f32 to vector<8x128xf32>
    %1350 = arith.addf %1349, %1348 : vector<8x128xf32>
    %1351 = arith.divf %1349, %1350 : vector<8x128xf32>
    %1352 = vector.extract_strided_slice %1341 {offsets = [0, 128], sizes = [8, 128], strides = [1, 1]} : vector<8x384xf32> to vector<8x128xf32>
    %1353 = vector.extract_strided_slice %1343 {offsets = [0, 128], sizes = [8, 128], strides = [1, 1]} : vector<8x384xf32> to vector<8x128xf32>
    %1354 = arith.addf %1352, %1353 : vector<8x128xf32>
    %1355 = arith.negf %1354 : vector<8x128xf32>
    %1356 = math.exp %1355 : vector<8x128xf32>
    %cst_406 = arith.constant 1.000000e+00 : f32
    %1357 = vector.broadcast %cst_406 : f32 to vector<8x128xf32>
    %1358 = arith.addf %1357, %1356 : vector<8x128xf32>
    %1359 = arith.divf %1357, %1358 : vector<8x128xf32>
    %1360 = vector.extract_strided_slice %1341 {offsets = [0, 256], sizes = [8, 128], strides = [1, 1]} : vector<8x384xf32> to vector<8x128xf32>
    %1361 = vector.extract_strided_slice %1343 {offsets = [0, 256], sizes = [8, 128], strides = [1, 1]} : vector<8x384xf32> to vector<8x128xf32>
    %1362 = arith.addf %1361, %1200 : vector<8x128xf32>
    %1363 = arith.mulf %1351, %1362 : vector<8x128xf32>
    %1364 = arith.addf %1360, %1363 : vector<8x128xf32>
    %1365 = math.tanh %1364 : vector<8x128xf32>
    %1366 = arith.subf %1334, %1365 : vector<8x128xf32>
    %1367 = arith.mulf %1359, %1366 : vector<8x128xf32>
    %1368 = arith.addf %1365, %1367 : vector<8x128xf32>
    %1369 = arith.index_cast %c4_i32_401 : i32 to index
    %c0_407 = arith.constant 0 : index
    %c0_408 = arith.constant 0 : index
    %1370 = vector.load %arg6[%1369, %c0_407, %c0_408] : memref<8x8x128xf32, #tpu.memory_space<vmem>>, vector<1x8x128xf32>
    %1371 = vector.shape_cast %1370 : vector<1x8x128xf32> to vector<8x128xf32>
    %1372 = vector.shape_cast %1368 : vector<8x128xf32> to vector<1x8x128xf32>
    tpu.vector_store %arg6[%1369, %c0_407, %c0_408], %1372 {strides = array<i32>} : memref<8x8x128xf32, #tpu.memory_space<vmem>>, vector<1x8x128xf32>,
    %c5_i32_409 = arith.constant 5 : i32
    %1373 = arith.index_cast %c5_i32_409 : i32 to index
    %c0_410 = arith.constant 0 : index
    %c0_411 = arith.constant 0 : index
    %1374 = vector.load %arg9[%1373, %c0_410, %c0_411] : memref<8x8x384xf32, #tpu.memory_space<vmem>>, vector<1x8x384xf32>
    %1375 = vector.shape_cast %1374 : vector<1x8x384xf32> to vector<8x384xf32>
    %1376 = arith.truncf %1368 : vector<8x128xf32> to vector<8x128xbf16>
    %cst_412 = arith.constant dense<0.000000e+00> : vector<8x384xf32>
    %1377 = tpu.matmul %1376, %1196, %cst_412 {dimension_numbers = #tpu.dot_dimension_numbers<[1], [0], [0], [1], [0, 0, 1, 1], [], []>} : vector<8x128xbf16>, vector<128x384xbf16>, vector<8x384xf32> -> vector<8x384xf32>
    %1378 = vector.extract_strided_slice %1375 {offsets = [0, 0], sizes = [8, 128], strides = [1, 1]} : vector<8x384xf32> to vector<8x128xf32>
    %1379 = vector.extract_strided_slice %1377 {offsets = [0, 0], sizes = [8, 128], strides = [1, 1]} : vector<8x384xf32> to vector<8x128xf32>
    %1380 = arith.addf %1378, %1379 : vector<8x128xf32>
    %1381 = arith.negf %1380 : vector<8x128xf32>
    %1382 = math.exp %1381 : vector<8x128xf32>
    %cst_413 = arith.constant 1.000000e+00 : f32
    %1383 = vector.broadcast %cst_413 : f32 to vector<8x128xf32>
    %1384 = arith.addf %1383, %1382 : vector<8x128xf32>
    %1385 = arith.divf %1383, %1384 : vector<8x128xf32>
    %1386 = vector.extract_strided_slice %1375 {offsets = [0, 128], sizes = [8, 128], strides = [1, 1]} : vector<8x384xf32> to vector<8x128xf32>
    %1387 = vector.extract_strided_slice %1377 {offsets = [0, 128], sizes = [8, 128], strides = [1, 1]} : vector<8x384xf32> to vector<8x128xf32>
    %1388 = arith.addf %1386, %1387 : vector<8x128xf32>
    %1389 = arith.negf %1388 : vector<8x128xf32>
    %1390 = math.exp %1389 : vector<8x128xf32>
    %cst_414 = arith.constant 1.000000e+00 : f32
    %1391 = vector.broadcast %cst_414 : f32 to vector<8x128xf32>
    %1392 = arith.addf %1391, %1390 : vector<8x128xf32>
    %1393 = arith.divf %1391, %1392 : vector<8x128xf32>
    %1394 = vector.extract_strided_slice %1375 {offsets = [0, 256], sizes = [8, 128], strides = [1, 1]} : vector<8x384xf32> to vector<8x128xf32>
    %1395 = vector.extract_strided_slice %1377 {offsets = [0, 256], sizes = [8, 128], strides = [1, 1]} : vector<8x384xf32> to vector<8x128xf32>
    %1396 = arith.addf %1395, %1200 : vector<8x128xf32>
    %1397 = arith.mulf %1385, %1396 : vector<8x128xf32>
    %1398 = arith.addf %1394, %1397 : vector<8x128xf32>
    %1399 = math.tanh %1398 : vector<8x128xf32>
    %1400 = arith.subf %1368, %1399 : vector<8x128xf32>
    %1401 = arith.mulf %1393, %1400 : vector<8x128xf32>
    %1402 = arith.addf %1399, %1401 : vector<8x128xf32>
    %1403 = arith.index_cast %c5_i32_409 : i32 to index
    %c0_415 = arith.constant 0 : index
    %c0_416 = arith.constant 0 : index
    %1404 = vector.load %arg6[%1403, %c0_415, %c0_416] : memref<8x8x128xf32, #tpu.memory_space<vmem>>, vector<1x8x128xf32>
    %1405 = vector.shape_cast %1404 : vector<1x8x128xf32> to vector<8x128xf32>
    %1406 = vector.shape_cast %1402 : vector<8x128xf32> to vector<1x8x128xf32>
    tpu.vector_store %arg6[%1403, %c0_415, %c0_416], %1406 {strides = array<i32>} : memref<8x8x128xf32, #tpu.memory_space<vmem>>, vector<1x8x128xf32>,
    %c6_i32_417 = arith.constant 6 : i32
    %1407 = arith.index_cast %c6_i32_417 : i32 to index
    %c0_418 = arith.constant 0 : index
    %c0_419 = arith.constant 0 : index
    %1408 = vector.load %arg9[%1407, %c0_418, %c0_419] : memref<8x8x384xf32, #tpu.memory_space<vmem>>, vector<1x8x384xf32>
    %1409 = vector.shape_cast %1408 : vector<1x8x384xf32> to vector<8x384xf32>
    %1410 = arith.truncf %1402 : vector<8x128xf32> to vector<8x128xbf16>
    %cst_420 = arith.constant dense<0.000000e+00> : vector<8x384xf32>
    %1411 = tpu.matmul %1410, %1196, %cst_420 {dimension_numbers = #tpu.dot_dimension_numbers<[1], [0], [0], [1], [0, 0, 1, 1], [], []>} : vector<8x128xbf16>, vector<128x384xbf16>, vector<8x384xf32> -> vector<8x384xf32>
    %1412 = vector.extract_strided_slice %1409 {offsets = [0, 0], sizes = [8, 128], strides = [1, 1]} : vector<8x384xf32> to vector<8x128xf32>
    %1413 = vector.extract_strided_slice %1411 {offsets = [0, 0], sizes = [8, 128], strides = [1, 1]} : vector<8x384xf32> to vector<8x128xf32>
    %1414 = arith.addf %1412, %1413 : vector<8x128xf32>
    %1415 = arith.negf %1414 : vector<8x128xf32>
    %1416 = math.exp %1415 : vector<8x128xf32>
    %cst_421 = arith.constant 1.000000e+00 : f32
    %1417 = vector.broadcast %cst_421 : f32 to vector<8x128xf32>
    %1418 = arith.addf %1417, %1416 : vector<8x128xf32>
    %1419 = arith.divf %1417, %1418 : vector<8x128xf32>
    %1420 = vector.extract_strided_slice %1409 {offsets = [0, 128], sizes = [8, 128], strides = [1, 1]} : vector<8x384xf32> to vector<8x128xf32>
    %1421 = vector.extract_strided_slice %1411 {offsets = [0, 128], sizes = [8, 128], strides = [1, 1]} : vector<8x384xf32> to vector<8x128xf32>
    %1422 = arith.addf %1420, %1421 : vector<8x128xf32>
    %1423 = arith.negf %1422 : vector<8x128xf32>
    %1424 = math.exp %1423 : vector<8x128xf32>
    %cst_422 = arith.constant 1.000000e+00 : f32
    %1425 = vector.broadcast %cst_422 : f32 to vector<8x128xf32>
    %1426 = arith.addf %1425, %1424 : vector<8x128xf32>
    %1427 = arith.divf %1425, %1426 : vector<8x128xf32>
    %1428 = vector.extract_strided_slice %1409 {offsets = [0, 256], sizes = [8, 128], strides = [1, 1]} : vector<8x384xf32> to vector<8x128xf32>
    %1429 = vector.extract_strided_slice %1411 {offsets = [0, 256], sizes = [8, 128], strides = [1, 1]} : vector<8x384xf32> to vector<8x128xf32>
    %1430 = arith.addf %1429, %1200 : vector<8x128xf32>
    %1431 = arith.mulf %1419, %1430 : vector<8x128xf32>
    %1432 = arith.addf %1428, %1431 : vector<8x128xf32>
    %1433 = math.tanh %1432 : vector<8x128xf32>
    %1434 = arith.subf %1402, %1433 : vector<8x128xf32>
    %1435 = arith.mulf %1427, %1434 : vector<8x128xf32>
    %1436 = arith.addf %1433, %1435 : vector<8x128xf32>
    %1437 = arith.index_cast %c6_i32_417 : i32 to index
    %c0_423 = arith.constant 0 : index
    %c0_424 = arith.constant 0 : index
    %1438 = vector.load %arg6[%1437, %c0_423, %c0_424] : memref<8x8x128xf32, #tpu.memory_space<vmem>>, vector<1x8x128xf32>
    %1439 = vector.shape_cast %1438 : vector<1x8x128xf32> to vector<8x128xf32>
    %1440 = vector.shape_cast %1436 : vector<8x128xf32> to vector<1x8x128xf32>
    tpu.vector_store %arg6[%1437, %c0_423, %c0_424], %1440 {strides = array<i32>} : memref<8x8x128xf32, #tpu.memory_space<vmem>>, vector<1x8x128xf32>,
    %c7_i32_425 = arith.constant 7 : i32
    %1441 = arith.index_cast %c7_i32_425 : i32 to index
    %c0_426 = arith.constant 0 : index
    %c0_427 = arith.constant 0 : index
    %1442 = vector.load %arg9[%1441, %c0_426, %c0_427] : memref<8x8x384xf32, #tpu.memory_space<vmem>>, vector<1x8x384xf32>
    %1443 = vector.shape_cast %1442 : vector<1x8x384xf32> to vector<8x384xf32>
    %1444 = arith.truncf %1436 : vector<8x128xf32> to vector<8x128xbf16>
    %cst_428 = arith.constant dense<0.000000e+00> : vector<8x384xf32>
    %1445 = tpu.matmul %1444, %1196, %cst_428 {dimension_numbers = #tpu.dot_dimension_numbers<[1], [0], [0], [1], [0, 0, 1, 1], [], []>} : vector<8x128xbf16>, vector<128x384xbf16>, vector<8x384xf32> -> vector<8x384xf32>
    %1446 = vector.extract_strided_slice %1443 {offsets = [0, 0], sizes = [8, 128], strides = [1, 1]} : vector<8x384xf32> to vector<8x128xf32>
    %1447 = vector.extract_strided_slice %1445 {offsets = [0, 0], sizes = [8, 128], strides = [1, 1]} : vector<8x384xf32> to vector<8x128xf32>
    %1448 = arith.addf %1446, %1447 : vector<8x128xf32>
    %1449 = arith.negf %1448 : vector<8x128xf32>
    %1450 = math.exp %1449 : vector<8x128xf32>
    %cst_429 = arith.constant 1.000000e+00 : f32
    %1451 = vector.broadcast %cst_429 : f32 to vector<8x128xf32>
    %1452 = arith.addf %1451, %1450 : vector<8x128xf32>
    %1453 = arith.divf %1451, %1452 : vector<8x128xf32>
    %1454 = vector.extract_strided_slice %1443 {offsets = [0, 128], sizes = [8, 128], strides = [1, 1]} : vector<8x384xf32> to vector<8x128xf32>
    %1455 = vector.extract_strided_slice %1445 {offsets = [0, 128], sizes = [8, 128], strides = [1, 1]} : vector<8x384xf32> to vector<8x128xf32>
    %1456 = arith.addf %1454, %1455 : vector<8x128xf32>
    %1457 = arith.negf %1456 : vector<8x128xf32>
    %1458 = math.exp %1457 : vector<8x128xf32>
    %cst_430 = arith.constant 1.000000e+00 : f32
    %1459 = vector.broadcast %cst_430 : f32 to vector<8x128xf32>
    %1460 = arith.addf %1459, %1458 : vector<8x128xf32>
    %1461 = arith.divf %1459, %1460 : vector<8x128xf32>
    %1462 = vector.extract_strided_slice %1443 {offsets = [0, 256], sizes = [8, 128], strides = [1, 1]} : vector<8x384xf32> to vector<8x128xf32>
    %1463 = vector.extract_strided_slice %1445 {offsets = [0, 256], sizes = [8, 128], strides = [1, 1]} : vector<8x384xf32> to vector<8x128xf32>
    %1464 = arith.addf %1463, %1200 : vector<8x128xf32>
    %1465 = arith.mulf %1453, %1464 : vector<8x128xf32>
    %1466 = arith.addf %1462, %1465 : vector<8x128xf32>
    %1467 = math.tanh %1466 : vector<8x128xf32>
    %1468 = arith.subf %1436, %1467 : vector<8x128xf32>
    %1469 = arith.mulf %1461, %1468 : vector<8x128xf32>
    %1470 = arith.addf %1467, %1469 : vector<8x128xf32>
    %1471 = arith.index_cast %c7_i32_425 : i32 to index
    %c0_431 = arith.constant 0 : index
    %c0_432 = arith.constant 0 : index
    %1472 = vector.load %arg6[%1471, %c0_431, %c0_432] : memref<8x8x128xf32, #tpu.memory_space<vmem>>, vector<1x8x128xf32>
    %1473 = vector.shape_cast %1472 : vector<1x8x128xf32> to vector<8x128xf32>
    %1474 = vector.shape_cast %1470 : vector<8x128xf32> to vector<1x8x128xf32>
    tpu.vector_store %arg6[%1471, %c0_431, %c0_432], %1474 {strides = array<i32>} : memref<8x8x128xf32, #tpu.memory_space<vmem>>, vector<1x8x128xf32>,
    %c8_i32_433 = arith.constant 8 : i32
    %c4_434 = arith.constant 4 : index
    %c0_435 = arith.constant 0 : index
    %c0_436 = arith.constant 0 : index
    %1475 = vector.load %arg7[%c4_434, %c0_435, %c0_436] : memref<5x8x128xf32, #tpu.memory_space<vmem>>, vector<1x8x128xf32>
    %1476 = vector.shape_cast %1475 : vector<1x8x128xf32> to vector<8x128xf32>
    %1477 = vector.shape_cast %1470 : vector<8x128xf32> to vector<1x8x128xf32>
    tpu.vector_store %arg7[%c4_434, %c0_435, %c0_436], %1477 {strides = array<i32>} : memref<5x8x128xf32, #tpu.memory_space<vmem>>, vector<1x8x128xf32>,
    return
  }
  func.func @transform_0(%arg0: i32) -> (i32, i32, i32) {
    %c0_i32 = arith.constant 0 : i32
    %c0_i32_0 = arith.constant 0 : i32
    %c0_i32_1 = arith.constant 0 : i32
    return %arg0, %c0_i32, %c0_i32_0 : i32, i32, i32
  }
  func.func @transform_1(%arg0: i32) -> (i32, i32, i32) {
    %c0_i32 = arith.constant 0 : i32
    %c0_i32_0 = arith.constant 0 : i32
    %c0_i32_1 = arith.constant 0 : i32
    %c0_i32_2 = arith.constant 0 : i32
    return %c0_i32, %c0_i32_0, %c0_i32_1 : i32, i32, i32
  }
  func.func @transform_2(%arg0: i32) -> (i32, i32, i32) {
    %c0_i32 = arith.constant 0 : i32
    %c0_i32_0 = arith.constant 0 : i32
    %c0_i32_1 = arith.constant 0 : i32
    %c0_i32_2 = arith.constant 0 : i32
    return %c0_i32, %c0_i32_0, %c0_i32_1 : i32, i32, i32
  }
  func.func @transform_3(%arg0: i32) -> (i32, i32, i32) {
    %c0_i32 = arith.constant 0 : i32
    %c0_i32_0 = arith.constant 0 : i32
    %c0_i32_1 = arith.constant 0 : i32
    %c0_i32_2 = arith.constant 0 : i32
    return %c0_i32, %c0_i32_0, %c0_i32_1 : i32, i32, i32
  }
  func.func @transform_4(%arg0: i32) -> (i32, i32, i32) {
    %c0_i32 = arith.constant 0 : i32
    %c0_i32_0 = arith.constant 0 : i32
    %c0_i32_1 = arith.constant 0 : i32
    %c0_i32_2 = arith.constant 0 : i32
    return %c0_i32, %c0_i32_0, %c0_i32_1 : i32, i32, i32
  }
  func.func @transform_5(%arg0: i32) -> (i32, i32, i32) {
    %c0_i32 = arith.constant 0 : i32
    %c0_i32_0 = arith.constant 0 : i32
    %c0_i32_1 = arith.constant 0 : i32
    return %arg0, %c0_i32, %c0_i32_0 : i32, i32, i32
  }
}

</mosaic_0001>

<bundles_post_ra>
// kernel: rnn_forward.1
= control target key start
LH: loop header
LB: loop body
LE: loop exit
PB: predicated region body
PF: predicated region fallthrough
CT: control target
= control target key end

     0   :  { %10 = vsyncpa [#allocation6], 0  ;;  %s12043_s0 = inlined_call_operand.vmem [shape: f32[8,8,128], index: 0, kind: input, shape index: {}]   ;;  %s12044_s1 = inlined_call_operand.hbm [shape: bf16[5,128,384], index: 1, kind: input, shape index: {}]   ;;  %s12045_s2 = inlined_call_operand.hbm [shape: bf16[5,128,384], index: 2, kind: input, shape index: {}]   ;;  %s12046_s3 = inlined_call_operand.vmem [shape: f32[5,1,384], index: 3, kind: input, shape index: {}]   ;;  %s12047_s4 = inlined_call_operand.vmem [shape: f32[5,1,128], index: 4, kind: input, shape index: {}]   ;;  %s12048_s5 = inlined_call_operand.vmem [shape: f32[8,8,128], index: 5, kind: output, shape index: {}]  }
   0x1   :  { %11 = vsyncpa [#allocation8], 0  ;;  %s9558_s18 = smov [#allocation5]  }
   0x2   :  { %s19_s19 = sshll.u32 %s9558_s18, 4  ;;  %s20_s19 = int_to_ptr.vmem [resolvable:$true] %s19_s19 }
   0x3   :  { %s9522_s20 = scalar_lea.vmem %s20_s19, 15360  ;;  %p9527_p1 = scmp.lt.s32.totalorder %s20_s19, %s20_s19 }
   0x4   :  { %p9523_p0 = scmp.ne.s32.totalorder %s20_s19, %s9522_s20  ;;  %p9528_p2 = scmp.lt.s32.totalorder %s9522_s20, %s9522_s20 }
   0x6   :  { %p9529_p3 = por %p9528_p2, %p9527_p1 }
   0x8   :  { %p9530_p4 = pnand %p9529_p3, %p9523_p0 }
   0xa   :  { %9533 = shalt.err (!%p9530_p4)
}
   0xb   :  { %s9559_s21 = smov 192   ;;  %s9560_s22 = smov 12  }
   0xc   :  { %25 = dma.hbm_to_vmem [thread:$0]  %s12044_s1, 15360, %s20_s19, [#allocation6], %s9559_s21, %s9559_s21, %s9560_s22  }
   0xd   :  { %s9561_s25 = smov [#allocation7]  }
   0xe   :  { %s31_s26 = sshll.u32 %s9561_s25, 4  ;;  %s32_s26 = int_to_ptr.vmem [resolvable:$true] %s31_s26 }
   0xf   :  { %s9542_s27 = scalar_lea.vmem %s32_s26, 15360  ;;  %p9547_p6 = scmp.lt.s32.totalorder %s32_s26, %s32_s26 }
  0x10   :  { %p9543_p5 = scmp.ne.s32.totalorder %s32_s26, %s9542_s27  ;;  %p9548_p7 = scmp.lt.s32.totalorder %s9542_s27, %s9542_s27 }
  0x12   :  { %p9549_p8 = por %p9548_p7, %p9547_p6 }
  0x14   :  { %p9550_p9 = pnand %p9549_p8, %p9543_p5 }
  0x16   :  { %9553 = shalt.err (!%p9550_p9)
}
  0x17   :  { %37 = dma.hbm_to_vmem [thread:$0]  %s12045_s2, 15360, %s32_s26, [#allocation8], %s9559_s21, %s9559_s21, %s9560_s22  }
  0x18   :  { %9554 = dma.done.wait [#allocation6], 15360  }
  0x19   :  { %9555 = vsyncadd [#allocation6], 4294951936 }
  0x1a   :  { %9556 = dma.done.wait [#allocation8], 15360  }
  0x1b   :  { %9557 = vsyncadd [#allocation8], 4294951936  ;;  %v12051_v0 = vmov 0   ;;  %v8673_v1 = vld [vmem:[#allocation5 + $0xac] ss:$12 sps:$4 sm:$0xff]   ;;  %v58_v12 = vld [vmem:[%s12043_s0] sm:$0xff]  ;;  %v104_v63 = vlaneseq }
  0x1c   :  { %279 = vmatprep.mubr.bf16.mxu0 %v12051_v0  ;;  %v8675_v2 = vld [vmem:[#allocation5 + $0xa8] ss:$12 sps:$4 sm:$0xff]   ;;  %247 = vmatprep.subr.bf16.mxu0 %v8673_v1  ;;  %v8678_v4 = vld [vmem:[#allocation5 + $0x90] ss:$12 sps:$4 sm:$0xff]   ;;  %v8681_v6 = vld [vmem:[#allocation5 + $0x78] ss:$12 sps:$4 sm:$0xff]  }
  0x1d   :  { %v8676_v3 = vld [vmem:[#allocation5 + $0x94] ss:$12 sps:$4 sm:$0xff]   ;;  %248 = vmatpush1.bf16.msra.mxu0 %v8675_v2  ;;  %v8679_v5 = vld [vmem:[#allocation5 + $0x7c] ss:$12 sps:$4 sm:$0xff]   ;;  %v8682_v7 = vld [vmem:[#allocation5 + $0x64] ss:$12 sps:$4 sm:$0xff]  }
  0x1e   :  { %249 = vmatprep.subr.bf16.mxu0 %v8676_v3  ;;  %v8694_v8 = vld [vmem:[#allocation5 + $0xb0] ss:$12 sps:$4 sm:$0xff]   ;;  %v8684_v9 = vld [vmem:[#allocation5 + $0x60] ss:$12 sps:$4 sm:$0xff]   ;;  %v8698_v11 = vld [vmem:[#allocation5 + $0x98] ss:$12 sps:$4 sm:$0xff]  }
  0x1f   :  { %v8685_v10 = vld [vmem:[#allocation5 + $0x4c] ss:$12 sps:$4 sm:$0xff]   ;;  %7745 = vmatprep.subr.bf16.mxu1 %v8694_v8  ;;  %v8687_v14 = vld [vmem:[#allocation5 + $0x48] ss:$12 sps:$4 sm:$0xff]   ;;  %v8690_v19 = vld [vmem:[#allocation5 + $0x30] ss:$12 sps:$4 sm:$0xff]  }
  0x20   :  { %7746 = vmatpush3.bf16.msra.mxu1 %v8694_v8  ;;  %v59_v13 = vld [vmem:[%s12043_s0 + $0x8] sm:$0xff]  ;;  %v8688_v17 = vld [vmem:[#allocation5 + $0x34] ss:$12 sps:$4 sm:$0xff]   ;;  %v8710_v21 = vld [vmem:[#allocation5 + $0x50] ss:$12 sps:$4 sm:$0xff]   ;;  %v12053_v43 = vmov 0.0  }
  0x21   :  { %250 = vmatpush1.bf16.msra.mxu0 %v8678_v4  ;;  %7747 = vmatprep.subr.bf16.mxu1 %v8698_v11  ;;  %v66_v15 = vpack.c.bf16 %v59_v13, %v58_v12  ;;  %v8702_v16 = vld [vmem:[#allocation5 + $0x80] ss:$12 sps:$4 sm:$0xff]   ;;  %v8706_v18 = vld [vmem:[#allocation5 + $0x68] ss:$12 sps:$4 sm:$0xff]   ;;  %v8693_v22 = vld [vmem:[#allocation5 + $0x18] ss:$12 sps:$4 sm:$0xff]  }
  0x22   :  { %251 = vmatprep.subr.bf16.mxu0 %v8679_v5  ;;  %v8691_v20 = vld [vmem:[#allocation5 + $0x1c] ss:$12 sps:$4 sm:$0xff]   ;;  %v8695_v23 = vld [vmem:[#allocation5 + $0x4] ss:$12 sps:$4 sm:$0xff]   ;;  %v8697_v25 = vld [vmem:[#allocation5] ss:$12 sps:$4 sm:$0xff]  }
  0x23   :  { %7761 = vmatprep.mubr.bf16.mxu1 %v66_v15  ;;  %v8714_v24 = vld [vmem:[#allocation5 + $0x38] ss:$12 sps:$4 sm:$0xff]   ;;  %v8718_v27 = vld [vmem:[#allocation5 + $0x20] ss:$12 sps:$4 sm:$0xff]   ;;  %v9611_v28 = vld [vmem:[#allocation7 + $0xa8] ss:$12 sps:$4 sm:$0xff]  }
  0x24   :  { %7748 = vmatpush3.bf16.msra.mxu1 %v8698_v11  ;;  %v9609_v26 = vld [vmem:[#allocation7 + $0xac] ss:$12 sps:$4 sm:$0xff]   ;;  %v9614_v29 = vld [vmem:[#allocation7 + $0x94] ss:$12 sps:$4 sm:$0xff]   ;;  %v9616_v30 = vld [vmem:[#allocation7 + $0x90] ss:$12 sps:$4 sm:$0xff]  }
  0x25   :  { %252 = vmatpush1.bf16.msra.mxu0 %v8681_v6  ;;  %7749 = vmatprep.subr.bf16.mxu1 %v8702_v16  ;;  %v60_v31 = vld [vmem:[%s12043_s0 + $0x10] sm:$0xff]  ;;  %v61_v33 = vld [vmem:[%s12043_s0 + $0x18] sm:$0xff]  ;;  %v62_v38 = vld [vmem:[%s12043_s0 + $0x20] sm:$0xff]  ;;  %vm9564_vm0 = vmmov 0   ;;  %v12049_v61 = vmov 0.0|0.0   ;;  %v105_v1 = vshrl.u32 %v104_v63, 7 }
  0x26   :  { %253 = vmatprep.subr.bf16.mxu0 %v8682_v7  ;;  %v8722_v32 = vld [vmem:[#allocation5 + $0x8] ss:$12 sps:$4 sm:$0xff]   ;;  %v9629_v35 = vld [vmem:[#allocation7 + $0x78] ss:$12 sps:$4 sm:$0xff]   ;;  %v67_v36 = vpack.c.bf16 %v61_v33, %v60_v31  ;;  %v9641_v40 = vld [vmem:[#allocation7 + $0xb0] ss:$12 sps:$4 sm:$0xff]  }
  0x27   :  { %v9627_v34 = vld [vmem:[#allocation7 + $0x7c] ss:$12 sps:$4 sm:$0xff]   ;;  %v9631_v37 = vld [vmem:[#allocation7 + $0x64] ss:$12 sps:$4 sm:$0xff]   ;;  %v9643_v41 = vld [vmem:[#allocation7 + $0x60] ss:$12 sps:$4 sm:$0xff]  }
  0x28   :  { %7750 = vmatpush3.bf16.msra.mxu1 %v8702_v16  ;;  %v63_v39 = vld [vmem:[%s12043_s0 + $0x28] sm:$0xff]  ;;  %v9650_v45 = vld [vmem:[#allocation7 + $0x98] ss:$12 sps:$4 sm:$0xff]   ;;  %v64_v47 = vld [vmem:[%s12043_s0 + $0x30] sm:$0xff]  ;;  %v9752_v2 = vsub.s32 0, %v105_v1  ;;  %v9758_v7 = vsub.s32 2, %v105_v1 }
  0x29   :  { %254 = vmatpush1.bf16.msra.mxu0 %v8684_v9  ;;  %7751 = vmatprep.subr.bf16.mxu1 %v8706_v18  ;;  %v9645_v42 = vld [vmem:[#allocation7 + $0x4c] ss:$12 sps:$4 sm:$0xff]   ;;  %v68_v44 = vpack.c.bf16 %v63_v39, %v62_v38  ;;  %v9653_v46 = vld [vmem:[#allocation7 + $0x48] ss:$12 sps:$4 sm:$0xff]   ;;  %v9669_v51 = vld [vmem:[#allocation7 + $0x30] ss:$12 sps:$4 sm:$0xff]  }
  0x2a   :  { %255 = vmatprep.subr.bf16.mxu0 %v8685_v10  ;;  %v65_v48 = vld [vmem:[%s12043_s0 + $0x38] sm:$0xff]  ;;  %v9662_v49 = vld [vmem:[#allocation7 + $0x34] ss:$12 sps:$4 sm:$0xff]   ;;  %v9685_v56 = vld [vmem:[#allocation7 + $0x4] ss:$12 sps:$4 sm:$0xff]   ;;  %12064 = vst [vmem:[#allocation11_spill] sm:$0xff] %v9752_v2 }
  0x2b   :  { %v9666_v50 = vld [vmem:[#allocation7 + $0x80] ss:$12 sps:$4 sm:$0xff]   ;;  %v69_v52 = vpack.c.bf16 %v65_v48, %v64_v47  ;;  %v9672_v53 = vld [vmem:[#allocation7 + $0x1c] ss:$12 sps:$4 sm:$0xff]   ;;  %v9680_v55 = vld [vmem:[#allocation7 + $0x18] ss:$12 sps:$4 sm:$0xff]  }
  0x2c   :  { %7752 = vmatpush3.bf16.msra.mxu1 %v8706_v18  ;;  %v9677_v54 = vld [vmem:[#allocation7 + $0x68] ss:$12 sps:$4 sm:$0xff]   ;;  %v9689_v57 = vld [vmem:[#allocation7 + $0x50] ss:$12 sps:$4 sm:$0xff]   ;;  %v9692_v58 = vld [vmem:[#allocation7] ss:$12 sps:$4 sm:$0xff]  }
  0x2d   :  { %256 = vmatpush1.bf16.msra.mxu0 %v8687_v14  ;;  %7753 = vmatprep.subr.bf16.mxu1 %v8710_v21  ;;  %v9698_v59 = vld [vmem:[#allocation7 + $0x38] ss:$12 sps:$4 sm:$0xff]   ;;  %v9704_v60 = vld [vmem:[#allocation7 + $0x20] ss:$12 sps:$4 sm:$0xff]   ;;  %v9710_v62 = vld [vmem:[#allocation7 + $0x8] ss:$12 sps:$4 sm:$0xff]  }
  0x2e   :  { %257 = vmatprep.subr.bf16.mxu0 %v8688_v17  ;;  %v102_v3 = vld [vmem:[%s12046_s3] sm:$0x7]  ;;  %12065 = vst [vmem:[#allocation12_spill] sm:$0xff] %v9758_v7  ;;  %v9760_v9 = vsub.s32 1, %v105_v1 }
  0x2f   :  { %v107_v6 = vrot.slane %v102_v3, %v9752_v2  ;;  %v9767_v12 = vrot.slane %v102_v3, %v9758_v7 }
  0x30   :  { %7754 = vmatpush3.bf16.msra.mxu1 %v8710_v21  ;;  %12066 = vst [vmem:[#allocation13_spill] sm:$0xff] %v9760_v9  ;;  %v9770_v14 = vrot.slane %v102_v3, %v9760_v9 }
  0x31   :  { %258 = vmatpush1.bf16.msra.mxu0 %v8690_v19  ;;  %7755 = vmatprep.subr.bf16.mxu1 %v8714_v24 }
  0x32   :  { %259 = vmatprep.subr.bf16.mxu0 %v8691_v20 }
  0x34   :  { %7756 = vmatpush3.bf16.msra.mxu1 %v8714_v24 }
  0x35   :  { %260 = vmatpush1.bf16.msra.mxu0 %v8693_v22  ;;  %7757 = vmatprep.subr.bf16.mxu1 %v8718_v27 }
  0x36   :  { %261 = vmatprep.subr.bf16.mxu0 %v8695_v23 }
  0x38   :  { %7758 = vmatpush3.bf16.msra.mxu1 %v8718_v27 }
  0x39   :  { %262 = vmatpush1.bf16.msra.mxu0 %v8697_v25  ;;  %7759 = vmatprep.subr.bf16.mxu1 %v8722_v32 }
  0x3a   :  { %581 = vmatprep.subr.bf16.mxu0 %v9609_v26 }
  0x3c   :  { %280 = vmatmul.mubr.bf16.vlgmr.msra.gmra.mxu0 %v66_v15  ;;  %7760 = vmatpush3.bf16.msra.mxu1 %v8722_v32 }
  0x3d   :  { %582 = vmatpush1.bf16.msra.mxu0 %v9611_v28  ;;  %289 = vmatprep.mubr.bf16.mxu0 %v12051_v0 }
  0x3e   :  { %583 = vmatprep.subr.bf16.mxu0 %v9614_v29  ;;  %7769 = vmatprep.subr.bf16.mxu1 %v12053_v43 }
  0x3f   :  { %7762 = vmatmul.mubr.bf16.vlgmr.msra.gmra.mxu1 %v67_v36 }
  0x40   :  { %7770 = vmatpush3.bf16.msra.mxu1 %v9641_v40  ;;  %7765 = vmatprep.mubr.bf16.mxu1 %v68_v44 }
  0x41   :  { %584 = vmatpush1.bf16.msra.mxu0 %v9616_v30  ;;  %7771 = vmatprep.subr.bf16.mxu1 %v12053_v43 }
  0x42   :  { %585 = vmatprep.subr.bf16.mxu0 %v9627_v34 }
  0x44   :  { %290 = vmatmul.mubr.bf16.gmra.mxu0 %v67_v36  ;;  %7772 = vmatpush3.bf16.msra.mxu1 %v9650_v45 }
  0x45   :  { %586 = vmatpush1.bf16.msra.mxu0 %v9629_v35  ;;  %299 = vmatprep.mubr.bf16.mxu0 %v12051_v0 }
  0x46   :  { %587 = vmatprep.subr.bf16.mxu0 %v9631_v37  ;;  %7773 = vmatprep.subr.bf16.mxu1 %v12053_v43 }
  0x47   :  { %7766 = vmatmul.mubr.bf16.gmra.mxu1 %v69_v52 }
  0x48   :  { %7774 = vmatpush3.bf16.msra.mxu1 %v9666_v50  ;;  %7785 = vmatprep.mubr.msk.bf16.mxu1 %vm9564_vm0, %v12053_v43 }
  0x49   :  { %588 = vmatpush1.bf16.msra.mxu0 %v9643_v41  ;;  %7775 = vmatprep.subr.bf16.mxu1 %v12053_v43 }
  0x4a   :  { %589 = vmatprep.subr.bf16.mxu0 %v9645_v42 }
  0x4c   :  { %300 = vmatmul.mubr.bf16.gmra.mxu0 %v68_v44  ;;  %7776 = vmatpush3.bf16.msra.mxu1 %v9677_v54 }
  0x4d   :  { %590 = vmatpush1.bf16.msra.mxu0 %v9653_v46  ;;  %309 = vmatprep.mubr.bf16.mxu0 %v12051_v0 }
  0x4e   :  { %591 = vmatprep.subr.bf16.mxu0 %v9662_v49  ;;  %7777 = vmatprep.subr.bf16.mxu1 %v12053_v43 }
  0x50   :  { %7778 = vmatpush3.bf16.msra.mxu1 %v9689_v57 }
  0x51   :  { %592 = vmatpush1.bf16.msra.mxu0 %v9669_v51  ;;  %7779 = vmatprep.subr.bf16.mxu1 %v12053_v43 }
  0x52   :  { %593 = vmatprep.subr.bf16.mxu0 %v9672_v53 }
  0x54   :  { %310 = vmatmul.mubr.bf16.gmra.mxu0 %v69_v52  ;;  %7780 = vmatpush3.bf16.msra.mxu1 %v9698_v59 }
  0x55   :  { %594 = vmatpush1.bf16.msra.mxu0 %v9680_v55  ;;  %613 = vmatprep.mubr.bf16.mxu0 %v12051_v0 }
  0x56   :  { %595 = vmatprep.subr.bf16.mxu0 %v9685_v56  ;;  %7781 = vmatprep.subr.bf16.mxu1 %v12053_v43 }
  0x58   :  { %7782 = vmatpush3.bf16.msra.mxu1 %v9704_v60 }
  0x59   :  { %596 = vmatpush1.bf16.msra.mxu0 %v9692_v58  ;;  %7783 = vmatprep.subr.bf16.mxu1 %v12053_v43 }
  0x5a   :  { %689 = vmatprep.subr.bf16.mxu0 %v9609_v26 }
  0x5c   :  { %614 = vmatmul.mubr.bf16.vlgmr.msra.gmra.mxu0 %v12049_v61  ;;  %7784 = vmatpush3.bf16.msra.mxu1 %v9710_v62 }
  0x5d   :  { %690 = vmatpush1.bf16.msra.mxu0 %v9611_v28  ;;  %721 = vmatprep.mubr.bf16.mxu0 %v12051_v0 }
  0x5e   :  { %691 = vmatprep.subr.bf16.mxu0 %v9614_v29  ;;  %7789 = vmatprep.subr.bf16.mxu1 %v12053_v43 }
  0x5f   :  { %7786 = vmatmul.mubr.bf16.vlgmr.msra.gmra.mxu1 %v12049_v61 }
  0x60   :  { %7790 = vmatpush3.bf16.msra.mxu1 %v9641_v40  ;;  %7805 = vmatprep.mubr.msk.bf16.mxu1 %vm9564_vm0, %v12053_v43 }
  0x61   :  { %692 = vmatpush1.bf16.msra.mxu0 %v9616_v30  ;;  %7791 = vmatprep.subr.bf16.mxu1 %v12053_v43 }
  0x62   :  { %693 = vmatprep.subr.bf16.mxu0 %v9627_v34 }
  0x64   :  { %7792 = vmatpush3.bf16.msra.mxu1 %v9650_v45 }
  0x65   :  { %694 = vmatpush1.bf16.msra.mxu0 %v9629_v35  ;;  %7793 = vmatprep.subr.bf16.mxu1 %v12053_v43 }
  0x66   :  { %695 = vmatprep.subr.bf16.mxu0 %v9631_v37 }
  0x68   :  { %7794 = vmatpush3.bf16.msra.mxu1 %v9666_v50 }
  0x69   :  { %696 = vmatpush1.bf16.msra.mxu0 %v9643_v41  ;;  %7795 = vmatprep.subr.bf16.mxu1 %v12053_v43 }
  0x6a   :  { %697 = vmatprep.subr.bf16.mxu0 %v9645_v42 }
  0x6c   :  { %7796 = vmatpush3.bf16.msra.mxu1 %v9677_v54 }
  0x6d   :  { %698 = vmatpush1.bf16.msra.mxu0 %v9653_v46  ;;  %7797 = vmatprep.subr.bf16.mxu1 %v12053_v43 }
  0x6e   :  { %699 = vmatprep.subr.bf16.mxu0 %v9662_v49 }
  0x70   :  { %7798 = vmatpush3.bf16.msra.mxu1 %v9689_v57 }
  0x71   :  { %700 = vmatpush1.bf16.msra.mxu0 %v9669_v51  ;;  %7799 = vmatprep.subr.bf16.mxu1 %v12053_v43 }
  0x72   :  { %701 = vmatprep.subr.bf16.mxu0 %v9672_v53 }
  0x74   :  { %7800 = vmatpush3.bf16.msra.mxu1 %v9698_v59 }
  0x75   :  { %702 = vmatpush1.bf16.msra.mxu0 %v9680_v55  ;;  %7801 = vmatprep.subr.bf16.mxu1 %v12053_v43 }
  0x76   :  { %703 = vmatprep.subr.bf16.mxu0 %v9685_v56 }
  0x78   :  { %7802 = vmatpush3.bf16.msra.mxu1 %v9704_v60 }
  0x79   :  { %704 = vmatpush1.bf16.msra.mxu0 %v9692_v58  ;;  %7803 = vmatprep.subr.bf16.mxu1 %v12053_v43 }
  0x7a   :  { %798 = vmatprep.subr.bf16.mxu0 %v9609_v26 }
  0x7c   :  { %7804 = vmatpush3.bf16.msra.mxu1 %v9710_v62 }
  0x7d   :  { %7809 = vmatprep.subr.bf16.mxu1 %v12053_v43 }
  0xfc   :  { %v281_v4 = vpop.f32.mrf.mxu0 }
  0xfe   :  { %v283_v5 = vpop.f32.mrf.mxu0 }
  0xff   :  { %v7763_v17 = vpop.f32.mrf.mxu1 }
 0x100   :  { %v285_v8 = vpop.f32.mrf.mxu0  ;;  %v9778_v19 = vadd.f32 %v7763_v17, %v9767_v12 }
 0x101   :  { %v9762_v10 = vadd.f32 %v285_v8, %v107_v6  ;;  %v354_v21 = vpop.f32.mrf.mxu1 }
 0x102   :  { %v9764_v11 = vpop.f32.mrf.mxu0 }
 0x103   :  { %v7764_v24 = vpop.f32.mrf.mxu1 }
 0x104   :  { %v291_v13 = vpop.f32.mrf.mxu0  ;;  %v9785_v25 = vadd.f32 %v7764_v24, %v9767_v12 }
 0x105   :  { %v9772_v15 = vadd.f32 %v291_v13, %v107_v6  ;;  %v9787_v27 = vpop.f32.mrf.mxu1 }
 0x106   :  { %v293_v16 = vpop.f32.mrf.mxu0 }
 0x107   :  { %v9775_v18 = vadd.f32 %v293_v16, %v9770_v14  ;;  %v7767_v33 = vpop.f32.mrf.mxu1 }
 0x108   :  { %v295_v20 = vpop.f32.mrf.mxu0  ;;  %v9795_v38 = vadd.f32 %v7767_v33, %v9767_v12 }
 0x109   :  { %v9780_v22 = vadd.f32 %v295_v20, %v107_v6  ;;  %v370_v44 = vpop.f32.mrf.mxu1 }
 0x10a   :  { %v9782_v23 = vpop.f32.mrf.mxu0  ;;  %v9800_v48 = vadd.f32 %v370_v44, %v9767_v12 }
 0x10b   :  { %v7768_v63 = vpop.f32.mrf.mxu1 }
 0x10c   :  { %v301_v26 = vpop.f32.mrf.mxu0  ;;  %v9805_v1 = vadd.f32 %v7768_v63, %v9767_v12 }
 0x10d   :  { %v9789_v31 = vadd.f32 %v301_v26, %v107_v6  ;;  %v282_v26 = vadd.f32 %v281_v4, %v107_v6  ;;  %v9816_v0 = vpop.f32.mrf.mxu1 }
 0x10e   :  { %v303_v32 = vpop.f32.mrf.mxu0  ;;  %12067 = vst [vmem:[#allocation14_spill] sm:$0xff] %v9805_v1 }
 0x10f   :  { %v9792_v36 = vadd.f32 %v303_v32, %v9770_v14 }
 0x110   :  { %v305_v39 = vpop.f32.mrf.mxu0 }
 0x111   :  { %v9797_v47 = vadd.f32 %v305_v39, %v107_v6 }
 0x112   :  { %v9802_v52 = vpop.f32.mrf.mxu0 }
 0x114   :  { %v311_v3 = vpop.f32.mrf.mxu0 }
 0x115   :  { %v9807_v8 = vadd.f32 %v311_v3, %v107_v6  ;;  %v284_v3 = vadd.f32 %v283_v5, %v9770_v14  ;;  %v355_v5 = vadd.f32 %v354_v21, %v9767_v12  ;;  %v12070_v21 = vmov 0  }
 0x116   :  { %v313_v13 = vpop.f32.mrf.mxu0 }
 0x117   :  { %v9810_v16 = vadd.f32 %v313_v13, %v9770_v14 }
 0x118   :  { %v315_v17 = vpop.f32.mrf.mxu0 }
 0x119   :  { %v9812_v20 = vadd.f32 %v315_v17, %v107_v6 }
 0x11a   :  { %v9814_v24 = vpop.f32.mrf.mxu0 }
 0x11b   :  { %12068 = vst [vmem:[#allocation15_spill] sm:$0xff] %v9814_v24 }
 0x11c   :  { %v615_v32 = vpop.f32.mrf.mxu0 }
 0x11d   :  { %v662_v33 = vadd.f32 %v615_v32, %v282_v26 }
 0x11e   :  { %v617_v39 = vpop.f32.mrf.mxu0 }
 0x11f   :  { %v7034_v44 = vmul.f32 -1.442695, %v662_v33  ;;  %v656_v43 = vpop.f32.mrf.mxu1  ;;  %v669_v13 = vadd.f32 %v617_v39, %v284_v3 }
 0x120   :  { %v619_v61 = vpop.f32.mrf.mxu0 }
 0x121   :  { %8993 = vpow2.f32 %v7034_v44  ;;  %v7787_v7 = vpop.f32.mrf.mxu1  ;;  %v7035_v17 = vmul.f32 -1.442695, %v669_v13  ;;  %v9822_v61 = vld [vmem:[%s12047_s4] ss:$0 sm:$0xff] }
 0x122   :  { %v620_v63 = vpop.f32.mrf.mxu0  ;;  %v676_v4 = vadd.f32 %v9822_v61, %v656_v43  ;;  %v12069_v43 = vmov 0.0  }
 0x123   :  { %v659_v9 = vpop.f32.mrf.mxu1  ;;  %8995 = vpow2.f32 %v7035_v17  ;;  %v288_v17 = vadd.f32 %v9764_v11, %v9770_v14 }
 0x125   :  { %v7788_v2 = vpop.f32.mrf.mxu1 }
 0x12e   :  { %v8994_v1 = vpop.eup %8993 }
 0x12f   :  { %v666_v24 = vadd.f32 1.0, %v8994_v1 }
 0x130   :  { %v8996_v6 = vpop.eup %8995 }
 0x131   :  { %8997 = vrcp.f32 %v666_v24  ;;  %v673_v7 = vadd.f32 1.0, %v8996_v6 }
 0x13e   :  { %v8998_v26 = vpop.eup %8997 }
 0x13f   :  { %v677_v32 = vmul.f32 %v8998_v26, %v676_v4 }
 0x141   :  { %v678_v9 = vadd.f32 %v677_v32, %v355_v5 }
 0x143   :  { %8999 = vtanh.f32 %v678_v9  ;;  %v358_v9 = vadd.f32 %v9787_v27, %v9767_v12  ;;  %v9882_v27 = vld [vmem:[#allocation7 + $0x94] ss:$12 sps:$4 sm:$0xff]  }
 0x144   :  { %9001 = vrcp.f32 %v673_v7 }
 0x150   :  { %v9000_v2 = vpop.eup %8999 }
 0x151   :  { %v680_v1 = vsub.f32 0.0, %v9000_v2  ;;  %v9002_v33 = vpop.eup %9001 }
 0x153   :  { %v681_v24 = vmul.f32 %v9002_v33, %v680_v1 }
 0x155   :  { %v9826_v39 = vadd.f32 %v9000_v2, %v681_v24 }
 0x157   :  { %v688_v44 = vpack.c.bf16 %v9826_v39, %v9826_v39 }
 0x159   :  { %722 = vmatmul.mubr.bf16.vlgmr.msra.gmra.mxu0 %v688_v44  ;;  %7806 = vmatmul.mubr.bf16.vlgmr.msra.gmra.mxu1 %v688_v44 }
 0x15a   :  { %799 = vmatpush1.bf16.msra.mxu0 %v9611_v28  ;;  %7810 = vmatpush3.bf16.msra.mxu1 %v9641_v40  ;;  %v9863_v28 = vld [vmem:[#allocation7 + $0xac] ss:$12 sps:$4 sm:$0xff]  }
 0x15b   :  { %800 = vmatprep.subr.bf16.mxu0 %v9614_v29  ;;  %7811 = vmatprep.subr.bf16.mxu1 %v12069_v43 }
 0x15c   :  { %830 = vmatprep.mubr.bf16.mxu0 %v12070_v21  ;;  %7825 = vmatprep.mubr.msk.bf16.mxu1 %vm9564_vm0, %v12069_v43 }
 0x15e   :  { %801 = vmatpush1.bf16.msra.mxu0 %v9616_v30  ;;  %7812 = vmatpush3.bf16.msra.mxu1 %v9650_v45 }
 0x15f   :  { %802 = vmatprep.subr.bf16.mxu0 %v9627_v34  ;;  %7813 = vmatprep.subr.bf16.mxu1 %v12069_v43 }
 0x162   :  { %803 = vmatpush1.bf16.msra.mxu0 %v9629_v35  ;;  %7814 = vmatpush3.bf16.msra.mxu1 %v9666_v50 }
 0x163   :  { %804 = vmatprep.subr.bf16.mxu0 %v9631_v37  ;;  %7815 = vmatprep.subr.bf16.mxu1 %v12069_v43 }
 0x166   :  { %805 = vmatpush1.bf16.msra.mxu0 %v9643_v41  ;;  %7816 = vmatpush3.bf16.msra.mxu1 %v9677_v54 }
 0x167   :  { %806 = vmatprep.subr.bf16.mxu0 %v9645_v42  ;;  %7817 = vmatprep.subr.bf16.mxu1 %v12069_v43 }
 0x16a   :  { %807 = vmatpush1.bf16.msra.mxu0 %v9653_v46  ;;  %7818 = vmatpush3.bf16.msra.mxu1 %v9689_v57 }
 0x16b   :  { %808 = vmatprep.subr.bf16.mxu0 %v9662_v49  ;;  %7819 = vmatprep.subr.bf16.mxu1 %v12069_v43 }
 0x16e   :  { %809 = vmatpush1.bf16.msra.mxu0 %v9669_v51  ;;  %7820 = vmatpush3.bf16.msra.mxu1 %v9698_v59 }
 0x16f   :  { %810 = vmatprep.subr.bf16.mxu0 %v9672_v53  ;;  %7821 = vmatprep.subr.bf16.mxu1 %v12069_v43 }
 0x172   :  { %811 = vmatpush1.bf16.msra.mxu0 %v9680_v55  ;;  %7822 = vmatpush3.bf16.msra.mxu1 %v9704_v60 }
 0x173   :  { %812 = vmatprep.subr.bf16.mxu0 %v9685_v56  ;;  %7823 = vmatprep.subr.bf16.mxu1 %v12069_v43 }
 0x176   :  { %813 = vmatpush1.bf16.msra.mxu0 %v9692_v58  ;;  %7824 = vmatpush3.bf16.msra.mxu1 %v9710_v62 }
 0x177   :  { %907 = vmatprep.subr.bf16.mxu0 %v9863_v28  ;;  %7829 = vmatprep.subr.bf16.mxu1 %v12069_v43 }
 0x219   :  { %v723_v29 = vpop.f32.mrf.mxu0  ;;  %v764_v30 = vpop.f32.mrf.mxu1 }
 0x21a   :  { %v770_v34 = vadd.f32 %v723_v29, %v9762_v10  ;;  %v784_v10 = vadd.f32 %v9822_v61, %v764_v30  ;;  %v9878_v30 = vld [vmem:[#allocation7 + $0xa8] ss:$12 sps:$4 sm:$0xff]  }
 0x21b   :  { %v725_v35 = vpop.f32.mrf.mxu0  ;;  %v7807_v37 = vpop.f32.mrf.mxu1 }
 0x21c   :  { %v7036_v41 = vmul.f32 -1.442695, %v770_v34  ;;  %v777_v4 = vadd.f32 %v725_v35, %v288_v17  ;;  %v9889_v37 = vld [vmem:[#allocation7 + $0x90] ss:$12 sps:$4 sm:$0xff]  }
 0x21d   :  { %v727_v42 = vpop.f32.mrf.mxu0  ;;  %v767_v63 = vpop.f32.mrf.mxu1 }
 0x21e   :  { %9003 = vpow2.f32 %v7036_v41  ;;  %v7037_v6 = vmul.f32 -1.442695, %v777_v4  ;;  %v9893_v41 = vld [vmem:[#allocation7 + $0x7c] ss:$12 sps:$4 sm:$0xff]   ;;  %v9901_v42 = vld [vmem:[#allocation7 + $0x64] ss:$12 sps:$4 sm:$0xff]  }
 0x21f   :  { %v728_v3 = vpop.f32.mrf.mxu0  ;;  %v7808_v13 = vpop.f32.mrf.mxu1  ;;  %v9905_v63 = vld [vmem:[#allocation7 + $0x60] ss:$12 sps:$4 sm:$0xff]  }
 0x220   :  { %9005 = vpow2.f32 %v7037_v6 }
 0x22b   :  { %v9004_v26 = vpop.eup %9003 }
 0x22c   :  { %v774_v5 = vadd.f32 1.0, %v9004_v26 }
 0x22d   :  { %v9006_v32 = vpop.eup %9005 }
 0x22e   :  { %9007 = vrcp.f32 %v774_v5  ;;  %v781_v33 = vadd.f32 1.0, %v9006_v32 }
 0x23b   :  { %v9008_v7 = vpop.eup %9007 }
 0x23c   :  { %v785_v2 = vmul.f32 %v9008_v7, %v784_v10 }
 0x23e   :  { %v786_v1 = vadd.f32 %v785_v2, %v358_v9 }
 0x240   :  { %9009 = vtanh.f32 %v786_v1 }
 0x241   :  { %9011 = vrcp.f32 %v781_v33 }
 0x24d   :  { %v9010_v24 = vpop.eup %9009 }
 0x24e   :  { %v788_v11 = vsub.f32 %v9826_v39, %v9010_v24  ;;  %v9012_v44 = vpop.eup %9011 }
 0x250   :  { %v789_v29 = vmul.f32 %v9012_v44, %v788_v11  ;;  %v9939_v11 = vld [vmem:[#allocation7 + $0xb0] ss:$12 sps:$4 sm:$0xff]   ;;  %v9954_v44 = vld [vmem:[#allocation7 + $0x80] ss:$12 sps:$4 sm:$0xff]  }
 0x252   :  { %v9874_v34 = vadd.f32 %v9010_v24, %v789_v29  ;;  %v9960_v29 = vld [vmem:[#allocation7 + $0x68] ss:$12 sps:$4 sm:$0xff]  }
 0x254   :  { %v797_v35 = vpack.c.bf16 %v9874_v34, %v9874_v34 }
 0x256   :  { %831 = vmatmul.mubr.bf16.vlgmr.msra.gmra.mxu0 %v797_v35  ;;  %7826 = vmatmul.mubr.bf16.vlgmr.msra.gmra.mxu1 %v797_v35  ;;  %v9965_v35 = vld [vmem:[#allocation7 + $0x48] ss:$12 sps:$4 sm:$0xff]  }
 0x257   :  { %908 = vmatpush1.bf16.msra.mxu0 %v9878_v30  ;;  %7830 = vmatpush3.bf16.msra.mxu1 %v9641_v40  ;;  %v9897_v40 = vld [vmem:[#allocation7 + $0x78] ss:$12 sps:$4 sm:$0xff]  }
 0x258   :  { %909 = vmatprep.subr.bf16.mxu0 %v9882_v27  ;;  %7831 = vmatprep.subr.bf16.mxu1 %v12069_v43 }
 0x259   :  { %939 = vmatprep.mubr.bf16.mxu0 %v12070_v21  ;;  %7845 = vmatprep.mubr.msk.bf16.mxu1 %vm9564_vm0, %v12069_v43 }
 0x25b   :  { %910 = vmatpush1.bf16.msra.mxu0 %v9889_v37  ;;  %7832 = vmatpush3.bf16.msra.mxu1 %v9650_v45  ;;  %v9909_v45 = vld [vmem:[#allocation7 + $0x4c] ss:$12 sps:$4 sm:$0xff]  }
 0x25c   :  { %911 = vmatprep.subr.bf16.mxu0 %v9893_v41  ;;  %7833 = vmatprep.subr.bf16.mxu1 %v12069_v43 }
 0x25f   :  { %912 = vmatpush1.bf16.msra.mxu0 %v9897_v40  ;;  %7834 = vmatpush3.bf16.msra.mxu1 %v9666_v50 }
 0x260   :  { %913 = vmatprep.subr.bf16.mxu0 %v9901_v42  ;;  %7835 = vmatprep.subr.bf16.mxu1 %v12069_v43 }
 0x263   :  { %914 = vmatpush1.bf16.msra.mxu0 %v9905_v63  ;;  %7836 = vmatpush3.bf16.msra.mxu1 %v9677_v54 }
 0x264   :  { %915 = vmatprep.subr.bf16.mxu0 %v9909_v45  ;;  %7837 = vmatprep.subr.bf16.mxu1 %v12069_v43 }
 0x267   :  { %916 = vmatpush1.bf16.msra.mxu0 %v9653_v46  ;;  %7838 = vmatpush3.bf16.msra.mxu1 %v9689_v57 }
 0x268   :  { %917 = vmatprep.subr.bf16.mxu0 %v9662_v49  ;;  %7839 = vmatprep.subr.bf16.mxu1 %v12069_v43 }
 0x26b   :  { %918 = vmatpush1.bf16.msra.mxu0 %v9669_v51  ;;  %7840 = vmatpush3.bf16.msra.mxu1 %v9698_v59 }
 0x26c   :  { %919 = vmatprep.subr.bf16.mxu0 %v9672_v53  ;;  %7841 = vmatprep.subr.bf16.mxu1 %v12069_v43 }
 0x26f   :  { %920 = vmatpush1.bf16.msra.mxu0 %v9680_v55  ;;  %7842 = vmatpush3.bf16.msra.mxu1 %v9704_v60 }
 0x270   :  { %921 = vmatprep.subr.bf16.mxu0 %v9685_v56  ;;  %7843 = vmatprep.subr.bf16.mxu1 %v12069_v43 }
 0x273   :  { %922 = vmatpush1.bf16.msra.mxu0 %v9692_v58  ;;  %7844 = vmatpush3.bf16.msra.mxu1 %v9710_v62 }
 0x274   :  { %1016 = vmatprep.subr.bf16.mxu0 %v9863_v28  ;;  %7849 = vmatprep.subr.bf16.mxu1 %v12069_v43 }
 0x316   :  { %v832_v46 = vpop.f32.mrf.mxu0  ;;  %v873_v49 = vpop.f32.mrf.mxu1 }
 0x317   :  { %v879_v50 = vadd.f32 %v832_v46, %v9772_v15  ;;  %v893_v5 = vadd.f32 %v9822_v61, %v873_v49  ;;  %v9969_v46 = vld [vmem:[#allocation7 + $0x34] ss:$12 sps:$4 sm:$0xff]   ;;  %v9973_v49 = vld [vmem:[#allocation7 + $0x30] ss:$12 sps:$4 sm:$0xff]  }
 0x318   :  { %v834_v51 = vpop.f32.mrf.mxu0  ;;  %v7827_v53 = vpop.f32.mrf.mxu1 }
 0x319   :  { %v7038_v54 = vmul.f32 -1.442695, %v879_v50  ;;  %v886_v58 = vadd.f32 %v834_v51, %v9775_v18  ;;  %v9977_v50 = vld [vmem:[#allocation7 + $0x1c] ss:$12 sps:$4 sm:$0xff]   ;;  %v9981_v51 = vld [vmem:[#allocation7 + $0x18] ss:$12 sps:$4 sm:$0xff]  }
 0x31a   :  { %v836_v55 = vpop.f32.mrf.mxu0  ;;  %v876_v3 = vpop.f32.mrf.mxu1  ;;  %v9989_v53 = vld [vmem:[#allocation7] ss:$12 sps:$4 sm:$0xff]  }
 0x31b   :  { %9013 = vpow2.f32 %v7038_v54  ;;  %v7039_v17 = vmul.f32 -1.442695, %v886_v58 }
 0x31c   :  { %v837_v56 = vpop.f32.mrf.mxu0  ;;  %v7828_v13 = vpop.f32.mrf.mxu1 }
 0x31d   :  { %9015 = vpow2.f32 %v7039_v17 }
 0x328   :  { %v9014_v4 = vpop.eup %9013 }
 0x329   :  { %v883_v6 = vadd.f32 1.0, %v9014_v4 }
 0x32a   :  { %v9016_v26 = vpop.eup %9015 }
 0x32b   :  { %9017 = vrcp.f32 %v883_v6  ;;  %v890_v7 = vadd.f32 1.0, %v9016_v26  ;;  %v298_v6 = vadd.f32 %v9782_v23, %v9770_v14 }
 0x338   :  { %v9018_v32 = vpop.eup %9017 }
 0x339   :  { %v894_v15 = vmul.f32 %v9018_v32, %v893_v5 }
 0x33b   :  { %v895_v10 = vadd.f32 %v894_v15, %v9778_v19  ;;  %v9948_v19 = vld [vmem:[#allocation7 + $0x98] ss:$12 sps:$4 sm:$0xff]  }
 0x33d   :  { %9019 = vtanh.f32 %v895_v10 }
 0x33e   :  { %9021 = vrcp.f32 %v890_v7 }
 0x34a   :  { %v9020_v9 = vpop.eup %9019 }
 0x34b   :  { %v897_v2 = vsub.f32 %v9874_v34, %v9020_v9  ;;  %v9022_v1 = vpop.eup %9021 }
 0x34d   :  { %v898_v18 = vmul.f32 %v9022_v1, %v897_v2 }
 0x34f   :  { %v9934_v33 = vadd.f32 %v9020_v9, %v898_v18 }
 0x351   :  { %v906_v24 = vpack.c.bf16 %v9934_v33, %v9934_v33 }
 0x353   :  { %940 = vmatmul.mubr.bf16.vlgmr.msra.gmra.mxu0 %v906_v24  ;;  %7846 = vmatmul.mubr.bf16.vlgmr.msra.gmra.mxu1 %v906_v24 }
 0x354   :  { %1017 = vmatpush1.bf16.msra.mxu0 %v9878_v30  ;;  %7850 = vmatpush3.bf16.msra.mxu1 %v9939_v11 }
 0x355   :  { %1018 = vmatprep.subr.bf16.mxu0 %v9882_v27  ;;  %7851 = vmatprep.subr.bf16.mxu1 %v12069_v43 }
 0x356   :  { %1048 = vmatprep.mubr.bf16.mxu0 %v12070_v21  ;;  %7865 = vmatprep.mubr.msk.bf16.mxu1 %vm9564_vm0, %v12069_v43 }
 0x358   :  { %1019 = vmatpush1.bf16.msra.mxu0 %v9889_v37  ;;  %7852 = vmatpush3.bf16.msra.mxu1 %v9948_v19 }
 0x359   :  { %1020 = vmatprep.subr.bf16.mxu0 %v9893_v41  ;;  %7853 = vmatprep.subr.bf16.mxu1 %v12069_v43 }
 0x35c   :  { %1021 = vmatpush1.bf16.msra.mxu0 %v9897_v40  ;;  %7854 = vmatpush3.bf16.msra.mxu1 %v9954_v44 }
 0x35d   :  { %1022 = vmatprep.subr.bf16.mxu0 %v9901_v42  ;;  %7855 = vmatprep.subr.bf16.mxu1 %v12069_v43 }
 0x360   :  { %1023 = vmatpush1.bf16.msra.mxu0 %v9905_v63  ;;  %7856 = vmatpush3.bf16.msra.mxu1 %v9960_v29 }
 0x361   :  { %1024 = vmatprep.subr.bf16.mxu0 %v9909_v45  ;;  %7857 = vmatprep.subr.bf16.mxu1 %v12069_v43 }
 0x364   :  { %1025 = vmatpush1.bf16.msra.mxu0 %v9965_v35  ;;  %7858 = vmatpush3.bf16.msra.mxu1 %v9689_v57  ;;  %v9985_v57 = vld [vmem:[#allocation7 + $0x4] ss:$12 sps:$4 sm:$0xff]  }
 0x365   :  { %1026 = vmatprep.subr.bf16.mxu0 %v9969_v46  ;;  %7859 = vmatprep.subr.bf16.mxu1 %v12069_v43 }
 0x368   :  { %1027 = vmatpush1.bf16.msra.mxu0 %v9973_v49  ;;  %7860 = vmatpush3.bf16.msra.mxu1 %v9698_v59 }
 0x369   :  { %1028 = vmatprep.subr.bf16.mxu0 %v9977_v50  ;;  %7861 = vmatprep.subr.bf16.mxu1 %v12069_v43 }
 0x36c   :  { %1029 = vmatpush1.bf16.msra.mxu0 %v9981_v51  ;;  %7862 = vmatpush3.bf16.msra.mxu1 %v9704_v60 }
 0x36d   :  { %1030 = vmatprep.subr.bf16.mxu0 %v9985_v57  ;;  %7863 = vmatprep.subr.bf16.mxu1 %v12069_v43 }
 0x370   :  { %1031 = vmatpush1.bf16.msra.mxu0 %v9989_v53  ;;  %7864 = vmatpush3.bf16.msra.mxu1 %v9710_v62 }
 0x371   :  { %1125 = vmatprep.subr.bf16.mxu0 %v9863_v28  ;;  %7869 = vmatprep.subr.bf16.mxu1 %v12069_v43 }
 0x413   :  { %v941_v59 = vpop.f32.mrf.mxu0  ;;  %v982_v54 = vpop.f32.mrf.mxu1 }
 0x414   :  { %v988_v60 = vadd.f32 %v941_v59, %v9780_v22  ;;  %v1002_v22 = vadd.f32 %v9822_v61, %v982_v54  ;;  %v10031_v54 = vld [vmem:[#allocation7 + $0x38] ss:$12 sps:$4 sm:$0xff]  }
 0x415   :  { %v943_v55 = vpop.f32.mrf.mxu0  ;;  %v7847_v3 = vpop.f32.mrf.mxu1 }
 0x416   :  { %v7040_v56 = vmul.f32 -1.442695, %v988_v60  ;;  %v995_v62 = vadd.f32 %v943_v55, %v298_v6  ;;  %v10037_v55 = vld [vmem:[#allocation7 + $0x20] ss:$12 sps:$4 sm:$0xff]   ;;  %v10043_v3 = vld [vmem:[#allocation7 + $0x8] ss:$12 sps:$4 sm:$0xff]  }
 0x417   :  { %v945_v13 = vpop.f32.mrf.mxu0  ;;  %v985_v58 = vpop.f32.mrf.mxu1 }
 0x418   :  { %9023 = vpow2.f32 %v7040_v56  ;;  %v7041_v26 = vmul.f32 -1.442695, %v995_v62 }
 0x419   :  { %v946_v17 = vpop.f32.mrf.mxu0  ;;  %v7848_v4 = vpop.f32.mrf.mxu1 }
 0x41a   :  { %9025 = vpow2.f32 %v7041_v26 }
 0x425   :  { %v9024_v5 = vpop.eup %9023 }
 0x426   :  { %v992_v32 = vadd.f32 1.0, %v9024_v5 }
 0x427   :  { %v9026_v15 = vpop.eup %9025 }
 0x428   :  { %9027 = vrcp.f32 %v992_v32  ;;  %v999_v2 = vadd.f32 1.0, %v9026_v15 }
 0x435   :  { %v9028_v10 = vpop.eup %9027 }
 0x436   :  { %v1003_v7 = vmul.f32 %v9028_v10, %v1002_v22 }
 0x438   :  { %v1004_v9 = vadd.f32 %v1003_v7, %v9785_v25  ;;  %v10025_v25 = vld [vmem:[#allocation7 + $0x50] ss:$12 sps:$4 sm:$0xff]  }
 0x43a   :  { %9029 = vtanh.f32 %v1004_v9 }
 0x43b   :  { %9031 = vrcp.f32 %v999_v2 }
 0x447   :  { %v9030_v1 = vpop.eup %9029 }
 0x448   :  { %v1006_v18 = vsub.f32 %v9934_v33, %v9030_v1  ;;  %v9032_v23 = vpop.eup %9031 }
 0x44a   :  { %v1007_v24 = vmul.f32 %v9032_v23, %v1006_v18 }
 0x44c   :  { %v10001_v59 = vadd.f32 %v9030_v1, %v1007_v24 }
 0x44e   :  { %v1015_v60 = vpack.c.bf16 %v10001_v59, %v10001_v59 }
 0x450   :  { %1049 = vmatmul.mubr.bf16.vlgmr.msra.gmra.mxu0 %v1015_v60  ;;  %7866 = vmatmul.mubr.bf16.vlgmr.msra.gmra.mxu1 %v1015_v60 }
 0x451   :  { %1126 = vmatpush1.bf16.msra.mxu0 %v9878_v30  ;;  %7870 = vmatpush3.bf16.msra.mxu1 %v9939_v11 }
 0x452   :  { %1127 = vmatprep.subr.bf16.mxu0 %v9882_v27  ;;  %7871 = vmatprep.subr.bf16.mxu1 %v12069_v43 }
 0x453   :  { %1157 = vmatprep.mubr.bf16.mxu0 %v12070_v21  ;;  %7885 = vmatprep.mubr.msk.bf16.mxu1 %vm9564_vm0, %v12069_v43 }
 0x455   :  { %1128 = vmatpush1.bf16.msra.mxu0 %v9889_v37  ;;  %7872 = vmatpush3.bf16.msra.mxu1 %v9948_v19 }
 0x456   :  { %1129 = vmatprep.subr.bf16.mxu0 %v9893_v41  ;;  %7873 = vmatprep.subr.bf16.mxu1 %v12069_v43 }
 0x459   :  { %1130 = vmatpush1.bf16.msra.mxu0 %v9897_v40  ;;  %7874 = vmatpush3.bf16.msra.mxu1 %v9954_v44 }
 0x45a   :  { %1131 = vmatprep.subr.bf16.mxu0 %v9901_v42  ;;  %7875 = vmatprep.subr.bf16.mxu1 %v12069_v43 }
 0x45d   :  { %1132 = vmatpush1.bf16.msra.mxu0 %v9905_v63  ;;  %7876 = vmatpush3.bf16.msra.mxu1 %v9960_v29 }
 0x45e   :  { %1133 = vmatprep.subr.bf16.mxu0 %v9909_v45  ;;  %7877 = vmatprep.subr.bf16.mxu1 %v12069_v43 }
 0x461   :  { %1134 = vmatpush1.bf16.msra.mxu0 %v9965_v35  ;;  %7878 = vmatpush3.bf16.msra.mxu1 %v10025_v25 }
 0x462   :  { %1135 = vmatprep.subr.bf16.mxu0 %v9969_v46  ;;  %7879 = vmatprep.subr.bf16.mxu1 %v12069_v43 }
 0x465   :  { %1136 = vmatpush1.bf16.msra.mxu0 %v9973_v49  ;;  %7880 = vmatpush3.bf16.msra.mxu1 %v10031_v54 }
 0x466   :  { %1137 = vmatprep.subr.bf16.mxu0 %v9977_v50  ;;  %7881 = vmatprep.subr.bf16.mxu1 %v12069_v43 }
 0x469   :  { %1138 = vmatpush1.bf16.msra.mxu0 %v9981_v51  ;;  %7882 = vmatpush3.bf16.msra.mxu1 %v10037_v55 }
 0x46a   :  { %1139 = vmatprep.subr.bf16.mxu0 %v9985_v57  ;;  %7883 = vmatprep.subr.bf16.mxu1 %v12069_v43 }
 0x46d   :  { %1140 = vmatpush1.bf16.msra.mxu0 %v9989_v53  ;;  %7884 = vmatpush3.bf16.msra.mxu1 %v10043_v3 }
 0x46e   :  { %1234 = vmatprep.subr.bf16.mxu0 %v9863_v28  ;;  %7889 = vmatprep.subr.bf16.mxu1 %v12069_v43 }
 0x510   :  { %v1050_v56 = vpop.f32.mrf.mxu0  ;;  %v1091_v13 = vpop.f32.mrf.mxu1 }
 0x511   :  { %v1097_v58 = vadd.f32 %v1050_v56, %v9789_v31  ;;  %v1111_v2 = vadd.f32 %v9822_v61, %v1091_v13 }
 0x512   :  { %v1052_v17 = vpop.f32.mrf.mxu0  ;;  %v7867_v4 = vpop.f32.mrf.mxu1 }
 0x513   :  { %v7042_v6 = vmul.f32 -1.442695, %v1097_v58  ;;  %v1104_v15 = vadd.f32 %v1052_v17, %v9792_v36 }
 0x514   :  { %v1054_v62 = vpop.f32.mrf.mxu0  ;;  %v1094_v26 = vpop.f32.mrf.mxu1 }
 0x515   :  { %9033 = vpow2.f32 %v7042_v6  ;;  %v7043_v22 = vmul.f32 -1.442695, %v1104_v15 }
 0x516   :  { %v1055_v5 = vpop.f32.mrf.mxu0  ;;  %v7868_v32 = vpop.f32.mrf.mxu1 }
 0x517   :  { %9035 = vpow2.f32 %v7043_v22 }
 0x522   :  { %v9034_v10 = vpop.eup %9033 }
 0x523   :  { %v1101_v7 = vadd.f32 1.0, %v9034_v10  ;;  %v308_v10 = vadd.f32 %v9802_v52, %v9770_v14 }
 0x524   :  { %v9036_v9 = vpop.eup %9035 }
 0x525   :  { %9037 = vrcp.f32 %v1101_v7  ;;  %v1108_v23 = vadd.f32 1.0, %v9036_v9 }
 0x532   :  { %v9038_v1 = vpop.eup %9037 }
 0x533   :  { %v1112_v31 = vmul.f32 %v9038_v1, %v1111_v2 }
 0x535   :  { %v1113_v18 = vadd.f32 %v1112_v31, %v9800_v48 }
 0x537   :  { %9039 = vtanh.f32 %v1113_v18  ;;  %v374_v18 = vadd.f32 %v9816_v0, %v9767_v12  ;;  %v8739_v0 = vld [vmem:[#allocation5 + $0x16c] ss:$12 sps:$4 sm:$0xff]   ;;  %v8740_v12 = vld [vmem:[#allocation5 + $0x170] ss:$12 sps:$4 sm:$0xff]  }
 0x538   :  { %9041 = vrcp.f32 %v1108_v23 }
 0x544   :  { %v9040_v24 = vpop.eup %9039 }
 0x545   :  { %v1115_v60 = vsub.f32 %v10001_v59, %v9040_v24  ;;  %v9042_v56 = vpop.eup %9041 }
 0x547   :  { %v1116_v36 = vmul.f32 %v9042_v56, %v1115_v60 }
 0x549   :  { %v10053_v58 = vadd.f32 %v9040_v24, %v1116_v36 }
 0x54b   :  { %v1124_v17 = vpack.c.bf16 %v10053_v58, %v10053_v58 }
 0x54d   :  { %1158 = vmatmul.mubr.bf16.vlgmr.msra.gmra.mxu0 %v1124_v17  ;;  %7886 = vmatmul.mubr.bf16.vlgmr.msra.gmra.mxu1 %v1124_v17 }
 0x54e   :  { %1235 = vmatpush1.bf16.msra.mxu0 %v9878_v30  ;;  %7890 = vmatpush3.bf16.msra.mxu1 %v9939_v11 }
 0x54f   :  { %1236 = vmatprep.subr.bf16.mxu0 %v9882_v27  ;;  %7891 = vmatprep.subr.bf16.mxu1 %v12069_v43 }
 0x550   :  { %1266 = vmatprep.mubr.bf16.mxu0 %v12070_v21  ;;  %7905 = vmatprep.mubr.msk.bf16.mxu1 %vm9564_vm0, %v12069_v43 }
 0x552   :  { %1237 = vmatpush1.bf16.msra.mxu0 %v9889_v37  ;;  %7892 = vmatpush3.bf16.msra.mxu1 %v9948_v19 }
 0x553   :  { %1238 = vmatprep.subr.bf16.mxu0 %v9893_v41  ;;  %7893 = vmatprep.subr.bf16.mxu1 %v12069_v43 }
 0x556   :  { %1239 = vmatpush1.bf16.msra.mxu0 %v9897_v40  ;;  %7894 = vmatpush3.bf16.msra.mxu1 %v9954_v44 }
 0x557   :  { %1240 = vmatprep.subr.bf16.mxu0 %v9901_v42  ;;  %7895 = vmatprep.subr.bf16.mxu1 %v12069_v43 }
 0x55a   :  { %1241 = vmatpush1.bf16.msra.mxu0 %v9905_v63  ;;  %7896 = vmatpush3.bf16.msra.mxu1 %v9960_v29 }
 0x55b   :  { %1242 = vmatprep.subr.bf16.mxu0 %v9909_v45  ;;  %7897 = vmatprep.subr.bf16.mxu1 %v12069_v43 }
 0x55e   :  { %1243 = vmatpush1.bf16.msra.mxu0 %v9965_v35  ;;  %7898 = vmatpush3.bf16.msra.mxu1 %v10025_v25 }
 0x55f   :  { %1244 = vmatprep.subr.bf16.mxu0 %v9969_v46  ;;  %7899 = vmatprep.subr.bf16.mxu1 %v12069_v43 }
 0x562   :  { %1245 = vmatpush1.bf16.msra.mxu0 %v9973_v49  ;;  %7900 = vmatpush3.bf16.msra.mxu1 %v10031_v54 }
 0x563   :  { %1246 = vmatprep.subr.bf16.mxu0 %v9977_v50  ;;  %7901 = vmatprep.subr.bf16.mxu1 %v12069_v43 }
 0x566   :  { %1247 = vmatpush1.bf16.msra.mxu0 %v9981_v51  ;;  %7902 = vmatpush3.bf16.msra.mxu1 %v10037_v55 }
 0x567   :  { %1248 = vmatprep.subr.bf16.mxu0 %v9985_v57  ;;  %7903 = vmatprep.subr.bf16.mxu1 %v12069_v43 }
 0x56a   :  { %1249 = vmatpush1.bf16.msra.mxu0 %v9989_v53  ;;  %7904 = vmatpush3.bf16.msra.mxu1 %v10043_v3 }
 0x56b   :  { %1343 = vmatprep.subr.bf16.mxu0 %v9863_v28  ;;  %7909 = vmatprep.subr.bf16.mxu1 %v12069_v43 }
 0x60d   :  { %v1159_v48 = vpop.f32.mrf.mxu0  ;;  %v1200_v13 = vpop.f32.mrf.mxu1 }
 0x60e   :  { %v1206_v4 = vadd.f32 %v1159_v48, %v9797_v47  ;;  %v1220_v47 = vadd.f32 %v9822_v61, %v1200_v13  ;;  %v8737_v13 = vld [vmem:[#allocation5 + $0x168] ss:$12 sps:$4 sm:$0xff]  }
 0x60f   :  { %v1161_v6 = vpop.f32.mrf.mxu0  ;;  %v7887_v62 = vpop.f32.mrf.mxu1 }
 0x610   :  { %v7044_v26 = vmul.f32 -1.442695, %v1206_v4  ;;  %v1213_v7 = vadd.f32 %v1161_v6, %v308_v10  ;;  %v8743_v62 = vld [vmem:[#allocation5 + $0x154] ss:$12 sps:$4 sm:$0xff]  }
 0x611   :  { %v1163_v5 = vpop.f32.mrf.mxu0  ;;  %v1203_v32 = vpop.f32.mrf.mxu1  ;;  %v8752_v10 = vld [vmem:[#allocation5 + $0x128] ss:$12 sps:$4 sm:$0xff]  }
 0x612   :  { %9043 = vpow2.f32 %v7044_v26  ;;  %v7045_v9 = vmul.f32 -1.442695, %v1213_v7  ;;  %v8741_v26 = vld [vmem:[#allocation5 + $0x150] ss:$12 sps:$4 sm:$0xff]   ;;  %v8748_v32 = vld [vmem:[#allocation5 + $0x140] ss:$12 sps:$4 sm:$0xff]  }
 0x613   :  { %v1164_v15 = vpop.f32.mrf.mxu0  ;;  %v7888_v22 = vpop.f32.mrf.mxu1  ;;  %v8747_v5 = vld [vmem:[#allocation5 + $0x13c] ss:$12 sps:$4 sm:$0xff]  }
 0x614   :  { %9045 = vpow2.f32 %v7045_v9  ;;  %v8745_v15 = vld [vmem:[#allocation5 + $0x138] ss:$12 sps:$4 sm:$0xff]   ;;  %v8756_v7 = vld [vmem:[#allocation5 + $0x110] ss:$12 sps:$4 sm:$0xff]   ;;  %v8753_v9 = vld [vmem:[#allocation5 + $0x108] ss:$12 sps:$4 sm:$0xff]  }
 0x615   :  { %v8751_v22 = vld [vmem:[#allocation5 + $0x124] ss:$12 sps:$4 sm:$0xff]  }
 0x61f   :  { %v9044_v28 = vpop.eup %9043 }
 0x620   :  { %v1210_v2 = vadd.f32 1.0, %v9044_v28  ;;  %v8759_v28 = vld [vmem:[#allocation5 + $0xf4] ss:$12 sps:$4 sm:$0xff]  }
 0x621   :  { %v9046_v1 = vpop.eup %9045 }
 0x622   :  { %9047 = vrcp.f32 %v1210_v2  ;;  %v1217_v60 = vadd.f32 1.0, %v9046_v1  ;;  %v8760_v2 = vld [vmem:[#allocation5 + $0xf8] ss:$12 sps:$4 sm:$0xff]   ;;  %v8757_v1 = vld [vmem:[#allocation5 + $0xf0] ss:$12 sps:$4 sm:$0xff]  }
 0x62f   :  { %v9048_v31 = vpop.eup %9047 }
 0x630   :  { %v1221_v23 = vmul.f32 %v9048_v31, %v1220_v47  ;;  %v8763_v47 = vld [vmem:[#allocation5 + $0xdc] ss:$12 sps:$4 sm:$0xff]   ;;  %v8764_v31 = vld [vmem:[#allocation5 + $0xe0] ss:$12 sps:$4 sm:$0xff]  }
 0x632   :  { %v1222_v24 = vadd.f32 %v1221_v23, %v374_v18  ;;  %v8761_v18 = vld [vmem:[#allocation5 + $0xd8] ss:$12 sps:$4 sm:$0xff]  }
 0x633   :  { %v8767_v23 = vld [vmem:[#allocation5 + $0xc4] ss:$12 sps:$4 sm:$0xff]  }
 0x634   :  { %9049 = vtanh.f32 %v1222_v24  ;;  %v8768_v24 = vld [vmem:[#allocation5 + $0xc8] ss:$12 sps:$4 sm:$0xff]  }
 0x635   :  { %9051 = vrcp.f32 %v1217_v60  ;;  %v8765_v60 = vld [vmem:[#allocation5 + $0xc0] ss:$12 sps:$4 sm:$0xff]  }
 0x641   :  { %v9050_v56 = vpop.eup %9049 }
 0x642   :  { %v1224_v52 = vsub.f32 %v10053_v58, %v9050_v56  ;;  %v9052_v36 = vpop.eup %9051 }
 0x644   :  { %v1225_v17 = vmul.f32 %v9052_v36, %v1224_v52  ;;  %v10156_v36 = vld [vmem:[#allocation7 + $0x16c] ss:$12 sps:$4 sm:$0xff]  }
 0x646   :  { %v10099_v48 = vadd.f32 %v9050_v56, %v1225_v17  ;;  %v1457_v56 = vpack.c.bf16 %v10001_v59, %v9934_v33  ;;  %v10158_v17 = vld [vmem:[#allocation7 + $0x168] ss:$12 sps:$4 sm:$0xff]   ;;  %v10164_v59 = vld [vmem:[#allocation7 + $0x150] ss:$12 sps:$4 sm:$0xff]  }
 0x647   :  { %v10162_v33 = vld [vmem:[#allocation7 + $0x154] ss:$12 sps:$4 sm:$0xff]  }
 0x648   :  { %v1233_v4 = vpack.c.bf16 %v10099_v48, %v10099_v48  ;;  %v1458_v52 = vpack.c.bf16 %v10099_v48, %v10053_v58  ;;  %v10168_v58 = vld [vmem:[#allocation7 + $0x13c] ss:$12 sps:$4 sm:$0xff]  }
 0x64a   :  { %1267 = vmatmul.mubr.bf16.vlgmr.msra.gmra.mxu0 %v1233_v4  ;;  %7906 = vmatmul.mubr.bf16.vlgmr.msra.gmra.mxu1 %v1233_v4  ;;  %v10174_v4 = vld [vmem:[#allocation7 + $0x124] ss:$12 sps:$4 sm:$0xff]  }
 0x64b   :  { %1344 = vmatpush1.bf16.msra.mxu0 %v9878_v30  ;;  %7910 = vmatpush3.bf16.msra.mxu1 %v9939_v11 }
 0x64c   :  { %1345 = vmatprep.subr.bf16.mxu0 %v9882_v27  ;;  %7911 = vmatprep.subr.bf16.mxu1 %v12069_v43 }
 0x64d   :  { %1375 = vmatprep.mubr.bf16.mxu0 %v12070_v21  ;;  %7925 = vmatprep.mubr.msk.bf16.mxu1 %vm9564_vm0, %v12069_v43 }
 0x64f   :  { %1346 = vmatpush1.bf16.msra.mxu0 %v9889_v37  ;;  %7912 = vmatpush3.bf16.msra.mxu1 %v9948_v19 }
 0x650   :  { %1347 = vmatprep.subr.bf16.mxu0 %v9893_v41  ;;  %7913 = vmatprep.subr.bf16.mxu1 %v12069_v43 }
 0x653   :  { %1348 = vmatpush1.bf16.msra.mxu0 %v9897_v40  ;;  %7914 = vmatpush3.bf16.msra.mxu1 %v9954_v44 }
 0x654   :  { %1349 = vmatprep.subr.bf16.mxu0 %v9901_v42  ;;  %7915 = vmatprep.subr.bf16.mxu1 %v12069_v43 }
 0x657   :  { %1350 = vmatpush1.bf16.msra.mxu0 %v9905_v63  ;;  %7916 = vmatpush3.bf16.msra.mxu1 %v9960_v29 }
 0x658   :  { %1351 = vmatprep.subr.bf16.mxu0 %v9909_v45  ;;  %7917 = vmatprep.subr.bf16.mxu1 %v12069_v43 }
 0x65b   :  { %1352 = vmatpush1.bf16.msra.mxu0 %v9965_v35  ;;  %7918 = vmatpush3.bf16.msra.mxu1 %v10025_v25 }
 0x65c   :  { %1353 = vmatprep.subr.bf16.mxu0 %v9969_v46  ;;  %7919 = vmatprep.subr.bf16.mxu1 %v12069_v43 }
 0x65f   :  { %1354 = vmatpush1.bf16.msra.mxu0 %v9973_v49  ;;  %7920 = vmatpush3.bf16.msra.mxu1 %v10031_v54 }
 0x660   :  { %1355 = vmatprep.subr.bf16.mxu0 %v9977_v50  ;;  %7921 = vmatprep.subr.bf16.mxu1 %v12069_v43 }
 0x663   :  { %1356 = vmatpush1.bf16.msra.mxu0 %v9981_v51  ;;  %7922 = vmatpush3.bf16.msra.mxu1 %v10037_v55 }
 0x664   :  { %1357 = vmatprep.subr.bf16.mxu0 %v9985_v57  ;;  %7923 = vmatprep.subr.bf16.mxu1 %v12069_v43 }
 0x667   :  { %1358 = vmatpush1.bf16.msra.mxu0 %v9989_v53  ;;  %7924 = vmatpush3.bf16.msra.mxu1 %v10043_v3 }
 0x668   :  { %1639 = vmatprep.subr.bf16.mxu0 %v8739_v0  ;;  %7929 = vmatprep.subr.bf16.mxu1 %v8740_v12  ;;  %v10176_v0 = vld [vmem:[#allocation7 + $0x120] ss:$12 sps:$4 sm:$0xff]  }
 0x70a   :  { %v1268_v30 = vpop.f32.mrf.mxu0  ;;  %v1309_v27 = vpop.f32.mrf.mxu1 }
 0x70b   :  { %v1315_v37 = vadd.f32 %v1268_v30, %v9807_v8  ;;  %v1329_v50 = vadd.f32 %v9822_v61, %v1309_v27  ;;  %v8744_v61 = vld [vmem:[#allocation5 + $0x158] ss:$12 sps:$4 sm:$0xff]   ;;  %v10182_v30 = vld [vmem:[#allocation7 + $0x108] ss:$12 sps:$4 sm:$0xff]  }
 0x70c   :  { %v1270_v41 = vpop.f32.mrf.mxu0  ;;  %v7907_v40 = vpop.f32.mrf.mxu1  ;;  %v10186_v27 = vld [vmem:[#allocation7 + $0xf4] ss:$12 sps:$4 sm:$0xff]  }
 0x70d   :  { %v7046_v42 = vmul.f32 -1.442695, %v1315_v37  ;;  %v1322_v44 = vadd.f32 %v1270_v41, %v9810_v16  ;;  %v10188_v37 = vld [vmem:[#allocation7 + $0xf0] ss:$12 sps:$4 sm:$0xff]   ;;  %v10194_v40 = vld [vmem:[#allocation7 + $0xd8] ss:$12 sps:$4 sm:$0xff]  }
 0x70e   :  { %v1272_v63 = vpop.f32.mrf.mxu0  ;;  %v1312_v45 = vpop.f32.mrf.mxu1  ;;  %v10192_v41 = vld [vmem:[#allocation7 + $0xdc] ss:$12 sps:$4 sm:$0xff]  }
 0x70f   :  { %9053 = vpow2.f32 %v7046_v42  ;;  %v7047_v29 = vmul.f32 -1.442695, %v1322_v44  ;;  %v10196_v42 = vld [vmem:[#allocation7 + $0xc4] ss:$12 sps:$4 sm:$0xff]   ;;  %v10203_v45 = vld [vmem:[#allocation7 + $0xc0] ss:$12 sps:$4 sm:$0xff]  }
 0x710   :  { %v1273_v11 = vpop.f32.mrf.mxu0  ;;  %v7908_v19 = vpop.f32.mrf.mxu1  ;;  %v10198_v63 = vld [vmem:[#allocation7 + $0x170] ss:$12 sps:$4 sm:$0xff]   ;;  %v10216_v44 = vld [vmem:[#allocation7 + $0x128] ss:$12 sps:$4 sm:$0xff]  }
 0x711   :  { %9055 = vpow2.f32 %v7047_v29  ;;  %v10208_v11 = vld [vmem:[#allocation7 + $0x158] ss:$12 sps:$4 sm:$0xff]   ;;  %v10212_v19 = vld [vmem:[#allocation7 + $0x140] ss:$12 sps:$4 sm:$0xff]   ;;  %v10220_v29 = vld [vmem:[#allocation7 + $0x110] ss:$12 sps:$4 sm:$0xff]  }
 0x71c   :  { %v9054_v35 = vpop.eup %9053 }
 0x71d   :  { %v1319_v46 = vadd.f32 1.0, %v9054_v35  ;;  %v10224_v35 = vld [vmem:[#allocation7 + $0xf8] ss:$12 sps:$4 sm:$0xff]  }
 0x71e   :  { %v9056_v49 = vpop.eup %9055 }
 0x71f   :  { %9057 = vrcp.f32 %v1319_v46  ;;  %v1326_v53 = vadd.f32 1.0, %v9056_v49  ;;  %v10228_v46 = vld [vmem:[#allocation7 + $0xe0] ss:$12 sps:$4 sm:$0xff]   ;;  %v10232_v49 = vld [vmem:[#allocation7 + $0xc8] ss:$12 sps:$4 sm:$0xff]  }
 0x72c   :  { %v9058_v51 = vpop.eup %9057 }
 0x72d   :  { %v1330_v8 = vmul.f32 %v9058_v51, %v1329_v50 }
 0x72f   :  { %v1331_v57 = vadd.f32 %v1330_v8, %v9795_v38  ;;  %v1456_v38 = vpack.c.bf16 %v9874_v34, %v9826_v39  ;;  %v8749_v39 = vld [vmem:[#allocation5 + $0x120] ss:$12 sps:$4 sm:$0xff]  }
 0x730   :  { %v8755_v34 = vld [vmem:[#allocation5 + $0x10c] ss:$12 sps:$4 sm:$0xff]  }
 0x731   :  { %9059 = vtanh.f32 %v1331_v57 }
 0x732   :  { %9061 = vrcp.f32 %v1326_v53 }
 0x73e   :  { %v9060_v25 = vpop.eup %9059 }
 0x73f   :  { %v1333_v54 = vsub.f32 %v10099_v48, %v9060_v25  ;;  %v9062_v55 = vpop.eup %9061  ;;  %v10170_v48 = vld [vmem:[#allocation7 + $0x138] ss:$12 sps:$4 sm:$0xff]  }
 0x741   :  { %v1334_v16 = vmul.f32 %v9062_v55, %v1333_v54 }
 0x743   :  { %v10141_v3 = vadd.f32 %v9060_v25, %v1334_v16 }
 0x745   :  { %v1342_v6 = vpack.c.bf16 %v10141_v3, %v10141_v3 }
 0x747   :  { %1376 = vmatmul.mubr.bf16.vlgmr.msra.gmra.mxu0 %v1342_v6  ;;  %7926 = vmatmul.mubr.bf16.vlgmr.msra.gmra.mxu1 %v1342_v6  ;;  %v12071_v6 = vld [vmem:[#allocation15_spill] sm:$0xff] }
 0x748   :  { %1640 = vmatpush1.bf16.msra.mxu0 %v8737_v13  ;;  %7930 = vmatpush3.bf16.msra.mxu1 %v8740_v12  ;;  %v10180_v12 = vld [vmem:[#allocation7 + $0x10c] ss:$12 sps:$4 sm:$0xff]  }
 0x749   :  { %7945 = vmatprep.mubr.bf16.mxu1 %v1456_v38  ;;  %1641 = vmatprep.subr.bf16.mxu0 %v8743_v62  ;;  %v318_v62 = vadd.f32 %v12071_v6, %v9770_v14 }
 0x74a   :  { %7931 = vmatprep.subr.bf16.mxu1 %v8744_v61  ;;  %1671 = vmatprep.mubr.bf16.mxu0 %v12070_v21 }
 0x74c   :  { %1642 = vmatpush1.bf16.msra.mxu0 %v8741_v26  ;;  %7932 = vmatpush3.bf16.msra.mxu1 %v8744_v61 }
 0x74d   :  { %1643 = vmatprep.subr.bf16.mxu0 %v8747_v5  ;;  %7933 = vmatprep.subr.bf16.mxu1 %v8748_v32 }
 0x750   :  { %1644 = vmatpush1.bf16.msra.mxu0 %v8745_v15  ;;  %7934 = vmatpush3.bf16.msra.mxu1 %v8748_v32 }
 0x751   :  { %1645 = vmatprep.subr.bf16.mxu0 %v8751_v22  ;;  %7935 = vmatprep.subr.bf16.mxu1 %v8752_v10 }
 0x754   :  { %1646 = vmatpush1.bf16.msra.mxu0 %v8749_v39  ;;  %7936 = vmatpush3.bf16.msra.mxu1 %v8752_v10  ;;  %v12072_v39 = vld [vmem:[#allocation14_spill] sm:$0xff] }
 0x755   :  { %1647 = vmatprep.subr.bf16.mxu0 %v8755_v34  ;;  %7937 = vmatprep.subr.bf16.mxu1 %v8756_v7 }
 0x758   :  { %1648 = vmatpush1.bf16.msra.mxu0 %v8753_v9  ;;  %7938 = vmatpush3.bf16.msra.mxu1 %v8756_v7 }
 0x759   :  { %1649 = vmatprep.subr.bf16.mxu0 %v8759_v28  ;;  %7939 = vmatprep.subr.bf16.mxu1 %v8760_v2 }
 0x75c   :  { %1650 = vmatpush1.bf16.msra.mxu0 %v8757_v1  ;;  %7940 = vmatpush3.bf16.msra.mxu1 %v8760_v2 }
 0x75d   :  { %1651 = vmatprep.subr.bf16.mxu0 %v8763_v47  ;;  %7941 = vmatprep.subr.bf16.mxu1 %v8764_v31 }
 0x760   :  { %1652 = vmatpush1.bf16.msra.mxu0 %v8761_v18  ;;  %7942 = vmatpush3.bf16.msra.mxu1 %v8764_v31  ;;  %v12073_v31 = vmov 0.0|0.0  }
 0x761   :  { %1653 = vmatprep.subr.bf16.mxu0 %v8767_v23  ;;  %7943 = vmatprep.subr.bf16.mxu1 %v8768_v24 }
 0x764   :  { %1654 = vmatpush1.bf16.msra.mxu0 %v8765_v60  ;;  %7944 = vmatpush3.bf16.msra.mxu1 %v8768_v24 }
 0x765   :  { %7953 = vmatprep.subr.bf16.mxu1 %v12069_v43  ;;  %1976 = vmatprep.subr.bf16.mxu0 %v10156_v36 }
 0x767   :  { %1672 = vmatmul.mubr.bf16.vlgmr.msra.gmra.mxu0 %v1456_v38  ;;  %7946 = vmatmul.mubr.bf16.vlgmr.msra.gmra.mxu1 %v1457_v56 }
 0x768   :  { %7949 = vmatprep.mubr.bf16.mxu1 %v1458_v52  ;;  %1681 = vmatprep.mubr.bf16.mxu0 %v12070_v21 }
 0x769   :  { %1977 = vmatpush1.bf16.msra.mxu0 %v10158_v17  ;;  %7954 = vmatpush3.bf16.msra.mxu1 %v10198_v63 }
 0x76a   :  { %1978 = vmatprep.subr.bf16.mxu0 %v10162_v33  ;;  %7955 = vmatprep.subr.bf16.mxu1 %v12069_v43 }
 0x76d   :  { %1979 = vmatpush1.bf16.msra.mxu0 %v10164_v59  ;;  %7956 = vmatpush3.bf16.msra.mxu1 %v10208_v11 }
 0x76e   :  { %1980 = vmatprep.subr.bf16.mxu0 %v10168_v58  ;;  %7957 = vmatprep.subr.bf16.mxu1 %v12069_v43 }
 0x76f   :  { %1682 = vmatmul.mubr.bf16.gmra.mxu0 %v1457_v56 }
 0x770   :  { %1691 = vmatprep.mubr.bf16.mxu0 %v12070_v21 }
 0x771   :  { %1981 = vmatpush1.bf16.msra.mxu0 %v10170_v48  ;;  %7958 = vmatpush3.bf16.msra.mxu1 %v10212_v19 }
 0x772   :  { %1982 = vmatprep.subr.bf16.mxu0 %v10174_v4  ;;  %7959 = vmatprep.subr.bf16.mxu1 %v12069_v43 }
 0x775   :  { %1983 = vmatpush1.bf16.msra.mxu0 %v10176_v0  ;;  %7960 = vmatpush3.bf16.msra.mxu1 %v10216_v44 }
 0x776   :  { %1984 = vmatprep.subr.bf16.mxu0 %v10180_v12  ;;  %7961 = vmatprep.subr.bf16.mxu1 %v12069_v43 }
 0x777   :  { %1692 = vmatmul.mubr.bf16.gmra.mxu0 %v1458_v52 }
 0x778   :  { %1701 = vmatprep.mubr.bf16.mxu0 %v12070_v21 }
 0x779   :  { %1985 = vmatpush1.bf16.msra.mxu0 %v10182_v30  ;;  %7962 = vmatpush3.bf16.msra.mxu1 %v10220_v29 }
 0x77a   :  { %1986 = vmatprep.subr.bf16.mxu0 %v10186_v27  ;;  %7963 = vmatprep.subr.bf16.mxu1 %v12069_v43 }
 0x77d   :  { %1987 = vmatpush1.bf16.msra.mxu0 %v10188_v37  ;;  %7964 = vmatpush3.bf16.msra.mxu1 %v10224_v35 }
 0x77e   :  { %1988 = vmatprep.subr.bf16.mxu0 %v10192_v41  ;;  %7965 = vmatprep.subr.bf16.mxu1 %v12069_v43 }
 0x781   :  { %1989 = vmatpush1.bf16.msra.mxu0 %v10194_v40  ;;  %7966 = vmatpush3.bf16.msra.mxu1 %v10228_v46 }
 0x782   :  { %1990 = vmatprep.subr.bf16.mxu0 %v10196_v42  ;;  %7967 = vmatprep.subr.bf16.mxu1 %v12069_v43 }
 0x785   :  { %1991 = vmatpush1.bf16.msra.mxu0 %v10203_v45  ;;  %7968 = vmatpush3.bf16.msra.mxu1 %v10232_v49 }
 0x786   :  { %2083 = vmatprep.subr.bf16.mxu0 %v10156_v36  ;;  %7973 = vmatprep.subr.bf16.mxu1 %v12069_v43 }
 0x807   :  { %v1377_v50 = vpop.f32.mrf.mxu0  ;;  %v1418_v51 = vpop.f32.mrf.mxu1 }
 0x808   :  { %v1424_v8 = vadd.f32 %v1377_v50, %v9812_v20  ;;  %v9417_v20 = vld [vmem:[%s12047_s4] ss:$0 sm:$0xff] }
 0x809   :  { %v1379_v57 = vpop.f32.mrf.mxu0  ;;  %v7927_v53 = vpop.f32.mrf.mxu1  ;;  %v1438_v15 = vadd.f32 %v9417_v20, %v1418_v51 }
 0x80a   :  { %v7048_v25 = vmul.f32 -1.442695, %v1424_v8  ;;  %v1431_v61 = vadd.f32 %v1379_v57, %v318_v62 }
 0x80b   :  { %v1381_v54 = vpop.f32.mrf.mxu0  ;;  %v1421_v55 = vpop.f32.mrf.mxu1 }
 0x80c   :  { %9063 = vpow2.f32 %v7048_v25  ;;  %v7049_v38 = vmul.f32 -1.442695, %v1431_v61 }
 0x80d   :  { %v1382_v16 = vpop.f32.mrf.mxu0  ;;  %v7928_v13 = vpop.f32.mrf.mxu1 }
 0x80e   :  { %9065 = vpow2.f32 %v7049_v38  ;;  %v7050_v13 = vld [vmem:[%s12046_s3 + $0x3] sm:$0x7] }
 0x819   :  { %v9064_v26 = vpop.eup %9063 }
 0x81a   :  { %v1428_v5 = vadd.f32 1.0, %v9064_v26  ;;  %v12076_v26 = vld [vmem:[#allocation11_spill] sm:$0xff] }
 0x81b   :  { %v9066_v32 = vpop.eup %9065 }
 0x81c   :  { %9067 = vrcp.f32 %v1428_v5  ;;  %v1435_v7 = vadd.f32 1.0, %v9066_v32  ;;  %v10324_v5 = vrot.slane %v7050_v13, %v12076_v26 }
 0x827   :  { %v10298_v51 = vpop.f32.mrf.mxu1 }
 0x829   :  { %v9068_v22 = vpop.eup %9067  ;;  %v1746_v57 = vpop.f32.mrf.mxu1 }
 0x82a   :  { %v1439_v10 = vmul.f32 %v9068_v22, %v1438_v15 }
 0x82b   :  { %v10304_v25 = vpop.f32.mrf.mxu1 }
 0x82c   :  { %v1440_v34 = vadd.f32 %v1439_v10, %v12072_v39 }
 0x82d   :  { %v10308_v55 = vpop.f32.mrf.mxu1 }
 0x82e   :  { %9069 = vtanh.f32 %v1440_v34 }
 0x82f   :  { %9071 = vrcp.f32 %v1435_v7 }
 0x83b   :  { %v9070_v14 = vpop.eup %9069 }
 0x83c   :  { %v1442_v9 = vsub.f32 %v10141_v3, %v9070_v14  ;;  %v9072_v28 = vpop.eup %9071 }
 0x83e   :  { %v1443_v2 = vmul.f32 %v9072_v28, %v1442_v9 }
 0x840   :  { %v1444_v1 = vadd.f32 %v9070_v14, %v1443_v2 }
 0x842   :  { %v1459_v47 = vpack.c.bf16 %v1444_v1, %v10141_v3  ;;  %v1673_v3 = vpop.f32.mrf.mxu0 }
 0x843   :  { %v1674_v10 = vadd.f32 %v1673_v3, %v10324_v5 }
 0x844   :  { %1702 = vmatmul.mubr.bf16.gmra.mxu0 %v1459_v47  ;;  %7950 = vmatmul.mubr.bf16.gmra.mxu1 %v1459_v47  ;;  %v1675_v18 = vpop.f32.mrf.mxu0  ;;  %v12080_v47 = vld [vmem:[#allocation13_spill] sm:$0xff] }
 0x845   :  { %2008 = vmatprep.mubr.bf16.mxu0 %v12070_v21  ;;  %7969 = vmatprep.mubr.msk.bf16.mxu1 %vm9564_vm0, %v12069_v43  ;;  %v10336_v26 = vrot.slane %v7050_v13, %v12080_v47 }
 0x846   :  { %v10286_v23 = vpop.f32.mrf.mxu0 }
 0x848   :  { %v10288_v24 = vpop.f32.mrf.mxu0 }
 0x84a   :  { %v10290_v60 = vpop.f32.mrf.mxu0 }
 0x84c   :  { %2009 = vmatmul.mubr.bf16.vlgmr.msra.gmra.mxu0 %v12073_v31  ;;  %7970 = vmatmul.mubr.bf16.vlgmr.msra.gmra.mxu1 %v12073_v31  ;;  %v10292_v56 = vpop.f32.mrf.mxu0 }
 0x84d   :  { %2084 = vmatpush1.bf16.msra.mxu0 %v10158_v17  ;;  %7974 = vmatpush3.bf16.msra.mxu1 %v10198_v63 }
 0x84e   :  { %2085 = vmatprep.subr.bf16.mxu0 %v10162_v33  ;;  %7975 = vmatprep.subr.bf16.mxu1 %v12069_v43  ;;  %v10294_v52 = vpop.f32.mrf.mxu0 }
 0x84f   :  { %2115 = vmatprep.mubr.bf16.mxu0 %v12070_v21  ;;  %7989 = vmatprep.mubr.msk.bf16.mxu1 %vm9564_vm0, %v12069_v43 }
 0x850   :  { %v10296_v50 = vpop.f32.mrf.mxu0 }
 0x851   :  { %2086 = vmatpush1.bf16.msra.mxu0 %v10164_v59  ;;  %7976 = vmatpush3.bf16.msra.mxu1 %v10208_v11 }
 0x852   :  { %2087 = vmatprep.subr.bf16.mxu0 %v10168_v58  ;;  %7977 = vmatprep.subr.bf16.mxu1 %v12069_v43  ;;  %v10300_v8 = vpop.f32.mrf.mxu0 }
 0x854   :  { %v10302_v53 = vpop.f32.mrf.mxu0 }
 0x855   :  { %2088 = vmatpush1.bf16.msra.mxu0 %v10170_v48  ;;  %7978 = vmatpush3.bf16.msra.mxu1 %v10212_v19 }
 0x856   :  { %2089 = vmatprep.subr.bf16.mxu0 %v10174_v4  ;;  %7979 = vmatprep.subr.bf16.mxu1 %v12069_v43  ;;  %v10306_v54 = vpop.f32.mrf.mxu0 }
 0x858   :  { %v10310_v16 = vpop.f32.mrf.mxu0 }
 0x859   :  { %2090 = vmatpush1.bf16.msra.mxu0 %v10176_v0  ;;  %7980 = vmatpush3.bf16.msra.mxu1 %v10216_v44 }
 0x85a   :  { %2091 = vmatprep.subr.bf16.mxu0 %v10180_v12  ;;  %7981 = vmatprep.subr.bf16.mxu1 %v12069_v43 }
 0x85d   :  { %2092 = vmatpush1.bf16.msra.mxu0 %v10182_v30  ;;  %7982 = vmatpush3.bf16.msra.mxu1 %v10220_v29 }
 0x85e   :  { %2093 = vmatprep.subr.bf16.mxu0 %v10186_v27  ;;  %7983 = vmatprep.subr.bf16.mxu1 %v12069_v43 }
 0x861   :  { %2094 = vmatpush1.bf16.msra.mxu0 %v10188_v37  ;;  %7984 = vmatpush3.bf16.msra.mxu1 %v10224_v35 }
 0x862   :  { %2095 = vmatprep.subr.bf16.mxu0 %v10192_v41  ;;  %7985 = vmatprep.subr.bf16.mxu1 %v12069_v43 }
 0x865   :  { %2096 = vmatpush1.bf16.msra.mxu0 %v10194_v40  ;;  %7986 = vmatpush3.bf16.msra.mxu1 %v10228_v46 }
 0x866   :  { %2097 = vmatprep.subr.bf16.mxu0 %v10196_v42  ;;  %7987 = vmatprep.subr.bf16.mxu1 %v12069_v43 }
 0x869   :  { %2098 = vmatpush1.bf16.msra.mxu0 %v10203_v45  ;;  %7988 = vmatpush3.bf16.msra.mxu1 %v10232_v49 }
 0x86a   :  { %2190 = vmatprep.subr.bf16.mxu0 %v10156_v36  ;;  %7993 = vmatprep.subr.bf16.mxu1 %v12069_v43 }
 0x904   :  { %v10315_v6 = vpop.f32.mrf.mxu0  ;;  %v10317_v62 = vpop.f32.mrf.mxu1 }
 0x905   :  { %12074 = vst [vmem:[#allocation15_spill] sm:$0xff] %v10317_v62 }
 0x906   :  { %v10319_v61 = vpop.f32.mrf.mxu0  ;;  %v10321_v38 = vpop.f32.mrf.mxu1 }
 0x907   :  { %12075 = vst [vmem:[#allocation14_spill] sm:$0xff] %v10319_v61 }
 0x908   :  { %v10326_v32 = vpop.f32.mrf.mxu0  ;;  %v10328_v20 = vpop.f32.mrf.mxu1 }
 0x909   :  { %12077 = vst [vmem:[#allocation16_spill] sm:$0xff] %v10326_v32  ;;  %12078 = vst [vmem:[#allocation17_spill] sm:$0xff] %v10328_v20 }
 0x90a   :  { %v10330_v15 = vpop.f32.mrf.mxu0  ;;  %v10332_v22 = vpop.f32.mrf.mxu1 }
 0x90b   :  { %12079 = vst [vmem:[#allocation18_spill] sm:$0xff] %v10330_v15  ;;  %v1676_v15 = vadd.f32 %v1675_v18, %v10336_v26 }
 0x90c   :  { %v2010_v39 = vpop.f32.mrf.mxu0  ;;  %v2051_v34 = vpop.f32.mrf.mxu1 }
 0x90d   :  { %v2057_v7 = vadd.f32 %v2010_v39, %v1674_v10  ;;  %v10342_v10 = vld [vmem:[%s12047_s4 + $0x1] ss:$0 sm:$0xff] }
 0x90e   :  { %v2012_v14 = vpop.f32.mrf.mxu0  ;;  %v7971_v9 = vpop.f32.mrf.mxu1  ;;  %v2071_v39 = vadd.f32 %v10342_v10, %v2051_v34 }
 0x90f   :  { %v7101_v28 = vmul.f32 -1.442695, %v2057_v7  ;;  %v2064_v32 = vadd.f32 %v2012_v14, %v1676_v15  ;;  %v12081_v9 = vld [vmem:[#allocation12_spill] sm:$0xff] }
 0x910   :  { %v2014_v2 = vpop.f32.mrf.mxu0  ;;  %v2054_v1 = vpop.f32.mrf.mxu1 }
 0x911   :  { %9073 = vpow2.f32 %v7101_v28  ;;  %v7102_v62 = vmul.f32 -1.442695, %v2064_v32  ;;  %v10346_v28 = vrot.slane %v7050_v13, %v12081_v9 }
 0x912   :  { %v2015_v31 = vpop.f32.mrf.mxu0  ;;  %v7972_v20 = vpop.f32.mrf.mxu1 }
 0x913   :  { %9075 = vpow2.f32 %v7102_v62  ;;  %v1747_v18 = vadd.f32 %v1746_v57, %v10346_v28  ;;  %v1678_v57 = vadd.f32 %v10286_v23, %v10324_v5 }
 0x91e   :  { %v9074_v61 = vpop.eup %9073 }
 0x91f   :  { %v2061_v3 = vadd.f32 1.0, %v9074_v61 }
 0x920   :  { %v9076_v7 = vpop.eup %9075 }
 0x921   :  { %9077 = vrcp.f32 %v2061_v3  ;;  %v2068_v32 = vadd.f32 1.0, %v9076_v7 }
 0x92e   :  { %v9078_v31 = vpop.eup %9077 }
 0x92f   :  { %v2072_v20 = vmul.f32 %v9078_v31, %v2071_v39 }
 0x931   :  { %v2073_v15 = vadd.f32 %v2072_v20, %v1747_v18 }
 0x933   :  { %9079 = vtanh.f32 %v2073_v15 }
 0x934   :  { %9081 = vrcp.f32 %v2068_v32 }
 0x940   :  { %v9080_v62 = vpop.eup %9079 }
 0x941   :  { %v2075_v61 = vsub.f32 0.0, %v9080_v62  ;;  %v9082_v14 = vpop.eup %9081 }
 0x943   :  { %v2076_v2 = vmul.f32 %v9082_v14, %v2075_v61  ;;  %v1680_v61 = vadd.f32 %v10288_v24, %v10336_v26 }
 0x945   :  { %v10349_v1 = vadd.f32 %v9080_v62, %v2076_v2 }
 0x947   :  { %v2082_v34 = vpack.c.bf16 %v10349_v1, %v10349_v1 }
 0x949   :  { %2116 = vmatmul.mubr.bf16.vlgmr.msra.gmra.mxu0 %v2082_v34  ;;  %7990 = vmatmul.mubr.bf16.vlgmr.msra.gmra.mxu1 %v2082_v34 }
 0x94a   :  { %2191 = vmatpush1.bf16.msra.mxu0 %v10158_v17  ;;  %7994 = vmatpush3.bf16.msra.mxu1 %v10198_v63 }
 0x94b   :  { %2192 = vmatprep.subr.bf16.mxu0 %v10162_v33  ;;  %7995 = vmatprep.subr.bf16.mxu1 %v12069_v43 }
 0x94c   :  { %2222 = vmatprep.mubr.bf16.mxu0 %v12070_v21  ;;  %8009 = vmatprep.mubr.msk.bf16.mxu1 %vm9564_vm0, %v12069_v43 }
 0x94e   :  { %2193 = vmatpush1.bf16.msra.mxu0 %v10164_v59  ;;  %7996 = vmatpush3.bf16.msra.mxu1 %v10208_v11 }
 0x94f   :  { %2194 = vmatprep.subr.bf16.mxu0 %v10168_v58  ;;  %7997 = vmatprep.subr.bf16.mxu1 %v12069_v43 }
 0x952   :  { %2195 = vmatpush1.bf16.msra.mxu0 %v10170_v48  ;;  %7998 = vmatpush3.bf16.msra.mxu1 %v10212_v19 }
 0x953   :  { %2196 = vmatprep.subr.bf16.mxu0 %v10174_v4  ;;  %7999 = vmatprep.subr.bf16.mxu1 %v12069_v43 }
 0x956   :  { %2197 = vmatpush1.bf16.msra.mxu0 %v10176_v0  ;;  %8000 = vmatpush3.bf16.msra.mxu1 %v10216_v44 }
 0x957   :  { %2198 = vmatprep.subr.bf16.mxu0 %v10180_v12  ;;  %8001 = vmatprep.subr.bf16.mxu1 %v12069_v43 }
 0x95a   :  { %2199 = vmatpush1.bf16.msra.mxu0 %v10182_v30  ;;  %8002 = vmatpush3.bf16.msra.mxu1 %v10220_v29 }
 0x95b   :  { %2200 = vmatprep.subr.bf16.mxu0 %v10186_v27  ;;  %8003 = vmatprep.subr.bf16.mxu1 %v12069_v43 }
 0x95e   :  { %2201 = vmatpush1.bf16.msra.mxu0 %v10188_v37  ;;  %8004 = vmatpush3.bf16.msra.mxu1 %v10224_v35 }
 0x95f   :  { %2202 = vmatprep.subr.bf16.mxu0 %v10192_v41  ;;  %8005 = vmatprep.subr.bf16.mxu1 %v12069_v43 }
 0x962   :  { %2203 = vmatpush1.bf16.msra.mxu0 %v10194_v40  ;;  %8006 = vmatpush3.bf16.msra.mxu1 %v10228_v46 }
 0x963   :  { %2204 = vmatprep.subr.bf16.mxu0 %v10196_v42  ;;  %8007 = vmatprep.subr.bf16.mxu1 %v12069_v43 }
 0x966   :  { %2205 = vmatpush1.bf16.msra.mxu0 %v10203_v45  ;;  %8008 = vmatpush3.bf16.msra.mxu1 %v10232_v49 }
 0x967   :  { %2297 = vmatprep.subr.bf16.mxu0 %v10156_v36  ;;  %8013 = vmatprep.subr.bf16.mxu1 %v12069_v43 }
 0xa09   :  { %v2117_v13 = vpop.f32.mrf.mxu0  ;;  %v2158_v3 = vpop.f32.mrf.mxu1 }
 0xa0a   :  { %v2164_v39 = vadd.f32 %v2117_v13, %v1678_v57  ;;  %v2178_v57 = vadd.f32 %v10342_v10, %v2158_v3 }
 0xa0b   :  { %v2119_v7 = vpop.f32.mrf.mxu0  ;;  %v7991_v31 = vpop.f32.mrf.mxu1 }
 0xa0c   :  { %v7103_v18 = vmul.f32 -1.442695, %v2164_v39  ;;  %v2171_v14 = vadd.f32 %v2119_v7, %v1680_v61  ;;  %v1750_v39 = vadd.f32 %v10308_v55, %v10346_v28  ;;  %v1684_v55 = vadd.f32 %v10290_v60, %v10324_v5 }
 0xa0d   :  { %v2121_v20 = vpop.f32.mrf.mxu0  ;;  %v2161_v32 = vpop.f32.mrf.mxu1 }
 0xa0e   :  { %9083 = vpow2.f32 %v7103_v18  ;;  %v7104_v2 = vmul.f32 -1.442695, %v2171_v14 }
 0xa0f   :  { %v2122_v15 = vpop.f32.mrf.mxu0  ;;  %v7992_v62 = vpop.f32.mrf.mxu1 }
 0xa10   :  { %9085 = vpow2.f32 %v7104_v2 }
 0xa1b   :  { %v9084_v34 = vpop.eup %9083 }
 0xa1c   :  { %v2168_v9 = vadd.f32 1.0, %v9084_v34 }
 0xa1d   :  { %v9086_v23 = vpop.eup %9085 }
 0xa1e   :  { %9087 = vrcp.f32 %v2168_v9  ;;  %v2175_v20 = vadd.f32 1.0, %v9086_v23 }
 0xa2b   :  { %v9088_v13 = vpop.eup %9087 }
 0xa2c   :  { %v2179_v31 = vmul.f32 %v9088_v13, %v2178_v57 }
 0xa2e   :  { %v2180_v18 = vadd.f32 %v2179_v31, %v1750_v39 }
 0xa30   :  { %9089 = vtanh.f32 %v2180_v18  ;;  %v1686_v18 = vadd.f32 %v10292_v56, %v10336_v26 }
 0xa31   :  { %9091 = vrcp.f32 %v2175_v20 }
 0xa3d   :  { %v9090_v32 = vpop.eup %9089 }
 0xa3e   :  { %v2182_v24 = vsub.f32 %v10349_v1, %v9090_v32  ;;  %v9092_v7 = vpop.eup %9091 }
 0xa40   :  { %v2183_v15 = vmul.f32 %v9092_v7, %v2182_v24 }
 0xa42   :  { %v10396_v62 = vadd.f32 %v9090_v32, %v2183_v15 }
 0xa44   :  { %v2189_v9 = vpack.c.bf16 %v10396_v62, %v10396_v62 }
 0xa46   :  { %2223 = vmatmul.mubr.bf16.vlgmr.msra.gmra.mxu0 %v2189_v9  ;;  %8010 = vmatmul.mubr.bf16.vlgmr.msra.gmra.mxu1 %v2189_v9 }
 0xa47   :  { %2298 = vmatpush1.bf16.msra.mxu0 %v10158_v17  ;;  %8014 = vmatpush3.bf16.msra.mxu1 %v10198_v63 }
 0xa48   :  { %2299 = vmatprep.subr.bf16.mxu0 %v10162_v33  ;;  %8015 = vmatprep.subr.bf16.mxu1 %v12069_v43 }
 0xa49   :  { %2329 = vmatprep.mubr.bf16.mxu0 %v12070_v21  ;;  %8029 = vmatprep.mubr.msk.bf16.mxu1 %vm9564_vm0, %v12069_v43 }
 0xa4b   :  { %2300 = vmatpush1.bf16.msra.mxu0 %v10164_v59  ;;  %8016 = vmatpush3.bf16.msra.mxu1 %v10208_v11 }
 0xa4c   :  { %2301 = vmatprep.subr.bf16.mxu0 %v10168_v58  ;;  %8017 = vmatprep.subr.bf16.mxu1 %v12069_v43 }
 0xa4f   :  { %2302 = vmatpush1.bf16.msra.mxu0 %v10170_v48  ;;  %8018 = vmatpush3.bf16.msra.mxu1 %v10212_v19 }
 0xa50   :  { %2303 = vmatprep.subr.bf16.mxu0 %v10174_v4  ;;  %8019 = vmatprep.subr.bf16.mxu1 %v12069_v43 }
 0xa53   :  { %2304 = vmatpush1.bf16.msra.mxu0 %v10176_v0  ;;  %8020 = vmatpush3.bf16.msra.mxu1 %v10216_v44 }
 0xa54   :  { %2305 = vmatprep.subr.bf16.mxu0 %v10180_v12  ;;  %8021 = vmatprep.subr.bf16.mxu1 %v12069_v43 }
 0xa57   :  { %2306 = vmatpush1.bf16.msra.mxu0 %v10182_v30  ;;  %8022 = vmatpush3.bf16.msra.mxu1 %v10220_v29 }
 0xa58   :  { %2307 = vmatprep.subr.bf16.mxu0 %v10186_v27  ;;  %8023 = vmatprep.subr.bf16.mxu1 %v12069_v43 }
 0xa5b   :  { %2308 = vmatpush1.bf16.msra.mxu0 %v10188_v37  ;;  %8024 = vmatpush3.bf16.msra.mxu1 %v10224_v35 }
 0xa5c   :  { %2309 = vmatprep.subr.bf16.mxu0 %v10192_v41  ;;  %8025 = vmatprep.subr.bf16.mxu1 %v12069_v43 }
 0xa5f   :  { %2310 = vmatpush1.bf16.msra.mxu0 %v10194_v40  ;;  %8026 = vmatpush3.bf16.msra.mxu1 %v10228_v46 }
 0xa60   :  { %2311 = vmatprep.subr.bf16.mxu0 %v10196_v42  ;;  %8027 = vmatprep.subr.bf16.mxu1 %v12069_v43 }
 0xa63   :  { %2312 = vmatpush1.bf16.msra.mxu0 %v10203_v45  ;;  %8028 = vmatpush3.bf16.msra.mxu1 %v10232_v49 }
 0xa64   :  { %2404 = vmatprep.subr.bf16.mxu0 %v10156_v36  ;;  %8033 = vmatprep.subr.bf16.mxu1 %v12069_v43 }
 0xb06   :  { %v2224_v3 = vpop.f32.mrf.mxu0  ;;  %v2265_v61 = vpop.f32.mrf.mxu1 }
 0xb07   :  { %v2271_v14 = vadd.f32 %v2224_v3, %v1684_v55  ;;  %v2285_v15 = vadd.f32 %v10342_v10, %v2265_v61  ;;  %v1755_v55 = vadd.f32 %v10298_v51, %v10346_v28  ;;  %v1688_v51 = vadd.f32 %v10294_v52, %v10324_v5 }
 0xb08   :  { %v2226_v2 = vpop.f32.mrf.mxu0  ;;  %v8011_v34 = vpop.f32.mrf.mxu1 }
 0xb09   :  { %v7105_v23 = vmul.f32 -1.442695, %v2271_v14  ;;  %v2278_v20 = vadd.f32 %v2226_v2, %v1686_v18 }
 0xb0a   :  { %v2228_v57 = vpop.f32.mrf.mxu0  ;;  %v2268_v13 = vpop.f32.mrf.mxu1 }
 0xb0b   :  { %9093 = vpow2.f32 %v7105_v23  ;;  %v7106_v32 = vmul.f32 -1.442695, %v2278_v20 }
 0xb0c   :  { %v2229_v39 = vpop.f32.mrf.mxu0  ;;  %v8012_v31 = vpop.f32.mrf.mxu1 }
 0xb0d   :  { %9095 = vpow2.f32 %v7106_v32 }
 0xb18   :  { %v9094_v24 = vpop.eup %9093 }
 0xb19   :  { %v2275_v7 = vadd.f32 1.0, %v9094_v24 }
 0xb1a   :  { %v9096_v60 = vpop.eup %9095 }
 0xb1b   :  { %9097 = vrcp.f32 %v2275_v7  ;;  %v2282_v34 = vadd.f32 1.0, %v9096_v60 }
 0xb28   :  { %v9098_v9 = vpop.eup %9097 }
 0xb29   :  { %v2286_v3 = vmul.f32 %v9098_v9, %v2285_v15 }
 0xb2b   :  { %v2287_v14 = vadd.f32 %v2286_v3, %v1755_v55  ;;  %v1690_v55 = vadd.f32 %v10296_v50, %v10336_v26 }
 0xb2d   :  { %9099 = vtanh.f32 %v2287_v14 }
 0xb2e   :  { %9101 = vrcp.f32 %v2282_v34 }
 0xb3a   :  { %v9100_v23 = vpop.eup %9099 }
 0xb3b   :  { %v2289_v56 = vsub.f32 %v10396_v62, %v9100_v23  ;;  %v9102_v2 = vpop.eup %9101 }
 0xb3d   :  { %v2290_v57 = vmul.f32 %v9102_v2, %v2289_v56 }
 0xb3f   :  { %v10443_v13 = vadd.f32 %v9100_v23, %v2290_v57  ;;  %v1758_v57 = vadd.f32 %v10304_v25, %v10346_v28  ;;  %v1694_v25 = vadd.f32 %v10300_v8, %v10324_v5 }
 0xb41   :  { %v2296_v39 = vpack.c.bf16 %v10443_v13, %v10443_v13 }
 0xb43   :  { %2330 = vmatmul.mubr.bf16.vlgmr.msra.gmra.mxu0 %v2296_v39  ;;  %8030 = vmatmul.mubr.bf16.vlgmr.msra.gmra.mxu1 %v2296_v39 }
 0xb44   :  { %2405 = vmatpush1.bf16.msra.mxu0 %v10158_v17  ;;  %8034 = vmatpush3.bf16.msra.mxu1 %v10198_v63 }
 0xb45   :  { %2406 = vmatprep.subr.bf16.mxu0 %v10162_v33  ;;  %8035 = vmatprep.subr.bf16.mxu1 %v12069_v43 }
 0xb46   :  { %2436 = vmatprep.mubr.bf16.mxu0 %v12070_v21  ;;  %8049 = vmatprep.mubr.msk.bf16.mxu1 %vm9564_vm0, %v12069_v43 }
 0xb48   :  { %2407 = vmatpush1.bf16.msra.mxu0 %v10164_v59  ;;  %8036 = vmatpush3.bf16.msra.mxu1 %v10208_v11 }
 0xb49   :  { %2408 = vmatprep.subr.bf16.mxu0 %v10168_v58  ;;  %8037 = vmatprep.subr.bf16.mxu1 %v12069_v43 }
 0xb4c   :  { %2409 = vmatpush1.bf16.msra.mxu0 %v10170_v48  ;;  %8038 = vmatpush3.bf16.msra.mxu1 %v10212_v19 }
 0xb4d   :  { %2410 = vmatprep.subr.bf16.mxu0 %v10174_v4  ;;  %8039 = vmatprep.subr.bf16.mxu1 %v12069_v43 }
 0xb50   :  { %2411 = vmatpush1.bf16.msra.mxu0 %v10176_v0  ;;  %8040 = vmatpush3.bf16.msra.mxu1 %v10216_v44 }
 0xb51   :  { %2412 = vmatprep.subr.bf16.mxu0 %v10180_v12  ;;  %8041 = vmatprep.subr.bf16.mxu1 %v12069_v43 }
 0xb54   :  { %2413 = vmatpush1.bf16.msra.mxu0 %v10182_v30  ;;  %8042 = vmatpush3.bf16.msra.mxu1 %v10220_v29 }
 0xb55   :  { %2414 = vmatprep.subr.bf16.mxu0 %v10186_v27  ;;  %8043 = vmatprep.subr.bf16.mxu1 %v12069_v43 }
 0xb58   :  { %2415 = vmatpush1.bf16.msra.mxu0 %v10188_v37  ;;  %8044 = vmatpush3.bf16.msra.mxu1 %v10224_v35 }
 0xb59   :  { %2416 = vmatprep.subr.bf16.mxu0 %v10192_v41  ;;  %8045 = vmatprep.subr.bf16.mxu1 %v12069_v43 }
 0xb5c   :  { %2417 = vmatpush1.bf16.msra.mxu0 %v10194_v40  ;;  %8046 = vmatpush3.bf16.msra.mxu1 %v10228_v46 }
 0xb5d   :  { %2418 = vmatprep.subr.bf16.mxu0 %v10196_v42  ;;  %8047 = vmatprep.subr.bf16.mxu1 %v12069_v43 }
 0xb60   :  { %2419 = vmatpush1.bf16.msra.mxu0 %v10203_v45  ;;  %8048 = vmatpush3.bf16.msra.mxu1 %v10232_v49 }
 0xb61   :  { %2511 = vmatprep.subr.bf16.mxu0 %v10156_v36  ;;  %8053 = vmatprep.subr.bf16.mxu1 %v12069_v43 }
 0xc03   :  { %v2331_v61 = vpop.f32.mrf.mxu0  ;;  %v2372_v31 = vpop.f32.mrf.mxu1 }
 0xc04   :  { %v2378_v18 = vadd.f32 %v2331_v61, %v1688_v51  ;;  %v2392_v56 = vadd.f32 %v10342_v10, %v2372_v31 }
 0xc05   :  { %v2333_v20 = vpop.f32.mrf.mxu0  ;;  %v8031_v32 = vpop.f32.mrf.mxu1 }
 0xc06   :  { %v7107_v24 = vmul.f32 -1.442695, %v2378_v18  ;;  %v2385_v3 = vadd.f32 %v2333_v20, %v1690_v55 }
 0xc07   :  { %v2335_v7 = vpop.f32.mrf.mxu0  ;;  %v2375_v60 = vpop.f32.mrf.mxu1 }
 0xc08   :  { %9103 = vpow2.f32 %v7107_v24  ;;  %v7108_v14 = vmul.f32 -1.442695, %v2385_v3 }
 0xc09   :  { %v2336_v15 = vpop.f32.mrf.mxu0  ;;  %v8032_v9 = vpop.f32.mrf.mxu1 }
 0xc0a   :  { %9105 = vpow2.f32 %v7108_v14 }
 0xc15   :  { %v9104_v34 = vpop.eup %9103 }
 0xc16   :  { %v2382_v23 = vadd.f32 1.0, %v9104_v34 }
 0xc17   :  { %v9106_v52 = vpop.eup %9105 }
 0xc18   :  { %9107 = vrcp.f32 %v2382_v23  ;;  %v2389_v61 = vadd.f32 1.0, %v9106_v52 }
 0xc25   :  { %v9108_v2 = vpop.eup %9107 }
 0xc26   :  { %v2393_v39 = vmul.f32 %v9108_v2, %v2392_v56  ;;  %v1696_v56 = vadd.f32 %v10302_v53, %v10336_v26 }
 0xc28   :  { %v2394_v51 = vadd.f32 %v2393_v39, %v1758_v57 }
 0xc2a   :  { %9109 = vtanh.f32 %v2394_v51 }
 0xc2b   :  { %9111 = vrcp.f32 %v2389_v61 }
 0xc37   :  { %v9110_v18 = vpop.eup %9109 }
 0xc38   :  { %v2396_v50 = vsub.f32 %v10443_v13, %v9110_v18  ;;  %v9112_v20 = vpop.eup %9111 }
 0xc3a   :  { %v2397_v32 = vmul.f32 %v9112_v20, %v2396_v50  ;;  %v1763_v50 = vadd.f32 %v10321_v38, %v10346_v28 }
 0xc3c   :  { %v10490_v24 = vadd.f32 %v9110_v18, %v2397_v32 }
 0xc3e   :  { %v2403_v7 = vpack.c.bf16 %v10490_v24, %v10490_v24 }
 0xc40   :  { %2437 = vmatmul.mubr.bf16.vlgmr.msra.gmra.mxu0 %v2403_v7  ;;  %8050 = vmatmul.mubr.bf16.vlgmr.msra.gmra.mxu1 %v2403_v7 }
 0xc41   :  { %2512 = vmatpush1.bf16.msra.mxu0 %v10158_v17  ;;  %8054 = vmatpush3.bf16.msra.mxu1 %v10198_v63 }
 0xc42   :  { %2513 = vmatprep.subr.bf16.mxu0 %v10162_v33  ;;  %8055 = vmatprep.subr.bf16.mxu1 %v12069_v43 }
 0xc43   :  { %2543 = vmatprep.mubr.bf16.mxu0 %v12070_v21  ;;  %8069 = vmatprep.mubr.msk.bf16.mxu1 %vm9564_vm0, %v12069_v43 }
 0xc45   :  { %2514 = vmatpush1.bf16.msra.mxu0 %v10164_v59  ;;  %8056 = vmatpush3.bf16.msra.mxu1 %v10208_v11 }
 0xc46   :  { %2515 = vmatprep.subr.bf16.mxu0 %v10168_v58  ;;  %8057 = vmatprep.subr.bf16.mxu1 %v12069_v43 }
 0xc49   :  { %2516 = vmatpush1.bf16.msra.mxu0 %v10170_v48  ;;  %8058 = vmatpush3.bf16.msra.mxu1 %v10212_v19 }
 0xc4a   :  { %2517 = vmatprep.subr.bf16.mxu0 %v10174_v4  ;;  %8059 = vmatprep.subr.bf16.mxu1 %v12069_v43 }
 0xc4d   :  { %2518 = vmatpush1.bf16.msra.mxu0 %v10176_v0  ;;  %8060 = vmatpush3.bf16.msra.mxu1 %v10216_v44 }
 0xc4e   :  { %2519 = vmatprep.subr.bf16.mxu0 %v10180_v12  ;;  %8061 = vmatprep.subr.bf16.mxu1 %v12069_v43 }
 0xc51   :  { %2520 = vmatpush1.bf16.msra.mxu0 %v10182_v30  ;;  %8062 = vmatpush3.bf16.msra.mxu1 %v10220_v29 }
 0xc52   :  { %2521 = vmatprep.subr.bf16.mxu0 %v10186_v27  ;;  %8063 = vmatprep.subr.bf16.mxu1 %v12069_v43 }
 0xc55   :  { %2522 = vmatpush1.bf16.msra.mxu0 %v10188_v37  ;;  %8064 = vmatpush3.bf16.msra.mxu1 %v10224_v35 }
 0xc56   :  { %2523 = vmatprep.subr.bf16.mxu0 %v10192_v41  ;;  %8065 = vmatprep.subr.bf16.mxu1 %v12069_v43 }
 0xc59   :  { %2524 = vmatpush1.bf16.msra.mxu0 %v10194_v40  ;;  %8066 = vmatpush3.bf16.msra.mxu1 %v10228_v46 }
 0xc5a   :  { %2525 = vmatprep.subr.bf16.mxu0 %v10196_v42  ;;  %8067 = vmatprep.subr.bf16.mxu1 %v12069_v43 }
 0xc5d   :  { %2526 = vmatpush1.bf16.msra.mxu0 %v10203_v45  ;;  %8068 = vmatpush3.bf16.msra.mxu1 %v10232_v49 }
 0xc5e   :  { %2618 = vmatprep.subr.bf16.mxu0 %v10156_v36  ;;  %8073 = vmatprep.subr.bf16.mxu1 %v12069_v43 }
 0xd00   :  { %v2438_v31 = vpop.f32.mrf.mxu0  ;;  %v2479_v60 = vpop.f32.mrf.mxu1 }
 0xd01   :  { %v2485_v15 = vadd.f32 %v2438_v31, %v1694_v25  ;;  %v2499_v61 = vadd.f32 %v10342_v10, %v2479_v60 }
 0xd02   :  { %v2440_v9 = vpop.f32.mrf.mxu0  ;;  %v8051_v55 = vpop.f32.mrf.mxu1 }
 0xd03   :  { %v7109_v3 = vmul.f32 -1.442695, %v2485_v15  ;;  %v2492_v2 = vadd.f32 %v2440_v9, %v1696_v56  ;;  %v9423_v56 = vld [vmem:[#allocation7 + $0x13c] ss:$12 sps:$4 sm:$0xff]  }
 0xd04   :  { %v2442_v14 = vpop.f32.mrf.mxu0  ;;  %v2482_v34 = vpop.f32.mrf.mxu1 }
 0xd05   :  { %9113 = vpow2.f32 %v7109_v3  ;;  %v7110_v57 = vmul.f32 -1.442695, %v2492_v2  ;;  %v9418_v14 = vld [vmem:[#allocation7 + $0x168] ss:$12 sps:$4 sm:$0xff]   ;;  %v9424_v2 = vld [vmem:[#allocation7 + $0x138] ss:$12 sps:$4 sm:$0xff]  }
 0xd06   :  { %v2443_v23 = vpop.f32.mrf.mxu0  ;;  %v8052_v52 = vpop.f32.mrf.mxu1  ;;  %v9420_v34 = vld [vmem:[#allocation7 + $0x154] ss:$12 sps:$4 sm:$0xff]  }
 0xd07   :  { %9115 = vpow2.f32 %v7110_v57  ;;  %v9421_v23 = vld [vmem:[#allocation7 + $0x150] ss:$12 sps:$4 sm:$0xff]   ;;  %v9422_v52 = vld [vmem:[#allocation7 + $0x158] ss:$12 sps:$4 sm:$0xff]   ;;  %v9425_v57 = vld [vmem:[#allocation7 + $0x140] ss:$12 sps:$4 sm:$0xff]  }
 0xd12   :  { %v9114_v39 = vpop.eup %9113 }
 0xd13   :  { %v2489_v51 = vadd.f32 1.0, %v9114_v39  ;;  %v9426_v39 = vld [vmem:[#allocation7 + $0x124] ss:$12 sps:$4 sm:$0xff]  }
 0xd14   :  { %v9116_v8 = vpop.eup %9115 }
 0xd15   :  { %9117 = vrcp.f32 %v2489_v51  ;;  %v2496_v7 = vadd.f32 1.0, %v9116_v8  ;;  %v9427_v51 = vld [vmem:[#allocation7 + $0x120] ss:$12 sps:$4 sm:$0xff]   ;;  %v9428_v8 = vld [vmem:[#allocation7 + $0x128] ss:$12 sps:$4 sm:$0xff]  }
 0xd22   :  { %v9118_v18 = vpop.eup %9117 }
 0xd23   :  { %v2500_v20 = vmul.f32 %v9118_v18, %v2499_v61  ;;  %v9429_v61 = vld [vmem:[#allocation7 + $0x10c] ss:$12 sps:$4 sm:$0xff]   ;;  %v9430_v18 = vld [vmem:[#allocation7 + $0x108] ss:$12 sps:$4 sm:$0xff]  }
 0xd25   :  { %v2501_v32 = vadd.f32 %v2500_v20, %v1763_v50  ;;  %v9431_v50 = vld [vmem:[#allocation7 + $0x110] ss:$12 sps:$4 sm:$0xff]   ;;  %v9432_v20 = vld [vmem:[#allocation7 + $0xf4] ss:$12 sps:$4 sm:$0xff]  }
 0xd27   :  { %9119 = vtanh.f32 %v2501_v32  ;;  %v9433_v32 = vld [vmem:[#allocation7 + $0xf0] ss:$12 sps:$4 sm:$0xff]  }
 0xd28   :  { %9121 = vrcp.f32 %v2496_v7  ;;  %v9434_v7 = vld [vmem:[#allocation7 + $0xf8] ss:$12 sps:$4 sm:$0xff]  }
 0xd34   :  { %v9120_v25 = vpop.eup %9119 }
 0xd35   :  { %v2503_v53 = vsub.f32 %v10490_v24, %v9120_v25  ;;  %v9122_v31 = vpop.eup %9121 }
 0xd37   :  { %v2504_v15 = vmul.f32 %v9122_v31, %v2503_v53  ;;  %v9436_v53 = vld [vmem:[#allocation7 + $0xd8] ss:$12 sps:$4 sm:$0xff]   ;;  %v9437_v31 = vld [vmem:[#allocation7 + $0xe0] ss:$12 sps:$4 sm:$0xff]  }
 0xd39   :  { %v10537_v9 = vadd.f32 %v9120_v25, %v2504_v15  ;;  %v9435_v25 = vld [vmem:[#allocation7 + $0xdc] ss:$12 sps:$4 sm:$0xff]   ;;  %v9438_v15 = vld [vmem:[#allocation7 + $0xc4] ss:$12 sps:$4 sm:$0xff]  }
 0xd3b   :  { %v2510_v55 = vpack.c.bf16 %v10537_v9, %v10537_v9 }
 0xd3d   :  { %2544 = vmatmul.mubr.bf16.vlgmr.msra.gmra.mxu0 %v2510_v55  ;;  %8070 = vmatmul.mubr.bf16.vlgmr.msra.gmra.mxu1 %v2510_v55  ;;  %v9439_v55 = vld [vmem:[#allocation7 + $0xc0] ss:$12 sps:$4 sm:$0xff]  }
 0xd3e   :  { %2619 = vmatpush1.bf16.msra.mxu0 %v10158_v17  ;;  %8074 = vmatpush3.bf16.msra.mxu1 %v10198_v63  ;;  %v1698_v17 = vadd.f32 %v10306_v54, %v10324_v5 }
 0xd3f   :  { %2620 = vmatprep.subr.bf16.mxu0 %v10162_v33  ;;  %8075 = vmatprep.subr.bf16.mxu1 %v12069_v43 }
 0xd40   :  { %2650 = vmatprep.mubr.bf16.mxu0 %v12070_v21  ;;  %8089 = vmatprep.mubr.msk.bf16.mxu1 %vm9564_vm0, %v12069_v43 }
 0xd42   :  { %2621 = vmatpush1.bf16.msra.mxu0 %v10164_v59  ;;  %8076 = vmatpush3.bf16.msra.mxu1 %v10208_v11 }
 0xd43   :  { %2622 = vmatprep.subr.bf16.mxu0 %v10168_v58  ;;  %8077 = vmatprep.subr.bf16.mxu1 %v12069_v43 }
 0xd46   :  { %2623 = vmatpush1.bf16.msra.mxu0 %v10170_v48  ;;  %8078 = vmatpush3.bf16.msra.mxu1 %v10212_v19 }
 0xd47   :  { %2624 = vmatprep.subr.bf16.mxu0 %v10174_v4  ;;  %8079 = vmatprep.subr.bf16.mxu1 %v12069_v43 }
 0xd4a   :  { %2625 = vmatpush1.bf16.msra.mxu0 %v10176_v0  ;;  %8080 = vmatpush3.bf16.msra.mxu1 %v10216_v44  ;;  %v1766_v44 = vadd.f32 %v10332_v22, %v10346_v28  ;;  %v9419_v22 = vld [vmem:[#allocation7 + $0x170] ss:$12 sps:$4 sm:$0xff]  }
 0xd4b   :  { %2626 = vmatprep.subr.bf16.mxu0 %v10180_v12  ;;  %8081 = vmatprep.subr.bf16.mxu1 %v12069_v43 }
 0xd4e   :  { %2627 = vmatpush1.bf16.msra.mxu0 %v10182_v30  ;;  %8082 = vmatpush3.bf16.msra.mxu1 %v10220_v29 }
 0xd4f   :  { %2628 = vmatprep.subr.bf16.mxu0 %v10186_v27  ;;  %8083 = vmatprep.subr.bf16.mxu1 %v12069_v43 }
 0xd52   :  { %2629 = vmatpush1.bf16.msra.mxu0 %v10188_v37  ;;  %8084 = vmatpush3.bf16.msra.mxu1 %v10224_v35 }
 0xd53   :  { %2630 = vmatprep.subr.bf16.mxu0 %v10192_v41  ;;  %8085 = vmatprep.subr.bf16.mxu1 %v12069_v43  ;;  %v1700_v41 = vadd.f32 %v10310_v16, %v10336_v26 }
 0xd56   :  { %2631 = vmatpush1.bf16.msra.mxu0 %v10194_v40  ;;  %8086 = vmatpush3.bf16.msra.mxu1 %v10228_v46 }
 0xd57   :  { %2632 = vmatprep.subr.bf16.mxu0 %v10196_v42  ;;  %8087 = vmatprep.subr.bf16.mxu1 %v12069_v43 }
 0xd5a   :  { %2633 = vmatpush1.bf16.msra.mxu0 %v10203_v45  ;;  %8088 = vmatpush3.bf16.msra.mxu1 %v10232_v49 }
 0xd5b   :  { %2725 = vmatprep.subr.bf16.mxu0 %v10156_v36  ;;  %8093 = vmatprep.subr.bf16.mxu1 %v12069_v43 }
 0xdfd   :  { %v2545_v33 = vpop.f32.mrf.mxu0  ;;  %v2586_v59 = vpop.f32.mrf.mxu1 }
 0xdfe   :  { %v2592_v58 = vadd.f32 %v2545_v33, %v1698_v17  ;;  %v2606_v11 = vadd.f32 %v10342_v10, %v2586_v59  ;;  %v9440_v17 = vld [vmem:[#allocation7 + $0xc8] ss:$12 sps:$4 sm:$0xff]   ;;  %v8803_v33 = vld [vmem:[#allocation5 + $0x22c] ss:$12 sps:$4 sm:$0xff]   ;;  %v8804_v59 = vld [vmem:[#allocation5 + $0x230] ss:$12 sps:$4 sm:$0xff]  }
 0xdff   :  { %v2547_v48 = vpop.f32.mrf.mxu0  ;;  %v8071_v4 = vpop.f32.mrf.mxu1 }
 0xe00   :  { %v7111_v0 = vmul.f32 -1.442695, %v2592_v58  ;;  %v2599_v36 = vadd.f32 %v2547_v48, %v1700_v41  ;;  %v1704_v58 = vadd.f32 %v10315_v6, %v10324_v5 }
 0xe01   :  { %v2549_v12 = vpop.f32.mrf.mxu0  ;;  %v2589_v30 = vpop.f32.mrf.mxu1 }
 0xe02   :  { %9123 = vpow2.f32 %v7111_v0  ;;  %v7112_v40 = vmul.f32 -1.442695, %v2599_v36 }
 0xe03   :  { %v2550_v27 = vpop.f32.mrf.mxu0  ;;  %v8072_v37 = vpop.f32.mrf.mxu1 }
 0xe04   :  { %9125 = vpow2.f32 %v7112_v40 }
 0xe0f   :  { %v9124_v42 = vpop.eup %9123 }
 0xe10   :  { %v2596_v63 = vadd.f32 1.0, %v9124_v42  ;;  %v12082_v42 = vld [vmem:[#allocation14_spill] sm:$0xff] }
 0xe11   :  { %v9126_v45 = vpop.eup %9125 }
 0xe12   :  { %9127 = vrcp.f32 %v2596_v63  ;;  %v2603_v46 = vadd.f32 1.0, %v9126_v45  ;;  %v1706_v63 = vadd.f32 %v12082_v42, %v10336_v26  ;;  %v10659_v42 = vld [vmem:[#allocation7 + $0x198] ss:$12 sps:$4 sm:$0xff]  }
 0xe1f   :  { %v9128_v19 = vpop.eup %9127 }
 0xe20   :  { %v2607_v29 = vmul.f32 %v9128_v19, %v2606_v11 }
 0xe22   :  { %v2608_v35 = vadd.f32 %v2607_v29, %v1766_v44 }
 0xe24   :  { %9129 = vtanh.f32 %v2608_v35 }
 0xe25   :  { %9131 = vrcp.f32 %v2603_v46  ;;  %v12083_v46 = vld [vmem:[#allocation15_spill] sm:$0xff] }
 0xe31   :  { %v9130_v49 = vpop.eup %9129 }
 0xe32   :  { %v2610_v54 = vsub.f32 %v10537_v9, %v9130_v49  ;;  %v9132_v16 = vpop.eup %9131 }
 0xe34   :  { %v2611_v38 = vmul.f32 %v9132_v16, %v2610_v54 }
 0xe36   :  { %v10584_v60 = vadd.f32 %v9130_v49, %v2611_v38  ;;  %v1771_v49 = vadd.f32 %v12083_v46, %v10346_v28  ;;  %v10693_v46 = vld [vmem:[#allocation7 + $0x1a0] ss:$12 sps:$4 sm:$0xff]  }
 0xe38   :  { %v2617_v3 = vpack.c.bf16 %v10584_v60, %v10584_v60 }
 0xe3a   :  { %2651 = vmatmul.mubr.bf16.vlgmr.msra.gmra.mxu0 %v2617_v3  ;;  %8090 = vmatmul.mubr.bf16.vlgmr.msra.gmra.mxu1 %v2617_v3 }
 0xe3b   :  { %2726 = vmatpush1.bf16.msra.mxu0 %v9418_v14  ;;  %8094 = vmatpush3.bf16.msra.mxu1 %v9419_v22 }
 0xe3c   :  { %2727 = vmatprep.subr.bf16.mxu0 %v9420_v34  ;;  %8095 = vmatprep.subr.bf16.mxu1 %v12069_v43 }
 0xe3d   :  { %2757 = vmatprep.mubr.bf16.mxu0 %v12070_v21  ;;  %8109 = vmatprep.mubr.msk.bf16.mxu1 %vm9564_vm0, %v12069_v43 }
 0xe3f   :  { %2728 = vmatpush1.bf16.msra.mxu0 %v9421_v23  ;;  %8096 = vmatpush3.bf16.msra.mxu1 %v9422_v52  ;;  %v8801_v52 = vld [vmem:[#allocation5 + $0x228] ss:$12 sps:$4 sm:$0xff]  }
 0xe40   :  { %2729 = vmatprep.subr.bf16.mxu0 %v9423_v56  ;;  %8097 = vmatprep.subr.bf16.mxu1 %v12069_v43  ;;  %v8807_v56 = vld [vmem:[#allocation5 + $0x214] ss:$12 sps:$4 sm:$0xff]  }
 0xe43   :  { %2730 = vmatpush1.bf16.msra.mxu0 %v9424_v2  ;;  %8098 = vmatpush3.bf16.msra.mxu1 %v9425_v57  ;;  %v8808_v2 = vld [vmem:[#allocation5 + $0x218] ss:$12 sps:$4 sm:$0xff]   ;;  %v2837_v57 = vpack.c.bf16 %v10396_v62, %v10349_v1  ;;  %v8813_v1 = vld [vmem:[#allocation5 + $0x1e0] ss:$12 sps:$4 sm:$0xff]  }
 0xe44   :  { %2731 = vmatprep.subr.bf16.mxu0 %v9426_v39  ;;  %8099 = vmatprep.subr.bf16.mxu1 %v12069_v43  ;;  %v8805_v39 = vld [vmem:[#allocation5 + $0x210] ss:$12 sps:$4 sm:$0xff]   ;;  %v8819_v62 = vld [vmem:[#allocation5 + $0x1cc] ss:$12 sps:$4 sm:$0xff]  }
 0xe47   :  { %2732 = vmatpush1.bf16.msra.mxu0 %v9427_v51  ;;  %8100 = vmatpush3.bf16.msra.mxu1 %v9428_v8  ;;  %v8811_v51 = vld [vmem:[#allocation5 + $0x1fc] ss:$12 sps:$4 sm:$0xff]   ;;  %v8812_v8 = vld [vmem:[#allocation5 + $0x200] ss:$12 sps:$4 sm:$0xff]  }
 0xe48   :  { %2733 = vmatprep.subr.bf16.mxu0 %v9429_v61  ;;  %8101 = vmatprep.subr.bf16.mxu1 %v12069_v43  ;;  %v8809_v61 = vld [vmem:[#allocation5 + $0x1f8] ss:$12 sps:$4 sm:$0xff]  }
 0xe4b   :  { %2734 = vmatpush1.bf16.msra.mxu0 %v9430_v18  ;;  %8102 = vmatpush3.bf16.msra.mxu1 %v9431_v50  ;;  %v8815_v18 = vld [vmem:[#allocation5 + $0x1e4] ss:$12 sps:$4 sm:$0xff]   ;;  %v8816_v50 = vld [vmem:[#allocation5 + $0x1e8] ss:$12 sps:$4 sm:$0xff]  }
 0xe4c   :  { %2735 = vmatprep.subr.bf16.mxu0 %v9432_v20  ;;  %8103 = vmatprep.subr.bf16.mxu1 %v12069_v43  ;;  %v8820_v20 = vld [vmem:[#allocation5 + $0x1d0] ss:$12 sps:$4 sm:$0xff]  }
 0xe4f   :  { %2736 = vmatpush1.bf16.msra.mxu0 %v9433_v32  ;;  %8104 = vmatpush3.bf16.msra.mxu1 %v9434_v7  ;;  %v8817_v32 = vld [vmem:[#allocation5 + $0x1c8] ss:$12 sps:$4 sm:$0xff]  }
 0xe50   :  { %2737 = vmatprep.subr.bf16.mxu0 %v9435_v25  ;;  %8105 = vmatprep.subr.bf16.mxu1 %v12069_v43  ;;  %v8823_v7 = vld [vmem:[#allocation5 + $0x1b4] ss:$12 sps:$4 sm:$0xff]   ;;  %v8824_v25 = vld [vmem:[#allocation5 + $0x1b8] ss:$12 sps:$4 sm:$0xff]  }
 0xe53   :  { %2738 = vmatpush1.bf16.msra.mxu0 %v9436_v53  ;;  %8106 = vmatpush3.bf16.msra.mxu1 %v9437_v31  ;;  %v8821_v53 = vld [vmem:[#allocation5 + $0x1b0] ss:$12 sps:$4 sm:$0xff]  }
 0xe54   :  { %2739 = vmatprep.subr.bf16.mxu0 %v9438_v15  ;;  %8107 = vmatprep.subr.bf16.mxu1 %v12069_v43  ;;  %v8827_v31 = vld [vmem:[#allocation5 + $0x19c] ss:$12 sps:$4 sm:$0xff]   ;;  %v8828_v15 = vld [vmem:[#allocation5 + $0x1a0] ss:$12 sps:$4 sm:$0xff]  }
 0xe57   :  { %2740 = vmatpush1.bf16.msra.mxu0 %v9439_v55  ;;  %8108 = vmatpush3.bf16.msra.mxu1 %v9440_v17  ;;  %v8825_v55 = vld [vmem:[#allocation5 + $0x198] ss:$12 sps:$4 sm:$0xff]  }
 0xe58   :  { %3020 = vmatprep.subr.bf16.mxu0 %v8803_v33  ;;  %8113 = vmatprep.subr.bf16.mxu1 %v8804_v59  ;;  %v8831_v17 = vld [vmem:[#allocation5 + $0x184] ss:$12 sps:$4 sm:$0xff]   ;;  %v8832_v33 = vld [vmem:[#allocation5 + $0x188] ss:$12 sps:$4 sm:$0xff]  }
 0xefa   :  { %v2652_v48 = vpop.f32.mrf.mxu0  ;;  %v2693_v4 = vpop.f32.mrf.mxu1 }
 0xefb   :  { %v2699_v0 = vadd.f32 %v2652_v48, %v1704_v58  ;;  %v2713_v29 = vadd.f32 %v10342_v10, %v2693_v4  ;;  %v2838_v58 = vpack.c.bf16 %v10490_v24, %v10443_v13  ;;  %v2839_v48 = vpack.c.bf16 %v10584_v60, %v10537_v9  ;;  %v10621_v4 = vld [vmem:[#allocation7 + $0x22c] ss:$12 sps:$4 sm:$0xff]   ;;  %v10627_v13 = vld [vmem:[#allocation7 + $0x214] ss:$12 sps:$4 sm:$0xff]   ;;  %v10629_v24 = vld [vmem:[#allocation7 + $0x210] ss:$12 sps:$4 sm:$0xff]  }
 0xefc   :  { %v2654_v12 = vpop.f32.mrf.mxu0  ;;  %v8091_v30 = vpop.f32.mrf.mxu1  ;;  %v10633_v9 = vld [vmem:[#allocation7 + $0x1fc] ss:$12 sps:$4 sm:$0xff]  }
 0xefd   :  { %v7113_v27 = vmul.f32 -1.442695, %v2699_v0  ;;  %v2706_v45 = vadd.f32 %v2654_v12, %v1706_v63  ;;  %v10623_v0 = vld [vmem:[#allocation7 + $0x228] ss:$12 sps:$4 sm:$0xff]   ;;  %v10639_v12 = vld [vmem:[#allocation7 + $0x1e4] ss:$12 sps:$4 sm:$0xff]  }
 0xefe   :  { %v2656_v37 = vpop.f32.mrf.mxu0  ;;  %v2696_v41 = vpop.f32.mrf.mxu1  ;;  %v10641_v30 = vld [vmem:[#allocation7 + $0x1e0] ss:$12 sps:$4 sm:$0xff]   ;;  %v10661_v63 = vld [vmem:[#allocation7 + $0x184] ss:$12 sps:$4 sm:$0xff]  }
 0xeff   :  { %9133 = vpow2.f32 %v7113_v27  ;;  %v7114_v11 = vmul.f32 -1.442695, %v2706_v45  ;;  %v10645_v27 = vld [vmem:[#allocation7 + $0x1cc] ss:$12 sps:$4 sm:$0xff]   ;;  %v10647_v37 = vld [vmem:[#allocation7 + $0x1c8] ss:$12 sps:$4 sm:$0xff]  }
 0xf00   :  { %v2657_v36 = vpop.f32.mrf.mxu0  ;;  %v8092_v40 = vpop.f32.mrf.mxu1  ;;  %v10651_v41 = vld [vmem:[#allocation7 + $0x1b4] ss:$12 sps:$4 sm:$0xff]   ;;  %v10663_v45 = vld [vmem:[#allocation7 + $0x230] ss:$12 sps:$4 sm:$0xff]  }
 0xf01   :  { %9135 = vpow2.f32 %v7114_v11  ;;  %v10653_v36 = vld [vmem:[#allocation7 + $0x1b0] ss:$12 sps:$4 sm:$0xff]   ;;  %v10668_v11 = vld [vmem:[#allocation7 + $0x180] ss:$12 sps:$4 sm:$0xff]  }
 0xf02   :  { %v10657_v40 = vld [vmem:[#allocation7 + $0x19c] ss:$12 sps:$4 sm:$0xff]  }
 0xf0c   :  { %v9134_v19 = vpop.eup %9133 }
 0xf0d   :  { %v2703_v44 = vadd.f32 1.0, %v9134_v19  ;;  %v10673_v19 = vld [vmem:[#allocation7 + $0x218] ss:$12 sps:$4 sm:$0xff]  }
 0xf0e   :  { %v9136_v6 = vpop.eup %9135 }
 0xf0f   :  { %9137 = vrcp.f32 %v2703_v44  ;;  %v2710_v38 = vadd.f32 1.0, %v9136_v6  ;;  %v10677_v44 = vld [vmem:[#allocation7 + $0x200] ss:$12 sps:$4 sm:$0xff]   ;;  %v10681_v6 = vld [vmem:[#allocation7 + $0x1e8] ss:$12 sps:$4 sm:$0xff]  }
 0xf1c   :  { %v9138_v35 = vpop.eup %9137 }
 0xf1d   :  { %v2714_v54 = vmul.f32 %v9138_v35, %v2713_v29  ;;  %v10685_v29 = vld [vmem:[#allocation7 + $0x1d0] ss:$12 sps:$4 sm:$0xff]   ;;  %v10689_v35 = vld [vmem:[#allocation7 + $0x1b8] ss:$12 sps:$4 sm:$0xff]  }
 0xf1f   :  { %v2715_v16 = vadd.f32 %v2714_v54, %v1771_v49  ;;  %v10697_v49 = vld [vmem:[#allocation7 + $0x188] ss:$12 sps:$4 sm:$0xff]  }
 0xf20   :  { %v12084_v54 = vld [vmem:[#allocation16_spill] sm:$0xff] }
 0xf21   :  { %9139 = vtanh.f32 %v2715_v16  ;;  %v1708_v16 = vadd.f32 %v12084_v54, %v10324_v5 }
 0xf22   :  { %9141 = vrcp.f32 %v2710_v38 }
 0xf2e   :  { %v9140_v3 = vpop.eup %9139 }
 0xf2f   :  { %v2717_v14 = vsub.f32 %v10584_v60, %v9140_v3  ;;  %v9142_v22 = vpop.eup %9141  ;;  %v10635_v60 = vld [vmem:[#allocation7 + $0x1f8] ss:$12 sps:$4 sm:$0xff]  }
 0xf31   :  { %v2718_v34 = vmul.f32 %v9142_v22, %v2717_v14 }
 0xf33   :  { %v10606_v23 = vadd.f32 %v9140_v3, %v2718_v34 }
 0xf35   :  { %v2724_v10 = vpack.c.bf16 %v10606_v23, %v10606_v23 }
 0xf37   :  { %2758 = vmatmul.mubr.bf16.vlgmr.msra.gmra.mxu0 %v2724_v10  ;;  %8110 = vmatmul.mubr.bf16.vlgmr.msra.gmra.mxu1 %v2724_v10 }
 0xf38   :  { %3021 = vmatpush1.bf16.msra.mxu0 %v8801_v52  ;;  %8114 = vmatpush3.bf16.msra.mxu1 %v8804_v59  ;;  %v8829_v59 = vld [vmem:[#allocation5 + $0x180] ss:$12 sps:$4 sm:$0xff]  }
 0xf39   :  { %8129 = vmatprep.mubr.bf16.mxu1 %v2837_v57  ;;  %3022 = vmatprep.subr.bf16.mxu0 %v8807_v56 }
 0xf3a   :  { %8115 = vmatprep.subr.bf16.mxu1 %v8808_v2  ;;  %3052 = vmatprep.mubr.bf16.mxu0 %v12070_v21 }
 0xf3c   :  { %3023 = vmatpush1.bf16.msra.mxu0 %v8805_v39  ;;  %8116 = vmatpush3.bf16.msra.mxu1 %v8808_v2  ;;  %v12085_v39 = vld [vmem:[#allocation18_spill] sm:$0xff] }
 0xf3d   :  { %3024 = vmatprep.subr.bf16.mxu0 %v8811_v51  ;;  %8117 = vmatprep.subr.bf16.mxu1 %v8812_v8  ;;  %v1710_v51 = vadd.f32 %v12085_v39, %v10336_v26 }
 0xf40   :  { %3025 = vmatpush1.bf16.msra.mxu0 %v8809_v61  ;;  %8118 = vmatpush3.bf16.msra.mxu1 %v8812_v8 }
 0xf41   :  { %3026 = vmatprep.subr.bf16.mxu0 %v8815_v18  ;;  %8119 = vmatprep.subr.bf16.mxu1 %v8816_v50 }
 0xf44   :  { %3027 = vmatpush1.bf16.msra.mxu0 %v8813_v1  ;;  %8120 = vmatpush3.bf16.msra.mxu1 %v8816_v50  ;;  %v9441_v1 = vld [vmem:[%s12047_s4 + $0x1] ss:$0 sm:$0xff] }
 0xf45   :  { %3028 = vmatprep.subr.bf16.mxu0 %v8819_v62  ;;  %8121 = vmatprep.subr.bf16.mxu1 %v8820_v20 }
 0xf48   :  { %3029 = vmatpush1.bf16.msra.mxu0 %v8817_v32  ;;  %8122 = vmatpush3.bf16.msra.mxu1 %v8820_v20  ;;  %v12086_v32 = vld [vmem:[#allocation17_spill] sm:$0xff] }
 0xf49   :  { %3030 = vmatprep.subr.bf16.mxu0 %v8823_v7  ;;  %8123 = vmatprep.subr.bf16.mxu1 %v8824_v25  ;;  %v1774_v7 = vadd.f32 %v12086_v32, %v10346_v28  ;;  %v12087_v28 = vmov 0.0|0.0  }
 0xf4c   :  { %3031 = vmatpush1.bf16.msra.mxu0 %v8821_v53  ;;  %8124 = vmatpush3.bf16.msra.mxu1 %v8824_v25 }
 0xf4d   :  { %3032 = vmatprep.subr.bf16.mxu0 %v8827_v31  ;;  %8125 = vmatprep.subr.bf16.mxu1 %v8828_v15 }
 0xf50   :  { %3033 = vmatpush1.bf16.msra.mxu0 %v8825_v55  ;;  %8126 = vmatpush3.bf16.msra.mxu1 %v8828_v15 }
 0xf51   :  { %3034 = vmatprep.subr.bf16.mxu0 %v8831_v17  ;;  %8127 = vmatprep.subr.bf16.mxu1 %v8832_v33 }
 0xf54   :  { %3035 = vmatpush1.bf16.msra.mxu0 %v8829_v59  ;;  %8128 = vmatpush3.bf16.msra.mxu1 %v8832_v33 }
 0xf55   :  { %8137 = vmatprep.subr.bf16.mxu1 %v12069_v43  ;;  %3357 = vmatprep.subr.bf16.mxu0 %v10621_v4 }
 0xf57   :  { %3053 = vmatmul.mubr.bf16.vlgmr.msra.gmra.mxu0 %v2837_v57  ;;  %8130 = vmatmul.mubr.bf16.vlgmr.msra.gmra.mxu1 %v2838_v58 }
 0xf58   :  { %8133 = vmatprep.mubr.bf16.mxu1 %v2839_v48  ;;  %3062 = vmatprep.mubr.bf16.mxu0 %v12070_v21 }
 0xf59   :  { %3358 = vmatpush1.bf16.msra.mxu0 %v10623_v0  ;;  %8138 = vmatpush3.bf16.msra.mxu1 %v10663_v45 }
 0xf5a   :  { %3359 = vmatprep.subr.bf16.mxu0 %v10627_v13  ;;  %8139 = vmatprep.subr.bf16.mxu1 %v12069_v43 }
 0xf5d   :  { %3360 = vmatpush1.bf16.msra.mxu0 %v10629_v24  ;;  %8140 = vmatpush3.bf16.msra.mxu1 %v10673_v19 }
 0xf5e   :  { %3361 = vmatprep.subr.bf16.mxu0 %v10633_v9  ;;  %8141 = vmatprep.subr.bf16.mxu1 %v12069_v43 }
 0xf5f   :  { %3063 = vmatmul.mubr.bf16.gmra.mxu0 %v2838_v58 }
 0xf60   :  { %3072 = vmatprep.mubr.bf16.mxu0 %v12070_v21 }
 0xf61   :  { %3362 = vmatpush1.bf16.msra.mxu0 %v10635_v60  ;;  %8142 = vmatpush3.bf16.msra.mxu1 %v10677_v44 }
 0xf62   :  { %3363 = vmatprep.subr.bf16.mxu0 %v10639_v12  ;;  %8143 = vmatprep.subr.bf16.mxu1 %v12069_v43 }
 0xf65   :  { %3364 = vmatpush1.bf16.msra.mxu0 %v10641_v30  ;;  %8144 = vmatpush3.bf16.msra.mxu1 %v10681_v6 }
 0xf66   :  { %3365 = vmatprep.subr.bf16.mxu0 %v10645_v27  ;;  %8145 = vmatprep.subr.bf16.mxu1 %v12069_v43 }
 0xf67   :  { %3073 = vmatmul.mubr.bf16.gmra.mxu0 %v2839_v48 }
 0xf68   :  { %3082 = vmatprep.mubr.bf16.mxu0 %v12070_v21 }
 0xf69   :  { %3366 = vmatpush1.bf16.msra.mxu0 %v10647_v37  ;;  %8146 = vmatpush3.bf16.msra.mxu1 %v10685_v29 }
 0xf6a   :  { %3367 = vmatprep.subr.bf16.mxu0 %v10651_v41  ;;  %8147 = vmatprep.subr.bf16.mxu1 %v12069_v43 }
 0xf6d   :  { %3368 = vmatpush1.bf16.msra.mxu0 %v10653_v36  ;;  %8148 = vmatpush3.bf16.msra.mxu1 %v10689_v35 }
 0xf6e   :  { %3369 = vmatprep.subr.bf16.mxu0 %v10657_v40  ;;  %8149 = vmatprep.subr.bf16.mxu1 %v12069_v43 }
 0xf71   :  { %3370 = vmatpush1.bf16.msra.mxu0 %v10659_v42  ;;  %8150 = vmatpush3.bf16.msra.mxu1 %v10693_v46 }
 0xf72   :  { %3371 = vmatprep.subr.bf16.mxu0 %v10661_v63  ;;  %8151 = vmatprep.subr.bf16.mxu1 %v12069_v43 }
 0xf75   :  { %3372 = vmatpush1.bf16.msra.mxu0 %v10668_v11  ;;  %8152 = vmatpush3.bf16.msra.mxu1 %v10697_v49 }
 0xf76   :  { %3464 = vmatprep.subr.bf16.mxu0 %v10621_v4  ;;  %8157 = vmatprep.subr.bf16.mxu1 %v12069_v43 }
 0xff7   :  { %v2759_v38 = vpop.f32.mrf.mxu0  ;;  %v2800_v3 = vpop.f32.mrf.mxu1 }
 0xff8   :  { %v2806_v14 = vadd.f32 %v2759_v38, %v1708_v16  ;;  %v2820_v62 = vadd.f32 %v9441_v1, %v2800_v3 }
 0xff9   :  { %v2761_v22 = vpop.f32.mrf.mxu0  ;;  %v8111_v34 = vpop.f32.mrf.mxu1 }
 0xffa   :  { %v7115_v52 = vmul.f32 -1.442695, %v2806_v14  ;;  %v2813_v8 = vadd.f32 %v2761_v22, %v1710_v51  ;;  %v7117_v51 = vld [vmem:[%s12046_s3 + $0x6] sm:$0x7] }
 0xffb   :  { %v2763_v10 = vpop.f32.mrf.mxu0  ;;  %v2803_v56 = vpop.f32.mrf.mxu1 }
 0xffc   :  { %9143 = vpow2.f32 %v7115_v52  ;;  %v7116_v61 = vmul.f32 -1.442695, %v2813_v8 }
 0xffd   :  { %v2764_v2 = vpop.f32.mrf.mxu0  ;;  %v8112_v57 = vpop.f32.mrf.mxu1 }
 0xffe   :  { %9145 = vpow2.f32 %v7116_v61 }
0x1009   :  { %v9144_v18 = vpop.eup %9143 }
0x100a   :  { %v2810_v50 = vadd.f32 1.0, %v9144_v18 }
0x100b   :  { %v9146_v5 = vpop.eup %9145 }
0x100c   :  { %9147 = vrcp.f32 %v2810_v50  ;;  %v2817_v31 = vadd.f32 1.0, %v9146_v5  ;;  %v12090_v5 = vld [vmem:[#allocation11_spill] sm:$0xff] }
0x100d   :  { %v10791_v1 = vrot.slane %v7117_v51, %v12090_v5  ;;  %v10803_v5 = vrot.slane %v7117_v51, %v12080_v47 }
0x1017   :  { %v10765_v22 = vpop.f32.mrf.mxu1 }
0x1019   :  { %v9148_v20 = vpop.eup %9147  ;;  %v3127_v52 = vpop.f32.mrf.mxu1 }
0x101a   :  { %v2821_v25 = vmul.f32 %v9148_v20, %v2820_v62 }
0x101b   :  { %v10771_v56 = vpop.f32.mrf.mxu1 }
0x101c   :  { %v2822_v53 = vadd.f32 %v2821_v25, %v1774_v7 }
0x101d   :  { %v10775_v57 = vpop.f32.mrf.mxu1 }
0x101e   :  { %9149 = vtanh.f32 %v2822_v53 }
0x101f   :  { %9151 = vrcp.f32 %v2817_v31 }
0x102b   :  { %v9150_v26 = vpop.eup %9149 }
0x102c   :  { %v2824_v15 = vsub.f32 %v10606_v23, %v9150_v26  ;;  %v9152_v55 = vpop.eup %9151 }
0x102e   :  { %v2825_v17 = vmul.f32 %v9152_v55, %v2824_v15 }
0x1030   :  { %v2826_v33 = vadd.f32 %v9150_v26, %v2825_v17 }
0x1032   :  { %v2840_v59 = vpack.c.bf16 %v2826_v33, %v10606_v23  ;;  %v3054_v23 = vpop.f32.mrf.mxu0 }
0x1033   :  { %v3055_v25 = vadd.f32 %v3054_v23, %v10791_v1 }
0x1034   :  { %3083 = vmatmul.mubr.bf16.gmra.mxu0 %v2840_v59  ;;  %8134 = vmatmul.mubr.bf16.gmra.mxu1 %v2840_v59  ;;  %v3056_v58 = vpop.f32.mrf.mxu0 }
0x1035   :  { %3389 = vmatprep.mubr.bf16.mxu0 %v12070_v21  ;;  %8153 = vmatprep.mubr.msk.bf16.mxu1 %vm9564_vm0, %v12069_v43 }
0x1036   :  { %v10753_v48 = vpop.f32.mrf.mxu0 }
0x1038   :  { %v10755_v54 = vpop.f32.mrf.mxu0 }
0x103a   :  { %v10757_v16 = vpop.f32.mrf.mxu0 }
0x103c   :  { %3390 = vmatmul.mubr.bf16.vlgmr.msra.gmra.mxu0 %v12087_v28  ;;  %8154 = vmatmul.mubr.bf16.vlgmr.msra.gmra.mxu1 %v12087_v28  ;;  %v10759_v38 = vpop.f32.mrf.mxu0 }
0x103d   :  { %3465 = vmatpush1.bf16.msra.mxu0 %v10623_v0  ;;  %8158 = vmatpush3.bf16.msra.mxu1 %v10663_v45 }
0x103e   :  { %3466 = vmatprep.subr.bf16.mxu0 %v10627_v13  ;;  %8159 = vmatprep.subr.bf16.mxu1 %v12069_v43  ;;  %v10761_v3 = vpop.f32.mrf.mxu0 }
0x103f   :  { %3496 = vmatprep.mubr.bf16.mxu0 %v12070_v21  ;;  %8173 = vmatprep.mubr.msk.bf16.mxu1 %vm9564_vm0, %v12069_v43 }
0x1040   :  { %v10763_v14 = vpop.f32.mrf.mxu0 }
0x1041   :  { %3467 = vmatpush1.bf16.msra.mxu0 %v10629_v24  ;;  %8160 = vmatpush3.bf16.msra.mxu1 %v10673_v19 }
0x1042   :  { %3468 = vmatprep.subr.bf16.mxu0 %v10633_v9  ;;  %8161 = vmatprep.subr.bf16.mxu1 %v12069_v43  ;;  %v10767_v34 = vpop.f32.mrf.mxu0 }
0x1044   :  { %v10769_v10 = vpop.f32.mrf.mxu0 }
0x1045   :  { %3469 = vmatpush1.bf16.msra.mxu0 %v10635_v60  ;;  %8162 = vmatpush3.bf16.msra.mxu1 %v10677_v44 }
0x1046   :  { %3470 = vmatprep.subr.bf16.mxu0 %v10639_v12  ;;  %8163 = vmatprep.subr.bf16.mxu1 %v12069_v43  ;;  %v10773_v2 = vpop.f32.mrf.mxu0 }
0x1048   :  { %v10777_v39 = vpop.f32.mrf.mxu0 }
0x1049   :  { %3471 = vmatpush1.bf16.msra.mxu0 %v10641_v30  ;;  %8164 = vmatpush3.bf16.msra.mxu1 %v10681_v6 }
0x104a   :  { %3472 = vmatprep.subr.bf16.mxu0 %v10645_v27  ;;  %8165 = vmatprep.subr.bf16.mxu1 %v12069_v43 }
0x104d   :  { %3473 = vmatpush1.bf16.msra.mxu0 %v10647_v37  ;;  %8166 = vmatpush3.bf16.msra.mxu1 %v10685_v29 }
0x104e   :  { %3474 = vmatprep.subr.bf16.mxu0 %v10651_v41  ;;  %8167 = vmatprep.subr.bf16.mxu1 %v12069_v43 }
0x1051   :  { %3475 = vmatpush1.bf16.msra.mxu0 %v10653_v36  ;;  %8168 = vmatpush3.bf16.msra.mxu1 %v10689_v35 }
0x1052   :  { %3476 = vmatprep.subr.bf16.mxu0 %v10657_v40  ;;  %8169 = vmatprep.subr.bf16.mxu1 %v12069_v43 }
0x1055   :  { %3477 = vmatpush1.bf16.msra.mxu0 %v10659_v42  ;;  %8170 = vmatpush3.bf16.msra.mxu1 %v10693_v46 }
0x1056   :  { %3478 = vmatprep.subr.bf16.mxu0 %v10661_v63  ;;  %8171 = vmatprep.subr.bf16.mxu1 %v12069_v43 }
0x1059   :  { %3479 = vmatpush1.bf16.msra.mxu0 %v10668_v11  ;;  %8172 = vmatpush3.bf16.msra.mxu1 %v10697_v49 }
0x105a   :  { %3571 = vmatprep.subr.bf16.mxu0 %v10621_v4  ;;  %8177 = vmatprep.subr.bf16.mxu1 %v12069_v43 }
0x10f4   :  { %v10782_v8 = vpop.f32.mrf.mxu0  ;;  %v10784_v61 = vpop.f32.mrf.mxu1 }
0x10f5   :  { %12088 = vst [vmem:[#allocation13_spill] sm:$0xff] %v10784_v61 }
0x10f6   :  { %v10786_v18 = vpop.f32.mrf.mxu0  ;;  %v10788_v50 = vpop.f32.mrf.mxu1 }
0x10f7   :  { %12089 = vst [vmem:[#allocation14_spill] sm:$0xff] %v10786_v18 }
0x10f8   :  { %v10793_v62 = vpop.f32.mrf.mxu0  ;;  %v10795_v20 = vpop.f32.mrf.mxu1 }
0x10f9   :  { %12091 = vst [vmem:[#allocation15_spill] sm:$0xff] %v10793_v62  ;;  %12092 = vst [vmem:[#allocation16_spill] sm:$0xff] %v10795_v20 }
0x10fa   :  { %v10797_v32 = vpop.f32.mrf.mxu0  ;;  %v10799_v7 = vpop.f32.mrf.mxu1 }
0x10fb   :  { %12093 = vst [vmem:[#allocation18_spill] sm:$0xff] %v10797_v32  ;;  %v3057_v32 = vadd.f32 %v3056_v58, %v10803_v5 }
0x10fc   :  { %v3391_v53 = vpop.f32.mrf.mxu0  ;;  %v3432_v31 = vpop.f32.mrf.mxu1 }
0x10fd   :  { %v3438_v26 = vadd.f32 %v3391_v53, %v3055_v25  ;;  %v10809_v25 = vld [vmem:[%s12047_s4 + $0x2] ss:$0 sm:$0xff] }
0x10fe   :  { %v3393_v15 = vpop.f32.mrf.mxu0  ;;  %v8155_v55 = vpop.f32.mrf.mxu1  ;;  %v3452_v53 = vadd.f32 %v10809_v25, %v3432_v31 }
0x10ff   :  { %v7168_v17 = vmul.f32 -1.442695, %v3438_v26  ;;  %v3445_v62 = vadd.f32 %v3393_v15, %v3057_v32  ;;  %v12094_v55 = vld [vmem:[#allocation12_spill] sm:$0xff] }
0x1100   :  { %v3395_v33 = vpop.f32.mrf.mxu0  ;;  %v3435_v59 = vpop.f32.mrf.mxu1 }
0x1101   :  { %9153 = vpow2.f32 %v7168_v17  ;;  %v7169_v61 = vmul.f32 -1.442695, %v3445_v62  ;;  %v10813_v17 = vrot.slane %v7117_v51, %v12094_v55 }
0x1102   :  { %v3396_v28 = vpop.f32.mrf.mxu0  ;;  %v8156_v20 = vpop.f32.mrf.mxu1 }
0x1103   :  { %9155 = vpow2.f32 %v7169_v61  ;;  %v3128_v58 = vadd.f32 %v3127_v52, %v10813_v17  ;;  %v3059_v52 = vadd.f32 %v10753_v48, %v10791_v1 }
0x110e   :  { %v9154_v18 = vpop.eup %9153 }
0x110f   :  { %v3442_v23 = vadd.f32 1.0, %v9154_v18 }
0x1110   :  { %v9156_v26 = vpop.eup %9155 }
0x1111   :  { %9157 = vrcp.f32 %v3442_v23  ;;  %v3449_v62 = vadd.f32 1.0, %v9156_v26 }
0x111e   :  { %v9158_v28 = vpop.eup %9157 }
0x111f   :  { %v3453_v20 = vmul.f32 %v9158_v28, %v3452_v53 }
0x1121   :  { %v3454_v32 = vadd.f32 %v3453_v20, %v3128_v58 }
0x1123   :  { %9159 = vtanh.f32 %v3454_v32 }
0x1124   :  { %9161 = vrcp.f32 %v3449_v62 }
0x1130   :  { %v9160_v61 = vpop.eup %9159 }
0x1131   :  { %v3456_v18 = vsub.f32 0.0, %v9160_v61  ;;  %v9162_v15 = vpop.eup %9161 }
0x1133   :  { %v3457_v33 = vmul.f32 %v9162_v15, %v3456_v18  ;;  %v3061_v18 = vadd.f32 %v10755_v54, %v10803_v5 }
0x1135   :  { %v10816_v59 = vadd.f32 %v9160_v61, %v3457_v33 }
0x1137   :  { %v3463_v31 = vpack.c.bf16 %v10816_v59, %v10816_v59 }
0x1139   :  { %3497 = vmatmul.mubr.bf16.vlgmr.msra.gmra.mxu0 %v3463_v31  ;;  %8174 = vmatmul.mubr.bf16.vlgmr.msra.gmra.mxu1 %v3463_v31 }
0x113a   :  { %3572 = vmatpush1.bf16.msra.mxu0 %v10623_v0  ;;  %8178 = vmatpush3.bf16.msra.mxu1 %v10663_v45 }
0x113b   :  { %3573 = vmatprep.subr.bf16.mxu0 %v10627_v13  ;;  %8179 = vmatprep.subr.bf16.mxu1 %v12069_v43 }
0x113c   :  { %3603 = vmatprep.mubr.bf16.mxu0 %v12070_v21  ;;  %8193 = vmatprep.mubr.msk.bf16.mxu1 %vm9564_vm0, %v12069_v43 }
0x113e   :  { %3574 = vmatpush1.bf16.msra.mxu0 %v10629_v24  ;;  %8180 = vmatpush3.bf16.msra.mxu1 %v10673_v19 }
0x113f   :  { %3575 = vmatprep.subr.bf16.mxu0 %v10633_v9  ;;  %8181 = vmatprep.subr.bf16.mxu1 %v12069_v43 }
0x1142   :  { %3576 = vmatpush1.bf16.msra.mxu0 %v10635_v60  ;;  %8182 = vmatpush3.bf16.msra.mxu1 %v10677_v44 }
0x1143   :  { %3577 = vmatprep.subr.bf16.mxu0 %v10639_v12  ;;  %8183 = vmatprep.subr.bf16.mxu1 %v12069_v43 }
0x1146   :  { %3578 = vmatpush1.bf16.msra.mxu0 %v10641_v30  ;;  %8184 = vmatpush3.bf16.msra.mxu1 %v10681_v6 }
0x1147   :  { %3579 = vmatprep.subr.bf16.mxu0 %v10645_v27  ;;  %8185 = vmatprep.subr.bf16.mxu1 %v12069_v43 }
0x114a   :  { %3580 = vmatpush1.bf16.msra.mxu0 %v10647_v37  ;;  %8186 = vmatpush3.bf16.msra.mxu1 %v10685_v29 }
0x114b   :  { %3581 = vmatprep.subr.bf16.mxu0 %v10651_v41  ;;  %8187 = vmatprep.subr.bf16.mxu1 %v12069_v43 }
0x114e   :  { %3582 = vmatpush1.bf16.msra.mxu0 %v10653_v36  ;;  %8188 = vmatpush3.bf16.msra.mxu1 %v10689_v35 }
0x114f   :  { %3583 = vmatprep.subr.bf16.mxu0 %v10657_v40  ;;  %8189 = vmatprep.subr.bf16.mxu1 %v12069_v43 }
0x1152   :  { %3584 = vmatpush1.bf16.msra.mxu0 %v10659_v42  ;;  %8190 = vmatpush3.bf16.msra.mxu1 %v10693_v46 }
0x1153   :  { %3585 = vmatprep.subr.bf16.mxu0 %v10661_v63  ;;  %8191 = vmatprep.subr.bf16.mxu1 %v12069_v43 }
0x1156   :  { %3586 = vmatpush1.bf16.msra.mxu0 %v10668_v11  ;;  %8192 = vmatpush3.bf16.msra.mxu1 %v10697_v49 }
0x1157   :  { %3678 = vmatprep.subr.bf16.mxu0 %v10621_v4  ;;  %8197 = vmatprep.subr.bf16.mxu1 %v12069_v43 }
0x11f9   :  { %v3498_v51 = vpop.f32.mrf.mxu0  ;;  %v3539_v23 = vpop.f32.mrf.mxu1 }
0x11fa   :  { %v3545_v53 = vadd.f32 %v3498_v51, %v3059_v52  ;;  %v3559_v52 = vadd.f32 %v10809_v25, %v3539_v23 }
0x11fb   :  { %v3500_v26 = vpop.f32.mrf.mxu0  ;;  %v8175_v28 = vpop.f32.mrf.mxu1 }
0x11fc   :  { %v7170_v58 = vmul.f32 -1.442695, %v3545_v53  ;;  %v3552_v15 = vadd.f32 %v3500_v26, %v3061_v18  ;;  %v3131_v53 = vadd.f32 %v10775_v57, %v10813_v17  ;;  %v3065_v57 = vadd.f32 %v10757_v16, %v10791_v1 }
0x11fd   :  { %v3502_v20 = vpop.f32.mrf.mxu0  ;;  %v3542_v62 = vpop.f32.mrf.mxu1 }
0x11fe   :  { %9163 = vpow2.f32 %v7170_v58  ;;  %v7171_v33 = vmul.f32 -1.442695, %v3552_v15 }
0x11ff   :  { %v3503_v32 = vpop.f32.mrf.mxu0  ;;  %v8176_v61 = vpop.f32.mrf.mxu1 }
0x1200   :  { %9165 = vpow2.f32 %v7171_v33 }
0x120b   :  { %v9164_v31 = vpop.eup %9163 }
0x120c   :  { %v3549_v55 = vadd.f32 1.0, %v9164_v31 }
0x120d   :  { %v9166_v48 = vpop.eup %9165 }
0x120e   :  { %9167 = vrcp.f32 %v3549_v55  ;;  %v3556_v20 = vadd.f32 1.0, %v9166_v48 }
0x121b   :  { %v9168_v51 = vpop.eup %9167 }
0x121c   :  { %v3560_v28 = vmul.f32 %v9168_v51, %v3559_v52 }
0x121e   :  { %v3561_v58 = vadd.f32 %v3560_v28, %v3131_v53 }
0x1220   :  { %9169 = vtanh.f32 %v3561_v58  ;;  %v3067_v58 = vadd.f32 %v10759_v38, %v10803_v5 }
0x1221   :  { %9171 = vrcp.f32 %v3556_v20 }
0x122d   :  { %v9170_v62 = vpop.eup %9169 }
0x122e   :  { %v3563_v54 = vsub.f32 %v10816_v59, %v9170_v62  ;;  %v9172_v26 = vpop.eup %9171 }
0x1230   :  { %v3564_v32 = vmul.f32 %v9172_v26, %v3563_v54 }
0x1232   :  { %v10863_v61 = vadd.f32 %v9170_v62, %v3564_v32 }
0x1234   :  { %v3570_v55 = vpack.c.bf16 %v10863_v61, %v10863_v61 }
0x1236   :  { %3604 = vmatmul.mubr.bf16.vlgmr.msra.gmra.mxu0 %v3570_v55  ;;  %8194 = vmatmul.mubr.bf16.vlgmr.msra.gmra.mxu1 %v3570_v55 }
0x1237   :  { %3679 = vmatpush1.bf16.msra.mxu0 %v10623_v0  ;;  %8198 = vmatpush3.bf16.msra.mxu1 %v10663_v45 }
0x1238   :  { %3680 = vmatprep.subr.bf16.mxu0 %v10627_v13  ;;  %8199 = vmatprep.subr.bf16.mxu1 %v12069_v43 }
0x1239   :  { %3710 = vmatprep.mubr.bf16.mxu0 %v12070_v21  ;;  %8213 = vmatprep.mubr.msk.bf16.mxu1 %vm9564_vm0, %v12069_v43 }
0x123b   :  { %3681 = vmatpush1.bf16.msra.mxu0 %v10629_v24  ;;  %8200 = vmatpush3.bf16.msra.mxu1 %v10673_v19 }
0x123c   :  { %3682 = vmatprep.subr.bf16.mxu0 %v10633_v9  ;;  %8201 = vmatprep.subr.bf16.mxu1 %v12069_v43 }
0x123f   :  { %3683 = vmatpush1.bf16.msra.mxu0 %v10635_v60  ;;  %8202 = vmatpush3.bf16.msra.mxu1 %v10677_v44 }
0x1240   :  { %3684 = vmatprep.subr.bf16.mxu0 %v10639_v12  ;;  %8203 = vmatprep.subr.bf16.mxu1 %v12069_v43 }
0x1243   :  { %3685 = vmatpush1.bf16.msra.mxu0 %v10641_v30  ;;  %8204 = vmatpush3.bf16.msra.mxu1 %v10681_v6 }
0x1244   :  { %3686 = vmatprep.subr.bf16.mxu0 %v10645_v27  ;;  %8205 = vmatprep.subr.bf16.mxu1 %v12069_v43 }
0x1247   :  { %3687 = vmatpush1.bf16.msra.mxu0 %v10647_v37  ;;  %8206 = vmatpush3.bf16.msra.mxu1 %v10685_v29 }
0x1248   :  { %3688 = vmatprep.subr.bf16.mxu0 %v10651_v41  ;;  %8207 = vmatprep.subr.bf16.mxu1 %v12069_v43 }
0x124b   :  { %3689 = vmatpush1.bf16.msra.mxu0 %v10653_v36  ;;  %8208 = vmatpush3.bf16.msra.mxu1 %v10689_v35 }
0x124c   :  { %3690 = vmatprep.subr.bf16.mxu0 %v10657_v40  ;;  %8209 = vmatprep.subr.bf16.mxu1 %v12069_v43 }
0x124f   :  { %3691 = vmatpush1.bf16.msra.mxu0 %v10659_v42  ;;  %8210 = vmatpush3.bf16.msra.mxu1 %v10693_v46 }
0x1250   :  { %3692 = vmatprep.subr.bf16.mxu0 %v10661_v63  ;;  %8211 = vmatprep.subr.bf16.mxu1 %v12069_v43 }
0x1253   :  { %3693 = vmatpush1.bf16.msra.mxu0 %v10668_v11  ;;  %8212 = vmatpush3.bf16.msra.mxu1 %v10697_v49 }
0x1254   :  { %3785 = vmatprep.subr.bf16.mxu0 %v10621_v4  ;;  %8217 = vmatprep.subr.bf16.mxu1 %v12069_v43 }
0x12f6   :  { %v3605_v23 = vpop.f32.mrf.mxu0  ;;  %v3646_v18 = vpop.f32.mrf.mxu1 }
0x12f7   :  { %v3652_v15 = vadd.f32 %v3605_v23, %v3065_v57  ;;  %v3666_v32 = vadd.f32 %v10809_v25, %v3646_v18  ;;  %v3136_v57 = vadd.f32 %v10765_v22, %v10813_v17  ;;  %v3069_v22 = vadd.f32 %v10761_v3, %v10791_v1 }
0x12f8   :  { %v3607_v33 = vpop.f32.mrf.mxu0  ;;  %v8195_v31 = vpop.f32.mrf.mxu1 }
0x12f9   :  { %v7172_v48 = vmul.f32 -1.442695, %v3652_v15  ;;  %v3659_v20 = vadd.f32 %v3607_v33, %v3067_v58 }
0x12fa   :  { %v3609_v52 = vpop.f32.mrf.mxu0  ;;  %v3649_v51 = vpop.f32.mrf.mxu1 }
0x12fb   :  { %9173 = vpow2.f32 %v7172_v48  ;;  %v7173_v62 = vmul.f32 -1.442695, %v3659_v20 }
0x12fc   :  { %v3610_v53 = vpop.f32.mrf.mxu0  ;;  %v8196_v28 = vpop.f32.mrf.mxu1 }
0x12fd   :  { %9175 = vpow2.f32 %v7173_v62 }
0x1308   :  { %v9174_v54 = vpop.eup %9173 }
0x1309   :  { %v3656_v26 = vadd.f32 1.0, %v9174_v54 }
0x130a   :  { %v9176_v16 = vpop.eup %9175 }
0x130b   :  { %9177 = vrcp.f32 %v3656_v26  ;;  %v3663_v31 = vadd.f32 1.0, %v9176_v16 }
0x1318   :  { %v9178_v55 = vpop.eup %9177 }
0x1319   :  { %v3667_v23 = vmul.f32 %v9178_v55, %v3666_v32 }
0x131b   :  { %v3668_v15 = vadd.f32 %v3667_v23, %v3136_v57  ;;  %v3071_v57 = vadd.f32 %v10763_v14, %v10803_v5 }
0x131d   :  { %9179 = vtanh.f32 %v3668_v15 }
0x131e   :  { %9181 = vrcp.f32 %v3663_v31 }
0x132a   :  { %v9180_v48 = vpop.eup %9179 }
0x132b   :  { %v3670_v38 = vsub.f32 %v10863_v61, %v9180_v48  ;;  %v9182_v33 = vpop.eup %9181 }
0x132d   :  { %v3671_v52 = vmul.f32 %v9182_v33, %v3670_v38 }
0x132f   :  { %v10910_v51 = vadd.f32 %v9180_v48, %v3671_v52  ;;  %v3139_v52 = vadd.f32 %v10771_v56, %v10813_v17  ;;  %v3075_v56 = vadd.f32 %v10767_v34, %v10791_v1 }
0x1331   :  { %v3677_v53 = vpack.c.bf16 %v10910_v51, %v10910_v51 }
0x1333   :  { %3711 = vmatmul.mubr.bf16.vlgmr.msra.gmra.mxu0 %v3677_v53  ;;  %8214 = vmatmul.mubr.bf16.vlgmr.msra.gmra.mxu1 %v3677_v53 }
0x1334   :  { %3786 = vmatpush1.bf16.msra.mxu0 %v10623_v0  ;;  %8218 = vmatpush3.bf16.msra.mxu1 %v10663_v45 }
0x1335   :  { %3787 = vmatprep.subr.bf16.mxu0 %v10627_v13  ;;  %8219 = vmatprep.subr.bf16.mxu1 %v12069_v43 }
0x1336   :  { %3817 = vmatprep.mubr.bf16.mxu0 %v12070_v21  ;;  %8233 = vmatprep.mubr.msk.bf16.mxu1 %vm9564_vm0, %v12069_v43 }
0x1338   :  { %3788 = vmatpush1.bf16.msra.mxu0 %v10629_v24  ;;  %8220 = vmatpush3.bf16.msra.mxu1 %v10673_v19 }
0x1339   :  { %3789 = vmatprep.subr.bf16.mxu0 %v10633_v9  ;;  %8221 = vmatprep.subr.bf16.mxu1 %v12069_v43 }
0x133c   :  { %3790 = vmatpush1.bf16.msra.mxu0 %v10635_v60  ;;  %8222 = vmatpush3.bf16.msra.mxu1 %v10677_v44 }
0x133d   :  { %3791 = vmatprep.subr.bf16.mxu0 %v10639_v12  ;;  %8223 = vmatprep.subr.bf16.mxu1 %v12069_v43 }
0x1340   :  { %3792 = vmatpush1.bf16.msra.mxu0 %v10641_v30  ;;  %8224 = vmatpush3.bf16.msra.mxu1 %v10681_v6 }
0x1341   :  { %3793 = vmatprep.subr.bf16.mxu0 %v10645_v27  ;;  %8225 = vmatprep.subr.bf16.mxu1 %v12069_v43 }
0x1344   :  { %3794 = vmatpush1.bf16.msra.mxu0 %v10647_v37  ;;  %8226 = vmatpush3.bf16.msra.mxu1 %v10685_v29 }
0x1345   :  { %3795 = vmatprep.subr.bf16.mxu0 %v10651_v41  ;;  %8227 = vmatprep.subr.bf16.mxu1 %v12069_v43 }
0x1348   :  { %3796 = vmatpush1.bf16.msra.mxu0 %v10653_v36  ;;  %8228 = vmatpush3.bf16.msra.mxu1 %v10689_v35 }
0x1349   :  { %3797 = vmatprep.subr.bf16.mxu0 %v10657_v40  ;;  %8229 = vmatprep.subr.bf16.mxu1 %v12069_v43 }
0x134c   :  { %3798 = vmatpush1.bf16.msra.mxu0 %v10659_v42  ;;  %8230 = vmatpush3.bf16.msra.mxu1 %v10693_v46 }
0x134d   :  { %3799 = vmatprep.subr.bf16.mxu0 %v10661_v63  ;;  %8231 = vmatprep.subr.bf16.mxu1 %v12069_v43 }
0x1350   :  { %3800 = vmatpush1.bf16.msra.mxu0 %v10668_v11  ;;  %8232 = vmatpush3.bf16.msra.mxu1 %v10697_v49 }
0x1351   :  { %3892 = vmatprep.subr.bf16.mxu0 %v10621_v4  ;;  %8237 = vmatprep.subr.bf16.mxu1 %v12069_v43 }
0x13f3   :  { %v3712_v18 = vpop.f32.mrf.mxu0  ;;  %v3753_v28 = vpop.f32.mrf.mxu1 }
0x13f4   :  { %v3759_v58 = vadd.f32 %v3712_v18, %v3069_v22  ;;  %v3773_v38 = vadd.f32 %v10809_v25, %v3753_v28 }
0x13f5   :  { %v3714_v20 = vpop.f32.mrf.mxu0  ;;  %v8215_v62 = vpop.f32.mrf.mxu1 }
0x13f6   :  { %v7174_v54 = vmul.f32 -1.442695, %v3759_v58  ;;  %v3766_v23 = vadd.f32 %v3714_v20, %v3071_v57 }
0x13f7   :  { %v3716_v26 = vpop.f32.mrf.mxu0  ;;  %v3756_v16 = vpop.f32.mrf.mxu1 }
0x13f8   :  { %9183 = vpow2.f32 %v7174_v54  ;;  %v7175_v15 = vmul.f32 -1.442695, %v3766_v23 }
0x13f9   :  { %v3717_v32 = vpop.f32.mrf.mxu0  ;;  %v8216_v55 = vpop.f32.mrf.mxu1 }
0x13fa   :  { %9185 = vpow2.f32 %v7175_v15 }
0x1405   :  { %v9184_v31 = vpop.eup %9183 }
0x1406   :  { %v3763_v48 = vadd.f32 1.0, %v9184_v31 }
0x1407   :  { %v9186_v3 = vpop.eup %9185 }
0x1408   :  { %9187 = vrcp.f32 %v3763_v48  ;;  %v3770_v18 = vadd.f32 1.0, %v9186_v3 }
0x1415   :  { %v9188_v33 = vpop.eup %9187 }
0x1416   :  { %v3774_v53 = vmul.f32 %v9188_v33, %v3773_v38  ;;  %v3077_v38 = vadd.f32 %v10769_v10, %v10803_v5 }
0x1418   :  { %v3775_v22 = vadd.f32 %v3774_v53, %v3139_v52 }
0x141a   :  { %9189 = vtanh.f32 %v3775_v22 }
0x141b   :  { %9191 = vrcp.f32 %v3770_v18 }
0x1427   :  { %v9190_v58 = vpop.eup %9189 }
0x1428   :  { %v3777_v14 = vsub.f32 %v10910_v51, %v9190_v58  ;;  %v9192_v20 = vpop.eup %9191 }
0x142a   :  { %v3778_v62 = vmul.f32 %v9192_v20, %v3777_v14  ;;  %v3144_v14 = vadd.f32 %v10788_v50, %v10813_v17 }
0x142c   :  { %v10957_v54 = vadd.f32 %v9190_v58, %v3778_v62 }
0x142e   :  { %v3784_v26 = vpack.c.bf16 %v10957_v54, %v10957_v54 }
0x1430   :  { %3818 = vmatmul.mubr.bf16.vlgmr.msra.gmra.mxu0 %v3784_v26  ;;  %8234 = vmatmul.mubr.bf16.vlgmr.msra.gmra.mxu1 %v3784_v26 }
0x1431   :  { %3893 = vmatpush1.bf16.msra.mxu0 %v10623_v0  ;;  %8238 = vmatpush3.bf16.msra.mxu1 %v10663_v45 }
0x1432   :  { %3894 = vmatprep.subr.bf16.mxu0 %v10627_v13  ;;  %8239 = vmatprep.subr.bf16.mxu1 %v12069_v43 }
0x1433   :  { %3924 = vmatprep.mubr.bf16.mxu0 %v12070_v21  ;;  %8253 = vmatprep.mubr.msk.bf16.mxu1 %vm9564_vm0, %v12069_v43 }
0x1435   :  { %3895 = vmatpush1.bf16.msra.mxu0 %v10629_v24  ;;  %8240 = vmatpush3.bf16.msra.mxu1 %v10673_v19 }
0x1436   :  { %3896 = vmatprep.subr.bf16.mxu0 %v10633_v9  ;;  %8241 = vmatprep.subr.bf16.mxu1 %v12069_v43 }
0x1439   :  { %3897 = vmatpush1.bf16.msra.mxu0 %v10635_v60  ;;  %8242 = vmatpush3.bf16.msra.mxu1 %v10677_v44 }
0x143a   :  { %3898 = vmatprep.subr.bf16.mxu0 %v10639_v12  ;;  %8243 = vmatprep.subr.bf16.mxu1 %v12069_v43 }
0x143d   :  { %3899 = vmatpush1.bf16.msra.mxu0 %v10641_v30  ;;  %8244 = vmatpush3.bf16.msra.mxu1 %v10681_v6 }
0x143e   :  { %3900 = vmatprep.subr.bf16.mxu0 %v10645_v27  ;;  %8245 = vmatprep.subr.bf16.mxu1 %v12069_v43 }
0x1441   :  { %3901 = vmatpush1.bf16.msra.mxu0 %v10647_v37  ;;  %8246 = vmatpush3.bf16.msra.mxu1 %v10685_v29 }
0x1442   :  { %3902 = vmatprep.subr.bf16.mxu0 %v10651_v41  ;;  %8247 = vmatprep.subr.bf16.mxu1 %v12069_v43 }
0x1445   :  { %3903 = vmatpush1.bf16.msra.mxu0 %v10653_v36  ;;  %8248 = vmatpush3.bf16.msra.mxu1 %v10689_v35 }
0x1446   :  { %3904 = vmatprep.subr.bf16.mxu0 %v10657_v40  ;;  %8249 = vmatprep.subr.bf16.mxu1 %v12069_v43 }
0x1449   :  { %3905 = vmatpush1.bf16.msra.mxu0 %v10659_v42  ;;  %8250 = vmatpush3.bf16.msra.mxu1 %v10693_v46 }
0x144a   :  { %3906 = vmatprep.subr.bf16.mxu0 %v10661_v63  ;;  %8251 = vmatprep.subr.bf16.mxu1 %v12069_v43 }
0x144d   :  { %3907 = vmatpush1.bf16.msra.mxu0 %v10668_v11  ;;  %8252 = vmatpush3.bf16.msra.mxu1 %v10697_v49 }
0x144e   :  { %3999 = vmatprep.subr.bf16.mxu0 %v10621_v4  ;;  %8257 = vmatprep.subr.bf16.mxu1 %v12069_v43 }
0x14f0   :  { %v3819_v28 = vpop.f32.mrf.mxu0  ;;  %v3860_v16 = vpop.f32.mrf.mxu1 }
0x14f1   :  { %v3866_v32 = vadd.f32 %v3819_v28, %v3075_v56  ;;  %v3880_v18 = vadd.f32 %v10809_v25, %v3860_v16 }
0x14f2   :  { %v3821_v55 = vpop.f32.mrf.mxu0  ;;  %v8235_v57 = vpop.f32.mrf.mxu1 }
0x14f3   :  { %v7176_v23 = vmul.f32 -1.442695, %v3866_v32  ;;  %v3873_v33 = vadd.f32 %v3821_v55, %v3077_v38  ;;  %v9447_v38 = vld [vmem:[#allocation7 + $0x1fc] ss:$12 sps:$4 sm:$0xff]  }
0x14f4   :  { %v3823_v15 = vpop.f32.mrf.mxu0  ;;  %v3863_v31 = vpop.f32.mrf.mxu1 }
0x14f5   :  { %9193 = vpow2.f32 %v7176_v23  ;;  %v7177_v52 = vmul.f32 -1.442695, %v3873_v33  ;;  %v9442_v15 = vld [vmem:[#allocation7 + $0x228] ss:$12 sps:$4 sm:$0xff]   ;;  %v9448_v33 = vld [vmem:[#allocation7 + $0x1f8] ss:$12 sps:$4 sm:$0xff]  }
0x14f6   :  { %v3824_v48 = vpop.f32.mrf.mxu0  ;;  %v8236_v3 = vpop.f32.mrf.mxu1  ;;  %v9444_v31 = vld [vmem:[#allocation7 + $0x214] ss:$12 sps:$4 sm:$0xff]  }
0x14f7   :  { %9195 = vpow2.f32 %v7177_v52  ;;  %v9445_v48 = vld [vmem:[#allocation7 + $0x210] ss:$12 sps:$4 sm:$0xff]   ;;  %v9446_v3 = vld [vmem:[#allocation7 + $0x218] ss:$12 sps:$4 sm:$0xff]   ;;  %v9449_v52 = vld [vmem:[#allocation7 + $0x200] ss:$12 sps:$4 sm:$0xff]  }
0x1502   :  { %v9194_v53 = vpop.eup %9193 }
0x1503   :  { %v3870_v22 = vadd.f32 1.0, %v9194_v53  ;;  %v9450_v53 = vld [vmem:[#allocation7 + $0x1e4] ss:$12 sps:$4 sm:$0xff]  }
0x1504   :  { %v9196_v34 = vpop.eup %9195 }
0x1505   :  { %9197 = vrcp.f32 %v3870_v22  ;;  %v3877_v26 = vadd.f32 1.0, %v9196_v34  ;;  %v9451_v22 = vld [vmem:[#allocation7 + $0x1e0] ss:$12 sps:$4 sm:$0xff]   ;;  %v9452_v34 = vld [vmem:[#allocation7 + $0x1e8] ss:$12 sps:$4 sm:$0xff]  }
0x1512   :  { %v9198_v58 = vpop.eup %9197 }
0x1513   :  { %v3881_v20 = vmul.f32 %v9198_v58, %v3880_v18  ;;  %v9453_v18 = vld [vmem:[#allocation7 + $0x1cc] ss:$12 sps:$4 sm:$0xff]   ;;  %v9454_v58 = vld [vmem:[#allocation7 + $0x1c8] ss:$12 sps:$4 sm:$0xff]  }
0x1515   :  { %v3882_v62 = vadd.f32 %v3881_v20, %v3144_v14  ;;  %v9455_v14 = vld [vmem:[#allocation7 + $0x1d0] ss:$12 sps:$4 sm:$0xff]   ;;  %v9456_v20 = vld [vmem:[#allocation7 + $0x1b4] ss:$12 sps:$4 sm:$0xff]  }
0x1517   :  { %9199 = vtanh.f32 %v3882_v62  ;;  %v9457_v62 = vld [vmem:[#allocation7 + $0x1b0] ss:$12 sps:$4 sm:$0xff]  }
0x1518   :  { %9201 = vrcp.f32 %v3877_v26  ;;  %v9458_v26 = vld [vmem:[#allocation7 + $0x1b8] ss:$12 sps:$4 sm:$0xff]  }
0x1524   :  { %v9200_v56 = vpop.eup %9199 }
0x1525   :  { %v3884_v10 = vsub.f32 %v10957_v54, %v9200_v56  ;;  %v9202_v28 = vpop.eup %9201 }
0x1527   :  { %v3885_v32 = vmul.f32 %v9202_v28, %v3884_v10  ;;  %v9460_v10 = vld [vmem:[#allocation7 + $0x198] ss:$12 sps:$4 sm:$0xff]   ;;  %v9461_v28 = vld [vmem:[#allocation7 + $0x1a0] ss:$12 sps:$4 sm:$0xff]  }
0x1529   :  { %v11004_v55 = vadd.f32 %v9200_v56, %v3885_v32  ;;  %v9459_v56 = vld [vmem:[#allocation7 + $0x19c] ss:$12 sps:$4 sm:$0xff]   ;;  %v9462_v32 = vld [vmem:[#allocation7 + $0x184] ss:$12 sps:$4 sm:$0xff]  }
0x152b   :  { %v3891_v57 = vpack.c.bf16 %v11004_v55, %v11004_v55 }
0x152d   :  { %3925 = vmatmul.mubr.bf16.vlgmr.msra.gmra.mxu0 %v3891_v57  ;;  %8254 = vmatmul.mubr.bf16.vlgmr.msra.gmra.mxu1 %v3891_v57  ;;  %v9463_v57 = vld [vmem:[#allocation7 + $0x180] ss:$12 sps:$4 sm:$0xff]  }
0x152e   :  { %4000 = vmatpush1.bf16.msra.mxu0 %v10623_v0  ;;  %8258 = vmatpush3.bf16.msra.mxu1 %v10663_v45  ;;  %v3079_v0 = vadd.f32 %v10773_v2, %v10791_v1 }
0x152f   :  { %4001 = vmatprep.subr.bf16.mxu0 %v10627_v13  ;;  %8259 = vmatprep.subr.bf16.mxu1 %v12069_v43 }
0x1530   :  { %4031 = vmatprep.mubr.bf16.mxu0 %v12070_v21  ;;  %8273 = vmatprep.mubr.msk.bf16.mxu1 %vm9564_vm0, %v12069_v43 }
0x1532   :  { %4002 = vmatpush1.bf16.msra.mxu0 %v10629_v24  ;;  %8260 = vmatpush3.bf16.msra.mxu1 %v10673_v19 }
0x1533   :  { %4003 = vmatprep.subr.bf16.mxu0 %v10633_v9  ;;  %8261 = vmatprep.subr.bf16.mxu1 %v12069_v43 }
0x1536   :  { %4004 = vmatpush1.bf16.msra.mxu0 %v10635_v60  ;;  %8262 = vmatpush3.bf16.msra.mxu1 %v10677_v44 }
0x1537   :  { %4005 = vmatprep.subr.bf16.mxu0 %v10639_v12  ;;  %8263 = vmatprep.subr.bf16.mxu1 %v12069_v43 }
0x153a   :  { %4006 = vmatpush1.bf16.msra.mxu0 %v10641_v30  ;;  %8264 = vmatpush3.bf16.msra.mxu1 %v10681_v6  ;;  %v3147_v6 = vadd.f32 %v10799_v7, %v10813_v17  ;;  %v9443_v7 = vld [vmem:[#allocation7 + $0x230] ss:$12 sps:$4 sm:$0xff]  }
0x153b   :  { %4007 = vmatprep.subr.bf16.mxu0 %v10645_v27  ;;  %8265 = vmatprep.subr.bf16.mxu1 %v12069_v43 }
0x153e   :  { %4008 = vmatpush1.bf16.msra.mxu0 %v10647_v37  ;;  %8266 = vmatpush3.bf16.msra.mxu1 %v10685_v29 }
0x153f   :  { %4009 = vmatprep.subr.bf16.mxu0 %v10651_v41  ;;  %8267 = vmatprep.subr.bf16.mxu1 %v12069_v43 }
0x1542   :  { %4010 = vmatpush1.bf16.msra.mxu0 %v10653_v36  ;;  %8268 = vmatpush3.bf16.msra.mxu1 %v10689_v35 }
0x1543   :  { %4011 = vmatprep.subr.bf16.mxu0 %v10657_v40  ;;  %8269 = vmatprep.subr.bf16.mxu1 %v12069_v43  ;;  %v3081_v40 = vadd.f32 %v10777_v39, %v10803_v5 }
0x1546   :  { %4012 = vmatpush1.bf16.msra.mxu0 %v10659_v42  ;;  %8270 = vmatpush3.bf16.msra.mxu1 %v10693_v46 }
0x1547   :  { %4013 = vmatprep.subr.bf16.mxu0 %v10661_v63  ;;  %8271 = vmatprep.subr.bf16.mxu1 %v12069_v43 }
0x154a   :  { %4014 = vmatpush1.bf16.msra.mxu0 %v10668_v11  ;;  %8272 = vmatpush3.bf16.msra.mxu1 %v10697_v49 }
0x154b   :  { %4106 = vmatprep.subr.bf16.mxu0 %v10621_v4  ;;  %8277 = vmatprep.subr.bf16.mxu1 %v12069_v43 }
0x15ed   :  { %v3926_v13 = vpop.f32.mrf.mxu0  ;;  %v3967_v24 = vpop.f32.mrf.mxu1 }
0x15ee   :  { %v3973_v9 = vadd.f32 %v3926_v13, %v3079_v0  ;;  %v3987_v19 = vadd.f32 %v10809_v25, %v3967_v24  ;;  %v9464_v0 = vld [vmem:[#allocation7 + $0x188] ss:$12 sps:$4 sm:$0xff]   ;;  %v8867_v13 = vld [vmem:[#allocation5 + $0x2ec] ss:$12 sps:$4 sm:$0xff]   ;;  %v8868_v24 = vld [vmem:[#allocation5 + $0x2f0] ss:$12 sps:$4 sm:$0xff]  }
0x15ef   :  { %v3928_v60 = vpop.f32.mrf.mxu0  ;;  %v8255_v12 = vpop.f32.mrf.mxu1 }
0x15f0   :  { %v7178_v30 = vmul.f32 -1.442695, %v3973_v9  ;;  %v3980_v4 = vadd.f32 %v3928_v60, %v3081_v40  ;;  %v3085_v9 = vadd.f32 %v10782_v8, %v10791_v1 }
0x15f1   :  { %v3930_v27 = vpop.f32.mrf.mxu0  ;;  %v3970_v37 = vpop.f32.mrf.mxu1 }
0x15f2   :  { %9203 = vpow2.f32 %v7178_v30  ;;  %v7179_v42 = vmul.f32 -1.442695, %v3980_v4 }
0x15f3   :  { %v3931_v41 = vpop.f32.mrf.mxu0  ;;  %v8256_v36 = vpop.f32.mrf.mxu1 }
0x15f4   :  { %9205 = vpow2.f32 %v7179_v42 }
0x15ff   :  { %v9204_v63 = vpop.eup %9203 }
0x1600   :  { %v3977_v45 = vadd.f32 1.0, %v9204_v63  ;;  %v12095_v63 = vld [vmem:[#allocation14_spill] sm:$0xff] }
0x1601   :  { %v9206_v11 = vpop.eup %9205 }
0x1602   :  { %9207 = vrcp.f32 %v3977_v45  ;;  %v3984_v46 = vadd.f32 1.0, %v9206_v11  ;;  %v3087_v45 = vadd.f32 %v12095_v63, %v10803_v5  ;;  %v11126_v63 = vld [vmem:[#allocation7 + $0x258] ss:$12 sps:$4 sm:$0xff]  }
0x160f   :  { %v9208_v44 = vpop.eup %9207 }
0x1610   :  { %v3988_v29 = vmul.f32 %v9208_v44, %v3987_v19 }
0x1612   :  { %v3989_v35 = vadd.f32 %v3988_v29, %v3147_v6 }
0x1614   :  { %9209 = vtanh.f32 %v3989_v35 }
0x1615   :  { %9211 = vrcp.f32 %v3984_v46  ;;  %v12096_v46 = vld [vmem:[#allocation13_spill] sm:$0xff] }
0x1621   :  { %v9210_v49 = vpop.eup %9209 }
0x1622   :  { %v3991_v2 = vsub.f32 %v11004_v55, %v9210_v49  ;;  %v9212_v39 = vpop.eup %9211 }
0x1624   :  { %v3992_v50 = vmul.f32 %v9212_v39, %v3991_v2 }
0x1626   :  { %v11051_v16 = vadd.f32 %v9210_v49, %v3992_v50  ;;  %v3152_v49 = vadd.f32 %v12096_v46, %v10813_v17  ;;  %v11160_v46 = vld [vmem:[#allocation7 + $0x260] ss:$12 sps:$4 sm:$0xff]  }
0x1628   :  { %v3998_v23 = vpack.c.bf16 %v11051_v16, %v11051_v16 }
0x162a   :  { %4032 = vmatmul.mubr.bf16.vlgmr.msra.gmra.mxu0 %v3998_v23  ;;  %8274 = vmatmul.mubr.bf16.vlgmr.msra.gmra.mxu1 %v3998_v23 }
0x162b   :  { %4107 = vmatpush1.bf16.msra.mxu0 %v9442_v15  ;;  %8278 = vmatpush3.bf16.msra.mxu1 %v9443_v7 }
0x162c   :  { %4108 = vmatprep.subr.bf16.mxu0 %v9444_v31  ;;  %8279 = vmatprep.subr.bf16.mxu1 %v12069_v43 }
0x162d   :  { %4138 = vmatprep.mubr.bf16.mxu0 %v12070_v21  ;;  %8293 = vmatprep.mubr.msk.bf16.mxu1 %vm9564_vm0, %v12069_v43 }
0x162f   :  { %4109 = vmatpush1.bf16.msra.mxu0 %v9445_v48  ;;  %8280 = vmatpush3.bf16.msra.mxu1 %v9446_v3  ;;  %v8865_v3 = vld [vmem:[#allocation5 + $0x2e8] ss:$12 sps:$4 sm:$0xff]  }
0x1630   :  { %4110 = vmatprep.subr.bf16.mxu0 %v9447_v38  ;;  %8281 = vmatprep.subr.bf16.mxu1 %v12069_v43  ;;  %v8871_v38 = vld [vmem:[#allocation5 + $0x2d4] ss:$12 sps:$4 sm:$0xff]  }
0x1633   :  { %4111 = vmatpush1.bf16.msra.mxu0 %v9448_v33  ;;  %8282 = vmatpush3.bf16.msra.mxu1 %v9449_v52  ;;  %v8872_v33 = vld [vmem:[#allocation5 + $0x2d8] ss:$12 sps:$4 sm:$0xff]   ;;  %v4218_v52 = vpack.c.bf16 %v10863_v61, %v10816_v59  ;;  %v8877_v59 = vld [vmem:[#allocation5 + $0x2a0] ss:$12 sps:$4 sm:$0xff]  }
0x1634   :  { %4112 = vmatprep.subr.bf16.mxu0 %v9450_v53  ;;  %8283 = vmatprep.subr.bf16.mxu1 %v12069_v43  ;;  %v8869_v53 = vld [vmem:[#allocation5 + $0x2d0] ss:$12 sps:$4 sm:$0xff]   ;;  %v8883_v61 = vld [vmem:[#allocation5 + $0x28c] ss:$12 sps:$4 sm:$0xff]  }
0x1637   :  { %4113 = vmatpush1.bf16.msra.mxu0 %v9451_v22  ;;  %8284 = vmatpush3.bf16.msra.mxu1 %v9452_v34  ;;  %v8875_v22 = vld [vmem:[#allocation5 + $0x2bc] ss:$12 sps:$4 sm:$0xff]   ;;  %v8876_v34 = vld [vmem:[#allocation5 + $0x2c0] ss:$12 sps:$4 sm:$0xff]  }
0x1638   :  { %4114 = vmatprep.subr.bf16.mxu0 %v9453_v18  ;;  %8285 = vmatprep.subr.bf16.mxu1 %v12069_v43  ;;  %v8873_v18 = vld [vmem:[#allocation5 + $0x2b8] ss:$12 sps:$4 sm:$0xff]  }
0x163b   :  { %4115 = vmatpush1.bf16.msra.mxu0 %v9454_v58  ;;  %8286 = vmatpush3.bf16.msra.mxu1 %v9455_v14  ;;  %v8879_v58 = vld [vmem:[#allocation5 + $0x2a4] ss:$12 sps:$4 sm:$0xff]   ;;  %v8880_v14 = vld [vmem:[#allocation5 + $0x2a8] ss:$12 sps:$4 sm:$0xff]  }
0x163c   :  { %4116 = vmatprep.subr.bf16.mxu0 %v9456_v20  ;;  %8287 = vmatprep.subr.bf16.mxu1 %v12069_v43  ;;  %v8884_v20 = vld [vmem:[#allocation5 + $0x290] ss:$12 sps:$4 sm:$0xff]  }
0x163f   :  { %4117 = vmatpush1.bf16.msra.mxu0 %v9457_v62  ;;  %8288 = vmatpush3.bf16.msra.mxu1 %v9458_v26  ;;  %v8881_v62 = vld [vmem:[#allocation5 + $0x288] ss:$12 sps:$4 sm:$0xff]  }
0x1640   :  { %4118 = vmatprep.subr.bf16.mxu0 %v9459_v56  ;;  %8289 = vmatprep.subr.bf16.mxu1 %v12069_v43  ;;  %v8887_v26 = vld [vmem:[#allocation5 + $0x274] ss:$12 sps:$4 sm:$0xff]   ;;  %v8888_v56 = vld [vmem:[#allocation5 + $0x278] ss:$12 sps:$4 sm:$0xff]  }
0x1643   :  { %4119 = vmatpush1.bf16.msra.mxu0 %v9460_v10  ;;  %8290 = vmatpush3.bf16.msra.mxu1 %v9461_v28  ;;  %v8885_v10 = vld [vmem:[#allocation5 + $0x270] ss:$12 sps:$4 sm:$0xff]  }
0x1644   :  { %4120 = vmatprep.subr.bf16.mxu0 %v9462_v32  ;;  %8291 = vmatprep.subr.bf16.mxu1 %v12069_v43  ;;  %v8891_v28 = vld [vmem:[#allocation5 + $0x25c] ss:$12 sps:$4 sm:$0xff]   ;;  %v8892_v32 = vld [vmem:[#allocation5 + $0x260] ss:$12 sps:$4 sm:$0xff]  }
0x1647   :  { %4121 = vmatpush1.bf16.msra.mxu0 %v9463_v57  ;;  %8292 = vmatpush3.bf16.msra.mxu1 %v9464_v0  ;;  %v8889_v57 = vld [vmem:[#allocation5 + $0x258] ss:$12 sps:$4 sm:$0xff]  }
0x1648   :  { %4401 = vmatprep.subr.bf16.mxu0 %v8867_v13  ;;  %8297 = vmatprep.subr.bf16.mxu1 %v8868_v24  ;;  %v8895_v0 = vld [vmem:[#allocation5 + $0x244] ss:$12 sps:$4 sm:$0xff]   ;;  %v8896_v13 = vld [vmem:[#allocation5 + $0x248] ss:$12 sps:$4 sm:$0xff]  }
0x16ea   :  { %v4033_v60 = vpop.f32.mrf.mxu0  ;;  %v4074_v12 = vpop.f32.mrf.mxu1 }
0x16eb   :  { %v4080_v30 = vadd.f32 %v4033_v60, %v3085_v9  ;;  %v4094_v29 = vadd.f32 %v10809_v25, %v4074_v12  ;;  %v4219_v9 = vpack.c.bf16 %v10957_v54, %v10910_v51  ;;  %v4220_v60 = vpack.c.bf16 %v11051_v16, %v11004_v55  ;;  %v11088_v12 = vld [vmem:[#allocation7 + $0x2ec] ss:$12 sps:$4 sm:$0xff]   ;;  %v11094_v51 = vld [vmem:[#allocation7 + $0x2d4] ss:$12 sps:$4 sm:$0xff]   ;;  %v11096_v54 = vld [vmem:[#allocation7 + $0x2d0] ss:$12 sps:$4 sm:$0xff]  }
0x16ec   :  { %v4035_v27 = vpop.f32.mrf.mxu0  ;;  %v8275_v37 = vpop.f32.mrf.mxu1  ;;  %v11100_v55 = vld [vmem:[#allocation7 + $0x2bc] ss:$12 sps:$4 sm:$0xff]  }
0x16ed   :  { %v7180_v41 = vmul.f32 -1.442695, %v4080_v30  ;;  %v4087_v11 = vadd.f32 %v4035_v27, %v3087_v45  ;;  %v11090_v30 = vld [vmem:[#allocation7 + $0x2e8] ss:$12 sps:$4 sm:$0xff]   ;;  %v11106_v27 = vld [vmem:[#allocation7 + $0x2a4] ss:$12 sps:$4 sm:$0xff]  }
0x16ee   :  { %v4037_v36 = vpop.f32.mrf.mxu0  ;;  %v4077_v40 = vpop.f32.mrf.mxu1  ;;  %v11108_v37 = vld [vmem:[#allocation7 + $0x2a0] ss:$12 sps:$4 sm:$0xff]   ;;  %v11128_v45 = vld [vmem:[#allocation7 + $0x244] ss:$12 sps:$4 sm:$0xff]  }
0x16ef   :  { %9213 = vpow2.f32 %v7180_v41  ;;  %v7181_v19 = vmul.f32 -1.442695, %v4087_v11  ;;  %v11112_v41 = vld [vmem:[#allocation7 + $0x28c] ss:$12 sps:$4 sm:$0xff]   ;;  %v11114_v36 = vld [vmem:[#allocation7 + $0x288] ss:$12 sps:$4 sm:$0xff]  }
0x16f0   :  { %v4038_v4 = vpop.f32.mrf.mxu0  ;;  %v8276_v42 = vpop.f32.mrf.mxu1  ;;  %v11118_v40 = vld [vmem:[#allocation7 + $0x274] ss:$12 sps:$4 sm:$0xff]   ;;  %v11130_v11 = vld [vmem:[#allocation7 + $0x2f0] ss:$12 sps:$4 sm:$0xff]  }
0x16f1   :  { %9215 = vpow2.f32 %v7181_v19  ;;  %v11120_v4 = vld [vmem:[#allocation7 + $0x270] ss:$12 sps:$4 sm:$0xff]   ;;  %v11135_v19 = vld [vmem:[#allocation7 + $0x240] ss:$12 sps:$4 sm:$0xff]  }
0x16f2   :  { %v11124_v42 = vld [vmem:[#allocation7 + $0x25c] ss:$12 sps:$4 sm:$0xff]  }
0x16fc   :  { %v9214_v44 = vpop.eup %9213 }
0x16fd   :  { %v4084_v6 = vadd.f32 1.0, %v9214_v44  ;;  %v11140_v44 = vld [vmem:[#allocation7 + $0x2d8] ss:$12 sps:$4 sm:$0xff]  }
0x16fe   :  { %v9216_v8 = vpop.eup %9215 }
0x16ff   :  { %9217 = vrcp.f32 %v4084_v6  ;;  %v4091_v50 = vadd.f32 1.0, %v9216_v8  ;;  %v11144_v6 = vld [vmem:[#allocation7 + $0x2c0] ss:$12 sps:$4 sm:$0xff]   ;;  %v11148_v8 = vld [vmem:[#allocation7 + $0x2a8] ss:$12 sps:$4 sm:$0xff]  }
0x170c   :  { %v9218_v35 = vpop.eup %9217 }
0x170d   :  { %v4095_v2 = vmul.f32 %v9218_v35, %v4094_v29  ;;  %v11152_v29 = vld [vmem:[#allocation7 + $0x290] ss:$12 sps:$4 sm:$0xff]   ;;  %v11156_v35 = vld [vmem:[#allocation7 + $0x278] ss:$12 sps:$4 sm:$0xff]  }
0x170f   :  { %v4096_v39 = vadd.f32 %v4095_v2, %v3152_v49  ;;  %v11164_v49 = vld [vmem:[#allocation7 + $0x248] ss:$12 sps:$4 sm:$0xff]   ;;  %v12097_v2 = vld [vmem:[#allocation15_spill] sm:$0xff] }
0x1711   :  { %9219 = vtanh.f32 %v4096_v39  ;;  %v3089_v39 = vadd.f32 %v12097_v2, %v10791_v1 }
0x1712   :  { %9221 = vrcp.f32 %v4091_v50 }
0x171e   :  { %v9220_v23 = vpop.eup %9219 }
0x171f   :  { %v4098_v15 = vsub.f32 %v11051_v16, %v9220_v23  ;;  %v9222_v7 = vpop.eup %9221  ;;  %v11102_v16 = vld [vmem:[#allocation7 + $0x2b8] ss:$12 sps:$4 sm:$0xff]  }
0x1721   :  { %v4099_v31 = vmul.f32 %v9222_v7, %v4098_v15 }
0x1723   :  { %v11073_v48 = vadd.f32 %v9220_v23, %v4099_v31 }
0x1725   :  { %v4105_v25 = vpack.c.bf16 %v11073_v48, %v11073_v48 }
0x1727   :  { %4139 = vmatmul.mubr.bf16.vlgmr.msra.gmra.mxu0 %v4105_v25  ;;  %8294 = vmatmul.mubr.bf16.vlgmr.msra.gmra.mxu1 %v4105_v25 }
0x1728   :  { %4402 = vmatpush1.bf16.msra.mxu0 %v8865_v3  ;;  %8298 = vmatpush3.bf16.msra.mxu1 %v8868_v24  ;;  %v8893_v24 = vld [vmem:[#allocation5 + $0x240] ss:$12 sps:$4 sm:$0xff]  }
0x1729   :  { %8313 = vmatprep.mubr.bf16.mxu1 %v4218_v52  ;;  %4403 = vmatprep.subr.bf16.mxu0 %v8871_v38 }
0x172a   :  { %8299 = vmatprep.subr.bf16.mxu1 %v8872_v33  ;;  %4433 = vmatprep.mubr.bf16.mxu0 %v12070_v21 }
0x172c   :  { %4404 = vmatpush1.bf16.msra.mxu0 %v8869_v53  ;;  %8300 = vmatpush3.bf16.msra.mxu1 %v8872_v33  ;;  %v12098_v53 = vld [vmem:[#allocation18_spill] sm:$0xff] }
0x172d   :  { %4405 = vmatprep.subr.bf16.mxu0 %v8875_v22  ;;  %8301 = vmatprep.subr.bf16.mxu1 %v8876_v34  ;;  %v3091_v22 = vadd.f32 %v12098_v53, %v10803_v5 }
0x1730   :  { %4406 = vmatpush1.bf16.msra.mxu0 %v8873_v18  ;;  %8302 = vmatpush3.bf16.msra.mxu1 %v8876_v34 }
0x1731   :  { %4407 = vmatprep.subr.bf16.mxu0 %v8879_v58  ;;  %8303 = vmatprep.subr.bf16.mxu1 %v8880_v14 }
0x1734   :  { %4408 = vmatpush1.bf16.msra.mxu0 %v8877_v59  ;;  %8304 = vmatpush3.bf16.msra.mxu1 %v8880_v14  ;;  %v9465_v59 = vld [vmem:[%s12047_s4 + $0x2] ss:$0 sm:$0xff] }
0x1735   :  { %4409 = vmatprep.subr.bf16.mxu0 %v8883_v61  ;;  %8305 = vmatprep.subr.bf16.mxu1 %v8884_v20 }
0x1738   :  { %4410 = vmatpush1.bf16.msra.mxu0 %v8881_v62  ;;  %8306 = vmatpush3.bf16.msra.mxu1 %v8884_v20  ;;  %v12099_v62 = vld [vmem:[#allocation16_spill] sm:$0xff] }
0x1739   :  { %4411 = vmatprep.subr.bf16.mxu0 %v8887_v26  ;;  %8307 = vmatprep.subr.bf16.mxu1 %v8888_v56  ;;  %v3155_v26 = vadd.f32 %v12099_v62, %v10813_v17  ;;  %v12100_v17 = vmov 0.0|0.0  }
0x173c   :  { %4412 = vmatpush1.bf16.msra.mxu0 %v8885_v10  ;;  %8308 = vmatpush3.bf16.msra.mxu1 %v8888_v56 }
0x173d   :  { %4413 = vmatprep.subr.bf16.mxu0 %v8891_v28  ;;  %8309 = vmatprep.subr.bf16.mxu1 %v8892_v32 }
0x1740   :  { %4414 = vmatpush1.bf16.msra.mxu0 %v8889_v57  ;;  %8310 = vmatpush3.bf16.msra.mxu1 %v8892_v32 }
0x1741   :  { %4415 = vmatprep.subr.bf16.mxu0 %v8895_v0  ;;  %8311 = vmatprep.subr.bf16.mxu1 %v8896_v13 }
0x1744   :  { %4416 = vmatpush1.bf16.msra.mxu0 %v8893_v24  ;;  %8312 = vmatpush3.bf16.msra.mxu1 %v8896_v13 }
0x1745   :  { %8321 = vmatprep.subr.bf16.mxu1 %v12069_v43  ;;  %4738 = vmatprep.subr.bf16.mxu0 %v11088_v12 }
0x1747   :  { %4434 = vmatmul.mubr.bf16.vlgmr.msra.gmra.mxu0 %v4218_v52  ;;  %8314 = vmatmul.mubr.bf16.vlgmr.msra.gmra.mxu1 %v4219_v9 }
0x1748   :  { %8317 = vmatprep.mubr.bf16.mxu1 %v4220_v60  ;;  %4443 = vmatprep.mubr.bf16.mxu0 %v12070_v21 }
0x1749   :  { %4739 = vmatpush1.bf16.msra.mxu0 %v11090_v30  ;;  %8322 = vmatpush3.bf16.msra.mxu1 %v11130_v11 }
0x174a   :  { %4740 = vmatprep.subr.bf16.mxu0 %v11094_v51  ;;  %8323 = vmatprep.subr.bf16.mxu1 %v12069_v43 }
0x174d   :  { %4741 = vmatpush1.bf16.msra.mxu0 %v11096_v54  ;;  %8324 = vmatpush3.bf16.msra.mxu1 %v11140_v44 }
0x174e   :  { %4742 = vmatprep.subr.bf16.mxu0 %v11100_v55  ;;  %8325 = vmatprep.subr.bf16.mxu1 %v12069_v43 }
0x174f   :  { %4444 = vmatmul.mubr.bf16.gmra.mxu0 %v4219_v9 }
0x1750   :  { %4453 = vmatprep.mubr.bf16.mxu0 %v12070_v21 }
0x1751   :  { %4743 = vmatpush1.bf16.msra.mxu0 %v11102_v16  ;;  %8326 = vmatpush3.bf16.msra.mxu1 %v11144_v6 }
0x1752   :  { %4744 = vmatprep.subr.bf16.mxu0 %v11106_v27  ;;  %8327 = vmatprep.subr.bf16.mxu1 %v12069_v43 }
0x1755   :  { %4745 = vmatpush1.bf16.msra.mxu0 %v11108_v37  ;;  %8328 = vmatpush3.bf16.msra.mxu1 %v11148_v8 }
0x1756   :  { %4746 = vmatprep.subr.bf16.mxu0 %v11112_v41  ;;  %8329 = vmatprep.subr.bf16.mxu1 %v12069_v43 }
0x1757   :  { %4454 = vmatmul.mubr.bf16.gmra.mxu0 %v4220_v60 }
0x1758   :  { %4463 = vmatprep.mubr.bf16.mxu0 %v12070_v21 }
0x1759   :  { %4747 = vmatpush1.bf16.msra.mxu0 %v11114_v36  ;;  %8330 = vmatpush3.bf16.msra.mxu1 %v11152_v29 }
0x175a   :  { %4748 = vmatprep.subr.bf16.mxu0 %v11118_v40  ;;  %8331 = vmatprep.subr.bf16.mxu1 %v12069_v43 }
0x175d   :  { %4749 = vmatpush1.bf16.msra.mxu0 %v11120_v4  ;;  %8332 = vmatpush3.bf16.msra.mxu1 %v11156_v35 }
0x175e   :  { %4750 = vmatprep.subr.bf16.mxu0 %v11124_v42  ;;  %8333 = vmatprep.subr.bf16.mxu1 %v12069_v43 }
0x1761   :  { %4751 = vmatpush1.bf16.msra.mxu0 %v11126_v63  ;;  %8334 = vmatpush3.bf16.msra.mxu1 %v11160_v46 }
0x1762   :  { %4752 = vmatprep.subr.bf16.mxu0 %v11128_v45  ;;  %8335 = vmatprep.subr.bf16.mxu1 %v12069_v43 }
0x1765   :  { %4753 = vmatpush1.bf16.msra.mxu0 %v11135_v19  ;;  %8336 = vmatpush3.bf16.msra.mxu1 %v11164_v49 }
0x1766   :  { %4845 = vmatprep.subr.bf16.mxu0 %v11088_v12  ;;  %8341 = vmatprep.subr.bf16.mxu1 %v12069_v43 }
0x17e7   :  { %v4140_v50 = vpop.f32.mrf.mxu0  ;;  %v4181_v23 = vpop.f32.mrf.mxu1 }
0x17e8   :  { %v4187_v15 = vadd.f32 %v4140_v50, %v3089_v39  ;;  %v4201_v61 = vadd.f32 %v9465_v59, %v4181_v23 }
0x17e9   :  { %v4142_v7 = vpop.f32.mrf.mxu0  ;;  %v8295_v31 = vpop.f32.mrf.mxu1 }
0x17ea   :  { %v7182_v3 = vmul.f32 -1.442695, %v4187_v15  ;;  %v4194_v34 = vadd.f32 %v4142_v7, %v3091_v22  ;;  %v7184_v22 = vld [vmem:[%s12046_s3 + $0x9] sm:$0x7] }
0x17eb   :  { %v4144_v25 = vpop.f32.mrf.mxu0  ;;  %v4184_v38 = vpop.f32.mrf.mxu1 }
0x17ec   :  { %9223 = vpow2.f32 %v7182_v3  ;;  %v7183_v18 = vmul.f32 -1.442695, %v4194_v34 }
0x17ed   :  { %v4145_v33 = vpop.f32.mrf.mxu0  ;;  %v8296_v52 = vpop.f32.mrf.mxu1 }
0x17ee   :  { %9225 = vpow2.f32 %v7183_v18 }
0x17f9   :  { %v9224_v58 = vpop.eup %9223 }
0x17fa   :  { %v4191_v14 = vadd.f32 1.0, %v9224_v58 }
0x17fb   :  { %v9226_v1 = vpop.eup %9225 }
0x17fc   :  { %9227 = vrcp.f32 %v4191_v14  ;;  %v4198_v28 = vadd.f32 1.0, %v9226_v1  ;;  %v12103_v1 = vld [vmem:[#allocation11_spill] sm:$0xff] }
0x17fd   :  { %v11258_v59 = vrot.slane %v7184_v22, %v12103_v1  ;;  %v11270_v1 = vrot.slane %v7184_v22, %v12080_v47 }
0x1807   :  { %v11232_v7 = vpop.f32.mrf.mxu1 }
0x1809   :  { %v9228_v20 = vpop.eup %9227  ;;  %v4508_v3 = vpop.f32.mrf.mxu1 }
0x180a   :  { %v4202_v56 = vmul.f32 %v9228_v20, %v4201_v61 }
0x180b   :  { %v11238_v38 = vpop.f32.mrf.mxu1 }
0x180c   :  { %v4203_v10 = vadd.f32 %v4202_v56, %v3155_v26 }
0x180d   :  { %v11242_v52 = vpop.f32.mrf.mxu1 }
0x180e   :  { %9229 = vtanh.f32 %v4203_v10 }
0x180f   :  { %9231 = vrcp.f32 %v4198_v28 }
0x181b   :  { %v9230_v5 = vpop.eup %9229 }
0x181c   :  { %v4205_v32 = vsub.f32 %v11073_v48, %v9230_v5  ;;  %v9232_v57 = vpop.eup %9231 }
0x181e   :  { %v4206_v0 = vmul.f32 %v9232_v57, %v4205_v32 }
0x1820   :  { %v4207_v13 = vadd.f32 %v9230_v5, %v4206_v0 }
0x1822   :  { %v4221_v24 = vpack.c.bf16 %v4207_v13, %v11073_v48  ;;  %v4435_v48 = vpop.f32.mrf.mxu0 }
0x1823   :  { %v4436_v56 = vadd.f32 %v4435_v48, %v11258_v59 }
0x1824   :  { %4464 = vmatmul.mubr.bf16.gmra.mxu0 %v4221_v24  ;;  %8318 = vmatmul.mubr.bf16.gmra.mxu1 %v4221_v24  ;;  %v4437_v9 = vpop.f32.mrf.mxu0 }
0x1825   :  { %4770 = vmatprep.mubr.bf16.mxu0 %v12070_v21  ;;  %8337 = vmatprep.mubr.msk.bf16.mxu1 %vm9564_vm0, %v12069_v43 }
0x1826   :  { %v11220_v60 = vpop.f32.mrf.mxu0 }
0x1828   :  { %v11222_v2 = vpop.f32.mrf.mxu0 }
0x182a   :  { %v11224_v39 = vpop.f32.mrf.mxu0 }
0x182c   :  { %4771 = vmatmul.mubr.bf16.vlgmr.msra.gmra.mxu0 %v12100_v17  ;;  %8338 = vmatmul.mubr.bf16.vlgmr.msra.gmra.mxu1 %v12100_v17  ;;  %v11226_v50 = vpop.f32.mrf.mxu0 }
0x182d   :  { %4846 = vmatpush1.bf16.msra.mxu0 %v11090_v30  ;;  %8342 = vmatpush3.bf16.msra.mxu1 %v11130_v11 }
0x182e   :  { %4847 = vmatprep.subr.bf16.mxu0 %v11094_v51  ;;  %8343 = vmatprep.subr.bf16.mxu1 %v12069_v43  ;;  %v11228_v23 = vpop.f32.mrf.mxu0 }
0x182f   :  { %4877 = vmatprep.mubr.bf16.mxu0 %v12070_v21  ;;  %8357 = vmatprep.mubr.msk.bf16.mxu1 %vm9564_vm0, %v12069_v43 }
0x1830   :  { %v11230_v15 = vpop.f32.mrf.mxu0 }
0x1831   :  { %4848 = vmatpush1.bf16.msra.mxu0 %v11096_v54  ;;  %8344 = vmatpush3.bf16.msra.mxu1 %v11140_v44 }
0x1832   :  { %4849 = vmatprep.subr.bf16.mxu0 %v11100_v55  ;;  %8345 = vmatprep.subr.bf16.mxu1 %v12069_v43  ;;  %v11234_v31 = vpop.f32.mrf.mxu0 }
0x1834   :  { %v11236_v25 = vpop.f32.mrf.mxu0 }
0x1835   :  { %4850 = vmatpush1.bf16.msra.mxu0 %v11102_v16  ;;  %8346 = vmatpush3.bf16.msra.mxu1 %v11144_v6 }
0x1836   :  { %4851 = vmatprep.subr.bf16.mxu0 %v11106_v27  ;;  %8347 = vmatprep.subr.bf16.mxu1 %v12069_v43  ;;  %v11240_v33 = vpop.f32.mrf.mxu0 }
0x1838   :  { %v11244_v53 = vpop.f32.mrf.mxu0 }
0x1839   :  { %4852 = vmatpush1.bf16.msra.mxu0 %v11108_v37  ;;  %8348 = vmatpush3.bf16.msra.mxu1 %v11148_v8 }
0x183a   :  { %4853 = vmatprep.subr.bf16.mxu0 %v11112_v41  ;;  %8349 = vmatprep.subr.bf16.mxu1 %v12069_v43 }
0x183d   :  { %4854 = vmatpush1.bf16.msra.mxu0 %v11114_v36  ;;  %8350 = vmatpush3.bf16.msra.mxu1 %v11152_v29 }
0x183e   :  { %4855 = vmatprep.subr.bf16.mxu0 %v11118_v40  ;;  %8351 = vmatprep.subr.bf16.mxu1 %v12069_v43 }
0x1841   :  { %4856 = vmatpush1.bf16.msra.mxu0 %v11120_v4  ;;  %8352 = vmatpush3.bf16.msra.mxu1 %v11156_v35 }
0x1842   :  { %4857 = vmatprep.subr.bf16.mxu0 %v11124_v42  ;;  %8353 = vmatprep.subr.bf16.mxu1 %v12069_v43 }
0x1845   :  { %4858 = vmatpush1.bf16.msra.mxu0 %v11126_v63  ;;  %8354 = vmatpush3.bf16.msra.mxu1 %v11160_v46 }
0x1846   :  { %4859 = vmatprep.subr.bf16.mxu0 %v11128_v45  ;;  %8355 = vmatprep.subr.bf16.mxu1 %v12069_v43 }
0x1849   :  { %4860 = vmatpush1.bf16.msra.mxu0 %v11135_v19  ;;  %8356 = vmatpush3.bf16.msra.mxu1 %v11164_v49 }
0x184a   :  { %4952 = vmatprep.subr.bf16.mxu0 %v11088_v12  ;;  %8361 = vmatprep.subr.bf16.mxu1 %v12069_v43 }
0x18e4   :  { %v11249_v34 = vpop.f32.mrf.mxu0  ;;  %v11251_v18 = vpop.f32.mrf.mxu1 }
0x18e5   :  { %12101 = vst [vmem:[#allocation17_spill] sm:$0xff] %v11251_v18 }
0x18e6   :  { %v11253_v58 = vpop.f32.mrf.mxu0  ;;  %v11255_v14 = vpop.f32.mrf.mxu1 }
0x18e7   :  { %12102 = vst [vmem:[#allocation14_spill] sm:$0xff] %v11253_v58 }
0x18e8   :  { %v11260_v61 = vpop.f32.mrf.mxu0  ;;  %v11262_v20 = vpop.f32.mrf.mxu1 }
0x18e9   :  { %12104 = vst [vmem:[#allocation13_spill] sm:$0xff] %v11260_v61  ;;  %12105 = vst [vmem:[#allocation15_spill] sm:$0xff] %v11262_v20 }
0x18ea   :  { %v11264_v62 = vpop.f32.mrf.mxu0  ;;  %v11266_v26 = vpop.f32.mrf.mxu1 }
0x18eb   :  { %12106 = vst [vmem:[#allocation18_spill] sm:$0xff] %v11264_v62  ;;  %v4438_v62 = vadd.f32 %v4437_v9, %v11270_v1 }
0x18ec   :  { %v4772_v10 = vpop.f32.mrf.mxu0  ;;  %v4813_v28 = vpop.f32.mrf.mxu1 }
0x18ed   :  { %v4819_v5 = vadd.f32 %v4772_v10, %v4436_v56  ;;  %v11276_v56 = vld [vmem:[%s12047_s4 + $0x3] ss:$0 sm:$0xff] }
0x18ee   :  { %v4774_v32 = vpop.f32.mrf.mxu0  ;;  %v8339_v57 = vpop.f32.mrf.mxu1  ;;  %v4833_v10 = vadd.f32 %v11276_v56, %v4813_v28 }
0x18ef   :  { %v7235_v0 = vmul.f32 -1.442695, %v4819_v5  ;;  %v4826_v61 = vadd.f32 %v4774_v32, %v4438_v62  ;;  %v12107_v57 = vld [vmem:[#allocation12_spill] sm:$0xff] }
0x18f0   :  { %v4776_v13 = vpop.f32.mrf.mxu0  ;;  %v4816_v24 = vpop.f32.mrf.mxu1 }
0x18f1   :  { %9233 = vpow2.f32 %v7235_v0  ;;  %v7236_v18 = vmul.f32 -1.442695, %v4826_v61  ;;  %v11280_v0 = vrot.slane %v7184_v22, %v12107_v57 }
0x18f2   :  { %v4777_v17 = vpop.f32.mrf.mxu0  ;;  %v8340_v20 = vpop.f32.mrf.mxu1 }
0x18f3   :  { %9235 = vpow2.f32 %v7236_v18  ;;  %v4509_v9 = vadd.f32 %v4508_v3, %v11280_v0  ;;  %v4440_v3 = vadd.f32 %v11220_v60, %v11258_v59 }
0x18fe   :  { %v9234_v58 = vpop.eup %9233 }
0x18ff   :  { %v4823_v48 = vadd.f32 1.0, %v9234_v58 }
0x1900   :  { %v9236_v5 = vpop.eup %9235 }
0x1901   :  { %9237 = vrcp.f32 %v4823_v48  ;;  %v4830_v61 = vadd.f32 1.0, %v9236_v5 }
0x190e   :  { %v9238_v17 = vpop.eup %9237 }
0x190f   :  { %v4834_v20 = vmul.f32 %v9238_v17, %v4833_v10 }
0x1911   :  { %v4835_v62 = vadd.f32 %v4834_v20, %v4509_v9 }
0x1913   :  { %9239 = vtanh.f32 %v4835_v62 }
0x1914   :  { %9241 = vrcp.f32 %v4830_v61 }
0x1920   :  { %v9240_v18 = vpop.eup %9239 }
0x1921   :  { %v4837_v58 = vsub.f32 0.0, %v9240_v18  ;;  %v9242_v32 = vpop.eup %9241 }
0x1923   :  { %v4838_v13 = vmul.f32 %v9242_v32, %v4837_v58  ;;  %v4442_v58 = vadd.f32 %v11222_v2, %v11270_v1 }
0x1925   :  { %v11283_v24 = vadd.f32 %v9240_v18, %v4838_v13 }
0x1927   :  { %v4844_v28 = vpack.c.bf16 %v11283_v24, %v11283_v24 }
0x1929   :  { %4878 = vmatmul.mubr.bf16.vlgmr.msra.gmra.mxu0 %v4844_v28  ;;  %8358 = vmatmul.mubr.bf16.vlgmr.msra.gmra.mxu1 %v4844_v28 }
0x192a   :  { %4953 = vmatpush1.bf16.msra.mxu0 %v11090_v30  ;;  %8362 = vmatpush3.bf16.msra.mxu1 %v11130_v11 }
0x192b   :  { %4954 = vmatprep.subr.bf16.mxu0 %v11094_v51  ;;  %8363 = vmatprep.subr.bf16.mxu1 %v12069_v43 }
0x192c   :  { %4984 = vmatprep.mubr.bf16.mxu0 %v12070_v21  ;;  %8377 = vmatprep.mubr.msk.bf16.mxu1 %vm9564_vm0, %v12069_v43 }
0x192e   :  { %4955 = vmatpush1.bf16.msra.mxu0 %v11096_v54  ;;  %8364 = vmatpush3.bf16.msra.mxu1 %v11140_v44 }
0x192f   :  { %4956 = vmatprep.subr.bf16.mxu0 %v11100_v55  ;;  %8365 = vmatprep.subr.bf16.mxu1 %v12069_v43 }
0x1932   :  { %4957 = vmatpush1.bf16.msra.mxu0 %v11102_v16  ;;  %8366 = vmatpush3.bf16.msra.mxu1 %v11144_v6 }
0x1933   :  { %4958 = vmatprep.subr.bf16.mxu0 %v11106_v27  ;;  %8367 = vmatprep.subr.bf16.mxu1 %v12069_v43 }
0x1936   :  { %4959 = vmatpush1.bf16.msra.mxu0 %v11108_v37  ;;  %8368 = vmatpush3.bf16.msra.mxu1 %v11148_v8 }
0x1937   :  { %4960 = vmatprep.subr.bf16.mxu0 %v11112_v41  ;;  %8369 = vmatprep.subr.bf16.mxu1 %v12069_v43 }
0x193a   :  { %4961 = vmatpush1.bf16.msra.mxu0 %v11114_v36  ;;  %8370 = vmatpush3.bf16.msra.mxu1 %v11152_v29 }
0x193b   :  { %4962 = vmatprep.subr.bf16.mxu0 %v11118_v40  ;;  %8371 = vmatprep.subr.bf16.mxu1 %v12069_v43 }
0x193e   :  { %4963 = vmatpush1.bf16.msra.mxu0 %v11120_v4  ;;  %8372 = vmatpush3.bf16.msra.mxu1 %v11156_v35 }
0x193f   :  { %4964 = vmatprep.subr.bf16.mxu0 %v11124_v42  ;;  %8373 = vmatprep.subr.bf16.mxu1 %v12069_v43 }
0x1942   :  { %4965 = vmatpush1.bf16.msra.mxu0 %v11126_v63  ;;  %8374 = vmatpush3.bf16.msra.mxu1 %v11160_v46 }
0x1943   :  { %4966 = vmatprep.subr.bf16.mxu0 %v11128_v45  ;;  %8375 = vmatprep.subr.bf16.mxu1 %v12069_v43 }
0x1946   :  { %4967 = vmatpush1.bf16.msra.mxu0 %v11135_v19  ;;  %8376 = vmatpush3.bf16.msra.mxu1 %v11164_v49 }
0x1947   :  { %5059 = vmatprep.subr.bf16.mxu0 %v11088_v12  ;;  %8381 = vmatprep.subr.bf16.mxu1 %v12069_v43 }
0x19e9   :  { %v4879_v22 = vpop.f32.mrf.mxu0  ;;  %v4920_v48 = vpop.f32.mrf.mxu1 }
0x19ea   :  { %v4926_v10 = vadd.f32 %v4879_v22, %v4440_v3  ;;  %v4940_v3 = vadd.f32 %v11276_v56, %v4920_v48 }
0x19eb   :  { %v4881_v5 = vpop.f32.mrf.mxu0  ;;  %v8359_v17 = vpop.f32.mrf.mxu1 }
0x19ec   :  { %v7237_v9 = vmul.f32 -1.442695, %v4926_v10  ;;  %v4933_v32 = vadd.f32 %v4881_v5, %v4442_v58  ;;  %v4512_v10 = vadd.f32 %v11242_v52, %v11280_v0  ;;  %v4446_v52 = vadd.f32 %v11224_v39, %v11258_v59 }
0x19ed   :  { %v4883_v20 = vpop.f32.mrf.mxu0  ;;  %v4923_v61 = vpop.f32.mrf.mxu1 }
0x19ee   :  { %9243 = vpow2.f32 %v7237_v9  ;;  %v7238_v13 = vmul.f32 -1.442695, %v4933_v32 }
0x19ef   :  { %v4884_v62 = vpop.f32.mrf.mxu0  ;;  %v8360_v18 = vpop.f32.mrf.mxu1 }
0x19f0   :  { %9245 = vpow2.f32 %v7238_v13 }
0x19fb   :  { %v9244_v28 = vpop.eup %9243 }
0x19fc   :  { %v4930_v57 = vadd.f32 1.0, %v9244_v28 }
0x19fd   :  { %v9246_v60 = vpop.eup %9245 }
0x19fe   :  { %9247 = vrcp.f32 %v4930_v57  ;;  %v4937_v20 = vadd.f32 1.0, %v9246_v60 }
0x1a0b   :  { %v9248_v22 = vpop.eup %9247 }
0x1a0c   :  { %v4941_v17 = vmul.f32 %v9248_v22, %v4940_v3 }
0x1a0e   :  { %v4942_v9 = vadd.f32 %v4941_v17, %v4512_v10 }
0x1a10   :  { %9249 = vtanh.f32 %v4942_v9  ;;  %v4448_v9 = vadd.f32 %v11226_v50, %v11270_v1 }
0x1a11   :  { %9251 = vrcp.f32 %v4937_v20 }
0x1a1d   :  { %v9250_v61 = vpop.eup %9249 }
0x1a1e   :  { %v4944_v2 = vsub.f32 %v11283_v24, %v9250_v61  ;;  %v9252_v5 = vpop.eup %9251 }
0x1a20   :  { %v4945_v62 = vmul.f32 %v9252_v5, %v4944_v2 }
0x1a22   :  { %v11330_v18 = vadd.f32 %v9250_v61, %v4945_v62 }
0x1a24   :  { %v4951_v57 = vpack.c.bf16 %v11330_v18, %v11330_v18 }
0x1a26   :  { %4985 = vmatmul.mubr.bf16.vlgmr.msra.gmra.mxu0 %v4951_v57  ;;  %8378 = vmatmul.mubr.bf16.vlgmr.msra.gmra.mxu1 %v4951_v57 }
0x1a27   :  { %5060 = vmatpush1.bf16.msra.mxu0 %v11090_v30  ;;  %8382 = vmatpush3.bf16.msra.mxu1 %v11130_v11 }
0x1a28   :  { %5061 = vmatprep.subr.bf16.mxu0 %v11094_v51  ;;  %8383 = vmatprep.subr.bf16.mxu1 %v12069_v43 }
0x1a29   :  { %5091 = vmatprep.mubr.bf16.mxu0 %v12070_v21  ;;  %8397 = vmatprep.mubr.msk.bf16.mxu1 %vm9564_vm0, %v12069_v43 }
0x1a2b   :  { %5062 = vmatpush1.bf16.msra.mxu0 %v11096_v54  ;;  %8384 = vmatpush3.bf16.msra.mxu1 %v11140_v44 }
0x1a2c   :  { %5063 = vmatprep.subr.bf16.mxu0 %v11100_v55  ;;  %8385 = vmatprep.subr.bf16.mxu1 %v12069_v43 }
0x1a2f   :  { %5064 = vmatpush1.bf16.msra.mxu0 %v11102_v16  ;;  %8386 = vmatpush3.bf16.msra.mxu1 %v11144_v6 }
0x1a30   :  { %5065 = vmatprep.subr.bf16.mxu0 %v11106_v27  ;;  %8387 = vmatprep.subr.bf16.mxu1 %v12069_v43 }
0x1a33   :  { %5066 = vmatpush1.bf16.msra.mxu0 %v11108_v37  ;;  %8388 = vmatpush3.bf16.msra.mxu1 %v11148_v8 }
0x1a34   :  { %5067 = vmatprep.subr.bf16.mxu0 %v11112_v41  ;;  %8389 = vmatprep.subr.bf16.mxu1 %v12069_v43 }
0x1a37   :  { %5068 = vmatpush1.bf16.msra.mxu0 %v11114_v36  ;;  %8390 = vmatpush3.bf16.msra.mxu1 %v11152_v29 }
0x1a38   :  { %5069 = vmatprep.subr.bf16.mxu0 %v11118_v40  ;;  %8391 = vmatprep.subr.bf16.mxu1 %v12069_v43 }
0x1a3b   :  { %5070 = vmatpush1.bf16.msra.mxu0 %v11120_v4  ;;  %8392 = vmatpush3.bf16.msra.mxu1 %v11156_v35 }
0x1a3c   :  { %5071 = vmatprep.subr.bf16.mxu0 %v11124_v42  ;;  %8393 = vmatprep.subr.bf16.mxu1 %v12069_v43 }
0x1a3f   :  { %5072 = vmatpush1.bf16.msra.mxu0 %v11126_v63  ;;  %8394 = vmatpush3.bf16.msra.mxu1 %v11160_v46 }
0x1a40   :  { %5073 = vmatprep.subr.bf16.mxu0 %v11128_v45  ;;  %8395 = vmatprep.subr.bf16.mxu1 %v12069_v43 }
0x1a43   :  { %5074 = vmatpush1.bf16.msra.mxu0 %v11135_v19  ;;  %8396 = vmatpush3.bf16.msra.mxu1 %v11164_v49 }
0x1a44   :  { %5166 = vmatprep.subr.bf16.mxu0 %v11088_v12  ;;  %8401 = vmatprep.subr.bf16.mxu1 %v12069_v43 }
0x1ae6   :  { %v4986_v48 = vpop.f32.mrf.mxu0  ;;  %v5027_v58 = vpop.f32.mrf.mxu1 }
0x1ae7   :  { %v5033_v32 = vadd.f32 %v4986_v48, %v4446_v52  ;;  %v5047_v62 = vadd.f32 %v11276_v56, %v5027_v58  ;;  %v4517_v52 = vadd.f32 %v11232_v7, %v11280_v0  ;;  %v4450_v7 = vadd.f32 %v11228_v23, %v11258_v59 }
0x1ae8   :  { %v4988_v13 = vpop.f32.mrf.mxu0  ;;  %v8379_v28 = vpop.f32.mrf.mxu1 }
0x1ae9   :  { %v7239_v60 = vmul.f32 -1.442695, %v5033_v32  ;;  %v5040_v20 = vadd.f32 %v4988_v13, %v4448_v9 }
0x1aea   :  { %v4990_v3 = vpop.f32.mrf.mxu0  ;;  %v5030_v22 = vpop.f32.mrf.mxu1 }
0x1aeb   :  { %9253 = vpow2.f32 %v7239_v60  ;;  %v7240_v61 = vmul.f32 -1.442695, %v5040_v20 }
0x1aec   :  { %v4991_v10 = vpop.f32.mrf.mxu0  ;;  %v8380_v17 = vpop.f32.mrf.mxu1 }
0x1aed   :  { %9255 = vpow2.f32 %v7240_v61 }
0x1af8   :  { %v9254_v2 = vpop.eup %9253 }
0x1af9   :  { %v5037_v5 = vadd.f32 1.0, %v9254_v2 }
0x1afa   :  { %v9256_v39 = vpop.eup %9255 }
0x1afb   :  { %9257 = vrcp.f32 %v5037_v5  ;;  %v5044_v28 = vadd.f32 1.0, %v9256_v39 }
0x1b08   :  { %v9258_v57 = vpop.eup %9257 }
0x1b09   :  { %v5048_v48 = vmul.f32 %v9258_v57, %v5047_v62 }
0x1b0b   :  { %v5049_v32 = vadd.f32 %v5048_v48, %v4517_v52  ;;  %v4452_v52 = vadd.f32 %v11230_v15, %v11270_v1 }
0x1b0d   :  { %9259 = vtanh.f32 %v5049_v32 }
0x1b0e   :  { %9261 = vrcp.f32 %v5044_v28 }
0x1b1a   :  { %v9260_v60 = vpop.eup %9259 }
0x1b1b   :  { %v5051_v50 = vsub.f32 %v11330_v18, %v9260_v60  ;;  %v9262_v13 = vpop.eup %9261 }
0x1b1d   :  { %v5052_v3 = vmul.f32 %v9262_v13, %v5051_v50 }
0x1b1f   :  { %v11377_v22 = vadd.f32 %v9260_v60, %v5052_v3  ;;  %v4520_v3 = vadd.f32 %v11238_v38, %v11280_v0  ;;  %v4456_v38 = vadd.f32 %v11234_v31, %v11258_v59 }
0x1b21   :  { %v5058_v10 = vpack.c.bf16 %v11377_v22, %v11377_v22 }
0x1b23   :  { %5092 = vmatmul.mubr.bf16.vlgmr.msra.gmra.mxu0 %v5058_v10  ;;  %8398 = vmatmul.mubr.bf16.vlgmr.msra.gmra.mxu1 %v5058_v10 }
0x1b24   :  { %5167 = vmatpush1.bf16.msra.mxu0 %v11090_v30  ;;  %8402 = vmatpush3.bf16.msra.mxu1 %v11130_v11 }
0x1b25   :  { %5168 = vmatprep.subr.bf16.mxu0 %v11094_v51  ;;  %8403 = vmatprep.subr.bf16.mxu1 %v12069_v43 }
0x1b26   :  { %5198 = vmatprep.mubr.bf16.mxu0 %v12070_v21  ;;  %8417 = vmatprep.mubr.msk.bf16.mxu1 %vm9564_vm0, %v12069_v43 }
0x1b28   :  { %5169 = vmatpush1.bf16.msra.mxu0 %v11096_v54  ;;  %8404 = vmatpush3.bf16.msra.mxu1 %v11140_v44 }
0x1b29   :  { %5170 = vmatprep.subr.bf16.mxu0 %v11100_v55  ;;  %8405 = vmatprep.subr.bf16.mxu1 %v12069_v43 }
0x1b2c   :  { %5171 = vmatpush1.bf16.msra.mxu0 %v11102_v16  ;;  %8406 = vmatpush3.bf16.msra.mxu1 %v11144_v6 }
0x1b2d   :  { %5172 = vmatprep.subr.bf16.mxu0 %v11106_v27  ;;  %8407 = vmatprep.subr.bf16.mxu1 %v12069_v43 }
0x1b30   :  { %5173 = vmatpush1.bf16.msra.mxu0 %v11108_v37  ;;  %8408 = vmatpush3.bf16.msra.mxu1 %v11148_v8 }
0x1b31   :  { %5174 = vmatprep.subr.bf16.mxu0 %v11112_v41  ;;  %8409 = vmatprep.subr.bf16.mxu1 %v12069_v43 }
0x1b34   :  { %5175 = vmatpush1.bf16.msra.mxu0 %v11114_v36  ;;  %8410 = vmatpush3.bf16.msra.mxu1 %v11152_v29 }
0x1b35   :  { %5176 = vmatprep.subr.bf16.mxu0 %v11118_v40  ;;  %8411 = vmatprep.subr.bf16.mxu1 %v12069_v43 }
0x1b38   :  { %5177 = vmatpush1.bf16.msra.mxu0 %v11120_v4  ;;  %8412 = vmatpush3.bf16.msra.mxu1 %v11156_v35 }
0x1b39   :  { %5178 = vmatprep.subr.bf16.mxu0 %v11124_v42  ;;  %8413 = vmatprep.subr.bf16.mxu1 %v12069_v43 }
0x1b3c   :  { %5179 = vmatpush1.bf16.msra.mxu0 %v11126_v63  ;;  %8414 = vmatpush3.bf16.msra.mxu1 %v11160_v46 }
0x1b3d   :  { %5180 = vmatprep.subr.bf16.mxu0 %v11128_v45  ;;  %8415 = vmatprep.subr.bf16.mxu1 %v12069_v43 }
0x1b40   :  { %5181 = vmatpush1.bf16.msra.mxu0 %v11135_v19  ;;  %8416 = vmatpush3.bf16.msra.mxu1 %v11164_v49 }
0x1b41   :  { %5273 = vmatprep.subr.bf16.mxu0 %v11088_v12  ;;  %8421 = vmatprep.subr.bf16.mxu1 %v12069_v43 }
0x1be3   :  { %v5093_v58 = vpop.f32.mrf.mxu0  ;;  %v5134_v17 = vpop.f32.mrf.mxu1 }
0x1be4   :  { %v5140_v9 = vadd.f32 %v5093_v58, %v4450_v7  ;;  %v5154_v50 = vadd.f32 %v11276_v56, %v5134_v17 }
0x1be5   :  { %v5095_v20 = vpop.f32.mrf.mxu0  ;;  %v8399_v61 = vpop.f32.mrf.mxu1 }
0x1be6   :  { %v7241_v2 = vmul.f32 -1.442695, %v5140_v9  ;;  %v5147_v48 = vadd.f32 %v5095_v20, %v4452_v52 }
0x1be7   :  { %v5097_v5 = vpop.f32.mrf.mxu0  ;;  %v5137_v39 = vpop.f32.mrf.mxu1 }
0x1be8   :  { %9263 = vpow2.f32 %v7241_v2  ;;  %v7242_v32 = vmul.f32 -1.442695, %v5147_v48 }
0x1be9   :  { %v5098_v62 = vpop.f32.mrf.mxu0  ;;  %v8400_v57 = vpop.f32.mrf.mxu1 }
0x1bea   :  { %9265 = vpow2.f32 %v7242_v32 }
0x1bf5   :  { %v9264_v28 = vpop.eup %9263 }
0x1bf6   :  { %v5144_v60 = vadd.f32 1.0, %v9264_v28 }
0x1bf7   :  { %v9266_v23 = vpop.eup %9265 }
0x1bf8   :  { %9267 = vrcp.f32 %v5144_v60  ;;  %v5151_v58 = vadd.f32 1.0, %v9266_v23 }
0x1c05   :  { %v9268_v13 = vpop.eup %9267 }
0x1c06   :  { %v5155_v10 = vmul.f32 %v9268_v13, %v5154_v50  ;;  %v4458_v50 = vadd.f32 %v11236_v25, %v11270_v1 }
0x1c08   :  { %v5156_v7 = vadd.f32 %v5155_v10, %v4520_v3 }
0x1c0a   :  { %9269 = vtanh.f32 %v5156_v7 }
0x1c0b   :  { %9271 = vrcp.f32 %v5151_v58 }
0x1c17   :  { %v9270_v9 = vpop.eup %9269 }
0x1c18   :  { %v5158_v15 = vsub.f32 %v11377_v22, %v9270_v9  ;;  %v9272_v20 = vpop.eup %9271 }
0x1c1a   :  { %v5159_v61 = vmul.f32 %v9272_v20, %v5158_v15  ;;  %v4525_v15 = vadd.f32 %v11255_v14, %v11280_v0 }
0x1c1c   :  { %v11424_v2 = vadd.f32 %v9270_v9, %v5159_v61 }
0x1c1e   :  { %v5165_v5 = vpack.c.bf16 %v11424_v2, %v11424_v2 }
0x1c20   :  { %5199 = vmatmul.mubr.bf16.vlgmr.msra.gmra.mxu0 %v5165_v5  ;;  %8418 = vmatmul.mubr.bf16.vlgmr.msra.gmra.mxu1 %v5165_v5 }
0x1c21   :  { %5274 = vmatpush1.bf16.msra.mxu0 %v11090_v30  ;;  %8422 = vmatpush3.bf16.msra.mxu1 %v11130_v11 }
0x1c22   :  { %5275 = vmatprep.subr.bf16.mxu0 %v11094_v51  ;;  %8423 = vmatprep.subr.bf16.mxu1 %v12069_v43 }
0x1c23   :  { %5305 = vmatprep.mubr.bf16.mxu0 %v12070_v21  ;;  %8437 = vmatprep.mubr.msk.bf16.mxu1 %vm9564_vm0, %v12069_v43 }
0x1c25   :  { %5276 = vmatpush1.bf16.msra.mxu0 %v11096_v54  ;;  %8424 = vmatpush3.bf16.msra.mxu1 %v11140_v44 }
0x1c26   :  { %5277 = vmatprep.subr.bf16.mxu0 %v11100_v55  ;;  %8425 = vmatprep.subr.bf16.mxu1 %v12069_v43 }
0x1c29   :  { %5278 = vmatpush1.bf16.msra.mxu0 %v11102_v16  ;;  %8426 = vmatpush3.bf16.msra.mxu1 %v11144_v6 }
0x1c2a   :  { %5279 = vmatprep.subr.bf16.mxu0 %v11106_v27  ;;  %8427 = vmatprep.subr.bf16.mxu1 %v12069_v43 }
0x1c2d   :  { %5280 = vmatpush1.bf16.msra.mxu0 %v11108_v37  ;;  %8428 = vmatpush3.bf16.msra.mxu1 %v11148_v8 }
0x1c2e   :  { %5281 = vmatprep.subr.bf16.mxu0 %v11112_v41  ;;  %8429 = vmatprep.subr.bf16.mxu1 %v12069_v43 }
0x1c31   :  { %5282 = vmatpush1.bf16.msra.mxu0 %v11114_v36  ;;  %8430 = vmatpush3.bf16.msra.mxu1 %v11152_v29 }
0x1c32   :  { %5283 = vmatprep.subr.bf16.mxu0 %v11118_v40  ;;  %8431 = vmatprep.subr.bf16.mxu1 %v12069_v43 }
0x1c35   :  { %5284 = vmatpush1.bf16.msra.mxu0 %v11120_v4  ;;  %8432 = vmatpush3.bf16.msra.mxu1 %v11156_v35 }
0x1c36   :  { %5285 = vmatprep.subr.bf16.mxu0 %v11124_v42  ;;  %8433 = vmatprep.subr.bf16.mxu1 %v12069_v43 }
0x1c39   :  { %5286 = vmatpush1.bf16.msra.mxu0 %v11126_v63  ;;  %8434 = vmatpush3.bf16.msra.mxu1 %v11160_v46 }
0x1c3a   :  { %5287 = vmatprep.subr.bf16.mxu0 %v11128_v45  ;;  %8435 = vmatprep.subr.bf16.mxu1 %v12069_v43 }
0x1c3d   :  { %5288 = vmatpush1.bf16.msra.mxu0 %v11135_v19  ;;  %8436 = vmatpush3.bf16.msra.mxu1 %v11164_v49 }
0x1c3e   :  { %5380 = vmatprep.subr.bf16.mxu0 %v11088_v12  ;;  %8441 = vmatprep.subr.bf16.mxu1 %v12069_v43 }
0x1ce0   :  { %v5200_v17 = vpop.f32.mrf.mxu0  ;;  %v5241_v39 = vpop.f32.mrf.mxu1 }
0x1ce1   :  { %v5247_v62 = vadd.f32 %v5200_v17, %v4456_v38  ;;  %v5261_v58 = vadd.f32 %v11276_v56, %v5241_v39 }
0x1ce2   :  { %v5202_v57 = vpop.f32.mrf.mxu0  ;;  %v8419_v52 = vpop.f32.mrf.mxu1 }
0x1ce3   :  { %v7243_v48 = vmul.f32 -1.442695, %v5247_v62  ;;  %v5254_v13 = vadd.f32 %v5202_v57, %v4458_v50  ;;  %v9471_v50 = vld [vmem:[#allocation7 + $0x2bc] ss:$12 sps:$4 sm:$0xff]  }
0x1ce4   :  { %v5204_v32 = vpop.f32.mrf.mxu0  ;;  %v5244_v28 = vpop.f32.mrf.mxu1 }
0x1ce5   :  { %9273 = vpow2.f32 %v7243_v48  ;;  %v7244_v3 = vmul.f32 -1.442695, %v5254_v13  ;;  %v9466_v32 = vld [vmem:[#allocation7 + $0x2e8] ss:$12 sps:$4 sm:$0xff]   ;;  %v9472_v13 = vld [vmem:[#allocation7 + $0x2b8] ss:$12 sps:$4 sm:$0xff]  }
0x1ce6   :  { %v5205_v60 = vpop.f32.mrf.mxu0  ;;  %v8420_v23 = vpop.f32.mrf.mxu1  ;;  %v9468_v28 = vld [vmem:[#allocation7 + $0x2d4] ss:$12 sps:$4 sm:$0xff]  }
0x1ce7   :  { %9275 = vpow2.f32 %v7244_v3  ;;  %v9469_v60 = vld [vmem:[#allocation7 + $0x2d0] ss:$12 sps:$4 sm:$0xff]   ;;  %v9470_v23 = vld [vmem:[#allocation7 + $0x2d8] ss:$12 sps:$4 sm:$0xff]   ;;  %v9473_v3 = vld [vmem:[#allocation7 + $0x2c0] ss:$12 sps:$4 sm:$0xff]  }
0x1cf2   :  { %v9274_v10 = vpop.eup %9273 }
0x1cf3   :  { %v5251_v7 = vadd.f32 1.0, %v9274_v10  ;;  %v9474_v10 = vld [vmem:[#allocation7 + $0x2a4] ss:$12 sps:$4 sm:$0xff]  }
0x1cf4   :  { %v9276_v31 = vpop.eup %9275 }
0x1cf5   :  { %9277 = vrcp.f32 %v5251_v7  ;;  %v5258_v5 = vadd.f32 1.0, %v9276_v31  ;;  %v9475_v7 = vld [vmem:[#allocation7 + $0x2a0] ss:$12 sps:$4 sm:$0xff]   ;;  %v9476_v31 = vld [vmem:[#allocation7 + $0x2a8] ss:$12 sps:$4 sm:$0xff]  }
0x1d02   :  { %v9278_v9 = vpop.eup %9277 }
0x1d03   :  { %v5262_v20 = vmul.f32 %v9278_v9, %v5261_v58  ;;  %v9477_v58 = vld [vmem:[#allocation7 + $0x28c] ss:$12 sps:$4 sm:$0xff]   ;;  %v9478_v9 = vld [vmem:[#allocation7 + $0x288] ss:$12 sps:$4 sm:$0xff]  }
0x1d05   :  { %v5263_v61 = vadd.f32 %v5262_v20, %v4525_v15  ;;  %v9479_v15 = vld [vmem:[#allocation7 + $0x290] ss:$12 sps:$4 sm:$0xff]   ;;  %v9480_v20 = vld [vmem:[#allocation7 + $0x274] ss:$12 sps:$4 sm:$0xff]  }
0x1d07   :  { %9279 = vtanh.f32 %v5263_v61  ;;  %v9481_v61 = vld [vmem:[#allocation7 + $0x270] ss:$12 sps:$4 sm:$0xff]  }
0x1d08   :  { %9281 = vrcp.f32 %v5258_v5  ;;  %v9482_v5 = vld [vmem:[#allocation7 + $0x278] ss:$12 sps:$4 sm:$0xff]  }
0x1d14   :  { %v9280_v38 = vpop.eup %9279 }
0x1d15   :  { %v5265_v25 = vsub.f32 %v11424_v2, %v9280_v38  ;;  %v9282_v17 = vpop.eup %9281 }
0x1d17   :  { %v5266_v62 = vmul.f32 %v9282_v17, %v5265_v25  ;;  %v9484_v25 = vld [vmem:[#allocation7 + $0x258] ss:$12 sps:$4 sm:$0xff]   ;;  %v9485_v17 = vld [vmem:[#allocation7 + $0x260] ss:$12 sps:$4 sm:$0xff]  }
0x1d19   :  { %v11471_v57 = vadd.f32 %v9280_v38, %v5266_v62  ;;  %v9483_v38 = vld [vmem:[#allocation7 + $0x25c] ss:$12 sps:$4 sm:$0xff]   ;;  %v9486_v62 = vld [vmem:[#allocation7 + $0x244] ss:$12 sps:$4 sm:$0xff]  }
0x1d1b   :  { %v5272_v52 = vpack.c.bf16 %v11471_v57, %v11471_v57 }
0x1d1d   :  { %5306 = vmatmul.mubr.bf16.vlgmr.msra.gmra.mxu0 %v5272_v52  ;;  %8438 = vmatmul.mubr.bf16.vlgmr.msra.gmra.mxu1 %v5272_v52  ;;  %v9487_v52 = vld [vmem:[#allocation7 + $0x240] ss:$12 sps:$4 sm:$0xff]  }
0x1d1e   :  { %5381 = vmatpush1.bf16.msra.mxu0 %v11090_v30  ;;  %8442 = vmatpush3.bf16.msra.mxu1 %v11130_v11  ;;  %v4460_v30 = vadd.f32 %v11240_v33, %v11258_v59 }
0x1d1f   :  { %5382 = vmatprep.subr.bf16.mxu0 %v11094_v51  ;;  %8443 = vmatprep.subr.bf16.mxu1 %v12069_v43 }
0x1d20   :  { %5412 = vmatprep.mubr.bf16.mxu0 %v12070_v21  ;;  %8457 = vmatprep.mubr.msk.bf16.mxu1 %vm9564_vm0, %v12069_v43 }
0x1d22   :  { %5383 = vmatpush1.bf16.msra.mxu0 %v11096_v54  ;;  %8444 = vmatpush3.bf16.msra.mxu1 %v11140_v44 }
0x1d23   :  { %5384 = vmatprep.subr.bf16.mxu0 %v11100_v55  ;;  %8445 = vmatprep.subr.bf16.mxu1 %v12069_v43 }
0x1d26   :  { %5385 = vmatpush1.bf16.msra.mxu0 %v11102_v16  ;;  %8446 = vmatpush3.bf16.msra.mxu1 %v11144_v6 }
0x1d27   :  { %5386 = vmatprep.subr.bf16.mxu0 %v11106_v27  ;;  %8447 = vmatprep.subr.bf16.mxu1 %v12069_v43 }
0x1d2a   :  { %5387 = vmatpush1.bf16.msra.mxu0 %v11108_v37  ;;  %8448 = vmatpush3.bf16.msra.mxu1 %v11148_v8  ;;  %v4528_v8 = vadd.f32 %v11266_v26, %v11280_v0  ;;  %v9467_v26 = vld [vmem:[#allocation7 + $0x2f0] ss:$12 sps:$4 sm:$0xff]  }
0x1d2b   :  { %5388 = vmatprep.subr.bf16.mxu0 %v11112_v41  ;;  %8449 = vmatprep.subr.bf16.mxu1 %v12069_v43 }
0x1d2e   :  { %5389 = vmatpush1.bf16.msra.mxu0 %v11114_v36  ;;  %8450 = vmatpush3.bf16.msra.mxu1 %v11152_v29 }
0x1d2f   :  { %5390 = vmatprep.subr.bf16.mxu0 %v11118_v40  ;;  %8451 = vmatprep.subr.bf16.mxu1 %v12069_v43 }
0x1d32   :  { %5391 = vmatpush1.bf16.msra.mxu0 %v11120_v4  ;;  %8452 = vmatpush3.bf16.msra.mxu1 %v11156_v35 }
0x1d33   :  { %5392 = vmatprep.subr.bf16.mxu0 %v11124_v42  ;;  %8453 = vmatprep.subr.bf16.mxu1 %v12069_v43  ;;  %v4462_v42 = vadd.f32 %v11244_v53, %v11270_v1 }
0x1d36   :  { %5393 = vmatpush1.bf16.msra.mxu0 %v11126_v63  ;;  %8454 = vmatpush3.bf16.msra.mxu1 %v11160_v46 }
0x1d37   :  { %5394 = vmatprep.subr.bf16.mxu0 %v11128_v45  ;;  %8455 = vmatprep.subr.bf16.mxu1 %v12069_v43 }
0x1d3a   :  { %5395 = vmatpush1.bf16.msra.mxu0 %v11135_v19  ;;  %8456 = vmatpush3.bf16.msra.mxu1 %v11164_v49 }
0x1d3b   :  { %5487 = vmatprep.subr.bf16.mxu0 %v11088_v12  ;;  %8461 = vmatprep.subr.bf16.mxu1 %v12069_v43 }
0x1ddd   :  { %v5307_v51 = vpop.f32.mrf.mxu0  ;;  %v5348_v54 = vpop.f32.mrf.mxu1 }
0x1dde   :  { %v5354_v55 = vadd.f32 %v5307_v51, %v4460_v30  ;;  %v5368_v44 = vadd.f32 %v11276_v56, %v5348_v54  ;;  %v9488_v30 = vld [vmem:[#allocation7 + $0x248] ss:$12 sps:$4 sm:$0xff]   ;;  %v8931_v51 = vld [vmem:[#allocation5 + $0x3ac] ss:$12 sps:$4 sm:$0xff]   ;;  %v8932_v54 = vld [vmem:[#allocation5 + $0x3b0] ss:$12 sps:$4 sm:$0xff]  }
0x1ddf   :  { %v5309_v16 = vpop.f32.mrf.mxu0  ;;  %v8439_v27 = vpop.f32.mrf.mxu1 }
0x1de0   :  { %v7245_v37 = vmul.f32 -1.442695, %v5354_v55  ;;  %v5361_v12 = vadd.f32 %v5309_v16, %v4462_v42  ;;  %v4466_v55 = vadd.f32 %v11249_v34, %v11258_v59 }
0x1de1   :  { %v5311_v41 = vpop.f32.mrf.mxu0  ;;  %v5351_v36 = vpop.f32.mrf.mxu1 }
0x1de2   :  { %9283 = vpow2.f32 %v7245_v37  ;;  %v7246_v63 = vmul.f32 -1.442695, %v5361_v12 }
0x1de3   :  { %v5312_v40 = vpop.f32.mrf.mxu0  ;;  %v8440_v4 = vpop.f32.mrf.mxu1 }
0x1de4   :  { %9285 = vpow2.f32 %v7246_v63 }
0x1def   :  { %v9284_v45 = vpop.eup %9283 }
0x1df0   :  { %v5358_v11 = vadd.f32 1.0, %v9284_v45  ;;  %v12108_v45 = vld [vmem:[#allocation14_spill] sm:$0xff] }
0x1df1   :  { %v9286_v19 = vpop.eup %9285 }
0x1df2   :  { %9287 = vrcp.f32 %v5358_v11  ;;  %v5365_v46 = vadd.f32 1.0, %v9286_v19  ;;  %v4468_v11 = vadd.f32 %v12108_v45, %v11270_v1  ;;  %v11593_v45 = vld [vmem:[#allocation7 + $0x318] ss:$12 sps:$4 sm:$0xff]  }
0x1dff   :  { %v9288_v6 = vpop.eup %9287 }
0x1e00   :  { %v5369_v29 = vmul.f32 %v9288_v6, %v5368_v44 }
0x1e02   :  { %v5370_v35 = vadd.f32 %v5369_v29, %v4528_v8 }
0x1e04   :  { %9289 = vtanh.f32 %v5370_v35 }
0x1e05   :  { %9291 = vrcp.f32 %v5365_v46  ;;  %v12109_v46 = vld [vmem:[#allocation17_spill] sm:$0xff] }
0x1e11   :  { %v9290_v49 = vpop.eup %9289 }
0x1e12   :  { %v5372_v33 = vsub.f32 %v11471_v57, %v9290_v49  ;;  %v9292_v53 = vpop.eup %9291 }
0x1e14   :  { %v5373_v14 = vmul.f32 %v9292_v53, %v5372_v33 }
0x1e16   :  { %v11518_v39 = vadd.f32 %v9290_v49, %v5373_v14  ;;  %v4533_v49 = vadd.f32 %v12109_v46, %v11280_v0  ;;  %v11627_v46 = vld [vmem:[#allocation7 + $0x320] ss:$12 sps:$4 sm:$0xff]  }
0x1e18   :  { %v5379_v48 = vpack.c.bf16 %v11518_v39, %v11518_v39 }
0x1e1a   :  { %5413 = vmatmul.mubr.bf16.vlgmr.msra.gmra.mxu0 %v5379_v48  ;;  %8458 = vmatmul.mubr.bf16.vlgmr.msra.gmra.mxu1 %v5379_v48 }
0x1e1b   :  { %5488 = vmatpush1.bf16.msra.mxu0 %v9466_v32  ;;  %8462 = vmatpush3.bf16.msra.mxu1 %v9467_v26 }
0x1e1c   :  { %5489 = vmatprep.subr.bf16.mxu0 %v9468_v28  ;;  %8463 = vmatprep.subr.bf16.mxu1 %v12069_v43 }
0x1e1d   :  { %5519 = vmatprep.mubr.bf16.mxu0 %v12070_v21  ;;  %8477 = vmatprep.mubr.msk.bf16.mxu1 %vm9564_vm0, %v12069_v43 }
0x1e1f   :  { %5490 = vmatpush1.bf16.msra.mxu0 %v9469_v60  ;;  %8464 = vmatpush3.bf16.msra.mxu1 %v9470_v23  ;;  %v8929_v23 = vld [vmem:[#allocation5 + $0x3a8] ss:$12 sps:$4 sm:$0xff]  }
0x1e20   :  { %5491 = vmatprep.subr.bf16.mxu0 %v9471_v50  ;;  %8465 = vmatprep.subr.bf16.mxu1 %v12069_v43  ;;  %v8935_v50 = vld [vmem:[#allocation5 + $0x394] ss:$12 sps:$4 sm:$0xff]  }
0x1e23   :  { %5492 = vmatpush1.bf16.msra.mxu0 %v9472_v13  ;;  %8466 = vmatpush3.bf16.msra.mxu1 %v9473_v3  ;;  %v8936_v13 = vld [vmem:[#allocation5 + $0x398] ss:$12 sps:$4 sm:$0xff]   ;;  %v5599_v3 = vpack.c.bf16 %v11330_v18, %v11283_v24  ;;  %v8941_v24 = vld [vmem:[#allocation5 + $0x360] ss:$12 sps:$4 sm:$0xff]  }
0x1e24   :  { %5493 = vmatprep.subr.bf16.mxu0 %v9474_v10  ;;  %8467 = vmatprep.subr.bf16.mxu1 %v12069_v43  ;;  %v8933_v10 = vld [vmem:[#allocation5 + $0x390] ss:$12 sps:$4 sm:$0xff]   ;;  %v8947_v18 = vld [vmem:[#allocation5 + $0x34c] ss:$12 sps:$4 sm:$0xff]  }
0x1e27   :  { %5494 = vmatpush1.bf16.msra.mxu0 %v9475_v7  ;;  %8468 = vmatpush3.bf16.msra.mxu1 %v9476_v31  ;;  %v8939_v7 = vld [vmem:[#allocation5 + $0x37c] ss:$12 sps:$4 sm:$0xff]   ;;  %v8940_v31 = vld [vmem:[#allocation5 + $0x380] ss:$12 sps:$4 sm:$0xff]  }
0x1e28   :  { %5495 = vmatprep.subr.bf16.mxu0 %v9477_v58  ;;  %8469 = vmatprep.subr.bf16.mxu1 %v12069_v43  ;;  %v8937_v58 = vld [vmem:[#allocation5 + $0x378] ss:$12 sps:$4 sm:$0xff]  }
0x1e2b   :  { %5496 = vmatpush1.bf16.msra.mxu0 %v9478_v9  ;;  %8470 = vmatpush3.bf16.msra.mxu1 %v9479_v15  ;;  %v8943_v9 = vld [vmem:[#allocation5 + $0x364] ss:$12 sps:$4 sm:$0xff]   ;;  %v8944_v15 = vld [vmem:[#allocation5 + $0x368] ss:$12 sps:$4 sm:$0xff]  }
0x1e2c   :  { %5497 = vmatprep.subr.bf16.mxu0 %v9480_v20  ;;  %8471 = vmatprep.subr.bf16.mxu1 %v12069_v43  ;;  %v8948_v20 = vld [vmem:[#allocation5 + $0x350] ss:$12 sps:$4 sm:$0xff]  }
0x1e2f   :  { %5498 = vmatpush1.bf16.msra.mxu0 %v9481_v61  ;;  %8472 = vmatpush3.bf16.msra.mxu1 %v9482_v5  ;;  %v8945_v61 = vld [vmem:[#allocation5 + $0x348] ss:$12 sps:$4 sm:$0xff]  }
0x1e30   :  { %5499 = vmatprep.subr.bf16.mxu0 %v9483_v38  ;;  %8473 = vmatprep.subr.bf16.mxu1 %v12069_v43  ;;  %v8951_v5 = vld [vmem:[#allocation5 + $0x334] ss:$12 sps:$4 sm:$0xff]   ;;  %v8952_v38 = vld [vmem:[#allocation5 + $0x338] ss:$12 sps:$4 sm:$0xff]  }
0x1e33   :  { %5500 = vmatpush1.bf16.msra.mxu0 %v9484_v25  ;;  %8474 = vmatpush3.bf16.msra.mxu1 %v9485_v17  ;;  %v8949_v25 = vld [vmem:[#allocation5 + $0x330] ss:$12 sps:$4 sm:$0xff]  }
0x1e34   :  { %5501 = vmatprep.subr.bf16.mxu0 %v9486_v62  ;;  %8475 = vmatprep.subr.bf16.mxu1 %v12069_v43  ;;  %v8955_v17 = vld [vmem:[#allocation5 + $0x31c] ss:$12 sps:$4 sm:$0xff]   ;;  %v8956_v62 = vld [vmem:[#allocation5 + $0x320] ss:$12 sps:$4 sm:$0xff]  }
0x1e37   :  { %5502 = vmatpush1.bf16.msra.mxu0 %v9487_v52  ;;  %8476 = vmatpush3.bf16.msra.mxu1 %v9488_v30  ;;  %v8953_v52 = vld [vmem:[#allocation5 + $0x318] ss:$12 sps:$4 sm:$0xff]  }
0x1e38   :  { %5782 = vmatprep.subr.bf16.mxu0 %v8931_v51  ;;  %8481 = vmatprep.subr.bf16.mxu1 %v8932_v54  ;;  %v8959_v30 = vld [vmem:[#allocation5 + $0x304] ss:$12 sps:$4 sm:$0xff]   ;;  %v8960_v51 = vld [vmem:[#allocation5 + $0x308] ss:$12 sps:$4 sm:$0xff]  }
0x1eda   :  { %v5414_v16 = vpop.f32.mrf.mxu0  ;;  %v5455_v27 = vpop.f32.mrf.mxu1 }
0x1edb   :  { %v5461_v37 = vadd.f32 %v5414_v16, %v4466_v55  ;;  %v5475_v29 = vadd.f32 %v11276_v56, %v5455_v27  ;;  %v5600_v55 = vpack.c.bf16 %v11424_v2, %v11377_v22  ;;  %v5601_v16 = vpack.c.bf16 %v11518_v39, %v11471_v57  ;;  %v11555_v27 = vld [vmem:[#allocation7 + $0x3ac] ss:$12 sps:$4 sm:$0xff]   ;;  %v11561_v22 = vld [vmem:[#allocation7 + $0x394] ss:$12 sps:$4 sm:$0xff]   ;;  %v11563_v2 = vld [vmem:[#allocation7 + $0x390] ss:$12 sps:$4 sm:$0xff]  }
0x1edc   :  { %v5416_v41 = vpop.f32.mrf.mxu0  ;;  %v8459_v36 = vpop.f32.mrf.mxu1  ;;  %v11567_v57 = vld [vmem:[#allocation7 + $0x37c] ss:$12 sps:$4 sm:$0xff]  }
0x1edd   :  { %v7247_v40 = vmul.f32 -1.442695, %v5461_v37  ;;  %v5468_v19 = vadd.f32 %v5416_v41, %v4468_v11  ;;  %v11557_v37 = vld [vmem:[#allocation7 + $0x3a8] ss:$12 sps:$4 sm:$0xff]   ;;  %v11573_v41 = vld [vmem:[#allocation7 + $0x364] ss:$12 sps:$4 sm:$0xff]  }
0x1ede   :  { %v5418_v4 = vpop.f32.mrf.mxu0  ;;  %v5458_v42 = vpop.f32.mrf.mxu1  ;;  %v11575_v36 = vld [vmem:[#allocation7 + $0x360] ss:$12 sps:$4 sm:$0xff]   ;;  %v11595_v11 = vld [vmem:[#allocation7 + $0x304] ss:$12 sps:$4 sm:$0xff]  }
0x1edf   :  { %9293 = vpow2.f32 %v7247_v40  ;;  %v7248_v44 = vmul.f32 -1.442695, %v5468_v19  ;;  %v11579_v40 = vld [vmem:[#allocation7 + $0x34c] ss:$12 sps:$4 sm:$0xff]   ;;  %v11581_v4 = vld [vmem:[#allocation7 + $0x348] ss:$12 sps:$4 sm:$0xff]  }
0x1ee0   :  { %v5419_v12 = vpop.f32.mrf.mxu0  ;;  %v8460_v63 = vpop.f32.mrf.mxu1  ;;  %v11585_v42 = vld [vmem:[#allocation7 + $0x334] ss:$12 sps:$4 sm:$0xff]   ;;  %v11597_v19 = vld [vmem:[#allocation7 + $0x3b0] ss:$12 sps:$4 sm:$0xff]  }
0x1ee1   :  { %9295 = vpow2.f32 %v7248_v44  ;;  %v11587_v12 = vld [vmem:[#allocation7 + $0x330] ss:$12 sps:$4 sm:$0xff]   ;;  %v11602_v44 = vld [vmem:[#allocation7 + $0x300] ss:$12 sps:$4 sm:$0xff]  }
0x1ee2   :  { %v11591_v63 = vld [vmem:[#allocation7 + $0x31c] ss:$12 sps:$4 sm:$0xff]  }
0x1eec   :  { %v9294_v6 = vpop.eup %9293 }
0x1eed   :  { %v5465_v8 = vadd.f32 1.0, %v9294_v6  ;;  %v11607_v6 = vld [vmem:[#allocation7 + $0x398] ss:$12 sps:$4 sm:$0xff]  }
0x1eee   :  { %v9296_v34 = vpop.eup %9295 }
0x1eef   :  { %9297 = vrcp.f32 %v5465_v8  ;;  %v5472_v14 = vadd.f32 1.0, %v9296_v34  ;;  %v11611_v8 = vld [vmem:[#allocation7 + $0x380] ss:$12 sps:$4 sm:$0xff]   ;;  %v11615_v34 = vld [vmem:[#allocation7 + $0x368] ss:$12 sps:$4 sm:$0xff]  }
0x1efc   :  { %v9298_v35 = vpop.eup %9297 }
0x1efd   :  { %v5476_v33 = vmul.f32 %v9298_v35, %v5475_v29  ;;  %v11619_v29 = vld [vmem:[#allocation7 + $0x350] ss:$12 sps:$4 sm:$0xff]   ;;  %v11623_v35 = vld [vmem:[#allocation7 + $0x338] ss:$12 sps:$4 sm:$0xff]  }
0x1eff   :  { %v5477_v53 = vadd.f32 %v5476_v33, %v4533_v49  ;;  %v11631_v49 = vld [vmem:[#allocation7 + $0x308] ss:$12 sps:$4 sm:$0xff]  }
0x1f00   :  { %v12110_v33 = vld [vmem:[#allocation13_spill] sm:$0xff] }
0x1f01   :  { %9299 = vtanh.f32 %v5477_v53  ;;  %v4470_v53 = vadd.f32 %v12110_v33, %v11258_v59 }
0x1f02   :  { %9301 = vrcp.f32 %v5472_v14 }
0x1f0e   :  { %v9300_v48 = vpop.eup %9299 }
0x1f0f   :  { %v5479_v32 = vsub.f32 %v11518_v39, %v9300_v48  ;;  %v9302_v26 = vpop.eup %9301  ;;  %v11569_v39 = vld [vmem:[#allocation7 + $0x378] ss:$12 sps:$4 sm:$0xff]  }
0x1f11   :  { %v5480_v28 = vmul.f32 %v9302_v26, %v5479_v32 }
0x1f13   :  { %v11540_v60 = vadd.f32 %v9300_v48, %v5480_v28 }
0x1f15   :  { %v5486_v56 = vpack.c.bf16 %v11540_v60, %v11540_v60 }
0x1f17   :  { %5520 = vmatmul.mubr.bf16.vlgmr.msra.gmra.mxu0 %v5486_v56  ;;  %8478 = vmatmul.mubr.bf16.vlgmr.msra.gmra.mxu1 %v5486_v56 }
0x1f18   :  { %5783 = vmatpush1.bf16.msra.mxu0 %v8929_v23  ;;  %8482 = vmatpush3.bf16.msra.mxu1 %v8932_v54  ;;  %v8957_v54 = vld [vmem:[#allocation5 + $0x300] ss:$12 sps:$4 sm:$0xff]  }
0x1f19   :  { %8497 = vmatprep.mubr.bf16.mxu1 %v5599_v3  ;;  %5784 = vmatprep.subr.bf16.mxu0 %v8935_v50 }
0x1f1a   :  { %8483 = vmatprep.subr.bf16.mxu1 %v8936_v13  ;;  %5814 = vmatprep.mubr.bf16.mxu0 %v12070_v21 }
0x1f1c   :  { %5785 = vmatpush1.bf16.msra.mxu0 %v8933_v10  ;;  %8484 = vmatpush3.bf16.msra.mxu1 %v8936_v13  ;;  %v12111_v10 = vld [vmem:[#allocation18_spill] sm:$0xff] }
0x1f1d   :  { %5786 = vmatprep.subr.bf16.mxu0 %v8939_v7  ;;  %8485 = vmatprep.subr.bf16.mxu1 %v8940_v31  ;;  %v4472_v7 = vadd.f32 %v12111_v10, %v11270_v1 }
0x1f20   :  { %5787 = vmatpush1.bf16.msra.mxu0 %v8937_v58  ;;  %8486 = vmatpush3.bf16.msra.mxu1 %v8940_v31 }
0x1f21   :  { %5788 = vmatprep.subr.bf16.mxu0 %v8943_v9  ;;  %8487 = vmatprep.subr.bf16.mxu1 %v8944_v15 }
0x1f24   :  { %5789 = vmatpush1.bf16.msra.mxu0 %v8941_v24  ;;  %8488 = vmatpush3.bf16.msra.mxu1 %v8944_v15  ;;  %v9489_v24 = vld [vmem:[%s12047_s4 + $0x3] ss:$0 sm:$0xff] }
0x1f25   :  { %5790 = vmatprep.subr.bf16.mxu0 %v8947_v18  ;;  %8489 = vmatprep.subr.bf16.mxu1 %v8948_v20 }
0x1f28   :  { %5791 = vmatpush1.bf16.msra.mxu0 %v8945_v61  ;;  %8490 = vmatpush3.bf16.msra.mxu1 %v8948_v20  ;;  %v12112_v61 = vld [vmem:[#allocation15_spill] sm:$0xff] }
0x1f29   :  { %5792 = vmatprep.subr.bf16.mxu0 %v8951_v5  ;;  %8491 = vmatprep.subr.bf16.mxu1 %v8952_v38  ;;  %v4536_v5 = vadd.f32 %v12112_v61, %v11280_v0  ;;  %v12113_v0 = vmov 0.0|0.0  }
0x1f2c   :  { %5793 = vmatpush1.bf16.msra.mxu0 %v8949_v25  ;;  %8492 = vmatpush3.bf16.msra.mxu1 %v8952_v38 }
0x1f2d   :  { %5794 = vmatprep.subr.bf16.mxu0 %v8955_v17  ;;  %8493 = vmatprep.subr.bf16.mxu1 %v8956_v62 }
0x1f30   :  { %5795 = vmatpush1.bf16.msra.mxu0 %v8953_v52  ;;  %8494 = vmatpush3.bf16.msra.mxu1 %v8956_v62 }
0x1f31   :  { %5796 = vmatprep.subr.bf16.mxu0 %v8959_v30  ;;  %8495 = vmatprep.subr.bf16.mxu1 %v8960_v51 }
0x1f34   :  { %5797 = vmatpush1.bf16.msra.mxu0 %v8957_v54  ;;  %8496 = vmatpush3.bf16.msra.mxu1 %v8960_v51 }
0x1f35   :  { %8505 = vmatprep.subr.bf16.mxu1 %v12069_v43  ;;  %6119 = vmatprep.subr.bf16.mxu0 %v11555_v27 }
0x1f37   :  { %5815 = vmatmul.mubr.bf16.vlgmr.msra.gmra.mxu0 %v5599_v3  ;;  %8498 = vmatmul.mubr.bf16.vlgmr.msra.gmra.mxu1 %v5600_v55 }
0x1f38   :  { %8501 = vmatprep.mubr.bf16.mxu1 %v5601_v16  ;;  %5824 = vmatprep.mubr.bf16.mxu0 %v12070_v21 }
0x1f39   :  { %6120 = vmatpush1.bf16.msra.mxu0 %v11557_v37  ;;  %8506 = vmatpush3.bf16.msra.mxu1 %v11597_v19 }
0x1f3a   :  { %6121 = vmatprep.subr.bf16.mxu0 %v11561_v22  ;;  %8507 = vmatprep.subr.bf16.mxu1 %v12069_v43 }
0x1f3d   :  { %6122 = vmatpush1.bf16.msra.mxu0 %v11563_v2  ;;  %8508 = vmatpush3.bf16.msra.mxu1 %v11607_v6 }
0x1f3e   :  { %6123 = vmatprep.subr.bf16.mxu0 %v11567_v57  ;;  %8509 = vmatprep.subr.bf16.mxu1 %v12069_v43 }
0x1f3f   :  { %5825 = vmatmul.mubr.bf16.gmra.mxu0 %v5600_v55 }
0x1f40   :  { %5834 = vmatprep.mubr.bf16.mxu0 %v12070_v21 }
0x1f41   :  { %6124 = vmatpush1.bf16.msra.mxu0 %v11569_v39  ;;  %8510 = vmatpush3.bf16.msra.mxu1 %v11611_v8 }
0x1f42   :  { %6125 = vmatprep.subr.bf16.mxu0 %v11573_v41  ;;  %8511 = vmatprep.subr.bf16.mxu1 %v12069_v43 }
0x1f45   :  { %6126 = vmatpush1.bf16.msra.mxu0 %v11575_v36  ;;  %8512 = vmatpush3.bf16.msra.mxu1 %v11615_v34 }
0x1f46   :  { %6127 = vmatprep.subr.bf16.mxu0 %v11579_v40  ;;  %8513 = vmatprep.subr.bf16.mxu1 %v12069_v43 }
0x1f47   :  { %5835 = vmatmul.mubr.bf16.gmra.mxu0 %v5601_v16 }
0x1f48   :  { %5844 = vmatprep.mubr.bf16.mxu0 %v12070_v21 }
0x1f49   :  { %6128 = vmatpush1.bf16.msra.mxu0 %v11581_v4  ;;  %8514 = vmatpush3.bf16.msra.mxu1 %v11619_v29 }
0x1f4a   :  { %6129 = vmatprep.subr.bf16.mxu0 %v11585_v42  ;;  %8515 = vmatprep.subr.bf16.mxu1 %v12069_v43 }
0x1f4d   :  { %6130 = vmatpush1.bf16.msra.mxu0 %v11587_v12  ;;  %8516 = vmatpush3.bf16.msra.mxu1 %v11623_v35 }
0x1f4e   :  { %6131 = vmatprep.subr.bf16.mxu0 %v11591_v63  ;;  %8517 = vmatprep.subr.bf16.mxu1 %v12069_v43 }
0x1f51   :  { %6132 = vmatpush1.bf16.msra.mxu0 %v11593_v45  ;;  %8518 = vmatpush3.bf16.msra.mxu1 %v11627_v46 }
0x1f52   :  { %6133 = vmatprep.subr.bf16.mxu0 %v11595_v11  ;;  %8519 = vmatprep.subr.bf16.mxu1 %v12069_v43 }
0x1f55   :  { %6134 = vmatpush1.bf16.msra.mxu0 %v11602_v44  ;;  %8520 = vmatpush3.bf16.msra.mxu1 %v11631_v49 }
0x1f56   :  { %6226 = vmatprep.subr.bf16.mxu0 %v11555_v27  ;;  %8525 = vmatprep.subr.bf16.mxu1 %v12069_v43 }
0x1fd7   :  { %v5521_v14 = vpop.f32.mrf.mxu0  ;;  %v5562_v48 = vpop.f32.mrf.mxu1 }
0x1fd8   :  { %v5568_v32 = vadd.f32 %v5521_v14, %v4470_v53  ;;  %v5582_v18 = vadd.f32 %v9489_v24, %v5562_v48 }
0x1fd9   :  { %v5523_v26 = vpop.f32.mrf.mxu0  ;;  %v8479_v28 = vpop.f32.mrf.mxu1 }
0x1fda   :  { %v7249_v23 = vmul.f32 -1.442695, %v5568_v32  ;;  %v5575_v31 = vadd.f32 %v5523_v26, %v4472_v7  ;;  %v7251_v7 = vld [vmem:[%s12046_s3 + $0xc] sm:$0x7] }
0x1fdb   :  { %v5525_v56 = vpop.f32.mrf.mxu0  ;;  %v5565_v50 = vpop.f32.mrf.mxu1 }
0x1fdc   :  { %9303 = vpow2.f32 %v7249_v23  ;;  %v7250_v58 = vmul.f32 -1.442695, %v5575_v31 }
0x1fdd   :  { %v5526_v13 = vpop.f32.mrf.mxu0  ;;  %v8480_v3 = vpop.f32.mrf.mxu1 }
0x1fde   :  { %9305 = vpow2.f32 %v7250_v58 }
0x1fe9   :  { %v9304_v9 = vpop.eup %9303 }
0x1fea   :  { %v5572_v15 = vadd.f32 1.0, %v9304_v9 }
0x1feb   :  { %v9306_v59 = vpop.eup %9305 }
0x1fec   :  { %9307 = vrcp.f32 %v5572_v15  ;;  %v5579_v17 = vadd.f32 1.0, %v9306_v59  ;;  %v12116_v59 = vld [vmem:[#allocation11_spill] sm:$0xff] }
0x1fed   :  { %v11725_v24 = vrot.slane %v7251_v7, %v12116_v59 }
0x1ff7   :  { %v11699_v26 = vpop.f32.mrf.mxu1 }
0x1ff9   :  { %v9308_v20 = vpop.eup %9307  ;;  %v5889_v23 = vpop.f32.mrf.mxu1 }
0x1ffa   :  { %v5583_v38 = vmul.f32 %v9308_v20, %v5582_v18 }
0x1ffb   :  { %v11705_v50 = vpop.f32.mrf.mxu1 }
0x1ffc   :  { %v5584_v25 = vadd.f32 %v5583_v38, %v4536_v5 }
0x1ffd   :  { %v11709_v3 = vpop.f32.mrf.mxu1 }
0x1ffe   :  { %9309 = vtanh.f32 %v5584_v25 }
0x1fff   :  { %9311 = vrcp.f32 %v5579_v17 }
0x200b   :  { %v9310_v1 = vpop.eup %9309 }
0x200c   :  { %v5586_v62 = vsub.f32 %v11540_v60, %v9310_v1  ;;  %v9312_v52 = vpop.eup %9311 }
0x200e   :  { %v5587_v30 = vmul.f32 %v9312_v52, %v5586_v62 }
0x2010   :  { %v5588_v51 = vadd.f32 %v9310_v1, %v5587_v30 }
0x2012   :  { %v5602_v54 = vpack.c.bf16 %v5588_v51, %v11540_v60  ;;  %v5816_v60 = vpop.f32.mrf.mxu0 }
0x2013   :  { %v5817_v38 = vadd.f32 %v5816_v60, %v11725_v24 }
0x2014   :  { %5845 = vmatmul.mubr.bf16.gmra.mxu0 %v5602_v54  ;;  %8502 = vmatmul.mubr.bf16.gmra.mxu1 %v5602_v54  ;;  %v5818_v55 = vpop.f32.mrf.mxu0 }
0x2015   :  { %6151 = vmatprep.mubr.bf16.mxu0 %v12070_v21  ;;  %8521 = vmatprep.mubr.msk.bf16.mxu1 %vm9564_vm0, %v12069_v43 }
0x2016   :  { %v11687_v16 = vpop.f32.mrf.mxu0 }
0x2018   :  { %v11689_v33 = vpop.f32.mrf.mxu0 }
0x201a   :  { %v11691_v53 = vpop.f32.mrf.mxu0 }
0x201c   :  { %6152 = vmatmul.mubr.bf16.vlgmr.msra.gmra.mxu0 %v12113_v0  ;;  %8522 = vmatmul.mubr.bf16.vlgmr.msra.gmra.mxu1 %v12113_v0  ;;  %v11693_v14 = vpop.f32.mrf.mxu0  ;;  %v11737_v0 = vrot.slane %v7251_v7, %v12080_v47  ;;  %v12120_v47 = vld [vmem:[#allocation12_spill] sm:$0xff] }
0x201d   :  { %6227 = vmatpush1.bf16.msra.mxu0 %v11557_v37  ;;  %8526 = vmatpush3.bf16.msra.mxu1 %v11597_v19 }
0x201e   :  { %6228 = vmatprep.subr.bf16.mxu0 %v11561_v22  ;;  %8527 = vmatprep.subr.bf16.mxu1 %v12069_v43  ;;  %v11695_v48 = vpop.f32.mrf.mxu0 }
0x201f   :  { %6258 = vmatprep.mubr.bf16.mxu0 %v12070_v21  ;;  %8541 = vmatprep.mubr.msk.bf16.mxu1 %vm9564_vm0, %v12069_v43 }
0x2020   :  { %v11697_v32 = vpop.f32.mrf.mxu0 }
0x2021   :  { %6229 = vmatpush1.bf16.msra.mxu0 %v11563_v2  ;;  %8528 = vmatpush3.bf16.msra.mxu1 %v11607_v6 }
0x2022   :  { %6230 = vmatprep.subr.bf16.mxu0 %v11567_v57  ;;  %8529 = vmatprep.subr.bf16.mxu1 %v12069_v43  ;;  %v11701_v28 = vpop.f32.mrf.mxu0 }
0x2024   :  { %v11703_v56 = vpop.f32.mrf.mxu0 }
0x2025   :  { %6231 = vmatpush1.bf16.msra.mxu0 %v11569_v39  ;;  %8530 = vmatpush3.bf16.msra.mxu1 %v11611_v8 }
0x2026   :  { %6232 = vmatprep.subr.bf16.mxu0 %v11573_v41  ;;  %8531 = vmatprep.subr.bf16.mxu1 %v12069_v43  ;;  %v11707_v13 = vpop.f32.mrf.mxu0 }
0x2028   :  { %v11711_v10 = vpop.f32.mrf.mxu0 }
0x2029   :  { %6233 = vmatpush1.bf16.msra.mxu0 %v11575_v36  ;;  %8532 = vmatpush3.bf16.msra.mxu1 %v11615_v34 }
0x202a   :  { %6234 = vmatprep.subr.bf16.mxu0 %v11579_v40  ;;  %8533 = vmatprep.subr.bf16.mxu1 %v12069_v43 }
0x202d   :  { %6235 = vmatpush1.bf16.msra.mxu0 %v11581_v4  ;;  %8534 = vmatpush3.bf16.msra.mxu1 %v11619_v29 }
0x202e   :  { %6236 = vmatprep.subr.bf16.mxu0 %v11585_v42  ;;  %8535 = vmatprep.subr.bf16.mxu1 %v12069_v43 }
0x2031   :  { %6237 = vmatpush1.bf16.msra.mxu0 %v11587_v12  ;;  %8536 = vmatpush3.bf16.msra.mxu1 %v11623_v35 }
0x2032   :  { %6238 = vmatprep.subr.bf16.mxu0 %v11591_v63  ;;  %8537 = vmatprep.subr.bf16.mxu1 %v12069_v43 }
0x2035   :  { %6239 = vmatpush1.bf16.msra.mxu0 %v11593_v45  ;;  %8538 = vmatpush3.bf16.msra.mxu1 %v11627_v46 }
0x2036   :  { %6240 = vmatprep.subr.bf16.mxu0 %v11595_v11  ;;  %8539 = vmatprep.subr.bf16.mxu1 %v12069_v43 }
0x2039   :  { %6241 = vmatpush1.bf16.msra.mxu0 %v11602_v44  ;;  %8540 = vmatpush3.bf16.msra.mxu1 %v11631_v49 }
0x203a   :  { %6334 = vmatprep.subr.bf16.mxu0 %v11555_v27  ;;  %8545 = vmatprep.subr.bf16.mxu1 %v12069_v43 }
0x20d4   :  { %v11716_v31 = vpop.f32.mrf.mxu0  ;;  %v11718_v58 = vpop.f32.mrf.mxu1 }
0x20d5   :  { %12114 = vst [vmem:[#allocation16_spill] sm:$0xff] %v11718_v58 }
0x20d6   :  { %v11720_v9 = vpop.f32.mrf.mxu0  ;;  %v11722_v15 = vpop.f32.mrf.mxu1 }
0x20d7   :  { %12115 = vst [vmem:[#allocation14_spill] sm:$0xff] %v11720_v9 }
0x20d8   :  { %v11727_v18 = vpop.f32.mrf.mxu0  ;;  %v11729_v20 = vpop.f32.mrf.mxu1 }
0x20d9   :  { %12117 = vst [vmem:[#allocation17_spill] sm:$0xff] %v11727_v18  ;;  %12118 = vst [vmem:[#allocation13_spill] sm:$0xff] %v11729_v20 }
0x20da   :  { %v11731_v61 = vpop.f32.mrf.mxu0  ;;  %v11733_v5 = vpop.f32.mrf.mxu1 }
0x20db   :  { %12119 = vst [vmem:[#allocation18_spill] sm:$0xff] %v11731_v61  ;;  %v5819_v61 = vadd.f32 %v5818_v55, %v11737_v0 }
0x20dc   :  { %v6153_v25 = vpop.f32.mrf.mxu0  ;;  %v6194_v17 = vpop.f32.mrf.mxu1 }
0x20dd   :  { %v6200_v1 = vadd.f32 %v6153_v25, %v5817_v38  ;;  %v11743_v38 = vld [vmem:[%s12047_s4 + $0x4] ss:$0 sm:$0xff] }
0x20de   :  { %v6155_v62 = vpop.f32.mrf.mxu0  ;;  %v8523_v52 = vpop.f32.mrf.mxu1  ;;  %v6214_v25 = vadd.f32 %v11743_v38, %v6194_v17 }
0x20df   :  { %v7302_v30 = vmul.f32 -1.442695, %v6200_v1  ;;  %v6207_v18 = vadd.f32 %v6155_v62, %v5819_v61  ;;  %v11747_v52 = vrot.slane %v7251_v7, %v12120_v47 }
0x20e0   :  { %v6157_v51 = vpop.f32.mrf.mxu0  ;;  %v6197_v54 = vpop.f32.mrf.mxu1 }
0x20e1   :  { %9313 = vpow2.f32 %v7302_v30  ;;  %v7303_v58 = vmul.f32 -1.442695, %v6207_v18  ;;  %v5890_v55 = vadd.f32 %v5889_v23, %v11747_v52  ;;  %v5821_v23 = vadd.f32 %v11687_v16, %v11725_v24 }
0x20e2   :  { %v6158_v59 = vpop.f32.mrf.mxu0  ;;  %v8524_v20 = vpop.f32.mrf.mxu1 }
0x20e3   :  { %9315 = vpow2.f32 %v7303_v58 }
0x20ee   :  { %v9314_v9 = vpop.eup %9313 }
0x20ef   :  { %v6204_v60 = vadd.f32 1.0, %v9314_v9 }
0x20f0   :  { %v9316_v1 = vpop.eup %9315 }
0x20f1   :  { %9317 = vrcp.f32 %v6204_v60  ;;  %v6211_v18 = vadd.f32 1.0, %v9316_v1 }
0x20fe   :  { %v9318_v20 = vpop.eup %9317 }
0x20ff   :  { %v6215_v61 = vmul.f32 %v9318_v20, %v6214_v25 }
0x2101   :  { %v6216_v62 = vadd.f32 %v6215_v61, %v5890_v55 }
0x2103   :  { %9319 = vtanh.f32 %v6216_v62  ;;  %v5823_v62 = vadd.f32 %v11689_v33, %v11737_v0 }
0x2104   :  { %9321 = vrcp.f32 %v6211_v18 }
0x2110   :  { %v9320_v58 = vpop.eup %9319 }
0x2111   :  { %v6218_v9 = vsub.f32 0.0, %v9320_v58  ;;  %v9322_v30 = vpop.eup %9321 }
0x2113   :  { %v6219_v51 = vmul.f32 %v9322_v30, %v6218_v9 }
0x2115   :  { %v11750_v54 = vadd.f32 %v9320_v58, %v6219_v51 }
0x2117   :  { %6221 = vst [vmem:[%s12048_s5] sm:$0xff] %v11750_v54  ;;  %v6225_v7 = vpack.c.bf16 %v11750_v54, %v11750_v54 }
0x2119   :  { %6259 = vmatmul.mubr.bf16.vlgmr.msra.gmra.mxu0 %v6225_v7  ;;  %8542 = vmatmul.mubr.bf16.vlgmr.msra.gmra.mxu1 %v6225_v7 }
0x211a   :  { %6335 = vmatpush1.bf16.msra.mxu0 %v11557_v37  ;;  %8546 = vmatpush3.bf16.msra.mxu1 %v11597_v19 }
0x211b   :  { %6336 = vmatprep.subr.bf16.mxu0 %v11561_v22  ;;  %8547 = vmatprep.subr.bf16.mxu1 %v12069_v43 }
0x211c   :  { %6366 = vmatprep.mubr.bf16.mxu0 %v12070_v21  ;;  %8561 = vmatprep.mubr.msk.bf16.mxu1 %vm9564_vm0, %v12069_v43 }
0x211e   :  { %6337 = vmatpush1.bf16.msra.mxu0 %v11563_v2  ;;  %8548 = vmatpush3.bf16.msra.mxu1 %v11607_v6 }
0x211f   :  { %6338 = vmatprep.subr.bf16.mxu0 %v11567_v57  ;;  %8549 = vmatprep.subr.bf16.mxu1 %v12069_v43 }
0x2122   :  { %6339 = vmatpush1.bf16.msra.mxu0 %v11569_v39  ;;  %8550 = vmatpush3.bf16.msra.mxu1 %v11611_v8 }
0x2123   :  { %6340 = vmatprep.subr.bf16.mxu0 %v11573_v41  ;;  %8551 = vmatprep.subr.bf16.mxu1 %v12069_v43 }
0x2126   :  { %6341 = vmatpush1.bf16.msra.mxu0 %v11575_v36  ;;  %8552 = vmatpush3.bf16.msra.mxu1 %v11615_v34 }
0x2127   :  { %6342 = vmatprep.subr.bf16.mxu0 %v11579_v40  ;;  %8553 = vmatprep.subr.bf16.mxu1 %v12069_v43 }
0x212a   :  { %6343 = vmatpush1.bf16.msra.mxu0 %v11581_v4  ;;  %8554 = vmatpush3.bf16.msra.mxu1 %v11619_v29 }
0x212b   :  { %6344 = vmatprep.subr.bf16.mxu0 %v11585_v42  ;;  %8555 = vmatprep.subr.bf16.mxu1 %v12069_v43 }
0x212e   :  { %6345 = vmatpush1.bf16.msra.mxu0 %v11587_v12  ;;  %8556 = vmatpush3.bf16.msra.mxu1 %v11623_v35 }
0x212f   :  { %6346 = vmatprep.subr.bf16.mxu0 %v11591_v63  ;;  %8557 = vmatprep.subr.bf16.mxu1 %v12069_v43 }
0x2132   :  { %6347 = vmatpush1.bf16.msra.mxu0 %v11593_v45  ;;  %8558 = vmatpush3.bf16.msra.mxu1 %v11627_v46 }
0x2133   :  { %6348 = vmatprep.subr.bf16.mxu0 %v11595_v11  ;;  %8559 = vmatprep.subr.bf16.mxu1 %v12069_v43 }
0x2136   :  { %6349 = vmatpush1.bf16.msra.mxu0 %v11602_v44  ;;  %8560 = vmatpush3.bf16.msra.mxu1 %v11631_v49 }
0x2137   :  { %6442 = vmatprep.subr.bf16.mxu0 %v11555_v27  ;;  %8565 = vmatprep.subr.bf16.mxu1 %v12069_v43 }
0x21d9   :  { %v6260_v17 = vpop.f32.mrf.mxu0  ;;  %v6301_v59 = vpop.f32.mrf.mxu1 }
0x21da   :  { %v6307_v60 = vadd.f32 %v6260_v17, %v5821_v23  ;;  %v6321_v7 = vadd.f32 %v11743_v38, %v6301_v59  ;;  %v5893_v17 = vadd.f32 %v11709_v3, %v11747_v52 }
0x21db   :  { %v6262_v25 = vpop.f32.mrf.mxu0  ;;  %v8543_v1 = vpop.f32.mrf.mxu1 }
0x21dc   :  { %v7304_v47 = vmul.f32 -1.442695, %v6307_v60  ;;  %v6314_v58 = vadd.f32 %v6262_v25, %v5823_v62 }
0x21dd   :  { %v6264_v20 = vpop.f32.mrf.mxu0  ;;  %v6304_v55 = vpop.f32.mrf.mxu1 }
0x21de   :  { %9323 = vpow2.f32 %v7304_v47  ;;  %v7305_v9 = vmul.f32 -1.442695, %v6314_v58 }
0x21df   :  { %v6265_v61 = vpop.f32.mrf.mxu0  ;;  %v8544_v18 = vpop.f32.mrf.mxu1 }
0x21e0   :  { %9325 = vpow2.f32 %v7305_v9 }
0x21eb   :  { %v9324_v30 = vpop.eup %9323 }
0x21ec   :  { %v6311_v51 = vadd.f32 1.0, %v9324_v30 }
0x21ed   :  { %v9326_v16 = vpop.eup %9325 }
0x21ee   :  { %9327 = vrcp.f32 %v6311_v51  ;;  %v6318_v47 = vadd.f32 1.0, %v9326_v16 }
0x21fb   :  { %v9328_v23 = vpop.eup %9327 }
0x21fc   :  { %v6322_v60 = vmul.f32 %v9328_v23, %v6321_v7 }
0x21fe   :  { %v6323_v1 = vadd.f32 %v6322_v60, %v5893_v17  ;;  %v5829_v17 = vadd.f32 %v11693_v14, %v11737_v0 }
0x2200   :  { %9329 = vtanh.f32 %v6323_v1 }
0x2201   :  { %9331 = vrcp.f32 %v6318_v47 }
0x220d   :  { %v9330_v20 = vpop.eup %9329 }
0x220e   :  { %v6325_v33 = vsub.f32 %v11750_v54, %v9330_v20  ;;  %v9332_v25 = vpop.eup %9331  ;;  %v5827_v54 = vadd.f32 %v11691_v53, %v11725_v24 }
0x2210   :  { %v6326_v55 = vmul.f32 %v9332_v25, %v6325_v33 }
0x2212   :  { %v11801_v61 = vadd.f32 %v9330_v20, %v6326_v55  ;;  %v5898_v55 = vadd.f32 %v11699_v26, %v11747_v52 }
0x2214   :  { %7306 = vst [vmem:[%s12048_s5 + $0x8] sm:$0xff] %v11801_v61  ;;  %v6333_v3 = vpack.c.bf16 %v11801_v61, %v11801_v61 }
0x2216   :  { %6367 = vmatmul.mubr.bf16.vlgmr.msra.gmra.mxu0 %v6333_v3  ;;  %8562 = vmatmul.mubr.bf16.vlgmr.msra.gmra.mxu1 %v6333_v3 }
0x2217   :  { %6443 = vmatpush1.bf16.msra.mxu0 %v11557_v37  ;;  %8566 = vmatpush3.bf16.msra.mxu1 %v11597_v19 }
0x2218   :  { %6444 = vmatprep.subr.bf16.mxu0 %v11561_v22  ;;  %8567 = vmatprep.subr.bf16.mxu1 %v12069_v43 }
0x2219   :  { %6474 = vmatprep.mubr.bf16.mxu0 %v12070_v21  ;;  %8581 = vmatprep.mubr.msk.bf16.mxu1 %vm9564_vm0, %v12069_v43 }
0x221b   :  { %6445 = vmatpush1.bf16.msra.mxu0 %v11563_v2  ;;  %8568 = vmatpush3.bf16.msra.mxu1 %v11607_v6 }
0x221c   :  { %6446 = vmatprep.subr.bf16.mxu0 %v11567_v57  ;;  %8569 = vmatprep.subr.bf16.mxu1 %v12069_v43 }
0x221f   :  { %6447 = vmatpush1.bf16.msra.mxu0 %v11569_v39  ;;  %8570 = vmatpush3.bf16.msra.mxu1 %v11611_v8 }
0x2220   :  { %6448 = vmatprep.subr.bf16.mxu0 %v11573_v41  ;;  %8571 = vmatprep.subr.bf16.mxu1 %v12069_v43 }
0x2223   :  { %6449 = vmatpush1.bf16.msra.mxu0 %v11575_v36  ;;  %8572 = vmatpush3.bf16.msra.mxu1 %v11615_v34 }
0x2224   :  { %6450 = vmatprep.subr.bf16.mxu0 %v11579_v40  ;;  %8573 = vmatprep.subr.bf16.mxu1 %v12069_v43 }
0x2227   :  { %6451 = vmatpush1.bf16.msra.mxu0 %v11581_v4  ;;  %8574 = vmatpush3.bf16.msra.mxu1 %v11619_v29 }
0x2228   :  { %6452 = vmatprep.subr.bf16.mxu0 %v11585_v42  ;;  %8575 = vmatprep.subr.bf16.mxu1 %v12069_v43 }
0x222b   :  { %6453 = vmatpush1.bf16.msra.mxu0 %v11587_v12  ;;  %8576 = vmatpush3.bf16.msra.mxu1 %v11623_v35 }
0x222c   :  { %6454 = vmatprep.subr.bf16.mxu0 %v11591_v63  ;;  %8577 = vmatprep.subr.bf16.mxu1 %v12069_v43 }
0x222f   :  { %6455 = vmatpush1.bf16.msra.mxu0 %v11593_v45  ;;  %8578 = vmatpush3.bf16.msra.mxu1 %v11627_v46 }
0x2230   :  { %6456 = vmatprep.subr.bf16.mxu0 %v11595_v11  ;;  %8579 = vmatprep.subr.bf16.mxu1 %v12069_v43 }
0x2233   :  { %6457 = vmatpush1.bf16.msra.mxu0 %v11602_v44  ;;  %8580 = vmatpush3.bf16.msra.mxu1 %v11631_v49 }
0x2234   :  { %6550 = vmatprep.subr.bf16.mxu0 %v11555_v27  ;;  %8585 = vmatprep.subr.bf16.mxu1 %v12069_v43 }
0x22d6   :  { %v6368_v59 = vpop.f32.mrf.mxu0  ;;  %v6409_v18 = vpop.f32.mrf.mxu1 }
0x22d7   :  { %v6415_v62 = vadd.f32 %v6368_v59, %v5827_v54  ;;  %v6429_v33 = vadd.f32 %v11743_v38, %v6409_v18 }
0x22d8   :  { %v6370_v58 = vpop.f32.mrf.mxu0  ;;  %v8563_v9 = vpop.f32.mrf.mxu1 }
0x22d9   :  { %v7307_v30 = vmul.f32 -1.442695, %v6415_v62  ;;  %v6422_v60 = vadd.f32 %v6370_v58, %v5829_v17 }
0x22da   :  { %v6372_v51 = vpop.f32.mrf.mxu0  ;;  %v6412_v16 = vpop.f32.mrf.mxu1 }
0x22db   :  { %9333 = vpow2.f32 %v7307_v30  ;;  %v7308_v1 = vmul.f32 -1.442695, %v6422_v60 }
0x22dc   :  { %v6373_v7 = vpop.f32.mrf.mxu0  ;;  %v8564_v23 = vpop.f32.mrf.mxu1 }
0x22dd   :  { %9335 = vpow2.f32 %v7308_v1 }
0x22e8   :  { %v9334_v47 = vpop.eup %9333 }
0x22e9   :  { %v6419_v20 = vadd.f32 1.0, %v9334_v47 }
0x22ea   :  { %v9336_v53 = vpop.eup %9335 }
0x22eb   :  { %9337 = vrcp.f32 %v6419_v20  ;;  %v6426_v59 = vadd.f32 1.0, %v9336_v53  ;;  %v5833_v53 = vadd.f32 %v11697_v32, %v11737_v0 }
0x22f8   :  { %v9338_v25 = vpop.eup %9337 }
0x22f9   :  { %v6430_v3 = vmul.f32 %v9338_v25, %v6429_v33 }
0x22fb   :  { %v6431_v54 = vadd.f32 %v6430_v3, %v5898_v55 }
0x22fd   :  { %9339 = vtanh.f32 %v6431_v54 }
0x22fe   :  { %9341 = vrcp.f32 %v6426_v59 }
0x230a   :  { %v9340_v62 = vpop.eup %9339 }
0x230b   :  { %v6433_v14 = vsub.f32 %v11801_v61, %v9340_v62  ;;  %v9342_v58 = vpop.eup %9341  ;;  %v5831_v61 = vadd.f32 %v11695_v48, %v11725_v24 }
0x230d   :  { %v6434_v9 = vmul.f32 %v9342_v58, %v6433_v14 }
0x230f   :  { %v11852_v30 = vadd.f32 %v9340_v62, %v6434_v9  ;;  %v5901_v62 = vadd.f32 %v11705_v50, %v11747_v52 }
0x2311   :  { %7309 = vst [vmem:[%s12048_s5 + $0x10] sm:$0xff] %v11852_v30  ;;  %v6441_v26 = vpack.c.bf16 %v11852_v30, %v11852_v30 }
0x2313   :  { %6475 = vmatmul.mubr.bf16.vlgmr.msra.gmra.mxu0 %v6441_v26  ;;  %8582 = vmatmul.mubr.bf16.vlgmr.msra.gmra.mxu1 %v6441_v26 }
0x2314   :  { %6551 = vmatpush1.bf16.msra.mxu0 %v11557_v37  ;;  %8586 = vmatpush3.bf16.msra.mxu1 %v11597_v19 }
0x2315   :  { %6552 = vmatprep.subr.bf16.mxu0 %v11561_v22  ;;  %8587 = vmatprep.subr.bf16.mxu1 %v12069_v43 }
0x2316   :  { %6582 = vmatprep.mubr.bf16.mxu0 %v12070_v21  ;;  %8601 = vmatprep.mubr.msk.bf16.mxu1 %vm9564_vm0, %v12069_v43 }
0x2318   :  { %6553 = vmatpush1.bf16.msra.mxu0 %v11563_v2  ;;  %8588 = vmatpush3.bf16.msra.mxu1 %v11607_v6 }
0x2319   :  { %6554 = vmatprep.subr.bf16.mxu0 %v11567_v57  ;;  %8589 = vmatprep.subr.bf16.mxu1 %v12069_v43 }
0x231c   :  { %6555 = vmatpush1.bf16.msra.mxu0 %v11569_v39  ;;  %8590 = vmatpush3.bf16.msra.mxu1 %v11611_v8 }
0x231d   :  { %6556 = vmatprep.subr.bf16.mxu0 %v11573_v41  ;;  %8591 = vmatprep.subr.bf16.mxu1 %v12069_v43 }
0x2320   :  { %6557 = vmatpush1.bf16.msra.mxu0 %v11575_v36  ;;  %8592 = vmatpush3.bf16.msra.mxu1 %v11615_v34 }
0x2321   :  { %6558 = vmatprep.subr.bf16.mxu0 %v11579_v40  ;;  %8593 = vmatprep.subr.bf16.mxu1 %v12069_v43 }
0x2324   :  { %6559 = vmatpush1.bf16.msra.mxu0 %v11581_v4  ;;  %8594 = vmatpush3.bf16.msra.mxu1 %v11619_v29 }
0x2325   :  { %6560 = vmatprep.subr.bf16.mxu0 %v11585_v42  ;;  %8595 = vmatprep.subr.bf16.mxu1 %v12069_v43 }
0x2328   :  { %6561 = vmatpush1.bf16.msra.mxu0 %v11587_v12  ;;  %8596 = vmatpush3.bf16.msra.mxu1 %v11623_v35 }
0x2329   :  { %6562 = vmatprep.subr.bf16.mxu0 %v11591_v63  ;;  %8597 = vmatprep.subr.bf16.mxu1 %v12069_v43 }
0x232c   :  { %6563 = vmatpush1.bf16.msra.mxu0 %v11593_v45  ;;  %8598 = vmatpush3.bf16.msra.mxu1 %v11627_v46 }
0x232d   :  { %6564 = vmatprep.subr.bf16.mxu0 %v11595_v11  ;;  %8599 = vmatprep.subr.bf16.mxu1 %v12069_v43 }
0x2330   :  { %6565 = vmatpush1.bf16.msra.mxu0 %v11602_v44  ;;  %8600 = vmatpush3.bf16.msra.mxu1 %v11631_v49 }
0x2331   :  { %6658 = vmatprep.subr.bf16.mxu0 %v11555_v27  ;;  %8605 = vmatprep.subr.bf16.mxu1 %v12069_v43 }
0x23d3   :  { %v6476_v18 = vpop.f32.mrf.mxu0  ;;  %v6517_v51 = vpop.f32.mrf.mxu1 }
0x23d4   :  { %v6523_v16 = vadd.f32 %v6476_v18, %v5831_v61  ;;  %v6537_v54 = vadd.f32 %v11743_v38, %v6517_v51 }
0x23d5   :  { %v6478_v7 = vpop.f32.mrf.mxu0  ;;  %v8583_v23 = vpop.f32.mrf.mxu1 }
0x23d6   :  { %v7310_v17 = vmul.f32 -1.442695, %v6523_v16  ;;  %v6530_v33 = vadd.f32 %v6478_v7, %v5833_v53 }
0x23d7   :  { %v6480_v60 = vpop.f32.mrf.mxu0  ;;  %v6520_v1 = vpop.f32.mrf.mxu1 }
0x23d8   :  { %9343 = vpow2.f32 %v7310_v17  ;;  %v7311_v25 = vmul.f32 -1.442695, %v6530_v33 }
0x23d9   :  { %v6481_v47 = vpop.f32.mrf.mxu0  ;;  %v8584_v20 = vpop.f32.mrf.mxu1 }
0x23da   :  { %9345 = vpow2.f32 %v7311_v25  ;;  %v5839_v25 = vadd.f32 %v11703_v56, %v11737_v0 }
0x23e5   :  { %v9344_v55 = vpop.eup %9343 }
0x23e6   :  { %v6527_v3 = vadd.f32 1.0, %v9344_v55 }
0x23e7   :  { %v9346_v48 = vpop.eup %9345 }
0x23e8   :  { %9347 = vrcp.f32 %v6527_v3  ;;  %v6534_v9 = vadd.f32 1.0, %v9346_v48 }
0x23f5   :  { %v9348_v59 = vpop.eup %9347 }
0x23f6   :  { %v6538_v14 = vmul.f32 %v9348_v59, %v6537_v54 }
0x23f8   :  { %v6539_v58 = vadd.f32 %v6538_v14, %v5901_v62  ;;  %v5906_v62 = vadd.f32 %v11722_v15, %v11747_v52 }
0x23fa   :  { %9349 = vtanh.f32 %v6539_v58 }
0x23fb   :  { %9351 = vrcp.f32 %v6534_v9 }
0x2407   :  { %v9350_v26 = vpop.eup %9349 }
0x2408   :  { %v6541_v32 = vsub.f32 %v11852_v30, %v9350_v26  ;;  %v9352_v61 = vpop.eup %9351  ;;  %v5837_v30 = vadd.f32 %v11701_v28, %v11725_v24 }
0x240a   :  { %v6542_v18 = vmul.f32 %v9352_v61, %v6541_v32 }
0x240c   :  { %v11903_v16 = vadd.f32 %v9350_v26, %v6542_v18 }
0x240e   :  { %7312 = vst [vmem:[%s12048_s5 + $0x18] sm:$0xff] %v11903_v16  ;;  %v6549_v50 = vpack.c.bf16 %v11903_v16, %v11903_v16 }
0x2410   :  { %6583 = vmatmul.mubr.bf16.vlgmr.msra.gmra.mxu0 %v6549_v50  ;;  %8602 = vmatmul.mubr.bf16.vlgmr.msra.gmra.mxu1 %v6549_v50 }
0x2411   :  { %6659 = vmatpush1.bf16.msra.mxu0 %v11557_v37  ;;  %8606 = vmatpush3.bf16.msra.mxu1 %v11597_v19 }
0x2412   :  { %6660 = vmatprep.subr.bf16.mxu0 %v11561_v22  ;;  %8607 = vmatprep.subr.bf16.mxu1 %v12069_v43 }
0x2413   :  { %6690 = vmatprep.mubr.bf16.mxu0 %v12070_v21  ;;  %8621 = vmatprep.mubr.msk.bf16.mxu1 %vm9564_vm0, %v12069_v43 }
0x2415   :  { %6661 = vmatpush1.bf16.msra.mxu0 %v11563_v2  ;;  %8608 = vmatpush3.bf16.msra.mxu1 %v11607_v6 }
0x2416   :  { %6662 = vmatprep.subr.bf16.mxu0 %v11567_v57  ;;  %8609 = vmatprep.subr.bf16.mxu1 %v12069_v43 }
0x2419   :  { %6663 = vmatpush1.bf16.msra.mxu0 %v11569_v39  ;;  %8610 = vmatpush3.bf16.msra.mxu1 %v11611_v8 }
0x241a   :  { %6664 = vmatprep.subr.bf16.mxu0 %v11573_v41  ;;  %8611 = vmatprep.subr.bf16.mxu1 %v12069_v43 }
0x241d   :  { %6665 = vmatpush1.bf16.msra.mxu0 %v11575_v36  ;;  %8612 = vmatpush3.bf16.msra.mxu1 %v11615_v34 }
0x241e   :  { %6666 = vmatprep.subr.bf16.mxu0 %v11579_v40  ;;  %8613 = vmatprep.subr.bf16.mxu1 %v12069_v43 }
0x2421   :  { %6667 = vmatpush1.bf16.msra.mxu0 %v11581_v4  ;;  %8614 = vmatpush3.bf16.msra.mxu1 %v11619_v29 }
0x2422   :  { %6668 = vmatprep.subr.bf16.mxu0 %v11585_v42  ;;  %8615 = vmatprep.subr.bf16.mxu1 %v12069_v43 }
0x2425   :  { %6669 = vmatpush1.bf16.msra.mxu0 %v11587_v12  ;;  %8616 = vmatpush3.bf16.msra.mxu1 %v11623_v35 }
0x2426   :  { %6670 = vmatprep.subr.bf16.mxu0 %v11591_v63  ;;  %8617 = vmatprep.subr.bf16.mxu1 %v12069_v43 }
0x2429   :  { %6671 = vmatpush1.bf16.msra.mxu0 %v11593_v45  ;;  %8618 = vmatpush3.bf16.msra.mxu1 %v11627_v46 }
0x242a   :  { %6672 = vmatprep.subr.bf16.mxu0 %v11595_v11  ;;  %8619 = vmatprep.subr.bf16.mxu1 %v12069_v43 }
0x242d   :  { %6673 = vmatpush1.bf16.msra.mxu0 %v11602_v44  ;;  %8620 = vmatpush3.bf16.msra.mxu1 %v11631_v49 }
0x242e   :  { %6766 = vmatprep.subr.bf16.mxu0 %v11555_v27  ;;  %8625 = vmatprep.subr.bf16.mxu1 %v12069_v43 }
0x24d0   :  { %v6584_v51 = vpop.f32.mrf.mxu0  ;;  %v6625_v7 = vpop.f32.mrf.mxu1 }
0x24d1   :  { %v6631_v23 = vadd.f32 %v6584_v51, %v5837_v30  ;;  %v6645_v54 = vadd.f32 %v11743_v38, %v6625_v7  ;;  %v9491_v7 = vld [vmem:[#allocation7 + $0x3a8] ss:$12 sps:$4 sm:$0xff]  }
0x24d2   :  { %v6586_v17 = vpop.f32.mrf.mxu0  ;;  %v8603_v60 = vpop.f32.mrf.mxu1 }
0x24d3   :  { %v7313_v1 = vmul.f32 -1.442695, %v6631_v23  ;;  %v6638_v27 = vadd.f32 %v6586_v17, %v5839_v25  ;;  %v9492_v23 = vld [vmem:[#allocation7 + $0x3b0] ss:$12 sps:$4 sm:$0xff]   ;;  %v9493_v17 = vld [vmem:[#allocation7 + $0x394] ss:$12 sps:$4 sm:$0xff]  }
0x24d4   :  { %v6588_v47 = vpop.f32.mrf.mxu0  ;;  %v6628_v20 = vpop.f32.mrf.mxu1  ;;  %v9494_v60 = vld [vmem:[#allocation7 + $0x390] ss:$12 sps:$4 sm:$0xff]   ;;  %v9501_v25 = vld [vmem:[#allocation7 + $0x368] ss:$12 sps:$4 sm:$0xff]  }
0x24d5   :  { %9353 = vpow2.f32 %v7313_v1  ;;  %v7314_v55 = vmul.f32 -1.442695, %v6638_v27  ;;  %v9495_v1 = vld [vmem:[#allocation7 + $0x398] ss:$12 sps:$4 sm:$0xff]   ;;  %v9496_v47 = vld [vmem:[#allocation7 + $0x37c] ss:$12 sps:$4 sm:$0xff]  }
0x24d6   :  { %v6589_v53 = vpop.f32.mrf.mxu0  ;;  %v8604_v33 = vpop.f32.mrf.mxu1  ;;  %v9497_v20 = vld [vmem:[#allocation7 + $0x378] ss:$12 sps:$4 sm:$0xff]  }
0x24d7   :  { %9355 = vpow2.f32 %v7314_v55  ;;  %v9498_v53 = vld [vmem:[#allocation7 + $0x380] ss:$12 sps:$4 sm:$0xff]   ;;  %v9499_v33 = vld [vmem:[#allocation7 + $0x364] ss:$12 sps:$4 sm:$0xff]   ;;  %v9503_v55 = vld [vmem:[#allocation7 + $0x348] ss:$12 sps:$4 sm:$0xff]  }
0x24d8   :  { %v9502_v27 = vld [vmem:[#allocation7 + $0x34c] ss:$12 sps:$4 sm:$0xff]  }
0x24e2   :  { %v9354_v3 = vpop.eup %9353 }
0x24e3   :  { %v6635_v48 = vadd.f32 1.0, %v9354_v3  ;;  %v9504_v3 = vld [vmem:[#allocation7 + $0x350] ss:$12 sps:$4 sm:$0xff]  }
0x24e4   :  { %v9356_v28 = vpop.eup %9355 }
0x24e5   :  { %9357 = vrcp.f32 %v6635_v48  ;;  %v6642_v9 = vadd.f32 1.0, %v9356_v28  ;;  %v9505_v48 = vld [vmem:[#allocation7 + $0x334] ss:$12 sps:$4 sm:$0xff]   ;;  %v9506_v28 = vld [vmem:[#allocation7 + $0x330] ss:$12 sps:$4 sm:$0xff]  }
0x24f2   :  { %v9358_v59 = vpop.eup %9357 }
0x24f3   :  { %v6646_v14 = vmul.f32 %v9358_v59, %v6645_v54  ;;  %v9507_v54 = vld [vmem:[#allocation7 + $0x338] ss:$12 sps:$4 sm:$0xff]   ;;  %v9508_v59 = vld [vmem:[#allocation7 + $0x31c] ss:$12 sps:$4 sm:$0xff]  }
0x24f5   :  { %v6647_v58 = vadd.f32 %v6646_v14, %v5906_v62  ;;  %v9509_v62 = vld [vmem:[#allocation7 + $0x318] ss:$12 sps:$4 sm:$0xff]   ;;  %v9510_v14 = vld [vmem:[#allocation7 + $0x320] ss:$12 sps:$4 sm:$0xff]  }
0x24f7   :  { %9359 = vtanh.f32 %v6647_v58  ;;  %v9511_v58 = vld [vmem:[#allocation7 + $0x304] ss:$12 sps:$4 sm:$0xff]  }
0x24f8   :  { %9361 = vrcp.f32 %v6642_v9  ;;  %v9512_v9 = vld [vmem:[#allocation7 + $0x300] ss:$12 sps:$4 sm:$0xff]  }
0x2504   :  { %v9360_v26 = vpop.eup %9359 }
0x2505   :  { %v6649_v56 = vsub.f32 %v11903_v16, %v9360_v26  ;;  %v9362_v32 = vpop.eup %9361 }
0x2507   :  { %v6650_v61 = vmul.f32 %v9362_v32, %v6649_v56  ;;  %v5847_v56 = vadd.f32 %v11716_v31, %v11725_v24 }
0x2509   :  { %v11954_v18 = vadd.f32 %v9360_v26, %v6650_v61  ;;  %v9513_v26 = vld [vmem:[#allocation7 + $0x308] ss:$12 sps:$4 sm:$0xff]  }
0x250b   :  { %7315 = vst [vmem:[%s12048_s5 + $0x20] sm:$0xff] %v11954_v18  ;;  %v6657_v15 = vpack.c.bf16 %v11954_v18, %v11954_v18 }
0x250d   :  { %6691 = vmatmul.mubr.bf16.vlgmr.msra.gmra.mxu0 %v6657_v15  ;;  %8622 = vmatmul.mubr.bf16.vlgmr.msra.gmra.mxu1 %v6657_v15 }
0x250e   :  { %6767 = vmatpush1.bf16.msra.mxu0 %v11557_v37  ;;  %8626 = vmatpush3.bf16.msra.mxu1 %v11597_v19  ;;  %v9490_v37 = vld [vmem:[#allocation7 + $0x3ac] ss:$12 sps:$4 sm:$0xff]  }
0x250f   :  { %6768 = vmatprep.subr.bf16.mxu0 %v11561_v22  ;;  %8627 = vmatprep.subr.bf16.mxu1 %v12069_v43  ;;  %v5841_v22 = vadd.f32 %v11707_v13, %v11725_v24 }
0x2510   :  { %6798 = vmatprep.mubr.bf16.mxu0 %v12070_v21  ;;  %8641 = vmatprep.mubr.msk.bf16.mxu1 %vm9564_vm0, %v12069_v43 }
0x2512   :  { %6769 = vmatpush1.bf16.msra.mxu0 %v11563_v2  ;;  %8628 = vmatpush3.bf16.msra.mxu1 %v11607_v6 }
0x2513   :  { %6770 = vmatprep.subr.bf16.mxu0 %v11567_v57  ;;  %8629 = vmatprep.subr.bf16.mxu1 %v12069_v43 }
0x2516   :  { %6771 = vmatpush1.bf16.msra.mxu0 %v11569_v39  ;;  %8630 = vmatpush3.bf16.msra.mxu1 %v11611_v8 }
0x2517   :  { %6772 = vmatprep.subr.bf16.mxu0 %v11573_v41  ;;  %8631 = vmatprep.subr.bf16.mxu1 %v12069_v43 }
0x251a   :  { %6773 = vmatpush1.bf16.msra.mxu0 %v11575_v36  ;;  %8632 = vmatpush3.bf16.msra.mxu1 %v11615_v34 }
0x251b   :  { %6774 = vmatprep.subr.bf16.mxu0 %v11579_v40  ;;  %8633 = vmatprep.subr.bf16.mxu1 %v12069_v43 }
0x251e   :  { %6775 = vmatpush1.bf16.msra.mxu0 %v11581_v4  ;;  %8634 = vmatpush3.bf16.msra.mxu1 %v11619_v29 }
0x251f   :  { %6776 = vmatprep.subr.bf16.mxu0 %v11585_v42  ;;  %8635 = vmatprep.subr.bf16.mxu1 %v12069_v43 }
0x2522   :  { %6777 = vmatpush1.bf16.msra.mxu0 %v11587_v12  ;;  %8636 = vmatpush3.bf16.msra.mxu1 %v11623_v35  ;;  %v5909_v35 = vadd.f32 %v11733_v5, %v11747_v52 }
0x2523   :  { %6778 = vmatprep.subr.bf16.mxu0 %v11591_v63  ;;  %8637 = vmatprep.subr.bf16.mxu1 %v12069_v43 }
0x2526   :  { %6779 = vmatpush1.bf16.msra.mxu0 %v11593_v45  ;;  %8638 = vmatpush3.bf16.msra.mxu1 %v11627_v46  ;;  %v5843_v45 = vadd.f32 %v11711_v10, %v11737_v0 }
0x2527   :  { %6780 = vmatprep.subr.bf16.mxu0 %v11595_v11  ;;  %8639 = vmatprep.subr.bf16.mxu1 %v12069_v43 }
0x252a   :  { %6781 = vmatpush1.bf16.msra.mxu0 %v11602_v44  ;;  %8640 = vmatpush3.bf16.msra.mxu1 %v11631_v49 }
0x252b   :  { %6874 = vmatprep.subr.bf16.mxu0 %v9490_v37  ;;  %8645 = vmatprep.subr.bf16.mxu1 %v12069_v43 }
0x25cd   :  { %v6692_v2 = vpop.f32.mrf.mxu0  ;;  %v6733_v57 = vpop.f32.mrf.mxu1 }
0x25ce   :  { %v6739_v39 = vadd.f32 %v6692_v2, %v5841_v22  ;;  %v6753_v34 = vadd.f32 %v11743_v38, %v6733_v57 }
0x25cf   :  { %v6694_v41 = vpop.f32.mrf.mxu0  ;;  %v8623_v36 = vpop.f32.mrf.mxu1 }
0x25d0   :  { %v7316_v40 = vmul.f32 -1.442695, %v6739_v39  ;;  %v6746_v11 = vadd.f32 %v6694_v41, %v5843_v45 }
0x25d1   :  { %v6696_v4 = vpop.f32.mrf.mxu0  ;;  %v6736_v42 = vpop.f32.mrf.mxu1 }
0x25d2   :  { %9363 = vpow2.f32 %v7316_v40  ;;  %v7317_v19 = vmul.f32 -1.442695, %v6746_v11  ;;  %v12122_v11 = vld [vmem:[#allocation16_spill] sm:$0xff] }
0x25d3   :  { %v6697_v12 = vpop.f32.mrf.mxu0  ;;  %v8624_v63 = vpop.f32.mrf.mxu1 }
0x25d4   :  { %9365 = vpow2.f32 %v7317_v19  ;;  %v5914_v19 = vadd.f32 %v12122_v11, %v11747_v52 }
0x25df   :  { %v9364_v44 = vpop.eup %9363 }
0x25e0   :  { %v6743_v6 = vadd.f32 1.0, %v9364_v44 }
0x25e1   :  { %v9366_v8 = vpop.eup %9365 }
0x25e2   :  { %9367 = vrcp.f32 %v6743_v6  ;;  %v6750_v13 = vadd.f32 1.0, %v9366_v8 }
0x25ef   :  { %v9368_v29 = vpop.eup %9367 }
0x25f0   :  { %v6754_v46 = vmul.f32 %v9368_v29, %v6753_v34 }
0x25f2   :  { %v6755_v49 = vadd.f32 %v6754_v46, %v5909_v35 }
0x25f4   :  { %9369 = vtanh.f32 %v6755_v49 }
0x25f5   :  { %9371 = vrcp.f32 %v6750_v13 }
0x2601   :  { %v9370_v16 = vpop.eup %9369 }
0x2602   :  { %v6757_v10 = vsub.f32 %v11954_v18, %v9370_v16  ;;  %v9372_v50 = vpop.eup %9371 }
0x2604   :  { %v6758_v30 = vmul.f32 %v9372_v50, %v6757_v10 }
0x2606   :  { %v12004_v51 = vadd.f32 %v9370_v16, %v6758_v30  ;;  %v12123_v16 = vld [vmem:[#allocation17_spill] sm:$0xff] }
0x2607   :  { %v5851_v10 = vadd.f32 %v12123_v16, %v11725_v24 }
0x2608   :  { %7318 = vst [vmem:[%s12048_s5 + $0x28] sm:$0xff] %v12004_v51  ;;  %v6765_v5 = vpack.c.bf16 %v12004_v51, %v12004_v51 }
0x260a   :  { %6799 = vmatmul.mubr.bf16.vlgmr.msra.gmra.mxu0 %v6765_v5  ;;  %8642 = vmatmul.mubr.bf16.vlgmr.msra.gmra.mxu1 %v6765_v5 }
0x260b   :  { %6875 = vmatpush1.bf16.msra.mxu0 %v9491_v7  ;;  %8646 = vmatpush3.bf16.msra.mxu1 %v9492_v23 }
0x260c   :  { %6876 = vmatprep.subr.bf16.mxu0 %v9493_v17  ;;  %8647 = vmatprep.subr.bf16.mxu1 %v12069_v43 }
0x260d   :  { %6906 = vmatprep.mubr.bf16.mxu0 %v12070_v21  ;;  %8661 = vmatprep.mubr.msk.bf16.mxu1 %vm9564_vm0, %v12069_v43  ;;  %v9500_v21 = vld [vmem:[#allocation7 + $0x360] ss:$12 sps:$4 sm:$0xff]  }
0x260f   :  { %6877 = vmatpush1.bf16.msra.mxu0 %v9494_v60  ;;  %8648 = vmatpush3.bf16.msra.mxu1 %v9495_v1 }
0x2610   :  { %6878 = vmatprep.subr.bf16.mxu0 %v9496_v47  ;;  %8649 = vmatprep.subr.bf16.mxu1 %v12069_v43 }
0x2613   :  { %6879 = vmatpush1.bf16.msra.mxu0 %v9497_v20  ;;  %8650 = vmatpush3.bf16.msra.mxu1 %v9498_v53  ;;  %v12124_v20 = vld [vmem:[#allocation18_spill] sm:$0xff] }
0x2614   :  { %6880 = vmatprep.subr.bf16.mxu0 %v9499_v33  ;;  %8651 = vmatprep.subr.bf16.mxu1 %v12069_v43  ;;  %v5853_v53 = vadd.f32 %v12124_v20, %v11737_v0 }
0x2617   :  { %6881 = vmatpush1.bf16.msra.mxu0 %v9500_v21  ;;  %8652 = vmatpush3.bf16.msra.mxu1 %v9501_v25 }
0x2618   :  { %6882 = vmatprep.subr.bf16.mxu0 %v9502_v27  ;;  %8653 = vmatprep.subr.bf16.mxu1 %v12069_v43 }
0x261b   :  { %6883 = vmatpush1.bf16.msra.mxu0 %v9503_v55  ;;  %8654 = vmatpush3.bf16.msra.mxu1 %v9504_v3 }
0x261c   :  { %6884 = vmatprep.subr.bf16.mxu0 %v9505_v48  ;;  %8655 = vmatprep.subr.bf16.mxu1 %v12069_v43  ;;  %v12125_v48 = vld [vmem:[#allocation13_spill] sm:$0xff] }
0x261f   :  { %6885 = vmatpush1.bf16.msra.mxu0 %v9506_v28  ;;  %8656 = vmatpush3.bf16.msra.mxu1 %v9507_v54  ;;  %v5917_v28 = vadd.f32 %v12125_v48, %v11747_v52 }
0x2620   :  { %6886 = vmatprep.subr.bf16.mxu0 %v9508_v59  ;;  %8657 = vmatprep.subr.bf16.mxu1 %v12069_v43 }
0x2623   :  { %6887 = vmatpush1.bf16.msra.mxu0 %v9509_v62  ;;  %8658 = vmatpush3.bf16.msra.mxu1 %v9510_v14 }
0x2624   :  { %6888 = vmatprep.subr.bf16.mxu0 %v9511_v58  ;;  %8659 = vmatprep.subr.bf16.mxu1 %v12069_v43  ;;  %v12121_v43 = vld [vmem:[#allocation14_spill] sm:$0xff] }
0x2625   :  { %v5849_v36 = vadd.f32 %v12121_v43, %v11737_v0 }
0x2627   :  { %6889 = vmatpush1.bf16.msra.mxu0 %v9512_v9  ;;  %8660 = vmatpush3.bf16.msra.mxu1 %v9513_v26 }
0x26ca   :  { %v6800_v32 = vpop.f32.mrf.mxu0  ;;  %v6841_v61 = vpop.f32.mrf.mxu1 }
0x26cb   :  { %v6847_v18 = vadd.f32 %v6800_v32, %v5847_v56  ;;  %v6861_v63 = vadd.f32 %v11743_v38, %v6841_v61 }
0x26cc   :  { %v6802_v15 = vpop.f32.mrf.mxu0  ;;  %v8643_v37 = vpop.f32.mrf.mxu1 }
0x26cd   :  { %v7319_v22 = vmul.f32 -1.442695, %v6847_v18  ;;  %v6854_v40 = vadd.f32 %v6802_v15, %v5849_v36 }
0x26ce   :  { %v6804_v2 = vpop.f32.mrf.mxu0  ;;  %v6844_v57 = vpop.f32.mrf.mxu1 }
0x26cf   :  { %9373 = vpow2.f32 %v7319_v22  ;;  %v7320_v4 = vmul.f32 -1.442695, %v6854_v40 }
0x26d0   :  { %v6805_v39 = vpop.f32.mrf.mxu0  ;;  %v8644_v41 = vpop.f32.mrf.mxu1 }
0x26d1   :  { %9375 = vpow2.f32 %v7320_v4 }
0x26dc   :  { %v9374_v42 = vpop.eup %9373 }
0x26dd   :  { %v6851_v12 = vadd.f32 1.0, %v9374_v42 }
0x26de   :  { %v9376_v31 = vpop.eup %9375 }
0x26df   :  { %9377 = vrcp.f32 %v6851_v12  ;;  %v6858_v8 = vadd.f32 1.0, %v9376_v31 }
0x26ec   :  { %v9378_v45 = vpop.eup %9377 }
0x26ed   :  { %v6862_v44 = vmul.f32 %v9378_v45, %v6861_v63 }
0x26ef   :  { %v6863_v6 = vadd.f32 %v6862_v44, %v5914_v19 }
0x26f1   :  { %9379 = vtanh.f32 %v6863_v6 }
0x26f2   :  { %9381 = vrcp.f32 %v6858_v8 }
0x26fe   :  { %v9380_v34 = vpop.eup %9379 }
0x26ff   :  { %v6865_v29 = vsub.f32 %v12004_v51, %v9380_v34  ;;  %v9382_v35 = vpop.eup %9381 }
0x2701   :  { %v6866_v46 = vmul.f32 %v9382_v35, %v6865_v29 }
0x2703   :  { %v6867_v49 = vadd.f32 %v9380_v34, %v6866_v46 }
0x2705   :  { %7321 = vst [vmem:[%s12048_s5 + $0x30] sm:$0xff] %v6867_v49  ;;  %v6873_v13 = vpack.c.bf16 %v6867_v49, %v6867_v49 }
0x2707   :  { %6907 = vmatmul.mubr.bf16.vlgmr.msra.gmra.mxu0 %v6873_v13  ;;  %8662 = vmatmul.mubr.bf16.vlgmr.msra.gmra.mxu1 %v6873_v13 }
0x27c7   :  { %v6908_v50 = vpop.f32.mrf.mxu0  ;;  %v6949_v30 = vpop.f32.mrf.mxu1 }
0x27c8   :  { %v6955_v5 = vadd.f32 %v6908_v50, %v5851_v10  ;;  %v6969_v55 = vadd.f32 %v11743_v38, %v6949_v30 }
0x27c9   :  { %v6910_v7 = vpop.f32.mrf.mxu0  ;;  %v8663_v23 = vpop.f32.mrf.mxu1 }
0x27ca   :  { %v7322_v17 = vmul.f32 -1.442695, %v6955_v5  ;;  %v6962_v33 = vadd.f32 %v6910_v7, %v5853_v53 }
0x27cb   :  { %v6912_v51 = vpop.f32.mrf.mxu0  ;;  %v6952_v60 = vpop.f32.mrf.mxu1 }
0x27cc   :  { %9383 = vpow2.f32 %v7322_v17  ;;  %v7323_v21 = vmul.f32 -1.442695, %v6962_v33 }
0x27cd   :  { %v6913_v1 = vpop.f32.mrf.mxu0  ;;  %v8664_v47 = vpop.f32.mrf.mxu1 }
0x27ce   :  { %9385 = vpow2.f32 %v7323_v21 }
0x27d9   :  { %v9384_v25 = vpop.eup %9383 }
0x27da   :  { %v6959_v27 = vadd.f32 1.0, %v9384_v25 }
0x27db   :  { %v9386_v24 = vpop.eup %9385 }
0x27dc   :  { %9387 = vrcp.f32 %v6959_v27  ;;  %v6966_v62 = vadd.f32 1.0, %v9386_v24 }
0x27e9   :  { %v9388_v3 = vpop.eup %9387 }
0x27ea   :  { %v6970_v54 = vmul.f32 %v9388_v3, %v6969_v55 }
0x27ec   :  { %v6971_v59 = vadd.f32 %v6970_v54, %v5917_v28 }
0x27ee   :  { %9389 = vtanh.f32 %v6971_v59 }
0x27ef   :  { %9391 = vrcp.f32 %v6966_v62 }
0x27fb   :  { %v9390_v14 = vpop.eup %9389 }
0x27fc   :  { %v6973_v0 = vsub.f32 %v6867_v49, %v9390_v14  ;;  %v9392_v58 = vpop.eup %9391 }
0x27fe   :  { %v6974_v9 = vmul.f32 %v9392_v58, %v6973_v0 }
0x2800   :  { %v6975_v26 = vadd.f32 %v9390_v14, %v6974_v9 }
0x2802   :  { %7324 = vst [vmem:[%s12048_s5 + $0x38] sm:$0xff] %v6975_v26 }
0x2803   :  { %6983 = vsyncpa [#allocation6], 1 }
0x2804   :  { %6984 = vsyncpa [#allocation8], 1 }

</bundles_post_ra>
